<compile_context>
chip_gen: v7x
topology: tpu7x:2x2x1
jax: 0.10.0
libtpu: 0.0.40
codegen_flags: <defaults>
</compile_context>

<pallas_src>
import math
from functools import partial

import jax
import jax.numpy as jnp
from jax import lax
from jax.experimental import pallas as pl
from jax.experimental.pallas import tpu as pltpu

C1_OUT, C2_OUT, C3_OUT = 32, 64, 64          # real channel counts (never padded)


# ---------------------------------------------------------------------------
# Fused kernel: conv1 -> conv2 -> conv3 -> global average pool, IMG images/step.
# ---------------------------------------------------------------------------
def _canonical_fused_kernel(p1_ref, w1_ref, b1_ref, w2_ref, b2_ref, w3_ref, b3_ref,
                            o_ref, a1_ref, a2_ref, *, dims):
    """Layouts (img = image index within the step, innermost M dim everywhere):
         p1  : (OH1*OW1*IMG, 16)   rows ordered (row-parity-pos, col-parity-pos, img)
         a1  : (OH1, OW1*IMG, 32)  bf16 scratch, both spatial axes parity-ordered
         a2  : (OH2, OW2*IMG, 64)  bf16 scratch
         out : (IMG, 64)
    """
    IMG, OH1, OW1, OH2, OW2, OH3, OW3 = dims
    EH1, EW1 = (OH1 + 1) // 2, (OW1 + 1) // 2   # sizes of the "even" parity blocks
    f32 = jnp.float32

    # ---------------- conv1 (4x4 s2): one matmul over all IMG images --------------
    a1 = jnp.dot(p1_ref[0], w1_ref[...], preferred_element_type=f32)     # (M1, 32)
    a1 = jnp.maximum(a1 + b1_ref[...], 0.0).astype(jnp.bfloat16)
    a1_ref[...] = a1.reshape(OH1, OW1 * IMG, C1_OUT)

    # ---------------- conv2 (4x4 s2): whole-layer im2col + one matmul --------------
    # a1 is stored with both spatial axes in parity order (even positions first) and
    # img innermost, so all 16 stride-2 taps are contiguous, aligned slices.
    taps2 = []
    for kh in range(4):
        r0 = EH1 * (kh % 2) + kh // 2
        for kw in range(4):
            c0 = (EW1 * (kw % 2) + kw // 2) * IMG
            taps2.append(a1_ref[r0:r0 + OH2, c0:c0 + OW2 * IMG, :])      # (OH2, OW2*IMG, 32)
    pat2 = jnp.concatenate(taps2, axis=2)                                # (OH2, OW2*IMG, 512)
    pat2 = pat2.reshape(OH2 * OW2 * IMG, 16 * C1_OUT)                    # K = 512 (no pad)
    a2 = jnp.dot(pat2, w2_ref[...], preferred_element_type=f32)          # (M2, 64)
    a2 = jnp.maximum(a2 + b2_ref[...], 0.0).astype(jnp.bfloat16)
    a2_ref[...] = a2.reshape(OH2, OW2 * IMG, C2_OUT)

    # ---------------- conv3 (3x3 s1) + fused global average pool -------------------
    taps3 = []
    for kh in range(3):
        for kw in range(3):
            taps3.append(a2_ref[kh:kh + OH3, kw * IMG:(kw + OW3) * IMG, :])  # (OH3, OW3*IMG, 64)
    pat3 = jnp.concatenate(taps3, axis=2)                                # (OH3, OW3*IMG, 576)
    pat3 = pat3.reshape(OH3 * OW3 * IMG, 9 * C2_OUT)                     # K = 576 (no pad)
    a3 = jnp.dot(pat3, w3_ref[...], preferred_element_type=f32)          # (M3, 64)
    a3 = jnp.maximum(a3 + b3_ref[...], 0.0)
    pooled = jnp.sum(a3.reshape(OH3 * OW3, IMG, C3_OUT), axis=0)         # (IMG, 64)
    o_ref[0] = pooled * (1.0 / float(OH3 * OW3))


# ---------------------------------------------------------------------------
# Wrapper
# ---------------------------------------------------------------------------
@jax.jit
def _canonical_forward_impl(x_nchw, w1, b1, w2, b2, w3, b3):
    B, Cin, H, W = x_nchw.shape
    assert Cin == 1, "canonical backbone expects a single input channel"
    OH1, OW1 = (H - 4) // 2 + 1, (W - 4) // 2 + 1
    OH2, OW2 = (OH1 - 4) // 2 + 1, (OW1 - 4) // 2 + 1
    OH3, OW3 = OH2 - 2, OW2 - 2
    assert OH3 >= 1 and OW3 >= 1, "input too small for the canonical backbone"

    # Images per grid step: 16 makes every in-kernel reshape bf16-tile aligned and
    # gives conv2 M = 576 / conv3 M = 256; fall back to 8 for tiny batches.
    IMG = 16 if B >= 16 else 8
    B_pad = -(-B // IMG) * IMG
    G = B_pad // IMG

    # ---- conv1 im2col in the wrapper (16 taps, Cin == 1, tiny), shipped as bf16 ----
    x = x_nchw.reshape(B, H, W)                        # Cin == 1 -> metadata-only
    taps = [x[:, kh:kh + 2 * OH1 - 1:2, kw:kw + 2 * OW1 - 1:2]
            for kh in range(4) for kw in range(4)]
    pat = jnp.stack(taps, axis=-1)                     # (B, OH1, OW1, 16)
    # Parity-reorder both spatial axes (even positions first) so conv2's stride-2
    # gathers inside the kernel become contiguous slices.
    pat = jnp.concatenate([pat[:, 0::2], pat[:, 1::2]], axis=1)
    pat = jnp.concatenate([pat[:, :, 0::2], pat[:, :, 1::2]], axis=2)
    pat = jnp.pad(pat, ((0, B_pad - B), (0, 0), (0, 0), (0, 0)))
    # (B_pad, OH1, OW1, 16) -> (G, OH1*OW1*IMG, 16), img as the innermost M dim.
    p1 = (pat.reshape(G, IMG, OH1, OW1, 16)
             .transpose(0, 2, 3, 1, 4)
             .reshape(G, OH1 * OW1 * IMG, 16)
             .astype(jnp.bfloat16))

    # ---- weights: flatten taps, real channel counts (no 128 padding), bf16 ----
    w1m = w1.reshape(4 * 4 * 1, C1_OUT).astype(jnp.bfloat16)          # (16, 32)
    w2m = w2.reshape(4 * 4 * C1_OUT, C2_OUT).astype(jnp.bfloat16)     # (512, 64)
    w3m = w3.reshape(3 * 3 * C2_OUT, C3_OUT).astype(jnp.bfloat16)     # (576, 64)
    b1m = b1.reshape(1, C1_OUT).astype(jnp.float32)
    b2m = b2.reshape(1, C2_OUT).astype(jnp.float32)
    b3m = b3.reshape(1, C3_OUT).astype(jnp.float32)

    kernel = partial(_canonical_fused_kernel,
                     dims=(IMG, OH1, OW1, OH2, OW2, OH3, OW3))

    out = pl.pallas_call(
        kernel,
        out_shape=jax.ShapeDtypeStruct((G, IMG, C3_OUT), jnp.float32),
        grid=(G,),
        in_specs=[
            pl.BlockSpec((1, OH1 * OW1 * IMG, 16), lambda g: (g, 0, 0)),
            pl.BlockSpec((4 * 4 * 1, C1_OUT), lambda g: (0, 0)),
            pl.BlockSpec((1, C1_OUT), lambda g: (0, 0)),
            pl.BlockSpec((4 * 4 * C1_OUT, C2_OUT), lambda g: (0, 0)),
            pl.BlockSpec((1, C2_OUT), lambda g: (0, 0)),
            pl.BlockSpec((3 * 3 * C2_OUT, C3_OUT), lambda g: (0, 0)),
            pl.BlockSpec((1, C3_OUT), lambda g: (0, 0)),
        ],
        out_specs=pl.BlockSpec((1, IMG, C3_OUT), lambda g: (g, 0, 0)),
        scratch_shapes=[
            pltpu.VMEM((OH1, OW1 * IMG, C1_OUT), jnp.bfloat16),   # conv1 activation
            pltpu.VMEM((OH2, OW2 * IMG, C2_OUT), jnp.bfloat16),   # conv2 activation
        ],
        compiler_params=pltpu.CompilerParams(
            dimension_semantics=("parallel",)),
    )(p1, w1m, b1m, w2m, b2m, w3m, b3m)

    return out.reshape(B_pad, C3_OUT)[:B]


# ---------------------------------------------------------------------------
# Pure-JAX reference (f32) of the PyTorch module, for a correctness check.
# ---------------------------------------------------------------------------
def _reference_forward(x, w1, b1, w2, b2, w3, b3):
    dn = ("NCHW", "HWIO", "NCHW")
    y = lax.conv_general_dilated(x, w1, (2, 2), "VALID", dimension_numbers=dn)
    y = jax.nn.relu(y + b1.reshape(1, -1, 1, 1))
    y = lax.conv_general_dilated(y, w2, (2, 2), "VALID", dimension_numbers=dn)
    y = jax.nn.relu(y + b2.reshape(1, -1, 1, 1))
    y = lax.conv_general_dilated(y, w3, (1, 1), "VALID", dimension_numbers=dn)
    y = jax.nn.relu(y + b3.reshape(1, -1, 1, 1))
    return jnp.mean(y, axis=(2, 3))


# ---------------------------------------------------------------------------
# Parameter init (deterministic, PyTorch-like uniform(-1/sqrt(fan_in), ...))
# ---------------------------------------------------------------------------
def init_conv_params(key, kh, kw, cin, cout):
    wkey, bkey = jax.random.split(key)
    fan_in = cin * kh * kw
    bound = 1.0 / math.sqrt(fan_in)
    w = jax.random.uniform(wkey, (kh, kw, cin, cout), jnp.float32, -bound, bound)
    b = jax.random.uniform(bkey, (cout,), jnp.float32, -bound, bound)
    return w, b


def init_canonical_params(key, output_dim=64):
    res = int(math.isqrt(output_dim // 64))
    assert res * res * 64 == output_dim, "canonical backbone resolution error"
    k1, k2, k3 = jax.random.split(key, 3)
    return {"conv1": init_conv_params(k1, 4, 4, 1, 32),
            "conv2": init_conv_params(k2, 4, 4, 32, 64),
            "conv3": init_conv_params(k3, 3, 3, 64, 64),
            "res": res}


def canonical_forward(params, x_nchw):
    # TODO(synk): AdaptiveAvgPool2d with res > 1 (output_dim > 64) not implemented.
    assert params["res"] == 1
    (w1, b1), (w2, b2), (w3, b3) = params["conv1"], params["conv2"], params["conv3"]
    return _canonical_forward_impl(x_nchw, w1, b1, w2, b2, w3, b3)


if __name__ == "__main__":
    key = jax.random.PRNGKey(0)
    pkey, xkey = jax.random.split(key)

    params = init_canonical_params(pkey, output_dim=64)
    # NCHW, 1 input channel, 32x32 spatial (valid for all three convs).
    x = jax.random.normal(xkey, (2, 1, 32, 32), dtype=jnp.float32)

    out = canonical_forward(params, x)
    out = jax.block_until_ready(out)
    assert out.shape == (2, 64), out.shape
    assert bool(jnp.all(jnp.isfinite(out)))

    (w1, b1), (w2, b2), (w3, b3) = params["conv1"], params["conv2"], params["conv3"]
    ref = _reference_forward(x, w1, b1, w2, b2, w3, b3)
    max_err = float(jnp.max(jnp.abs(out - ref)))
    assert bool(jnp.allclose(out, ref, atol=5e-2, rtol=5e-2)), max_err

    print("KERNEL_OK")
</pallas_src>

<mosaic_0001>
module attributes {stable_mosaic.version = 11 : i64} {
  func.func @_canonical_fused_kernel(%arg0: i32, %arg1: memref<1x1800x16xbf16, #tpu.memory_space<vmem>>, %arg2: memref<16x32xbf16, #tpu.memory_space<vmem>>, %arg3: memref<1x32xf32, #tpu.memory_space<vmem>>, %arg4: memref<512x64xbf16, #tpu.memory_space<vmem>>, %arg5: memref<1x64xf32, #tpu.memory_space<vmem>>, %arg6: memref<576x64xbf16, #tpu.memory_space<vmem>>, %arg7: memref<1x64xf32, #tpu.memory_space<vmem>>, %arg8: memref<1x8x64xf32, #tpu.memory_space<vmem>>, %arg9: memref<15x120x32xbf16, #tpu.memory_space<vmem>>, %arg10: memref<6x48x64xbf16, #tpu.memory_space<vmem>>) attributes {dimension_semantics = [#tpu.dimension_semantics<parallel>], iteration_bounds = array<i64: 1>, scalar_prefetch = 0 : i64, scratch_operands = 2 : i64, tpu.core_type = #tpu.core_type<tc>, window_params = [{transform_indices = @transform_0, window_bounds = array<i64: 1, 1800, 16>}, {pipeline_mode = #tpu.pipeline_mode<synchronous>, transform_indices = @transform_1, window_bounds = array<i64: 16, 32>}, {pipeline_mode = #tpu.pipeline_mode<synchronous>, transform_indices = @transform_2, window_bounds = array<i64: 1, 32>}, {pipeline_mode = #tpu.pipeline_mode<synchronous>, transform_indices = @transform_3, window_bounds = array<i64: 512, 64>}, {pipeline_mode = #tpu.pipeline_mode<synchronous>, transform_indices = @transform_4, window_bounds = array<i64: 1, 64>}, {pipeline_mode = #tpu.pipeline_mode<synchronous>, transform_indices = @transform_5, window_bounds = array<i64: 576, 64>}, {pipeline_mode = #tpu.pipeline_mode<synchronous>, transform_indices = @transform_6, window_bounds = array<i64: 1, 64>}, {transform_indices = @transform_7, window_bounds = array<i64: 1, 8, 64>}]} {
    %c0 = arith.constant 0 : index
    %c0_0 = arith.constant 0 : index
    %c0_1 = arith.constant 0 : index
    %0 = vector.load %arg1[%c0, %c0_0, %c0_1] : memref<1x1800x16xbf16, #tpu.memory_space<vmem>>, vector<1x1800x16xbf16>
    %1 = vector.shape_cast %0 : vector<1x1800x16xbf16> to vector<1800x16xbf16>
    %c0_2 = arith.constant 0 : index
    %c0_3 = arith.constant 0 : index
    %2 = vector.load %arg2[%c0_2, %c0_3] : memref<16x32xbf16, #tpu.memory_space<vmem>>, vector<16x32xbf16>
    %cst = arith.constant dense<0.000000e+00> : vector<1800x32xf32>
    %3 = tpu.matmul %1, %2, %cst {dimension_numbers = #tpu.dot_dimension_numbers<[1], [0], [0], [1], [0, 0, 1, 1], [], []>} : vector<1800x16xbf16>, vector<16x32xbf16>, vector<1800x32xf32> -> vector<1800x32xf32>
    %c0_4 = arith.constant 0 : index
    %c0_5 = arith.constant 0 : index
    %4 = vector.load %arg3[%c0_4, %c0_5] : memref<1x32xf32, #tpu.memory_space<vmem>>, vector<1x32xf32>
    %5 = vector.broadcast %4 : vector<1x32xf32> to vector<1800x32xf32>
    %6 = arith.addf %3, %5 : vector<1800x32xf32>
    %cst_6 = arith.constant 0.000000e+00 : f32
    %7 = vector.broadcast %cst_6 : f32 to vector<1800x32xf32>
    %8 = arith.maximumf %6, %7 : vector<1800x32xf32>
    %9 = arith.truncf %8 : vector<1800x32xf32> to vector<1800x32xbf16>
    %10 = vector.shape_cast %9 : vector<1800x32xbf16> to vector<15x120x32xbf16>
    %c0_7 = arith.constant 0 : index
    %c0_8 = arith.constant 0 : index
    %c0_9 = arith.constant 0 : index
    %11 = vector.load %arg9[%c0_7, %c0_8, %c0_9] : memref<15x120x32xbf16, #tpu.memory_space<vmem>>, vector<15x120x32xbf16>
    tpu.vector_store %arg9[%c0_7, %c0_8, %c0_9], %10 {strides = array<i32>} : memref<15x120x32xbf16, #tpu.memory_space<vmem>>, vector<15x120x32xbf16>,
    %c0_10 = arith.constant 0 : index
    %c0_11 = arith.constant 0 : index
    %c0_12 = arith.constant 0 : index
    %12 = vector.load %arg9[%c0_10, %c0_11, %c0_12] : memref<15x120x32xbf16, #tpu.memory_space<vmem>>, vector<6x48x32xbf16>
    %c0_13 = arith.constant 0 : index
    %c64 = arith.constant 64 : index
    %c0_14 = arith.constant 0 : index
    %13 = vector.load %arg9[%c0_13, %c64, %c0_14] : memref<15x120x32xbf16, #tpu.memory_space<vmem>>, vector<6x48x32xbf16>
    %c0_15 = arith.constant 0 : index
    %c8 = arith.constant 8 : index
    %c0_16 = arith.constant 0 : index
    %14 = vector.load %arg9[%c0_15, %c8, %c0_16] : memref<15x120x32xbf16, #tpu.memory_space<vmem>>, vector<6x48x32xbf16>
    %c0_17 = arith.constant 0 : index
    %c72 = arith.constant 72 : index
    %c0_18 = arith.constant 0 : index
    %15 = vector.load %arg9[%c0_17, %c72, %c0_18] : memref<15x120x32xbf16, #tpu.memory_space<vmem>>, vector<6x48x32xbf16>
    %c8_19 = arith.constant 8 : index
    %c0_20 = arith.constant 0 : index
    %c0_21 = arith.constant 0 : index
    %16 = vector.load %arg9[%c8_19, %c0_20, %c0_21] : memref<15x120x32xbf16, #tpu.memory_space<vmem>>, vector<6x48x32xbf16>
    %c8_22 = arith.constant 8 : index
    %c64_23 = arith.constant 64 : index
    %c0_24 = arith.constant 0 : index
    %17 = vector.load %arg9[%c8_22, %c64_23, %c0_24] : memref<15x120x32xbf16, #tpu.memory_space<vmem>>, vector<6x48x32xbf16>
    %c8_25 = arith.constant 8 : index
    %c8_26 = arith.constant 8 : index
    %c0_27 = arith.constant 0 : index
    %18 = vector.load %arg9[%c8_25, %c8_26, %c0_27] : memref<15x120x32xbf16, #tpu.memory_space<vmem>>, vector<6x48x32xbf16>
    %c8_28 = arith.constant 8 : index
    %c72_29 = arith.constant 72 : index
    %c0_30 = arith.constant 0 : index
    %19 = vector.load %arg9[%c8_28, %c72_29, %c0_30] : memref<15x120x32xbf16, #tpu.memory_space<vmem>>, vector<6x48x32xbf16>
    %c1 = arith.constant 1 : index
    %c0_31 = arith.constant 0 : index
    %c0_32 = arith.constant 0 : index
    %20 = vector.load %arg9[%c1, %c0_31, %c0_32] : memref<15x120x32xbf16, #tpu.memory_space<vmem>>, vector<6x48x32xbf16>
    %c1_33 = arith.constant 1 : index
    %c64_34 = arith.constant 64 : index
    %c0_35 = arith.constant 0 : index
    %21 = vector.load %arg9[%c1_33, %c64_34, %c0_35] : memref<15x120x32xbf16, #tpu.memory_space<vmem>>, vector<6x48x32xbf16>
    %c1_36 = arith.constant 1 : index
    %c8_37 = arith.constant 8 : index
    %c0_38 = arith.constant 0 : index
    %22 = vector.load %arg9[%c1_36, %c8_37, %c0_38] : memref<15x120x32xbf16, #tpu.memory_space<vmem>>, vector<6x48x32xbf16>
    %c1_39 = arith.constant 1 : index
    %c72_40 = arith.constant 72 : index
    %c0_41 = arith.constant 0 : index
    %23 = vector.load %arg9[%c1_39, %c72_40, %c0_41] : memref<15x120x32xbf16, #tpu.memory_space<vmem>>, vector<6x48x32xbf16>
    %c9 = arith.constant 9 : index
    %c0_42 = arith.constant 0 : index
    %c0_43 = arith.constant 0 : index
    %24 = vector.load %arg9[%c9, %c0_42, %c0_43] : memref<15x120x32xbf16, #tpu.memory_space<vmem>>, vector<6x48x32xbf16>
    %c9_44 = arith.constant 9 : index
    %c64_45 = arith.constant 64 : index
    %c0_46 = arith.constant 0 : index
    %25 = vector.load %arg9[%c9_44, %c64_45, %c0_46] : memref<15x120x32xbf16, #tpu.memory_space<vmem>>, vector<6x48x32xbf16>
    %c9_47 = arith.constant 9 : index
    %c8_48 = arith.constant 8 : index
    %c0_49 = arith.constant 0 : index
    %26 = vector.load %arg9[%c9_47, %c8_48, %c0_49] : memref<15x120x32xbf16, #tpu.memory_space<vmem>>, vector<6x48x32xbf16>
    %c9_50 = arith.constant 9 : index
    %c72_51 = arith.constant 72 : index
    %c0_52 = arith.constant 0 : index
    %27 = vector.load %arg9[%c9_50, %c72_51, %c0_52] : memref<15x120x32xbf16, #tpu.memory_space<vmem>>, vector<6x48x32xbf16>
    %28 = tpu.concatenate %12, %13, %14, %15, %16, %17, %18, %19, %20, %21, %22, %23, %24, %25, %26, %27 in 2 : vector<6x48x32xbf16>, vector<6x48x32xbf16>, vector<6x48x32xbf16>, vector<6x48x32xbf16>, vector<6x48x32xbf16>, vector<6x48x32xbf16>, vector<6x48x32xbf16>, vector<6x48x32xbf16>, vector<6x48x32xbf16>, vector<6x48x32xbf16>, vector<6x48x32xbf16>, vector<6x48x32xbf16>, vector<6x48x32xbf16>, vector<6x48x32xbf16>, vector<6x48x32xbf16>, vector<6x48x32xbf16> -> vector<6x48x512xbf16>
    %29 = vector.shape_cast %28 : vector<6x48x512xbf16> to vector<288x512xbf16>
    %c0_53 = arith.constant 0 : index
    %c0_54 = arith.constant 0 : index
    %30 = vector.load %arg4[%c0_53, %c0_54] : memref<512x64xbf16, #tpu.memory_space<vmem>>, vector<512x64xbf16>
    %cst_55 = arith.constant dense<0.000000e+00> : vector<288x64xf32>
    %31 = tpu.matmul %29, %30, %cst_55 {dimension_numbers = #tpu.dot_dimension_numbers<[1], [0], [0], [1], [0, 0, 1, 1], [], []>} : vector<288x512xbf16>, vector<512x64xbf16>, vector<288x64xf32> -> vector<288x64xf32>
    %c0_56 = arith.constant 0 : index
    %c0_57 = arith.constant 0 : index
    %32 = vector.load %arg5[%c0_56, %c0_57] : memref<1x64xf32, #tpu.memory_space<vmem>>, vector<1x64xf32>
    %33 = vector.broadcast %32 : vector<1x64xf32> to vector<288x64xf32>
    %34 = arith.addf %31, %33 : vector<288x64xf32>
    %cst_58 = arith.constant 0.000000e+00 : f32
    %35 = vector.broadcast %cst_58 : f32 to vector<288x64xf32>
    %36 = arith.maximumf %34, %35 : vector<288x64xf32>
    %37 = arith.truncf %36 : vector<288x64xf32> to vector<288x64xbf16>
    %38 = vector.shape_cast %37 : vector<288x64xbf16> to vector<6x48x64xbf16>
    %c0_59 = arith.constant 0 : index
    %c0_60 = arith.constant 0 : index
    %c0_61 = arith.constant 0 : index
    %39 = vector.load %arg10[%c0_59, %c0_60, %c0_61] : memref<6x48x64xbf16, #tpu.memory_space<vmem>>, vector<6x48x64xbf16>
    tpu.vector_store %arg10[%c0_59, %c0_60, %c0_61], %38 {strides = array<i32>} : memref<6x48x64xbf16, #tpu.memory_space<vmem>>, vector<6x48x64xbf16>,
    %c0_62 = arith.constant 0 : index
    %c0_63 = arith.constant 0 : index
    %c0_64 = arith.constant 0 : index
    %40 = vector.load %arg10[%c0_62, %c0_63, %c0_64] : memref<6x48x64xbf16, #tpu.memory_space<vmem>>, vector<4x32x64xbf16>
    %c0_65 = arith.constant 0 : index
    %c8_66 = arith.constant 8 : index
    %c0_67 = arith.constant 0 : index
    %41 = vector.load %arg10[%c0_65, %c8_66, %c0_67] : memref<6x48x64xbf16, #tpu.memory_space<vmem>>, vector<4x32x64xbf16>
    %c0_68 = arith.constant 0 : index
    %c16 = arith.constant 16 : index
    %c0_69 = arith.constant 0 : index
    %42 = vector.load %arg10[%c0_68, %c16, %c0_69] : memref<6x48x64xbf16, #tpu.memory_space<vmem>>, vector<4x32x64xbf16>
    %c1_70 = arith.constant 1 : index
    %c0_71 = arith.constant 0 : index
    %c0_72 = arith.constant 0 : index
    %43 = vector.load %arg10[%c1_70, %c0_71, %c0_72] : memref<6x48x64xbf16, #tpu.memory_space<vmem>>, vector<4x32x64xbf16>
    %c1_73 = arith.constant 1 : index
    %c8_74 = arith.constant 8 : index
    %c0_75 = arith.constant 0 : index
    %44 = vector.load %arg10[%c1_73, %c8_74, %c0_75] : memref<6x48x64xbf16, #tpu.memory_space<vmem>>, vector<4x32x64xbf16>
    %c1_76 = arith.constant 1 : index
    %c16_77 = arith.constant 16 : index
    %c0_78 = arith.constant 0 : index
    %45 = vector.load %arg10[%c1_76, %c16_77, %c0_78] : memref<6x48x64xbf16, #tpu.memory_space<vmem>>, vector<4x32x64xbf16>
    %c2 = arith.constant 2 : index
    %c0_79 = arith.constant 0 : index
    %c0_80 = arith.constant 0 : index
    %46 = vector.load %arg10[%c2, %c0_79, %c0_80] : memref<6x48x64xbf16, #tpu.memory_space<vmem>>, vector<4x32x64xbf16>
    %c2_81 = arith.constant 2 : index
    %c8_82 = arith.constant 8 : index
    %c0_83 = arith.constant 0 : index
    %47 = vector.load %arg10[%c2_81, %c8_82, %c0_83] : memref<6x48x64xbf16, #tpu.memory_space<vmem>>, vector<4x32x64xbf16>
    %c2_84 = arith.constant 2 : index
    %c16_85 = arith.constant 16 : index
    %c0_86 = arith.constant 0 : index
    %48 = vector.load %arg10[%c2_84, %c16_85, %c0_86] : memref<6x48x64xbf16, #tpu.memory_space<vmem>>, vector<4x32x64xbf16>
    %49 = tpu.concatenate %40, %41, %42, %43, %44, %45, %46, %47, %48 in 2 : vector<4x32x64xbf16>, vector<4x32x64xbf16>, vector<4x32x64xbf16>, vector<4x32x64xbf16>, vector<4x32x64xbf16>, vector<4x32x64xbf16>, vector<4x32x64xbf16>, vector<4x32x64xbf16>, vector<4x32x64xbf16> -> vector<4x32x576xbf16>
    %50 = vector.shape_cast %49 : vector<4x32x576xbf16> to vector<128x576xbf16>
    %c0_87 = arith.constant 0 : index
    %c0_88 = arith.constant 0 : index
    %51 = vector.load %arg6[%c0_87, %c0_88] : memref<576x64xbf16, #tpu.memory_space<vmem>>, vector<576x64xbf16>
    %cst_89 = arith.constant dense<0.000000e+00> : vector<128x64xf32>
    %52 = tpu.matmul %50, %51, %cst_89 {dimension_numbers = #tpu.dot_dimension_numbers<[1], [0], [0], [1], [0, 0, 1, 1], [], []>} : vector<128x576xbf16>, vector<576x64xbf16>, vector<128x64xf32> -> vector<128x64xf32>
    %c0_90 = arith.constant 0 : index
    %c0_91 = arith.constant 0 : index
    %53 = vector.load %arg7[%c0_90, %c0_91] : memref<1x64xf32, #tpu.memory_space<vmem>>, vector<1x64xf32>
    %54 = vector.broadcast %53 : vector<1x64xf32> to vector<128x64xf32>
    %55 = arith.addf %52, %54 : vector<128x64xf32>
    %cst_92 = arith.constant 0.000000e+00 : f32
    %56 = vector.broadcast %cst_92 : f32 to vector<128x64xf32>
    %57 = arith.maximumf %55, %56 : vector<128x64xf32>
    %58 = vector.shape_cast %57 : vector<128x64xf32> to vector<16x8x64xf32>
    %cst_93 = arith.constant dense<0.000000e+00> : vector<8x64xf32>
    %59 = vector.multi_reduction <add>, %58, %cst_93 [0] : vector<16x8x64xf32> to vector<8x64xf32>
    %cst_94 = arith.constant 6.250000e-02 : f32
    %60 = vector.broadcast %cst_94 : f32 to vector<8x64xf32>
    %61 = arith.mulf %59, %60 : vector<8x64xf32>
    %c0_95 = arith.constant 0 : index
    %c0_96 = arith.constant 0 : index
    %c0_97 = arith.constant 0 : index
    %62 = vector.load %arg8[%c0_95, %c0_96, %c0_97] : memref<1x8x64xf32, #tpu.memory_space<vmem>>, vector<1x8x64xf32>
    %63 = vector.shape_cast %62 : vector<1x8x64xf32> to vector<8x64xf32>
    %64 = vector.shape_cast %61 : vector<8x64xf32> to vector<1x8x64xf32>
    tpu.vector_store %arg8[%c0_95, %c0_96, %c0_97], %64 {strides = array<i32>} : memref<1x8x64xf32, #tpu.memory_space<vmem>>, vector<1x8x64xf32>,
    return
  }
  func.func @transform_0(%arg0: i32) -> (i32, i32, i32) {
    %c0_i32 = arith.constant 0 : i32
    %c0_i32_0 = arith.constant 0 : i32
    %c0_i32_1 = arith.constant 0 : i32
    return %arg0, %c0_i32, %c0_i32_0 : i32, i32, i32
  }
  func.func @transform_1(%arg0: i32) -> (i32, i32) {
    %c0_i32 = arith.constant 0 : i32
    %c0_i32_0 = arith.constant 0 : i32
    %c0_i32_1 = arith.constant 0 : i32
    return %c0_i32, %c0_i32_0 : i32, i32
  }
  func.func @transform_2(%arg0: i32) -> (i32, i32) {
    %c0_i32 = arith.constant 0 : i32
    %c0_i32_0 = arith.constant 0 : i32
    %c0_i32_1 = arith.constant 0 : i32
    return %c0_i32, %c0_i32_0 : i32, i32
  }
  func.func @transform_3(%arg0: i32) -> (i32, i32) {
    %c0_i32 = arith.constant 0 : i32
    %c0_i32_0 = arith.constant 0 : i32
    %c0_i32_1 = arith.constant 0 : i32
    return %c0_i32, %c0_i32_0 : i32, i32
  }
  func.func @transform_4(%arg0: i32) -> (i32, i32) {
    %c0_i32 = arith.constant 0 : i32
    %c0_i32_0 = arith.constant 0 : i32
    %c0_i32_1 = arith.constant 0 : i32
    return %c0_i32, %c0_i32_0 : i32, i32
  }
  func.func @transform_5(%arg0: i32) -> (i32, i32) {
    %c0_i32 = arith.constant 0 : i32
    %c0_i32_0 = arith.constant 0 : i32
    %c0_i32_1 = arith.constant 0 : i32
    return %c0_i32, %c0_i32_0 : i32, i32
  }
  func.func @transform_6(%arg0: i32) -> (i32, i32) {
    %c0_i32 = arith.constant 0 : i32
    %c0_i32_0 = arith.constant 0 : i32
    %c0_i32_1 = arith.constant 0 : i32
    return %c0_i32, %c0_i32_0 : i32, i32
  }
  func.func @transform_7(%arg0: i32) -> (i32, i32, i32) {
    %c0_i32 = arith.constant 0 : i32
    %c0_i32_0 = arith.constant 0 : i32
    %c0_i32_1 = arith.constant 0 : i32
    return %arg0, %c0_i32, %c0_i32_0 : i32, i32, i32
  }
}

</mosaic_0001>

<bundles_post_ra>
// kernel: _canonical_forward_impl.1
= control target key start
LH: loop header
LB: loop body
LE: loop exit
PB: predicated region body
PF: predicated region fallthrough
CT: control target
= control target key end

     0   :  { %v12898_v0 = vmov 0.0   ;;  %vm9760_vm0 = vmmov 0   ;;  %vm830_vm1 = vcmask 130048   ;;  %vm3232_vm2 = vcmask 257024   ;;  %s9761_s26 = smov 64   ;;  %s9762_s30 = smov 32   ;;  %s12890_s1 = inlined_call_operand.vmem [shape: bf16[16,32], index: 1, kind: input, shape index: {}]   ;;  %s12891_s0 = inlined_call_operand.vmem [shape: bf16[1,1800,16], index: 0, kind: input, shape index: {}]   ;;  %s12892_s2 = inlined_call_operand.vmem [shape: f32[1,32], index: 2, kind: input, shape index: {}]   ;;  %s12893_s3 = inlined_call_operand.vmem [shape: bf16[512,64], index: 3, kind: input, shape index: {}]   ;;  %s12894_s5 = inlined_call_operand.vmem [shape: bf16[576,64], index: 5, kind: input, shape index: {}]   ;;  %s12895_s4 = inlined_call_operand.vmem [shape: f32[1,64], index: 4, kind: input, shape index: {}]   ;;  %s12896_s6 = inlined_call_operand.vmem [shape: f32[1,64], index: 6, kind: input, shape index: {}]   ;;  %s12897_s7 = inlined_call_operand.vmem [shape: f32[1,8,64], index: 7, kind: output, shape index: {}]  }
   0x1   :  { %8757 = vmatprep.subr.bf16.mxu0 %v12898_v0  ;;  %9235 = vmatprep.subr.bf16.mxu1 %v12898_v0  ;;  %v9351_v1 = vld [vmem:[%s12890_s1] sm:$0xff]   ;;  %v9353_v3 = vld [vmem:[%s12891_s0 + $0x2a8] sm:$0xff]   ;;  %v9355_v5 = vld [vmem:[%s12891_s0 + $0x2b0] sm:$0xff]   ;;  %s9763_s10 = smov 96   ;;  %vm5189_vm3 = vcmask 261120   ;;  %vm5244_vm4 = vcmask 523264  }
   0x2   :  { %8759 = vmatprep.mubr.msk.bf16.mxu0 %vm9760_vm0, %v12898_v0  ;;  %9099 = vmatprep.mubr.msk.bf16.mxu1 %vm9760_vm0, %v12898_v0  ;;  %v9352_v2 = vld [vmem:[%s12891_s0] sm:$0xff]   ;;  %v9354_v4 = vld [vmem:[%s12891_s0 + $0x8] sm:$0xff]   ;;  %v9356_v6 = vld [vmem:[%s12891_s0 + $0x10] sm:$0xff]   ;;  %vm5281_vm5 = vcmask 785408   ;;  %vm6531_vm6 = vcmask 1043456  }
   0x3   :  { %8758 = vmatpush3.bf16.msra.mxu0 %v9351_v1  ;;  %9236 = vmatpush3.bf16.msra.mxu1 %v9351_v1  ;;  %v9357_v7 = vld [vmem:[%s12891_s0 + $0x2b8] sm:$0xff]   ;;  %v9359_v9 = vld [vmem:[%s12891_s0 + $0x2c0] sm:$0xff]   ;;  %v9361_v11 = vld [vmem:[%s12891_s0 + $0x2c8] sm:$0xff]  }
   0x4   :  { %v9358_v8 = vld [vmem:[%s12891_s0 + $0x18] sm:$0xff]   ;;  %v9360_v10 = vld [vmem:[%s12891_s0 + $0x20] sm:$0xff]   ;;  %v9362_v12 = vld [vmem:[%s12891_s0 + $0x28] sm:$0xff]  }
   0x5   :  { %v9363_v13 = vld [vmem:[%s12891_s0 + $0x30] sm:$0xff]   ;;  %v9364_v14 = vld [vmem:[%s12891_s0 + $0x38] sm:$0xff]   ;;  %v9365_v15 = vld [vmem:[%s12891_s0 + $0x40] sm:$0xff]  }
   0x6   :  { %8760 = vmatmul.mubr.msk.bf16.vlgmr.msra.gmra.mrb[0].mxu0 %vm830_vm1, %v9352_v2  ;;  %9100 = vmatmul.mubr.msk.bf16.vlgmr.msra.gmra.mrb[0].mxu1 %vm830_vm1, %v9353_v3  ;;  %v9366_v16 = vld [vmem:[%s12891_s0 + $0x48] sm:$0xff]   ;;  %v9367_v17 = vld [vmem:[%s12891_s0 + $0x50] sm:$0xff]   ;;  %v9368_v18 = vld [vmem:[%s12891_s0 + $0x58] sm:$0xff]  }
   0x7   :  { %8763 = vmatprep.mubr.msk.bf16.mxu0 %vm9760_vm0, %v12898_v0  ;;  %9103 = vmatprep.mubr.msk.bf16.mxu1 %vm9760_vm0, %v12898_v0  ;;  %v9369_v19 = vld [vmem:[%s12891_s0 + $0x60] sm:$0xff]   ;;  %v9370_v20 = vld [vmem:[%s12891_s0 + $0x68] sm:$0xff]   ;;  %v9371_v21 = vld [vmem:[%s12891_s0 + $0x70] sm:$0xff]  }
   0x8   :  { %v9372_v22 = vld [vmem:[%s12891_s0 + $0x78] sm:$0xff]   ;;  %v9373_v23 = vld [vmem:[%s12891_s0 + $0x80] sm:$0xff]   ;;  %v9374_v24 = vld [vmem:[%s12891_s0 + $0x88] sm:$0xff]  }
   0x9   :  { %v9375_v25 = vld [vmem:[%s12891_s0 + $0x90] sm:$0xff]   ;;  %v9376_v27 = vld [vmem:[%s12891_s0 + $0x98] sm:$0xff]   ;;  %v9377_v29 = vld [vmem:[%s12891_s0 + $0xa0] sm:$0xff]  }
   0xa   :  { %v9399_v26 = vld [vmem:[%s12891_s0 + $0x2d0] sm:$0xff]   ;;  %v9401_v28 = vld [vmem:[%s12891_s0 + $0x2d8] sm:$0xff]   ;;  %v9403_v30 = vld [vmem:[%s12891_s0 + $0x2e0] sm:$0xff]  }
   0xb   :  { %v9378_v31 = vld [vmem:[%s12891_s0 + $0xa8] sm:$0xff]   ;;  %v9379_v33 = vld [vmem:[%s12891_s0 + $0xb0] sm:$0xff]   ;;  %v9380_v35 = vld [vmem:[%s12891_s0 + $0xb8] sm:$0xff]  }
   0xc   :  { %v9407_v32 = vld [vmem:[%s12891_s0 + $0x2e8] sm:$0xff]   ;;  %v9410_v34 = vld [vmem:[%s12891_s0 + $0x2f0] sm:$0xff]   ;;  %v9413_v36 = vld [vmem:[%s12891_s0 + $0x2f8] sm:$0xff]  }
   0xd   :  { %v9381_v37 = vld [vmem:[%s12891_s0 + $0xc0] sm:$0xff]   ;;  %v9382_v39 = vld [vmem:[%s12891_s0 + $0xc8] sm:$0xff]   ;;  %v9383_v41 = vld [vmem:[%s12891_s0 + $0xd0] sm:$0xff]  }
   0xe   :  { %8764 = vmatmul.mubr.msk.bf16.gmra.mrb[4].mxu0 %vm830_vm1, %v9354_v4  ;;  %9104 = vmatmul.mubr.msk.bf16.gmra.mrb[4].mxu1 %vm830_vm1, %v9355_v5  ;;  %v9415_v38 = vld [vmem:[%s12891_s0 + $0x300] sm:$0xff]   ;;  %v9418_v40 = vld [vmem:[%s12891_s0 + $0x308] sm:$0xff]   ;;  %v9420_v42 = vld [vmem:[%s12891_s0 + $0x310] sm:$0xff]  }
   0xf   :  { %8767 = vmatprep.mubr.msk.bf16.mxu0 %vm9760_vm0, %v12898_v0  ;;  %9107 = vmatprep.mubr.msk.bf16.mxu1 %vm9760_vm0, %v12898_v0  ;;  %v10058_v43 = vld [vmem:[%s12892_s2] ss:$0 sm:$0xff]  ;;  %v9384_v48 = vld [vmem:[%s12891_s0 + $0xd8] sm:$0xff]  }
  0x10   :  { %v9422_v63 = vld [vmem:[%s12891_s0 + $0x318] sm:$0xff]  }
  0x16   :  { %8768 = vmatmul.mubr.msk.bf16.gmra.mrb[8].mxu0 %vm830_vm1, %v9356_v6  ;;  %9108 = vmatmul.mubr.msk.bf16.gmra.mrb[8].mxu1 %vm830_vm1, %v9357_v7  ;;  %v9385_v7 = vld [vmem:[%s12891_s0 + $0xe0] sm:$0xff]  }
  0x17   :  { %8771 = vmatprep.mubr.msk.bf16.mxu0 %vm9760_vm0, %v12898_v0  ;;  %9111 = vmatprep.mubr.msk.bf16.mxu1 %vm9760_vm0, %v12898_v0 }
  0x1e   :  { %8772 = vmatmul.mubr.msk.bf16.gmra.mrb[12].mxu0 %vm830_vm1, %v9358_v8  ;;  %9112 = vmatmul.mubr.msk.bf16.gmra.mrb[12].mxu1 %vm830_vm1, %v9359_v9 }
  0x1f   :  { %8775 = vmatprep.mubr.msk.bf16.mxu0 %vm9760_vm0, %v12898_v0  ;;  %9115 = vmatprep.mubr.msk.bf16.mxu1 %vm9760_vm0, %v12898_v0 }
  0x26   :  { %8776 = vmatmul.mubr.msk.bf16.gmra.mrb[16].mxu0 %vm830_vm1, %v9360_v10  ;;  %9116 = vmatmul.mubr.msk.bf16.gmra.mrb[16].mxu1 %vm830_vm1, %v9361_v11 }
  0x27   :  { %8779 = vmatprep.mubr.msk.bf16.mxu0 %vm9760_vm0, %v12898_v0  ;;  %9119 = vmatprep.mubr.msk.bf16.mxu1 %vm9760_vm0, %v12898_v0 }
  0x2e   :  { %8780 = vmatmul.mubr.msk.bf16.gmra.mrb[20].mxu0 %vm830_vm1, %v9362_v12  ;;  %9120 = vmatmul.mubr.msk.bf16.gmra.mrb[20].mxu1 %vm830_vm1, %v9399_v26 }
  0x2f   :  { %8783 = vmatprep.mubr.msk.bf16.mxu0 %vm9760_vm0, %v12898_v0  ;;  %9123 = vmatprep.mubr.msk.bf16.mxu1 %vm9760_vm0, %v12898_v0 }
  0x36   :  { %8784 = vmatmul.mubr.msk.bf16.gmra.mrb[24].mxu0 %vm830_vm1, %v9363_v13  ;;  %9124 = vmatmul.mubr.msk.bf16.gmra.mrb[24].mxu1 %vm830_vm1, %v9401_v28  ;;  %v9386_v28 = vld [vmem:[%s12891_s0 + $0xe8] sm:$0xff]  }
  0x37   :  { %8787 = vmatprep.mubr.msk.bf16.mxu0 %vm9760_vm0, %v12898_v0  ;;  %9127 = vmatprep.mubr.msk.bf16.mxu1 %vm9760_vm0, %v12898_v0 }
  0x3e   :  { %8788 = vmatmul.mubr.msk.bf16.gmra.mrb[28].mxu0 %vm830_vm1, %v9364_v14  ;;  %9128 = vmatmul.mubr.msk.bf16.gmra.mrb[28].mxu1 %vm830_vm1, %v9403_v30 }
  0x3f   :  { %8791 = vmatprep.mubr.msk.bf16.mxu0 %vm9760_vm0, %v12898_v0  ;;  %9131 = vmatprep.mubr.msk.bf16.mxu1 %vm9760_vm0, %v12898_v0 }
  0x46   :  { %8792 = vmatmul.mubr.msk.bf16.gmra.mrb[32].mxu0 %vm830_vm1, %v9365_v15  ;;  %9132 = vmatmul.mubr.msk.bf16.gmra.mrb[32].mxu1 %vm830_vm1, %v9407_v32 }
  0x47   :  { %8795 = vmatprep.mubr.msk.bf16.mxu0 %vm9760_vm0, %v12898_v0  ;;  %9135 = vmatprep.mubr.msk.bf16.mxu1 %vm9760_vm0, %v12898_v0 }
  0x4e   :  { %8796 = vmatmul.mubr.msk.bf16.gmra.mrb[36].mxu0 %vm830_vm1, %v9366_v16  ;;  %9136 = vmatmul.mubr.msk.bf16.gmra.mrb[36].mxu1 %vm830_vm1, %v9410_v34 }
  0x4f   :  { %8799 = vmatprep.mubr.msk.bf16.mxu0 %vm9760_vm0, %v12898_v0  ;;  %9139 = vmatprep.mubr.msk.bf16.mxu1 %vm9760_vm0, %v12898_v0 }
  0x56   :  { %8800 = vmatmul.mubr.msk.bf16.gmra.mrb[40].mxu0 %vm830_vm1, %v9367_v17  ;;  %9140 = vmatmul.mubr.msk.bf16.gmra.mrb[40].mxu1 %vm830_vm1, %v9413_v36 }
  0x57   :  { %8803 = vmatprep.mubr.msk.bf16.mxu0 %vm9760_vm0, %v12898_v0  ;;  %9143 = vmatprep.mubr.msk.bf16.mxu1 %vm9760_vm0, %v12898_v0 }
  0x5e   :  { %8804 = vmatmul.mubr.msk.bf16.gmra.mrb[44].mxu0 %vm830_vm1, %v9368_v18  ;;  %9144 = vmatmul.mubr.msk.bf16.gmra.mrb[44].mxu1 %vm830_vm1, %v9415_v38 }
  0x5f   :  { %8807 = vmatprep.mubr.msk.bf16.mxu0 %vm9760_vm0, %v12898_v0  ;;  %9147 = vmatprep.mubr.msk.bf16.mxu1 %vm9760_vm0, %v12898_v0 }
  0x66   :  { %8808 = vmatmul.mubr.msk.bf16.gmra.mrb[48].mxu0 %vm830_vm1, %v9369_v19  ;;  %9148 = vmatmul.mubr.msk.bf16.gmra.mrb[48].mxu1 %vm830_vm1, %v9418_v40  ;;  %v9424_v19 = vld [vmem:[%s12891_s0 + $0x320] sm:$0xff]  }
  0x67   :  { %8811 = vmatprep.mubr.msk.bf16.mxu0 %vm9760_vm0, %v12898_v0  ;;  %9151 = vmatprep.mubr.msk.bf16.mxu1 %vm9760_vm0, %v12898_v0 }
  0x6e   :  { %8812 = vmatmul.mubr.msk.bf16.gmra.mrb[52].mxu0 %vm830_vm1, %v9370_v20  ;;  %9152 = vmatmul.mubr.msk.bf16.gmra.mrb[52].mxu1 %vm830_vm1, %v9420_v42 }
  0x6f   :  { %8815 = vmatprep.mubr.msk.bf16.mxu0 %vm9760_vm0, %v12898_v0  ;;  %9155 = vmatprep.mubr.msk.bf16.mxu1 %vm9760_vm0, %v12898_v0 }
  0x76   :  { %8816 = vmatmul.mubr.msk.bf16.gmra.mrb[56].mxu0 %vm830_vm1, %v9371_v21  ;;  %9156 = vmatmul.mubr.msk.bf16.gmra.mrb[56].mxu1 %vm830_vm1, %v9422_v63 }
  0x77   :  { %8819 = vmatprep.mubr.msk.bf16.mxu0 %vm9760_vm0, %v12898_v0  ;;  %9159 = vmatprep.mubr.msk.bf16.mxu1 %vm9760_vm0, %v12898_v0 }
  0x7e   :  { %8820 = vmatmul.mubr.msk.bf16.gmra.mrb[60].mxu0 %vm830_vm1, %v9372_v22  ;;  %9160 = vmatmul.mubr.msk.bf16.gmra.mrb[60].mxu1 %vm830_vm1, %v9424_v19  ;;  %v9393_v19 = vld [vmem:[%s12891_s0 + $0xf8] sm:$0xff]  }
  0x7f   :  { %8823 = vmatprep.mubr.msk.bf16.mxu0 %vm9760_vm0, %v12898_v0  ;;  %9163 = vmatprep.mubr.msk.bf16.mxu1 %vm9760_vm0, %v12898_v0 }
  0x86   :  { %8824 = vmatmul.mubr.msk.bf16.gmra.mrb[64].mxu0 %vm830_vm1, %v9373_v23 }
  0x87   :  { %8827 = vmatprep.mubr.msk.bf16.mxu0 %vm9760_vm0, %v12898_v0 }
  0x8e   :  { %8828 = vmatmul.mubr.msk.bf16.gmra.mrb[68].mxu0 %vm830_vm1, %v9374_v24 }
  0x8f   :  { %8831 = vmatprep.mubr.msk.bf16.mxu0 %vm9760_vm0, %v12898_v0 }
  0x96   :  { %8832 = vmatmul.mubr.msk.bf16.gmra.mrb[72].mxu0 %vm830_vm1, %v9375_v25 }
  0x97   :  { %8835 = vmatprep.mubr.msk.bf16.mxu0 %vm9760_vm0, %v12898_v0 }
  0x9e   :  { %8836 = vmatmul.mubr.msk.bf16.gmra.mrb[76].mxu0 %vm830_vm1, %v9376_v27 }
  0x9f   :  { %8839 = vmatprep.mubr.msk.bf16.mxu0 %vm9760_vm0, %v12898_v0 }
  0xa6   :  { %8840 = vmatmul.mubr.msk.bf16.gmra.mrb[80].mxu0 %vm830_vm1, %v9377_v29 }
  0xa7   :  { %8843 = vmatprep.mubr.msk.bf16.mxu0 %vm9760_vm0, %v12898_v0 }
  0xae   :  { %8844 = vmatmul.mubr.msk.bf16.gmra.mrb[84].mxu0 %vm830_vm1, %v9378_v31 }
  0xaf   :  { %8847 = vmatprep.mubr.msk.bf16.mxu0 %vm9760_vm0, %v12898_v0 }
  0xb6   :  { %8848 = vmatmul.mubr.msk.bf16.gmra.mrb[88].mxu0 %vm830_vm1, %v9379_v33 }
  0xb7   :  { %8851 = vmatprep.mubr.msk.bf16.mxu0 %vm9760_vm0, %v12898_v0 }
  0xbe   :  { %8852 = vmatmul.mubr.msk.bf16.gmra.mrb[92].mxu0 %vm830_vm1, %v9380_v35 }
  0xbf   :  { %8855 = vmatprep.mubr.msk.bf16.mxu0 %vm9760_vm0, %v12898_v0 }
  0xc6   :  { %8856 = vmatmul.mubr.msk.bf16.gmra.mrb[96].mxu0 %vm830_vm1, %v9381_v37 }
  0xc7   :  { %8859 = vmatprep.mubr.msk.bf16.mxu0 %vm9760_vm0, %v12898_v0 }
  0xce   :  { %8860 = vmatmul.mubr.msk.bf16.gmra.mrb[100].mxu0 %vm830_vm1, %v9382_v39 }
  0xcf   :  { %8863 = vmatprep.mubr.msk.bf16.mxu0 %vm9760_vm0, %v12898_v0 }
  0xd6   :  { %8864 = vmatmul.mubr.msk.bf16.gmra.mrb[104].mxu0 %vm830_vm1, %v9383_v41  ;;  %v9428_v41 = vld [vmem:[%s12891_s0 + $0x328] sm:$0xff]  }
  0xd7   :  { %8867 = vmatprep.mubr.msk.bf16.mxu0 %vm9760_vm0, %v12898_v0  ;;  %9164 = vmatmul.mubr.msk.bf16.gmra.mrb[64].mxu1 %vm830_vm1, %v9428_v41  ;;  %v9434_v41 = vld [vmem:[%s12891_s0 + $0x338] sm:$0xff]  }
  0xd8   :  { %9167 = vmatprep.mubr.msk.bf16.mxu1 %vm9760_vm0, %v12898_v0 }
  0xd9   :  { %v1204_v44 = vpop.f32.mrb[0].mxu0  ;;  %v1884_v45 = vpop.f32.mrb[0].mxu1 }
  0xda   :  { %v1205_v46 = vadd.f32 %v10058_v43, %v1204_v44  ;;  %v8761_v47 = vpop.f32.mrb[1].mxu0  ;;  %v1885_v49 = vadd.f32 %v10058_v43, %v1884_v45  ;;  %v9101_v50 = vpop.f32.mrb[1].mxu1 }
  0xdb   :  { %v1207_v51 = vpop.f32.mrb[2].mxu0  ;;  %v1887_v52 = vpop.f32.mrb[2].mxu1 }
  0xdc   :  { %v2106_v53 = vmax.f32 %v1205_v46, 0.0  ;;  %v1208_v54 = vadd.f32 %v10058_v43, %v1207_v51  ;;  %v8762_v55 = vpop.f32.mrb[3].mxu0  ;;  %v2276_v56 = vmax.f32 %v1885_v49, 0.0  ;;  %v1888_v57 = vadd.f32 %v10058_v43, %v1887_v52  ;;  %v9102_v58 = vpop.f32.mrb[3].mxu1 }
  0xde   :  { %v8278_v59 = vpack.c.bf16 %v2106_v53, %v2106_v53  ;;  %v2107_v60 = vmax.f32 %v1208_v54, 0.0  ;;  %8868 = vmatmul.mubr.msk.bf16.gmra.mrb[108].mxu0 %vm830_vm1, %v9384_v48  ;;  %v8448_v61 = vpack.c.bf16 %v2276_v56, %v2276_v56  ;;  %v2277_v62 = vmax.f32 %v1888_v57, 0.0  ;;  %v9390_v56 = vld [vmem:[%s12891_s0 + $0xf0] sm:$0xff]  }
  0xdf   :  { %8871 = vmatprep.mubr.msk.bf16.mxu0 %vm9760_vm0, %v12898_v0 }
  0xe0   :  { %3233 = vst.msk [vmem:[#allocation2] sm:$0xf] %vm3232_vm2, %v8278_v59  ;;  %v8279_v1 = vpack.c.bf16 %v2107_v60, %v2107_v60  ;;  %3403 = vst.msk [vmem:[#allocation2 + $0x2a8] sm:$0xf] %vm3232_vm2, %v8448_v61  ;;  %v8449_v2 = vpack.c.bf16 %v2277_v62, %v2277_v62 }
  0xe1   :  { %v1212_v3 = vpop.f32.mrb[4].mxu0  ;;  %v1892_v4 = vpop.f32.mrb[4].mxu1 }
  0xe2   :  { %3234 = vst.msk [vmem:[#allocation2 + $0x4] sm:$0xf] %vm3232_vm2, %v8279_v1  ;;  %v1213_v5 = vadd.f32 %v10058_v43, %v1212_v3  ;;  %v8765_v6 = vpop.f32.mrb[5].mxu0  ;;  %3404 = vst.msk [vmem:[#allocation2 + $0x2ac] sm:$0xf] %vm3232_vm2, %v8449_v2  ;;  %v9105_v8 = vpop.f32.mrb[5].mxu1 }
  0xe3   :  { %v1215_v9 = vpop.f32.mrb[6].mxu0  ;;  %v1895_v10 = vpop.f32.mrb[6].mxu1 }
  0xe4   :  { %v2108_v11 = vmax.f32 %v1213_v5, 0.0  ;;  %v1216_v12 = vadd.f32 %v10058_v43, %v1215_v9  ;;  %v8766_v13 = vpop.f32.mrb[7].mxu0  ;;  %v1896_v14 = vadd.f32 %v10058_v43, %v1895_v10  ;;  %v9106_v15 = vpop.f32.mrb[7].mxu1  ;;  %v9431_v5 = vld [vmem:[%s12891_s0 + $0x330] sm:$0xff]  }
  0xe5   :  { %9168 = vmatmul.mubr.msk.bf16.gmra.mrb[68].mxu1 %vm830_vm1, %v9431_v5 }
  0xe6   :  { %v8280_v16 = vpack.c.bf16 %v2108_v11, %v2108_v11  ;;  %v2109_v17 = vmax.f32 %v1216_v12, 0.0  ;;  %8872 = vmatmul.mubr.msk.bf16.gmra.mrb[112].mxu0 %vm830_vm1, %v9385_v7  ;;  %v2279_v18 = vmax.f32 %v1896_v14, 0.0  ;;  %9171 = vmatprep.mubr.msk.bf16.mxu1 %vm9760_vm0, %v12898_v0 }
  0xe7   :  { %8875 = vmatprep.mubr.msk.bf16.mxu0 %vm9760_vm0, %v12898_v0 }
  0xe8   :  { %3235 = vst.msk [vmem:[#allocation2 + $0x8] sm:$0xf] %vm3232_vm2, %v8280_v16  ;;  %v8281_v20 = vpack.c.bf16 %v2109_v17, %v2109_v17  ;;  %v8451_v21 = vpack.c.bf16 %v2279_v18, %v2279_v18 }
  0xe9   :  { %v1220_v22 = vpop.f32.mrb[8].mxu0  ;;  %v1900_v23 = vpop.f32.mrb[8].mxu1  ;;  %v3459_v42 = vld [vmem:[#allocation2 + $0x4] sm:$0xf] }
  0xea   :  { %3236 = vst.msk [vmem:[#allocation2 + $0xc] sm:$0xf] %vm3232_vm2, %v8281_v20  ;;  %3406 = vst.msk [vmem:[#allocation2 + $0x2b4] sm:$0xf] %vm3232_vm2, %v8451_v21  ;;  %v1221_v24 = vadd.f32 %v10058_v43, %v1220_v22  ;;  %v1901_v25 = vadd.f32 %v10058_v43, %v1900_v23  ;;  %v8769_v26 = vpop.f32.mrb[9].mxu0  ;;  %v9109_v27 = vpop.f32.mrb[9].mxu1 }
  0xeb   :  { %v1223_v29 = vpop.f32.mrb[10].mxu0  ;;  %v1903_v30 = vpop.f32.mrb[10].mxu1 }
  0xec   :  { %v2110_v31 = vmax.f32 %v1221_v24, 0.0  ;;  %v2280_v32 = vmax.f32 %v1901_v25, 0.0  ;;  %v1224_v33 = vadd.f32 %v10058_v43, %v1223_v29  ;;  %v8770_v34 = vpop.f32.mrb[11].mxu0  ;;  %v1904_v35 = vadd.f32 %v10058_v43, %v1903_v30  ;;  %v9110_v36 = vpop.f32.mrb[11].mxu1 }
  0xed   :  { %9172 = vmatmul.mubr.msk.bf16.gmra.mrb[72].mxu1 %vm830_vm1, %v9434_v41 }
  0xee   :  { %v8282_v37 = vpack.c.bf16 %v2110_v31, %v2110_v31  ;;  %v8452_v38 = vpack.c.bf16 %v2280_v32, %v2280_v32  ;;  %v2111_v39 = vmax.f32 %v1224_v33, 0.0  ;;  %v2281_v40 = vmax.f32 %v1904_v35, 0.0  ;;  %8876 = vmatmul.mubr.msk.bf16.gmra.mrb[116].mxu0 %vm830_vm1, %v9386_v28  ;;  %9175 = vmatprep.mubr.msk.bf16.mxu1 %vm9760_vm0, %v12898_v0 }
  0xef   :  { %v10114_v44 = vld [vmem:[#allocation2 + $0x8] sm:$0xf]  ;;  %8879 = vmatprep.mubr.msk.bf16.mxu0 %vm9760_vm0, %v12898_v0 }
  0xf0   :  { %3237 = vst.msk [vmem:[#allocation2 + $0x10] sm:$0xf] %vm3232_vm2, %v8282_v37  ;;  %3407 = vst.msk [vmem:[#allocation2 + $0x2b8] sm:$0xf] %vm3232_vm2, %v8452_v38  ;;  %v8283_v45 = vpack.c.bf16 %v2111_v39, %v2111_v39  ;;  %v8453_v46 = vpack.c.bf16 %v2281_v40, %v2281_v40  ;;  %v7948_v47 = vcombine.low %v3459_v42, %v10114_v44  ;;  %v9395_v40 = vld [vmem:[%s12891_s0 + $0x100] sm:$0xff]  }
  0xf1   :  { %v1228_v48 = vpop.f32.mrb[12].mxu0  ;;  %v1908_v49 = vpop.f32.mrb[12].mxu1  ;;  %v10122_v50 = vld [vmem:[#allocation2 + $0xc] sm:$0xf]  ;;  %v3597_v1 = vld [vmem:[#allocation2 + $0x2b4] sm:$0xf] }
  0xf2   :  { %3238 = vst.msk [vmem:[#allocation2 + $0x14] sm:$0xf] %vm3232_vm2, %v8283_v45  ;;  %3408 = vst.msk [vmem:[#allocation2 + $0x2bc] sm:$0xf] %vm3232_vm2, %v8453_v46  ;;  %v1229_v51 = vadd.f32 %v10058_v43, %v1228_v48  ;;  %v1909_v52 = vadd.f32 %v10058_v43, %v1908_v49  ;;  %4043 = vrot.lane.b32.xlu1 %v7948_v47, %s9761_s26  ;;  %v8773_v54 = vpop.f32.mrb[13].mxu0  ;;  %v9113_v55 = vpop.f32.mrb[13].mxu1 }
  0xf3   :  { %v1231_v57 = vpop.f32.mrb[14].mxu0  ;;  %v1911_v58 = vpop.f32.mrb[14].mxu1 }
  0xf4   :  { %v2112_v59 = vmax.f32 %v1229_v51, 0.0  ;;  %v2282_v60 = vmax.f32 %v1909_v52, 0.0  ;;  %v8774_v61 = vpop.f32.mrb[15].mxu0  ;;  %v1912_v62 = vadd.f32 %v10058_v43, %v1911_v58  ;;  %v9114_v63 = vpop.f32.mrb[15].mxu1 }
  0xf6   :  { %v8284_v2 = vpack.c.bf16 %v2112_v59, %v2112_v59  ;;  %v8454_v3 = vpack.c.bf16 %v2282_v60, %v2282_v60  ;;  %v2283_v4 = vmax.f32 %v1912_v62, 0.0  ;;  %8880 = vmatmul.mubr.msk.bf16.gmra.mrb[120].mxu0 %vm830_vm1, %v9390_v56  ;;  %v9396_v59 = vld [vmem:[%s12891_s0 + $0x108] sm:$0xff]  }
  0xf7   :  { %v3598_v6 = vld [vmem:[#allocation2 + $0x2b8] sm:$0xf]  ;;  %v10141_v7 = vld [vmem:[#allocation2 + $0x10] sm:$0xf]  ;;  %8883 = vmatprep.mubr.msk.bf16.mxu0 %vm9760_vm0, %v12898_v0 }
  0xf8   :  { %3239 = vst.msk [vmem:[#allocation2 + $0x18] sm:$0xf] %vm3232_vm2, %v8284_v2  ;;  %3409 = vst.msk [vmem:[#allocation2 + $0x2c0] sm:$0xf] %vm3232_vm2, %v8454_v3  ;;  %v8455_v8 = vpack.c.bf16 %v2283_v4, %v2283_v4  ;;  %v8011_v9 = vcombine.low %v3597_v1, %v3598_v6  ;;  %v7949_v10 = vcombine.low %v10122_v50, %v10141_v7 }
  0xf9   :  { %v1236_v11 = vpop.f32.mrb[16].mxu0  ;;  %v1916_v12 = vpop.f32.mrb[16].mxu1  ;;  %v3599_v13 = vld [vmem:[#allocation2 + $0x2bc] sm:$0xf]  ;;  %v10150_v14 = vld [vmem:[#allocation2 + $0x14] sm:$0xf] }
  0xfa   :  { %3410 = vst.msk [vmem:[#allocation2 + $0x2c4] sm:$0xf] %vm3232_vm2, %v8455_v8  ;;  %v1237_v15 = vadd.f32 %v10058_v43, %v1236_v11  ;;  %v1917_v16 = vadd.f32 %v10058_v43, %v1916_v12  ;;  %4343 = vrot.lane.b32.xlu0 %v8011_v9, %s9762_s30  ;;  %v8047_v17 = vcombine.low %v3598_v6, %v3599_v13  ;;  %v8777_v18 = vpop.f32.mrb[17].mxu0  ;;  %v9117_v20 = vpop.f32.mrb[17].mxu1  ;;  %v9438_v9 = vld [vmem:[%s12891_s0 + $0x340] sm:$0xff]  }
  0xfb   :  { %4045 = vrot.lane.b32.xlu1 %v7949_v10, %s9761_s26  ;;  %v1239_v21 = vpop.f32.mrb[18].mxu0  ;;  %9176 = vmatmul.mubr.msk.bf16.gmra.mrb[76].mxu1 %vm830_vm1, %v9438_v9 }
  0xfc   :  { %v2114_v23 = vmax.f32 %v1237_v15, 0.0  ;;  %v2284_v24 = vmax.f32 %v1917_v16, 0.0  ;;  %v1240_v25 = vadd.f32 %v10058_v43, %v1239_v21  ;;  %v8778_v26 = vpop.f32.mrb[19].mxu0  ;;  %v9398_v15 = vld [vmem:[%s12891_s0 + $0x110] sm:$0xff]   ;;  %9179 = vmatprep.mubr.msk.bf16.mxu1 %vm9760_vm0, %v12898_v0 }
  0xfe   :  { %v8286_v27 = vpack.c.bf16 %v2114_v23, %v2114_v23  ;;  %v8456_v28 = vpack.c.bf16 %v2284_v24, %v2284_v24  ;;  %v2115_v29 = vmax.f32 %v1240_v25, 0.0  ;;  %4475 = vrot.lane.b32.xlu0 %v8047_v17, %s9763_s10  ;;  %8884 = vmatmul.mubr.msk.bf16.gmra.mrb[124].mxu0 %vm830_vm1, %v9393_v19 }
  0xff   :  { %v3600_v30 = vld [vmem:[#allocation2 + $0x2c0] sm:$0xf]  ;;  %v3530_v31 = vld [vmem:[#allocation2 + $0x18] sm:$0xf]  ;;  %8887 = vmatprep.mubr.msk.bf16.mxu0 %vm9760_vm0, %v12898_v0 }
 0x100   :  { %3241 = vst.msk [vmem:[#allocation2 + $0x20] sm:$0xf] %vm3232_vm2, %v8286_v27  ;;  %3411 = vst.msk [vmem:[#allocation2 + $0x2c8] sm:$0xf] %vm3232_vm2, %v8456_v28  ;;  %v8287_v32 = vpack.c.bf16 %v2115_v29, %v2115_v29  ;;  %v8012_v33 = vcombine.low %v3599_v13, %v3600_v30  ;;  %v7950_v34 = vcombine.low %v10150_v14, %v3530_v31  ;;  %v9400_v31 = vld [vmem:[%s12891_s0 + $0x118] sm:$0xff]  }
 0x101   :  { %v1244_v35 = vpop.f32.mrb[20].mxu0  ;;  %v3601_v36 = vld [vmem:[#allocation2 + $0x2c4] sm:$0xf] }
 0x102   :  { %3242 = vst.msk [vmem:[#allocation2 + $0x24] sm:$0xf] %vm3232_vm2, %v8287_v32  ;;  %v1245_v37 = vadd.f32 %v10058_v43, %v1244_v35  ;;  %4345 = vrot.lane.b32.xlu0 %v8012_v33, %s9762_s30  ;;  %4047 = vrot.lane.b32.xlu1 %v7950_v34, %s9761_s26  ;;  %v8781_v38 = vpop.f32.mrb[21].mxu0  ;;  %v8048_v39 = vcombine.low %v3600_v30, %v3601_v36 }
 0x103   :  { %v1247_v42 = vpop.f32.mrb[22].mxu0 }
 0x104   :  { %v2116_v45 = vmax.f32 %v1245_v37, 0.0  ;;  %v1248_v46 = vadd.f32 %v10058_v43, %v1247_v42  ;;  %v8782_v47 = vpop.f32.mrb[23].mxu0 }
 0x105   :  { %v9402_v47 = vld [vmem:[%s12891_s0 + $0x120] sm:$0xff]  }
 0x106   :  { %v8288_v48 = vpack.c.bf16 %v2116_v45, %v2116_v45  ;;  %v2117_v49 = vmax.f32 %v1248_v46, 0.0  ;;  %4477 = vrot.lane.b32.xlu0 %v8048_v39, %s9763_s10  ;;  %8888 = vmatmul.mubr.msk.bf16.gmra.mrb[128].mxu0 %vm830_vm1, %v9395_v40 }
 0x107   :  { %v10188_v51 = vld [vmem:[#allocation2 + $0x2c8] sm:$0xf]  ;;  %8891 = vmatprep.mubr.msk.bf16.mxu0 %vm9760_vm0, %v12898_v0  ;;  %v3494_v61 = vld [vmem:[#allocation2 + $0x20] sm:$0xf] }
 0x108   :  { %3243 = vst.msk [vmem:[#allocation2 + $0x28] sm:$0xf] %vm3232_vm2, %v8288_v48  ;;  %v8289_v52 = vpack.c.bf16 %v2117_v49, %v2117_v49  ;;  %v8013_v54 = vcombine.low %v3601_v36, %v10188_v51 }
 0x109   :  { %v1252_v55 = vpop.f32.mrb[24].mxu0  ;;  %v3495_v56 = vld [vmem:[#allocation2 + $0x24] sm:$0xf] }
 0x10a   :  { %3244 = vst.msk [vmem:[#allocation2 + $0x2c] sm:$0xf] %vm3232_vm2, %v8289_v52  ;;  %v1253_v57 = vadd.f32 %v10058_v43, %v1252_v55  ;;  %4347 = vrot.lane.b32.xlu0 %v8013_v54, %s9762_s30  ;;  %v8785_v58 = vpop.f32.mrb[25].mxu0  ;;  %v7930_v2 = vcombine.low %v3494_v61, %v3495_v56 }
 0x10b   :  { %v1255_v60 = vpop.f32.mrb[26].mxu0 }
 0x10c   :  { %v2118_v62 = vmax.f32 %v1253_v57, 0.0  ;;  %v1256_v63 = vadd.f32 %v10058_v43, %v1255_v60  ;;  %v8786_v1 = vpop.f32.mrb[27].mxu0 }
 0x10d   :  { %v9406_v1 = vld [vmem:[%s12891_s0 + $0x128] sm:$0xff]  }
 0x10e   :  { %v8290_v3 = vpack.c.bf16 %v2118_v62, %v2118_v62  ;;  %v2119_v4 = vmax.f32 %v1256_v63, 0.0  ;;  %8892 = vmatmul.mubr.msk.bf16.gmra.mrb[132].mxu0 %vm830_vm1, %v9396_v59  ;;  %3977 = vrot.lane.b32.xlu0 %v7930_v2, %s9762_s30 }
 0x10f   :  { %v3496_v5 = vld [vmem:[#allocation2 + $0x28] sm:$0xf]  ;;  %8895 = vmatprep.mubr.msk.bf16.mxu0 %vm9760_vm0, %v12898_v0 }
 0x110   :  { %3245 = vst.msk [vmem:[#allocation2 + $0x30] sm:$0xf] %vm3232_vm2, %v8290_v3  ;;  %v8291_v6 = vpack.c.bf16 %v2119_v4, %v2119_v4  ;;  %v7966_v8 = vcombine.low %v3495_v56, %v3496_v5 }
 0x111   :  { %v1260_v10 = vpop.f32.mrb[28].mxu0  ;;  %v3497_v11 = vld [vmem:[#allocation2 + $0x2c] sm:$0xf] }
 0x112   :  { %3246 = vst.msk [vmem:[#allocation2 + $0x34] sm:$0xf] %vm3232_vm2, %v8291_v6  ;;  %v1261_v12 = vadd.f32 %v10058_v43, %v1260_v10  ;;  %4109 = vrot.lane.b32.xlu1 %v7966_v8, %s9763_s10  ;;  %v8789_v13 = vpop.f32.mrb[29].mxu0  ;;  %v7931_v20 = vcombine.low %v3496_v5, %v3497_v11 }
 0x113   :  { %v1263_v16 = vpop.f32.mrb[30].mxu0 }
 0x114   :  { %v2120_v17 = vmax.f32 %v1261_v12, 0.0  ;;  %v1264_v18 = vadd.f32 %v10058_v43, %v1263_v16  ;;  %v8790_v19 = vpop.f32.mrb[31].mxu0 }
 0x116   :  { %v8292_v21 = vpack.c.bf16 %v2120_v17, %v2120_v17  ;;  %v2121_v23 = vmax.f32 %v1264_v18, 0.0  ;;  %8896 = vmatmul.mubr.msk.bf16.gmra.mrb[136].mxu0 %vm830_vm1, %v9398_v15  ;;  %3979 = vrot.lane.b32.xlu1 %v7931_v20, %s9762_s30  ;;  %v9409_v20 = vld [vmem:[%s12891_s0 + $0x130] sm:$0xff]  }
 0x117   :  { %v3498_v24 = vld [vmem:[#allocation2 + $0x30] sm:$0xf]  ;;  %8899 = vmatprep.mubr.msk.bf16.mxu0 %vm9760_vm0, %v12898_v0 }
 0x118   :  { %3247 = vst.msk [vmem:[#allocation2 + $0x38] sm:$0xf] %vm3232_vm2, %v8292_v21  ;;  %v8293_v25 = vpack.c.bf16 %v2121_v23, %v2121_v23  ;;  %v7967_v26 = vcombine.low %v3497_v11, %v3498_v24 }
 0x119   :  { %v1268_v27 = vpop.f32.mrb[32].mxu0  ;;  %v3499_v28 = vld [vmem:[#allocation2 + $0x34] sm:$0xf] }
 0x11a   :  { %3248 = vst.msk [vmem:[#allocation2 + $0x3c] sm:$0xf] %vm3232_vm2, %v8293_v25  ;;  %v1269_v29 = vadd.f32 %v10058_v43, %v1268_v27  ;;  %4111 = vrot.lane.b32.xlu1 %v7967_v26, %s9763_s10  ;;  %v8793_v30 = vpop.f32.mrb[33].mxu0  ;;  %v7932_v36 = vcombine.low %v3498_v24, %v3499_v28 }
 0x11b   :  { %v1271_v32 = vpop.f32.mrb[34].mxu0 }
 0x11c   :  { %v2122_v33 = vmax.f32 %v1269_v29, 0.0  ;;  %v1272_v34 = vadd.f32 %v10058_v43, %v1271_v32  ;;  %v8794_v35 = vpop.f32.mrb[35].mxu0 }
 0x11e   :  { %v8294_v37 = vpack.c.bf16 %v2122_v33, %v2122_v33  ;;  %v2123_v38 = vmax.f32 %v1272_v34, 0.0  ;;  %8900 = vmatmul.mubr.msk.bf16.gmra.mrb[140].mxu0 %vm830_vm1, %v9400_v31  ;;  %3981 = vrot.lane.b32.xlu1 %v7932_v36, %s9762_s30 }
 0x11f   :  { %v3536_v39 = vld [vmem:[#allocation2 + $0x38] sm:$0xf]  ;;  %8903 = vmatprep.mubr.msk.bf16.mxu0 %vm9760_vm0, %v12898_v0 }
 0x120   :  { %3249 = vst.msk [vmem:[#allocation2 + $0x40] sm:$0xf] %vm3232_vm2, %v8294_v37  ;;  %v8295_v40 = vpack.c.bf16 %v2123_v38, %v2123_v38  ;;  %v7968_v41 = vcombine.low %v3499_v28, %v3536_v39  ;;  %v9412_v37 = vld [vmem:[%s12891_s0 + $0x138] sm:$0xff]  }
 0x121   :  { %v1276_v42 = vpop.f32.mrb[36].mxu0 }
 0x122   :  { %3250 = vst.msk [vmem:[#allocation2 + $0x44] sm:$0xf] %vm3232_vm2, %v8295_v40  ;;  %v1277_v45 = vadd.f32 %v10058_v43, %v1276_v42  ;;  %4113 = vrot.lane.b32.xlu1 %v7968_v41, %s9763_s10  ;;  %v8797_v46 = vpop.f32.mrb[37].mxu0 }
 0x123   :  { %v1279_v48 = vpop.f32.mrb[38].mxu0 }
 0x124   :  { %v2124_v49 = vmax.f32 %v1277_v45, 0.0  ;;  %v1280_v52 = vadd.f32 %v10058_v43, %v1279_v48  ;;  %v8798_v54 = vpop.f32.mrb[39].mxu0 }
 0x126   :  { %v8296_v55 = vpack.c.bf16 %v2124_v49, %v2124_v49  ;;  %v2125_v56 = vmax.f32 %v1280_v52, 0.0  ;;  %8904 = vmatmul.mubr.msk.bf16.gmra.mrb[144].mxu0 %vm830_vm1, %v9402_v47  ;;  %v9414_v52 = vld [vmem:[%s12891_s0 + $0x140] sm:$0xff]  }
 0x127   :  { %8907 = vmatprep.mubr.msk.bf16.mxu0 %vm9760_vm0, %v12898_v0  ;;  %v3465_v59 = vld [vmem:[#allocation2 + $0x40] sm:$0xf] }
 0x128   :  { %3251 = vst.msk [vmem:[#allocation2 + $0x48] sm:$0xf] %vm3232_vm2, %v8296_v55  ;;  %v8297_v57 = vpack.c.bf16 %v2125_v56, %v2125_v56 }
 0x129   :  { %v1284_v58 = vpop.f32.mrb[40].mxu0  ;;  %v10247_v60 = vld [vmem:[#allocation2 + $0x44] sm:$0xf] }
 0x12a   :  { %3252 = vst.msk [vmem:[#allocation2 + $0x4c] sm:$0xf] %vm3232_vm2, %v8297_v57  ;;  %v1285_v61 = vadd.f32 %v10058_v43, %v1284_v58  ;;  %v8801_v62 = vpop.f32.mrb[41].mxu0  ;;  %v7951_v63 = vcombine.low %v3465_v59, %v10247_v60  ;;  %v10262_v10 = vld [vmem:[#allocation2 + $0x44] sm:$0xf] }
 0x12b   :  { %v1287_v2 = vpop.f32.mrb[42].mxu0  ;;  %12973 = vst [vmem:[#allocation4_spill] sm:$0xff] %v10262_v10 }
 0x12c   :  { %v2126_v3 = vmax.f32 %v1285_v61, 0.0  ;;  %v1288_v4 = vadd.f32 %v10058_v43, %v1287_v2  ;;  %4049 = vrot.lane.b32.xlu1 %v7951_v63, %s9761_s26  ;;  %v8802_v5 = vpop.f32.mrb[43].mxu0 }
 0x12e   :  { %v8298_v6 = vpack.c.bf16 %v2126_v3, %v2126_v3  ;;  %v2127_v8 = vmax.f32 %v1288_v4, 0.0  ;;  %8908 = vmatmul.mubr.msk.bf16.gmra.mrb[148].mxu0 %vm830_vm1, %v9406_v1 }
 0x12f   :  { %v10258_v9 = vld [vmem:[#allocation2 + $0x48] sm:$0xf]  ;;  %8911 = vmatprep.mubr.msk.bf16.mxu0 %vm9760_vm0, %v12898_v0 }
 0x130   :  { %v10264_v11 = vld [vmem:[#allocation2 + $0x48] sm:$0xf]  ;;  %3253 = vst.msk [vmem:[#allocation2 + $0x50] sm:$0xf] %vm3232_vm2, %v8298_v6  ;;  %v8299_v12 = vpack.c.bf16 %v2127_v8, %v2127_v8 }
 0x131   :  { %12974 = vst [vmem:[#allocation5_spill] sm:$0xff] %v10264_v11  ;;  %v1292_v16 = vpop.f32.mrb[44].mxu0  ;;  %v10271_v17 = vld [vmem:[#allocation2 + $0x4c] sm:$0xf] }
 0x132   :  { %3254 = vst.msk [vmem:[#allocation2 + $0x54] sm:$0xf] %vm3232_vm2, %v8299_v12  ;;  %v8805_v18 = vpop.f32.mrb[45].mxu0  ;;  %v7952_v19 = vcombine.low %v10258_v9, %v10271_v17  ;;  %v10286_v27 = vld [vmem:[#allocation2 + $0x4c] sm:$0xf] }
 0x133   :  { %v1295_v21 = vpop.f32.mrb[46].mxu0  ;;  %12975 = vst [vmem:[#allocation6_spill] sm:$0xff] %v10286_v27  ;;  %v9417_v6 = vld [vmem:[%s12891_s0 + $0x148] sm:$0xff]  }
 0x134   :  { %v1296_v23 = vadd.f32 %v10058_v43, %v1295_v21  ;;  %4051 = vrot.lane.b32.xlu1 %v7952_v19, %s9761_s26  ;;  %v8806_v24 = vpop.f32.mrb[47].mxu0 }
 0x136   :  { %v2129_v25 = vmax.f32 %v1296_v23, 0.0  ;;  %8912 = vmatmul.mubr.msk.bf16.gmra.mrb[152].mxu0 %vm830_vm1, %v9409_v20 }
 0x137   :  { %v10282_v26 = vld [vmem:[#allocation2 + $0x50] sm:$0xf]  ;;  %8915 = vmatprep.mubr.msk.bf16.mxu0 %vm9760_vm0, %v12898_v0 }
 0x138   :  { %v10288_v28 = vld [vmem:[#allocation2 + $0x50] sm:$0xf]  ;;  %v8301_v29 = vpack.c.bf16 %v2129_v25, %v2129_v25 }
 0x139   :  { %12976 = vst [vmem:[#allocation7_spill] sm:$0xff] %v10288_v28  ;;  %v1300_v32 = vpop.f32.mrb[48].mxu0  ;;  %v3531_v33 = vld [vmem:[#allocation2 + $0x54] sm:$0xf] }
 0x13a   :  { %3256 = vst.msk [vmem:[#allocation2 + $0x5c] sm:$0xf] %vm3232_vm2, %v8301_v29  ;;  %v1301_v34 = vadd.f32 %v10058_v43, %v1300_v32  ;;  %v8809_v35 = vpop.f32.mrb[49].mxu0  ;;  %v7953_v36 = vcombine.low %v10282_v26, %v3531_v33 }
 0x13b   :  { %v1303_v38 = vpop.f32.mrb[50].mxu0  ;;  %v9419_v35 = vld [vmem:[%s12891_s0 + $0x150] sm:$0xff]  }
 0x13c   :  { %v2130_v39 = vmax.f32 %v1301_v34, 0.0  ;;  %v1304_v40 = vadd.f32 %v10058_v43, %v1303_v38  ;;  %4053 = vrot.lane.b32.xlu1 %v7953_v36, %s9761_s26  ;;  %v8810_v41 = vpop.f32.mrb[51].mxu0 }
 0x13e   :  { %v8302_v42 = vpack.c.bf16 %v2130_v39, %v2130_v39  ;;  %v2131_v45 = vmax.f32 %v1304_v40, 0.0  ;;  %8916 = vmatmul.mubr.msk.bf16.gmra.mrb[156].mxu0 %vm830_vm1, %v9412_v37 }
 0x13f   :  { %8919 = vmatprep.mubr.msk.bf16.mxu0 %vm9760_vm0, %v12898_v0 }
 0x140   :  { %3257 = vst.msk [vmem:[#allocation2 + $0x60] sm:$0xf] %vm3232_vm2, %v8302_v42  ;;  %v8303_v46 = vpack.c.bf16 %v2131_v45, %v2131_v45 }
 0x141   :  { %v1308_v47 = vpop.f32.mrb[52].mxu0  ;;  %v3500_v61 = vld [vmem:[#allocation2 + $0x5c] sm:$0xf] }
 0x142   :  { %3258 = vst.msk [vmem:[#allocation2 + $0x64] sm:$0xf] %vm3232_vm2, %v8303_v46  ;;  %v1309_v48 = vadd.f32 %v10058_v43, %v1308_v47  ;;  %v8813_v49 = vpop.f32.mrb[53].mxu0 }
 0x143   :  { %v1311_v54 = vpop.f32.mrb[54].mxu0 }
 0x144   :  { %v2132_v55 = vmax.f32 %v1309_v48, 0.0  ;;  %v1312_v56 = vadd.f32 %v10058_v43, %v1311_v54  ;;  %v8814_v57 = vpop.f32.mrb[55].mxu0 }
 0x146   :  { %v8304_v58 = vpack.c.bf16 %v2132_v55, %v2132_v55  ;;  %v2133_v59 = vmax.f32 %v1312_v56, 0.0  ;;  %8920 = vmatmul.mubr.msk.bf16.gmra.mrb[160].mxu0 %vm830_vm1, %v9414_v52  ;;  %v9421_v55 = vld [vmem:[%s12891_s0 + $0x158] sm:$0xff]  }
 0x147   :  { %v3501_v62 = vld [vmem:[#allocation2 + $0x60] sm:$0xf]  ;;  %8923 = vmatprep.mubr.msk.bf16.mxu0 %vm9760_vm0, %v12898_v0 }
 0x148   :  { %3259 = vst.msk [vmem:[#allocation2 + $0x68] sm:$0xf] %vm3232_vm2, %v8304_v58  ;;  %v8305_v63 = vpack.c.bf16 %v2133_v59, %v2133_v59  ;;  %v7933_v1 = vcombine.low %v3500_v61, %v3501_v62 }
 0x149   :  { %v1316_v2 = vpop.f32.mrb[56].mxu0  ;;  %v3502_v3 = vld [vmem:[#allocation2 + $0x64] sm:$0xf] }
 0x14a   :  { %3260 = vst.msk [vmem:[#allocation2 + $0x6c] sm:$0xf] %vm3232_vm2, %v8305_v63  ;;  %v1317_v4 = vadd.f32 %v10058_v43, %v1316_v2  ;;  %3983 = vrot.lane.b32.xlu1 %v7933_v1, %s9762_s30  ;;  %v8817_v5 = vpop.f32.mrb[57].mxu0  ;;  %v7969_v19 = vcombine.low %v3501_v62, %v3502_v3 }
 0x14b   :  { %v1319_v8 = vpop.f32.mrb[58].mxu0  ;;  %v9423_v5 = vld [vmem:[%s12891_s0 + $0x160] sm:$0xff]  }
 0x14c   :  { %v2134_v12 = vmax.f32 %v1317_v4, 0.0  ;;  %v1320_v16 = vadd.f32 %v10058_v43, %v1319_v8  ;;  %v8818_v18 = vpop.f32.mrb[59].mxu0 }
 0x14e   :  { %v8306_v20 = vpack.c.bf16 %v2134_v12, %v2134_v12  ;;  %v2135_v21 = vmax.f32 %v1320_v16, 0.0  ;;  %8924 = vmatmul.mubr.msk.bf16.gmra.mrb[164].mxu0 %vm830_vm1, %v9417_v6  ;;  %4115 = vrot.lane.b32.xlu1 %v7969_v19, %s9763_s10 }
 0x14f   :  { %v3503_v23 = vld [vmem:[#allocation2 + $0x68] sm:$0xf]  ;;  %8927 = vmatprep.mubr.msk.bf16.mxu0 %vm9760_vm0, %v12898_v0 }
 0x150   :  { %3261 = vst.msk [vmem:[#allocation2 + $0x70] sm:$0xf] %vm3232_vm2, %v8306_v20  ;;  %v8307_v24 = vpack.c.bf16 %v2135_v21, %v2135_v21  ;;  %v7934_v25 = vcombine.low %v3502_v3, %v3503_v23 }
 0x151   :  { %v1324_v29 = vpop.f32.mrb[60].mxu0  ;;  %v3504_v32 = vld [vmem:[#allocation2 + $0x6c] sm:$0xf] }
 0x152   :  { %3262 = vst.msk [vmem:[#allocation2 + $0x74] sm:$0xf] %vm3232_vm2, %v8307_v24  ;;  %v1325_v33 = vadd.f32 %v10058_v43, %v1324_v29  ;;  %3985 = vrot.lane.b32.xlu1 %v7934_v25, %s9762_s30  ;;  %v8821_v34 = vpop.f32.mrb[61].mxu0  ;;  %v7970_v40 = vcombine.low %v3503_v23, %v3504_v32 }
 0x153   :  { %v1327_v36 = vpop.f32.mrb[62].mxu0 }
 0x154   :  { %v2136_v37 = vmax.f32 %v1325_v33, 0.0  ;;  %v1328_v38 = vadd.f32 %v10058_v43, %v1327_v36  ;;  %v8822_v39 = vpop.f32.mrb[63].mxu0  ;;  %v9427_v36 = vld [vmem:[%s12891_s0 + $0x168] sm:$0xff]  }
 0x156   :  { %v8308_v41 = vpack.c.bf16 %v2136_v37, %v2136_v37  ;;  %v2137_v42 = vmax.f32 %v1328_v38, 0.0  ;;  %8928 = vmatmul.mubr.msk.bf16.gmra.mrb[168].mxu0 %vm830_vm1, %v9419_v35  ;;  %4117 = vrot.lane.b32.xlu1 %v7970_v40, %s9763_s10 }
 0x157   :  { %v3505_v45 = vld [vmem:[#allocation2 + $0x70] sm:$0xf]  ;;  %8931 = vmatprep.mubr.msk.bf16.mxu0 %vm9760_vm0, %v12898_v0 }
 0x158   :  { %3263 = vst.msk [vmem:[#allocation2 + $0x78] sm:$0xf] %vm3232_vm2, %v8308_v41  ;;  %v8309_v46 = vpack.c.bf16 %v2137_v42, %v2137_v42  ;;  %v7935_v47 = vcombine.low %v3504_v32, %v3505_v45 }
 0x159   :  { %v1332_v48 = vpop.f32.mrb[64].mxu0  ;;  %v3537_v49 = vld [vmem:[#allocation2 + $0x74] sm:$0xf] }
 0x15a   :  { %3264 = vst.msk [vmem:[#allocation2 + $0x7c] sm:$0xf] %vm3232_vm2, %v8309_v46  ;;  %v1333_v52 = vadd.f32 %v10058_v43, %v1332_v48  ;;  %3987 = vrot.lane.b32.xlu1 %v7935_v47, %s9762_s30  ;;  %v8825_v54 = vpop.f32.mrb[65].mxu0  ;;  %v7971_v61 = vcombine.low %v3505_v45, %v3537_v49 }
 0x15b   :  { %v1335_v56 = vpop.f32.mrb[66].mxu0 }
 0x15c   :  { %v2138_v57 = vmax.f32 %v1333_v52, 0.0  ;;  %v1336_v58 = vadd.f32 %v10058_v43, %v1335_v56  ;;  %v8826_v59 = vpop.f32.mrb[67].mxu0  ;;  %v9430_v56 = vld [vmem:[%s12891_s0 + $0x170] sm:$0xff]  }
 0x15e   :  { %v8310_v62 = vpack.c.bf16 %v2138_v57, %v2138_v57  ;;  %v2139_v63 = vmax.f32 %v1336_v58, 0.0  ;;  %8932 = vmatmul.mubr.msk.bf16.gmra.mrb[172].mxu0 %vm830_vm1, %v9421_v55  ;;  %4119 = vrot.lane.b32.xlu1 %v7971_v61, %s9763_s10 }
 0x15f   :  { %8935 = vmatprep.mubr.msk.bf16.mxu0 %vm9760_vm0, %v12898_v0 }
 0x160   :  { %3265 = vst.msk [vmem:[#allocation2 + $0x80] sm:$0xf] %vm3232_vm2, %v8310_v62  ;;  %v8311_v1 = vpack.c.bf16 %v2139_v63, %v2139_v63 }
 0x161   :  { %v1340_v2 = vpop.f32.mrb[68].mxu0  ;;  %v3471_v20 = vld [vmem:[#allocation2 + $0x7c] sm:$0xf] }
 0x162   :  { %3266 = vst.msk [vmem:[#allocation2 + $0x84] sm:$0xf] %vm3232_vm2, %v8311_v1  ;;  %v1341_v3 = vadd.f32 %v10058_v43, %v1340_v2  ;;  %v8829_v4 = vpop.f32.mrb[69].mxu0 }
 0x163   :  { %v1343_v6 = vpop.f32.mrb[70].mxu0 }
 0x164   :  { %v2140_v8 = vmax.f32 %v1341_v3, 0.0  ;;  %v1344_v12 = vadd.f32 %v10058_v43, %v1343_v6  ;;  %v8830_v16 = vpop.f32.mrb[71].mxu0 }
 0x165   :  { %v9433_v16 = vld [vmem:[%s12891_s0 + $0x178] sm:$0xff]  }
 0x166   :  { %v8312_v18 = vpack.c.bf16 %v2140_v8, %v2140_v8  ;;  %v2141_v19 = vmax.f32 %v1344_v12, 0.0  ;;  %8936 = vmatmul.mubr.msk.bf16.gmra.mrb[176].mxu0 %vm830_vm1, %v9423_v5 }
 0x167   :  { %v10359_v21 = vld [vmem:[#allocation2 + $0x80] sm:$0xf]  ;;  %8939 = vmatprep.mubr.msk.bf16.mxu0 %vm9760_vm0, %v12898_v0 }
 0x168   :  { %12977 = vst [vmem:[#allocation8_spill] sm:$0xff] %v10359_v21  ;;  %3267 = vst.msk [vmem:[#allocation2 + $0x88] sm:$0xf] %vm3232_vm2, %v8312_v18  ;;  %v8313_v23 = vpack.c.bf16 %v2141_v19, %v2141_v19  ;;  %v7954_v24 = vcombine.low %v3471_v20, %v10359_v21  ;;  %v10365_v25 = vld [vmem:[#allocation2 + $0x80] sm:$0xf]  ;;  %v1919_v19 = vpop.f32.mrb[18].mxu1 }
 0x169   :  { %12978 = vst [vmem:[#allocation9_spill] sm:$0xff] %v10365_v25  ;;  %v1348_v29 = vpop.f32.mrb[72].mxu0  ;;  %v10367_v32 = vld [vmem:[#allocation2 + $0x84] sm:$0xf] }
 0x16a   :  { %12979 = vst [vmem:[#allocation10_spill] sm:$0xff] %v10367_v32  ;;  %v10369_v33 = vld [vmem:[#allocation2 + $0x84] sm:$0xf]  ;;  %3268 = vst.msk [vmem:[#allocation2 + $0x8c] sm:$0xf] %vm3232_vm2, %v8313_v23  ;;  %v1349_v34 = vadd.f32 %v10058_v43, %v1348_v29  ;;  %4055 = vrot.lane.b32.xlu1 %v7954_v24, %s9761_s26  ;;  %v8833_v35 = vpop.f32.mrb[73].mxu0 }
 0x16b   :  { %12980 = vst [vmem:[#allocation11_spill] sm:$0xff] %v10369_v33  ;;  %v1351_v39 = vpop.f32.mrb[74].mxu0  ;;  %v9118_v29 = vpop.f32.mrb[19].mxu1 }
 0x16c   :  { %v2142_v40 = vmax.f32 %v1349_v34, 0.0  ;;  %v8834_v41 = vpop.f32.mrb[75].mxu0 }
 0x16d   :  { %v1920_v41 = vadd.f32 %v10058_v43, %v1919_v19 }
 0x16e   :  { %v8314_v42 = vpack.c.bf16 %v2142_v40, %v2142_v40  ;;  %8940 = vmatmul.mubr.msk.bf16.gmra.mrb[180].mxu0 %vm830_vm1, %v9427_v36  ;;  %v1924_v36 = vpop.f32.mrb[20].mxu1 }
 0x16f   :  { %v10382_v45 = vld [vmem:[#allocation2 + $0x88] sm:$0xf]  ;;  %8943 = vmatprep.mubr.msk.bf16.mxu0 %vm9760_vm0, %v12898_v0  ;;  %v9121_v39 = vpop.f32.mrb[21].mxu1 }
 0x170   :  { %12981 = vst [vmem:[#allocation12_spill] sm:$0xff] %v10382_v45  ;;  %3269 = vst.msk [vmem:[#allocation2 + $0x90] sm:$0xf] %vm3232_vm2, %v8314_v42  ;;  %v7955_v46 = vcombine.low %v10367_v32, %v10382_v45  ;;  %v10389_v47 = vld [vmem:[#allocation2 + $0x88] sm:$0xf]  ;;  %v1927_v42 = vpop.f32.mrb[22].mxu1 }
 0x171   :  { %12982 = vst [vmem:[#allocation13_spill] sm:$0xff] %v10389_v47  ;;  %v1356_v48 = vpop.f32.mrb[76].mxu0  ;;  %v10391_v49 = vld [vmem:[#allocation2 + $0x8c] sm:$0xf] }
 0x172   :  { %12983 = vst [vmem:[#allocation14_spill] sm:$0xff] %v10391_v49  ;;  %v10393_v52 = vld [vmem:[#allocation2 + $0x8c] sm:$0xf]  ;;  %v1357_v54 = vadd.f32 %v10058_v43, %v1356_v48  ;;  %4057 = vrot.lane.b32.xlu1 %v7955_v46, %s9761_s26  ;;  %v8837_v55 = vpop.f32.mrb[77].mxu0 }
 0x173   :  { %12984 = vst [vmem:[#allocation15_spill] sm:$0xff] %v10393_v52  ;;  %v1359_v59 = vpop.f32.mrb[78].mxu0  ;;  %v9122_v55 = vpop.f32.mrb[23].mxu1 }
 0x174   :  { %v2144_v61 = vmax.f32 %v1357_v54, 0.0  ;;  %v1360_v62 = vadd.f32 %v10058_v43, %v1359_v59  ;;  %v8838_v63 = vpop.f32.mrb[79].mxu0 }
 0x175   :  { %v2285_v63 = vmax.f32 %v1920_v41, 0.0 }
 0x176   :  { %v8316_v1 = vpack.c.bf16 %v2144_v61, %v2144_v61  ;;  %v2145_v2 = vmax.f32 %v1360_v62, 0.0  ;;  %8944 = vmatmul.mubr.msk.bf16.gmra.mrb[184].mxu0 %vm830_vm1, %v9430_v56  ;;  %v10426_v56 = vld [vmem:[%s12892_s2] ss:$0 sm:$0xff] }
 0x177   :  { %v3532_v3 = vld [vmem:[#allocation2 + $0x90] sm:$0xf]  ;;  %8947 = vmatprep.mubr.msk.bf16.mxu0 %vm9760_vm0, %v12898_v0 }
 0x178   :  { %3271 = vst.msk [vmem:[#allocation2 + $0x98] sm:$0xf] %vm3232_vm2, %v8316_v1  ;;  %v8317_v4 = vpack.c.bf16 %v2145_v2, %v2145_v2  ;;  %v7956_v5 = vcombine.low %v10391_v49, %v3532_v3  ;;  %v1932_v1 = vpop.f32.mrb[24].mxu1  ;;  %v1925_v3 = vadd.f32 %v10426_v56, %v1924_v36 }
 0x179   :  { %v1364_v6 = vpop.f32.mrb[80].mxu0 }
 0x17a   :  { %3272 = vst.msk [vmem:[#allocation2 + $0x9c] sm:$0xf] %vm3232_vm2, %v8317_v4  ;;  %v1365_v8 = vadd.f32 %v10058_v43, %v1364_v6  ;;  %4059 = vrot.lane.b32.xlu1 %v7956_v5, %s9761_s26  ;;  %v8841_v12 = vpop.f32.mrb[81].mxu0  ;;  %v1928_v4 = vadd.f32 %v10426_v56, %v1927_v42  ;;  %v1933_v5 = vadd.f32 %v10426_v56, %v1932_v1  ;;  %v9125_v6 = vpop.f32.mrb[25].mxu1  ;;  %v2286_v19 = vmax.f32 %v1925_v3, 0.0 }
 0x17b   :  { %v1367_v18 = vpop.f32.mrb[82].mxu0 }
 0x17c   :  { %v2146_v20 = vmax.f32 %v1365_v8, 0.0  ;;  %v1368_v23 = vadd.f32 %v10058_v43, %v1367_v18  ;;  %v8842_v24 = vpop.f32.mrb[83].mxu0  ;;  %v9436_v43 = vld [vmem:[%s12891_s0 + $0x180] sm:$0xff]   ;;  %v8457_v18 = vpack.c.bf16 %v2285_v63, %v2285_v63  ;;  %v8458_v39 = vpack.c.bf16 %v2286_v19, %v2286_v19 }
 0x17d   :  { %v1935_v24 = vpop.f32.mrb[26].mxu1 }
 0x17e   :  { %v8318_v34 = vpack.c.bf16 %v2146_v20, %v2146_v20  ;;  %v2147_v35 = vmax.f32 %v1368_v23, 0.0  ;;  %8948 = vmatmul.mubr.msk.bf16.gmra.mrb[188].mxu0 %vm830_vm1, %v9433_v16  ;;  %v2287_v20 = vmax.f32 %v1928_v4, 0.0  ;;  %v2288_v23 = vmax.f32 %v1933_v5, 0.0  ;;  %3412 = vst.msk [vmem:[#allocation2 + $0x2cc] sm:$0xf] %vm3232_vm2, %v8457_v18 }
 0x17f   :  { %8951 = vmatprep.mubr.msk.bf16.mxu0 %vm9760_vm0, %v12898_v0  ;;  %v3506_v48 = vld [vmem:[#allocation2 + $0x98] sm:$0xf]  ;;  %v1936_v55 = vadd.f32 %v10426_v56, %v1935_v24  ;;  %3413 = vst.msk [vmem:[#allocation2 + $0x2d0] sm:$0xf] %vm3232_vm2, %v8458_v39 }
 0x180   :  { %3273 = vst.msk [vmem:[#allocation2 + $0xa0] sm:$0xf] %vm3232_vm2, %v8318_v34  ;;  %v8319_v40 = vpack.c.bf16 %v2147_v35, %v2147_v35  ;;  %v9126_v35 = vpop.f32.mrb[27].mxu1  ;;  %v8460_v41 = vpack.c.bf16 %v2288_v23, %v2288_v23 }
 0x181   :  { %v1372_v46 = vpop.f32.mrb[84].mxu0  ;;  %v3507_v54 = vld [vmem:[#allocation2 + $0x9c] sm:$0xf]  ;;  %v1940_v42 = vpop.f32.mrb[28].mxu1 }
 0x182   :  { %3274 = vst.msk [vmem:[#allocation2 + $0xa4] sm:$0xf] %vm3232_vm2, %v8319_v40  ;;  %v1373_v59 = vadd.f32 %v10426_v56, %v1372_v46  ;;  %v8845_v61 = vpop.f32.mrb[85].mxu0  ;;  %v7936_v62 = vcombine.low %v3506_v48, %v3507_v54  ;;  %v8459_v40 = vpack.c.bf16 %v2287_v20, %v2287_v20  ;;  %3415 = vst.msk [vmem:[#allocation2 + $0x2d8] sm:$0xf] %vm3232_vm2, %v8460_v41 }
 0x183   :  { %v1375_v2 = vpop.f32.mrb[86].mxu0  ;;  %v1941_v3 = vadd.f32 %v10426_v56, %v1940_v42 }
 0x184   :  { %v2148_v8 = vmax.f32 %v1373_v59, 0.0  ;;  %v1376_v12 = vadd.f32 %v10426_v56, %v1375_v2  ;;  %3989 = vrot.lane.b32.xlu1 %v7936_v62, %s9762_s30  ;;  %v8846_v16 = vpop.f32.mrb[87].mxu0  ;;  %v9129_v59 = vpop.f32.mrb[29].mxu1  ;;  %3414 = vst.msk [vmem:[#allocation2 + $0x2d4] sm:$0xf] %vm3232_vm2, %v8459_v40  ;;  %v2289_v2 = vmax.f32 %v1936_v55, 0.0 }
 0x185   :  { %v2290_v23 = vmax.f32 %v1941_v3, 0.0 }
 0x186   :  { %v8320_v29 = vpack.c.bf16 %v2148_v8, %v2148_v8  ;;  %v2149_v34 = vmax.f32 %v1376_v12, 0.0  ;;  %8952 = vmatmul.mubr.msk.bf16.gmra.mrb[192].mxu0 %vm830_vm1, %v9436_v43  ;;  %v1943_v43 = vpop.f32.mrb[30].mxu1  ;;  %v8461_v20 = vpack.c.bf16 %v2289_v2, %v2289_v2 }
 0x187   :  { %v3508_v36 = vld [vmem:[#allocation2 + $0xa0] sm:$0xf]  ;;  %8955 = vmatprep.mubr.msk.bf16.mxu0 %vm9760_vm0, %v12898_v0  ;;  %v9130_v4 = vpop.f32.mrb[31].mxu1  ;;  %v1944_v8 = vadd.f32 %v10426_v56, %v1943_v43 }
 0x188   :  { %3275 = vst.msk [vmem:[#allocation2 + $0xa8] sm:$0xf] %vm3232_vm2, %v8320_v29  ;;  %v8321_v46 = vpack.c.bf16 %v2149_v34, %v2149_v34  ;;  %v7972_v48 = vcombine.low %v3507_v54, %v3508_v36  ;;  %v9437_v54 = vld [vmem:[%s12891_s0 + $0x188] sm:$0xff]   ;;  %v1948_v12 = vpop.f32.mrb[32].mxu1  ;;  %3416 = vst.msk [vmem:[#allocation2 + $0x2dc] sm:$0xf] %vm3232_vm2, %v8461_v20 }
 0x189   :  { %v1380_v61 = vpop.f32.mrb[88].mxu0  ;;  %v3509_v62 = vld [vmem:[#allocation2 + $0xa4] sm:$0xf]  ;;  %v2291_v24 = vmax.f32 %v1944_v8, 0.0  ;;  %v1949_v29 = vadd.f32 %v10426_v56, %v1948_v12  ;;  %v9133_v34 = vpop.f32.mrb[33].mxu1 }
 0x18a   :  { %3276 = vst.msk [vmem:[#allocation2 + $0xac] sm:$0xf] %vm3232_vm2, %v8321_v46  ;;  %v1381_v63 = vadd.f32 %v10426_v56, %v1380_v61  ;;  %4121 = vrot.lane.b32.xlu1 %v7972_v48, %s9763_s10  ;;  %v8849_v1 = vpop.f32.mrb[89].mxu0  ;;  %v7937_v6 = vcombine.low %v3508_v36, %v3509_v62  ;;  %v8462_v36 = vpack.c.bf16 %v2290_v23, %v2290_v23  ;;  %v1951_v40 = vpop.f32.mrb[34].mxu1  ;;  %v3566_v34 = vld [vmem:[#allocation2 + $0x2a8] sm:$0xf] }
 0x18b   :  { %v1383_v5 = vpop.f32.mrb[90].mxu0  ;;  %v8463_v42 = vpack.c.bf16 %v2291_v24, %v2291_v24  ;;  %v2292_v46 = vmax.f32 %v1949_v29, 0.0  ;;  %v9134_v48 = vpop.f32.mrb[35].mxu1 }
 0x18c   :  { %v2150_v16 = vmax.f32 %v1381_v63, 0.0  ;;  %v1384_v18 = vadd.f32 %v10426_v56, %v1383_v5  ;;  %v8850_v19 = vpop.f32.mrb[91].mxu0  ;;  %3417 = vst.msk [vmem:[#allocation2 + $0x2e0] sm:$0xf] %vm3232_vm2, %v8462_v36  ;;  %v1956_v61 = vpop.f32.mrb[36].mxu1 }
 0x18d   :  { %3418 = vst.msk [vmem:[#allocation2 + $0x2e4] sm:$0xf] %vm3232_vm2, %v8463_v42  ;;  %v8464_v1 = vpack.c.bf16 %v2292_v46, %v2292_v46  ;;  %v9137_v2 = vpop.f32.mrb[37].mxu1 }
 0x18e   :  { %v8322_v35 = vpack.c.bf16 %v2150_v16, %v2150_v16  ;;  %v2151_v39 = vmax.f32 %v1384_v18, 0.0  ;;  %8956 = vmatmul.mubr.msk.bf16.gmra.mrb[196].mxu0 %vm830_vm1, %v9437_v54  ;;  %3991 = vrot.lane.b32.xlu1 %v7937_v6, %s9762_s30  ;;  %v1957_v54 = vadd.f32 %v10426_v56, %v1956_v61  ;;  %v1959_v5 = vpop.f32.mrb[38].mxu1 }
 0x18f   :  { %v3510_v41 = vld [vmem:[#allocation2 + $0xa8] sm:$0xf]  ;;  %8959 = vmatprep.mubr.msk.bf16.mxu0 %vm9760_vm0, %v12898_v0  ;;  %3419 = vst.msk [vmem:[#allocation2 + $0x2e8] sm:$0xf] %vm3232_vm2, %v8464_v1  ;;  %v1960_v12 = vadd.f32 %v10426_v56, %v1959_v5  ;;  %v9138_v16 = vpop.f32.mrb[39].mxu1 }
 0x190   :  { %3277 = vst.msk [vmem:[#allocation2 + $0xb0] sm:$0xf] %vm3232_vm2, %v8322_v35  ;;  %v8323_v55 = vpack.c.bf16 %v2151_v39, %v2151_v39  ;;  %v7973_v59 = vcombine.low %v3509_v62, %v3510_v41  ;;  %v9439_v62 = vld [vmem:[%s12891_s0 + $0x190] sm:$0xff]   ;;  %v2294_v8 = vmax.f32 %v1957_v54, 0.0  ;;  %v3618_v35 = vld [vmem:[#allocation2 + $0x2ac] sm:$0xf] }
 0x191   :  { %v1388_v43 = vpop.f32.mrb[92].mxu0  ;;  %v3511_v63 = vld [vmem:[#allocation2 + $0xac] sm:$0xf]  ;;  %v2295_v29 = vmax.f32 %v1960_v12, 0.0  ;;  %v8031_v40 = vcombine.low %v3566_v34, %v3618_v35  ;;  %v1964_v48 = vpop.f32.mrb[40].mxu1 }
 0x192   :  { %3278 = vst.msk [vmem:[#allocation2 + $0xb4] sm:$0xf] %vm3232_vm2, %v8323_v55  ;;  %v1389_v3 = vadd.f32 %v10426_v56, %v1388_v43  ;;  %4123 = vrot.lane.b32.xlu1 %v7973_v59, %s9763_s10  ;;  %v8853_v4 = vpop.f32.mrb[93].mxu0  ;;  %v7938_v23 = vcombine.low %v3510_v41, %v3511_v63  ;;  %v8466_v24 = vpack.c.bf16 %v2294_v8, %v2294_v8  ;;  %v9141_v61 = vpop.f32.mrb[41].mxu1  ;;  %v3624_v1 = vld [vmem:[#allocation2 + $0x2cc] sm:$0xf] }
 0x193   :  { %v1391_v6 = vpop.f32.mrb[94].mxu0  ;;  %v8467_v46 = vpack.c.bf16 %v2295_v29, %v2295_v29  ;;  %v1965_v59 = vadd.f32 %v10426_v56, %v1964_v48  ;;  %4413 = vrot.lane.b32.xlu0 %v8031_v40, %s9761_s26  ;;  %v8049_v4 = vcombine.low %v10188_v51, %v3624_v1  ;;  %v1967_v5 = vpop.f32.mrb[42].mxu1  ;;  %v10507_v61 = vld [vmem:[#allocation2 + $0x2d8] sm:$0xf] }
 0x194   :  { %v2152_v18 = vmax.f32 %v1389_v3, 0.0  ;;  %v1392_v19 = vadd.f32 %v10426_v56, %v1391_v6  ;;  %v8854_v20 = vpop.f32.mrb[95].mxu0  ;;  %3421 = vst.msk [vmem:[#allocation2 + $0x2f0] sm:$0xf] %vm3232_vm2, %v8466_v24  ;;  %12986 = vst [vmem:[#allocation17_spill] sm:$0xff] %v10507_v61 }
 0x195   :  { %3422 = vst.msk [vmem:[#allocation2 + $0x2f4] sm:$0xf] %vm3232_vm2, %v8467_v46  ;;  %v2296_v3 = vmax.f32 %v1965_v59, 0.0  ;;  %v3568_v46 = vld [vmem:[#allocation2 + $0x2d4] sm:$0xf]  ;;  %v9443_v59 = vld [vmem:[%s12891_s0 + $0x1a0] sm:$0xff]  }
 0x196   :  { %v8324_v39 = vpack.c.bf16 %v2152_v18, %v2152_v18  ;;  %v2153_v36 = vmax.f32 %v1392_v19, 0.0  ;;  %8960 = vmatmul.mubr.msk.bf16.gmra.mrb[200].mxu0 %vm830_vm1, %v9439_v62  ;;  %3993 = vrot.lane.b32.xlu1 %v7938_v23, %s9762_s30  ;;  %v1968_v18 = vadd.f32 %v10426_v56, %v1967_v5  ;;  %v9142_v19 = vpop.f32.mrb[43].mxu1 }
 0x197   :  { %v3538_v42 = vld [vmem:[#allocation2 + $0xb0] sm:$0xf]  ;;  %8963 = vmatprep.mubr.msk.bf16.mxu0 %vm9760_vm0, %v12898_v0  ;;  %v8468_v16 = vpack.c.bf16 %v2296_v3, %v2296_v3  ;;  %4479 = vrot.lane.b32.xlu0 %v8049_v4, %s9763_s10  ;;  %v1972_v1 = vpop.f32.mrb[44].mxu1 }
 0x198   :  { %3279 = vst.msk [vmem:[#allocation2 + $0xb8] sm:$0xf] %vm3232_vm2, %v8324_v39  ;;  %v8325_v41 = vpack.c.bf16 %v2153_v36, %v2153_v36  ;;  %v7974_v55 = vcombine.low %v3511_v63, %v3538_v42  ;;  %v9440_v63 = vld [vmem:[%s12891_s0 + $0x198] sm:$0xff]   ;;  %v2297_v24 = vmax.f32 %v1968_v18, 0.0  ;;  %v1973_v4 = vadd.f32 %v10426_v56, %v1972_v1 }
 0x199   :  { %v1396_v43 = vpop.f32.mrb[96].mxu0  ;;  %3423 = vst.msk [vmem:[#allocation2 + $0x2f8] sm:$0xf] %vm3232_vm2, %v8468_v16 }
 0x19a   :  { %3280 = vst.msk [vmem:[#allocation2 + $0xbc] sm:$0xf] %vm3232_vm2, %v8325_v41  ;;  %v1397_v54 = vadd.f32 %v10426_v56, %v1396_v43  ;;  %4125 = vrot.lane.b32.xlu1 %v7974_v55, %s9763_s10  ;;  %v8857_v2 = vpop.f32.mrb[97].mxu0  ;;  %v8469_v35 = vpack.c.bf16 %v2297_v24, %v2297_v24 }
 0x19b   :  { %v1399_v62 = vpop.f32.mrb[98].mxu0  ;;  %v3603_v51 = vld [vmem:[#allocation2 + $0x2f0] sm:$0xf] }
 0x19c   :  { %v2154_v6 = vmax.f32 %v1397_v54, 0.0  ;;  %v1400_v8 = vadd.f32 %v10426_v56, %v1399_v62  ;;  %v8858_v12 = vpop.f32.mrb[99].mxu0  ;;  %v3604_v39 = vld [vmem:[#allocation2 + $0x2f4] sm:$0xf]  ;;  %3424 = vst.msk [vmem:[#allocation2 + $0x2fc] sm:$0xf] %vm3232_vm2, %v8469_v35  ;;  %v8032_v54 = vcombine.low %v3568_v46, %v10507_v61 }
 0x19d   :  { %v8014_v42 = vcombine.low %v3603_v51, %v3604_v39  ;;  %v9145_v62 = vpop.f32.mrb[45].mxu1  ;;  %v2298_v12 = vmax.f32 %v1973_v4, 0.0  ;;  %v10544_v4 = vld [vmem:[#allocation2 + $0x2e0] sm:$0xf] }
 0x19e   :  { %v8326_v20 = vpack.c.bf16 %v2154_v6, %v2154_v6  ;;  %v2155_v23 = vmax.f32 %v1400_v8, 0.0  ;;  %8964 = vmatmul.mubr.msk.bf16.gmra.mrb[204].mxu0 %vm830_vm1, %v9440_v63  ;;  %v1975_v18 = vpop.f32.mrb[46].mxu1  ;;  %12992 = vst [vmem:[#allocation23_spill] sm:$0xff] %v10544_v4 }
 0x19f   :  { %8967 = vmatprep.mubr.msk.bf16.mxu0 %vm9760_vm0, %v12898_v0  ;;  %v3477_v34 = vld [vmem:[#allocation2 + $0xb8] sm:$0xf]  ;;  %4349 = vrot.lane.b32.xlu0 %v8014_v42, %s9762_s30  ;;  %v8470_v51 = vpack.c.bf16 %v2298_v12, %v2298_v12 }
 0x1a0   :  { %3281 = vst.msk [vmem:[#allocation2 + $0xc0] sm:$0xf] %vm3232_vm2, %v8326_v20  ;;  %v8327_v29 = vpack.c.bf16 %v2155_v23, %v2155_v23  ;;  %v3605_v5 = vld [vmem:[#allocation2 + $0x2f8] sm:$0xf] }
 0x1a1   :  { %v1404_v36 = vpop.f32.mrb[100].mxu0  ;;  %v10498_v40 = vld [vmem:[#allocation2 + $0xbc] sm:$0xf]  ;;  %v8050_v19 = vcombine.low %v3604_v39, %v3605_v5  ;;  %3425 = vst.msk [vmem:[#allocation2 + $0x300] sm:$0xf] %vm3232_vm2, %v8470_v51 }
 0x1a2   :  { %12985 = vst [vmem:[#allocation16_spill] sm:$0xff] %v10498_v40  ;;  %3282 = vst.msk [vmem:[#allocation2 + $0xc4] sm:$0xf] %vm3232_vm2, %v8327_v29  ;;  %v1405_v48 = vadd.f32 %v10426_v56, %v1404_v36  ;;  %v8861_v41 = vpop.f32.mrb[101].mxu0  ;;  %v7957_v55 = vcombine.low %v3477_v34, %v10498_v40  ;;  %v1976_v29 = vadd.f32 %v10426_v56, %v1975_v18  ;;  %v9146_v34 = vpop.f32.mrb[47].mxu1 }
 0x1a3   :  { %v1407_v43 = vpop.f32.mrb[102].mxu0  ;;  %4415 = vrot.lane.b32.xlu0 %v8032_v54, %s9761_s26  ;;  %v10526_v35 = vld [vmem:[#allocation2 + $0xbc] sm:$0xf] }
 0x1a4   :  { %v2156_v2 = vmax.f32 %v1405_v48, 0.0  ;;  %v1408_v63 = vadd.f32 %v10426_v56, %v1407_v43  ;;  %4061 = vrot.lane.b32.xlu1 %v7957_v55, %s9761_s26  ;;  %v8862_v3 = vpop.f32.mrb[103].mxu0  ;;  %12989 = vst [vmem:[#allocation20_spill] sm:$0xff] %v10526_v35  ;;  %v3606_v46 = vld [vmem:[#allocation2 + $0x2fc] sm:$0xf]  ;;  %v9445_v55 = vld [vmem:[%s12891_s0 + $0x1a8] sm:$0xff]  }
 0x1a5   :  { %v8015_v1 = vcombine.low %v3605_v5, %v3606_v46  ;;  %v10542_v3 = vld [vmem:[#allocation2 + $0x2dc] sm:$0xf]  ;;  %v1980_v5 = vpop.f32.mrb[48].mxu1 }
 0x1a6   :  { %v8328_v6 = vpack.c.bf16 %v2156_v2, %v2156_v2  ;;  %v2157_v8 = vmax.f32 %v1408_v63, 0.0  ;;  %8968 = vmatmul.mubr.msk.bf16.gmra.mrb[208].mxu0 %vm830_vm1, %v9443_v59  ;;  %v2299_v59 = vmax.f32 %v1976_v29, 0.0  ;;  %12991 = vst [vmem:[#allocation22_spill] sm:$0xff] %v10542_v3  ;;  %v9149_v51 = vpop.f32.mrb[49].mxu1 }
 0x1a7   :  { %v10515_v16 = vld [vmem:[#allocation2 + $0xc0] sm:$0xf]  ;;  %8971 = vmatprep.mubr.msk.bf16.mxu0 %vm9760_vm0, %v12898_v0  ;;  %4481 = vrot.lane.b32.xlu0 %v8050_v19, %s9763_s10 }
 0x1a8   :  { %12987 = vst [vmem:[#allocation18_spill] sm:$0xff] %v10515_v16  ;;  %v10520_v20 = vld [vmem:[#allocation2 + $0xc0] sm:$0xf]  ;;  %3283 = vst.msk [vmem:[#allocation2 + $0xc8] sm:$0xf] %vm3232_vm2, %v8328_v6  ;;  %v8329_v23 = vpack.c.bf16 %v2157_v8, %v2157_v8  ;;  %v8471_v63 = vpack.c.bf16 %v2299_v59, %v2299_v59  ;;  %v8033_v8 = vcombine.low %v10542_v3, %v10544_v4  ;;  %v9446_v59 = vld [vmem:[%s12891_s0 + $0x1b0] sm:$0xff]  }
 0x1a9   :  { %12988 = vst [vmem:[#allocation19_spill] sm:$0xff] %v10520_v20  ;;  %v1412_v36 = vpop.f32.mrb[104].mxu0  ;;  %v10528_v42 = vld [vmem:[#allocation2 + $0xc4] sm:$0xf] }
 0x1aa   :  { %12990 = vst [vmem:[#allocation21_spill] sm:$0xff] %v10528_v42  ;;  %3284 = vst.msk [vmem:[#allocation2 + $0xcc] sm:$0xf] %vm3232_vm2, %v8329_v23  ;;  %v8865_v48 = vpop.f32.mrb[105].mxu0  ;;  %v7958_v41 = vcombine.low %v10515_v16, %v10528_v42  ;;  %v10548_v6 = vld [vmem:[#allocation2 + $0xc4] sm:$0xf]  ;;  %v1981_v23 = vadd.f32 %v10426_v56, %v1980_v5 }
 0x1ab   :  { %v1415_v43 = vpop.f32.mrb[106].mxu0  ;;  %3426 = vst.msk [vmem:[#allocation2 + $0x304] sm:$0xf] %vm3232_vm2, %v8471_v63  ;;  %12993 = vst [vmem:[#allocation24_spill] sm:$0xff] %v10548_v6  ;;  %4351 = vrot.lane.b32.xlu0 %v8015_v1, %s9762_s30  ;;  %v3607_v48 = vld [vmem:[#allocation2 + $0x300] sm:$0xf] }
 0x1ac   :  { %v1416_v54 = vadd.f32 %v10426_v56, %v1415_v43  ;;  %4063 = vrot.lane.b32.xlu1 %v7958_v41, %s9761_s26  ;;  %v8866_v2 = vpop.f32.mrb[107].mxu0  ;;  %v2300_v43 = vmax.f32 %v1981_v23, 0.0 }
 0x1ad   :  { %v8051_v2 = vcombine.low %v3606_v46, %v3607_v48 }
 0x1ae   :  { %v2159_v62 = vmax.f32 %v1416_v54, 0.0  ;;  %8972 = vmatmul.mubr.msk.bf16.gmra.mrb[212].mxu0 %vm830_vm1, %v9445_v55 }
 0x1af   :  { %8975 = vmatprep.mubr.msk.bf16.mxu0 %vm9760_vm0, %v12898_v0  ;;  %v10555_v12 = vld [vmem:[#allocation2 + $0xc8] sm:$0xf]  ;;  %4417 = vrot.lane.b32.xlu0 %v8033_v8, %s9761_s26 }
 0x1b0   :  { %12994 = vst [vmem:[#allocation25_spill] sm:$0xff] %v10555_v12  ;;  %v10557_v18 = vld [vmem:[#allocation2 + $0xc8] sm:$0xf]  ;;  %v8331_v19 = vpack.c.bf16 %v2159_v62, %v2159_v62 }
 0x1b1   :  { %12995 = vst [vmem:[#allocation26_spill] sm:$0xff] %v10557_v18  ;;  %v1420_v36 = vpop.f32.mrb[108].mxu0 }
 0x1b2   :  { %3286 = vst.msk [vmem:[#allocation2 + $0xd4] sm:$0xf] %vm3232_vm2, %v8331_v19  ;;  %v1421_v41 = vadd.f32 %v10426_v56, %v1420_v36  ;;  %v8869_v55 = vpop.f32.mrb[109].mxu0  ;;  %v8472_v19 = vpack.c.bf16 %v2300_v43, %v2300_v43  ;;  %v3608_v51 = vld [vmem:[#allocation2 + $0x304] sm:$0xf] }
 0x1b3   :  { %v1423_v54 = vpop.f32.mrb[110].mxu0  ;;  %4483 = vrot.lane.b32.xlu0 %v8051_v2, %s9763_s10  ;;  %v8016_v23 = vcombine.low %v3607_v48, %v3608_v51  ;;  %v3619_v48 = vld [vmem:[#allocation2 + $0x2e8] sm:$0xf] }
 0x1b4   :  { %v2160_v63 = vmax.f32 %v1421_v41, 0.0  ;;  %v1424_v62 = vadd.f32 %v10426_v56, %v1423_v54  ;;  %v8870_v5 = vpop.f32.mrb[111].mxu0  ;;  %3427 = vst.msk [vmem:[#allocation2 + $0x308] sm:$0xf] %vm3232_vm2, %v8472_v19  ;;  %v1983_v41 = vpop.f32.mrb[50].mxu1 }
 0x1b5   :  { %v10579_v54 = vld [vmem:[#allocation2 + $0x2e4] sm:$0xf]  ;;  %v9150_v2 = vpop.f32.mrb[51].mxu1 }
 0x1b6   :  { %v8332_v36 = vpack.c.bf16 %v2160_v63, %v2160_v63  ;;  %v2161_v55 = vmax.f32 %v1424_v62, 0.0  ;;  %8976 = vmatmul.mubr.msk.bf16.gmra.mrb[216].mxu0 %vm830_vm1, %v9446_v59  ;;  %12996 = vst [vmem:[#allocation27_spill] sm:$0xff] %v10579_v54  ;;  %v9447_v63 = vld [vmem:[%s12891_s0 + $0x1b8] sm:$0xff]   ;;  %v1984_v62 = vadd.f32 %v10426_v56, %v1983_v41  ;;  %v1988_v19 = vpop.f32.mrb[52].mxu1 }
 0x1b7   :  { %8979 = vmatprep.mubr.msk.bf16.mxu0 %vm9760_vm0, %v12898_v0  ;;  %4353 = vrot.lane.b32.xlu0 %v8016_v23, %s9762_s30 }
 0x1b8   :  { %3287 = vst.msk [vmem:[#allocation2 + $0xd8] sm:$0xf] %vm3232_vm2, %v8332_v36  ;;  %v8333_v46 = vpack.c.bf16 %v2161_v55, %v2161_v55  ;;  %v8034_v36 = vcombine.low %v10579_v54, %v3619_v48  ;;  %v1989_v48 = vadd.f32 %v10426_v56, %v1988_v19 }
 0x1b9   :  { %v1428_v8 = vpop.f32.mrb[112].mxu0  ;;  %v3512_v31 = vld [vmem:[#allocation2 + $0xd4] sm:$0xf] }
 0x1ba   :  { %3288 = vst.msk [vmem:[#allocation2 + $0xdc] sm:$0xf] %vm3232_vm2, %v8333_v46  ;;  %v1429_v43 = vadd.f32 %v10426_v56, %v1428_v8  ;;  %v8873_v59 = vpop.f32.mrb[113].mxu0  ;;  %v2301_v8 = vmax.f32 %v1984_v62, 0.0 }
 0x1bb   :  { %v1431_v5 = vpop.f32.mrb[114].mxu0  ;;  %v9153_v59 = vpop.f32.mrb[53].mxu1  ;;  %v3625_v39 = vld [vmem:[#allocation2 + $0x308] sm:$0xf]  ;;  %4419 = vrot.lane.b32.xlu0 %v8034_v36, %s9761_s26 }
 0x1bc   :  { %v2162_v55 = vmax.f32 %v1429_v43, 0.0  ;;  %v1432_v46 = vadd.f32 %v10426_v56, %v1431_v5  ;;  %v8874_v34 = vpop.f32.mrb[115].mxu0  ;;  %v8473_v41 = vpack.c.bf16 %v2301_v8, %v2301_v8  ;;  %v1991_v2 = vpop.f32.mrb[54].mxu1  ;;  %v8052_v43 = vcombine.low %v3608_v51, %v3625_v39 }
 0x1bd   :  { %v9154_v23 = vpop.f32.mrb[55].mxu1  ;;  %v1992_v39 = vadd.f32 %v10426_v56, %v1991_v2 }
 0x1be   :  { %v8334_v58 = vpack.c.bf16 %v2162_v55, %v2162_v55  ;;  %v2163_v38 = vmax.f32 %v1432_v46, 0.0  ;;  %8980 = vmatmul.mubr.msk.bf16.gmra.mrb[220].mxu0 %vm830_vm1, %v9447_v63  ;;  %3428 = vst.msk [vmem:[#allocation2 + $0x30c] sm:$0xf] %vm3232_vm2, %v8473_v41  ;;  %v1996_v5 = vpop.f32.mrb[56].mxu1 }
 0x1bf   :  { %v3513_v15 = vld [vmem:[#allocation2 + $0xd8] sm:$0xf]  ;;  %8983 = vmatprep.mubr.msk.bf16.mxu0 %vm9760_vm0, %v12898_v0  ;;  %v9157_v8 = vpop.f32.mrb[57].mxu1  ;;  %v1997_v41 = vadd.f32 %v10426_v56, %v1996_v5  ;;  %4485 = vrot.lane.b32.xlu0 %v8052_v43, %s9763_s10  ;;  %v2303_v63 = vmax.f32 %v1992_v39, 0.0 }
 0x1c0   :  { %3289 = vst.msk [vmem:[#allocation2 + $0xe0] sm:$0xf] %vm3232_vm2, %v8334_v58  ;;  %v8335_v34 = vpack.c.bf16 %v2163_v38, %v2163_v38  ;;  %v7939_v62 = vcombine.low %v3512_v31, %v3513_v15  ;;  %v9449_v31 = vld [vmem:[%s12891_s0 + $0x1c0] sm:$0xff]   ;;  %v2302_v38 = vmax.f32 %v1989_v48, 0.0  ;;  %v1999_v51 = vpop.f32.mrb[58].mxu1 }
 0x1c1   :  { %v1436_v55 = vpop.f32.mrb[116].mxu0  ;;  %v3514_v46 = vld [vmem:[#allocation2 + $0xdc] sm:$0xf]  ;;  %v2000_v23 = vadd.f32 %v10426_v56, %v1999_v51  ;;  %v2304_v1 = vmax.f32 %v1997_v41, 0.0 }
 0x1c2   :  { %3290 = vst.msk [vmem:[#allocation2 + $0xe4] sm:$0xf] %vm3232_vm2, %v8335_v34  ;;  %v1437_v36 = vadd.f32 %v10426_v56, %v1436_v55  ;;  %3995 = vrot.lane.b32.xlu1 %v7939_v62, %s9762_s30  ;;  %v8877_v58 = vpop.f32.mrb[117].mxu0  ;;  %v7975_v59 = vcombine.low %v3513_v15, %v3514_v46  ;;  %v9158_v34 = vpop.f32.mrb[59].mxu1  ;;  %v8475_v15 = vpack.c.bf16 %v2303_v63, %v2303_v63 }
 0x1c3   :  { %v1439_v19 = vpop.f32.mrb[118].mxu0  ;;  %v8474_v58 = vpack.c.bf16 %v2302_v38, %v2302_v38  ;;  %v2305_v48 = vmax.f32 %v2000_v23, 0.0  ;;  %v2004_v29 = vpop.f32.mrb[60].mxu1 }
 0x1c4   :  { %v2164_v55 = vmax.f32 %v1437_v36, 0.0  ;;  %v1440_v62 = vadd.f32 %v10426_v56, %v1439_v19  ;;  %v8878_v8 = vpop.f32.mrb[119].mxu0  ;;  %v9161_v43 = vpop.f32.mrb[61].mxu1  ;;  %v8476_v36 = vpack.c.bf16 %v2304_v1, %v2304_v1  ;;  %3430 = vst.msk [vmem:[#allocation2 + $0x314] sm:$0xf] %vm3232_vm2, %v8475_v15 }
 0x1c5   :  { %3429 = vst.msk [vmem:[#allocation2 + $0x310] sm:$0xf] %vm3232_vm2, %v8474_v58  ;;  %v8477_v38 = vpack.c.bf16 %v2305_v48, %v2305_v48  ;;  %v2007_v39 = vpop.f32.mrb[62].mxu1 }
 0x1c6   :  { %v8336_v2 = vpack.c.bf16 %v2164_v55, %v2164_v55  ;;  %v2165_v24 = vmax.f32 %v1440_v62, 0.0  ;;  %8984 = vmatmul.mubr.msk.bf16.gmra.mrb[224].mxu0 %vm830_vm1, %v9449_v31  ;;  %4127 = vrot.lane.b32.xlu1 %v7975_v59, %s9763_s10  ;;  %v2005_v31 = vadd.f32 %v10426_v56, %v2004_v29  ;;  %v9162_v59 = vpop.f32.mrb[63].mxu1  ;;  %3431 = vst.msk [vmem:[#allocation2 + $0x318] sm:$0xf] %vm3232_vm2, %v8476_v36 }
 0x1c7   :  { %v3515_v5 = vld [vmem:[#allocation2 + $0xe0] sm:$0xf]  ;;  %8987 = vmatprep.mubr.msk.bf16.mxu0 %vm9760_vm0, %v12898_v0  ;;  %3432 = vst.msk [vmem:[#allocation2 + $0x31c] sm:$0xf] %vm3232_vm2, %v8477_v38  ;;  %v2012_v63 = vpop.f32.mrb[64].mxu1  ;;  %v2008_v34 = vadd.f32 %v10426_v56, %v2007_v39 }
 0x1c8   :  { %3291 = vst.msk [vmem:[#allocation2 + $0xe8] sm:$0xf] %vm3232_vm2, %v8336_v2  ;;  %v8337_v51 = vpack.c.bf16 %v2165_v24, %v2165_v24  ;;  %v7940_v19 = vcombine.low %v3514_v46, %v3515_v5  ;;  %v9450_v46 = vld [vmem:[%s12891_s0 + $0x1c8] sm:$0xff]   ;;  %v2306_v29 = vmax.f32 %v2005_v31, 0.0  ;;  %v9165_v55 = vpop.f32.mrb[65].mxu1 }
 0x1c9   :  { %v1444_v41 = vpop.f32.mrb[120].mxu0  ;;  %v3516_v23 = vld [vmem:[#allocation2 + $0xe4] sm:$0xf]  ;;  %v2015_v58 = vpop.f32.mrb[66].mxu1  ;;  %v2307_v36 = vmax.f32 %v2008_v34, 0.0  ;;  %v9451_v55 = vld [vmem:[%s12891_s0 + $0x1d0] sm:$0xff]  }
 0x1ca   :  { %3292 = vst.msk [vmem:[#allocation2 + $0xec] sm:$0xf] %vm3232_vm2, %v8337_v51  ;;  %v1445_v1 = vadd.f32 %v10426_v56, %v1444_v41  ;;  %3997 = vrot.lane.b32.xlu1 %v7940_v19, %s9762_s30  ;;  %v8881_v24 = vpop.f32.mrb[121].mxu0  ;;  %v7976_v8 = vcombine.low %v3515_v5, %v3516_v23  ;;  %v8478_v43 = vpack.c.bf16 %v2306_v29, %v2306_v29  ;;  %v9166_v51 = vpop.f32.mrb[67].mxu1 }
 0x1cb   :  { %v1447_v62 = vpop.f32.mrb[122].mxu0  ;;  %v2016_v38 = vadd.f32 %v10426_v56, %v2015_v58  ;;  %v8479_v39 = vpack.c.bf16 %v2307_v36, %v2307_v36  ;;  %v2020_v5 = vpop.f32.mrb[68].mxu1 }
 0x1cc   :  { %v2166_v48 = vmax.f32 %v1445_v1, 0.0  ;;  %v1448_v2 = vadd.f32 %v10426_v56, %v1447_v62  ;;  %v8882_v15 = vpop.f32.mrb[123].mxu0  ;;  %3433 = vst.msk [vmem:[#allocation2 + $0x320] sm:$0xf] %vm3232_vm2, %v8478_v43  ;;  %v2021_v41 = vadd.f32 %v10426_v56, %v2020_v5  ;;  %v9169_v23 = vpop.f32.mrb[69].mxu1 }
 0x1cd   :  { %v2309_v31 = vmax.f32 %v2016_v38, 0.0  ;;  %3434 = vst.msk [vmem:[#allocation2 + $0x324] sm:$0xf] %vm3232_vm2, %v8479_v39  ;;  %v2023_v58 = vpop.f32.mrb[70].mxu1 }
 0x1ce   :  { %v8338_v19 = vpack.c.bf16 %v2166_v48, %v2166_v48  ;;  %v2167_v59 = vmax.f32 %v1448_v2, 0.0  ;;  %8988 = vmatmul.mubr.msk.bf16.gmra.mrb[228].mxu0 %vm830_vm1, %v9450_v46  ;;  %4129 = vrot.lane.b32.xlu1 %v7976_v8, %s9763_s10  ;;  %v2310_v46 = vmax.f32 %v2021_v41, 0.0  ;;  %v2024_v43 = vadd.f32 %v10426_v56, %v2023_v58  ;;  %v9170_v36 = vpop.f32.mrb[71].mxu1 }
 0x1cf   :  { %8991 = vmatprep.mubr.msk.bf16.mxu0 %vm9760_vm0, %v12898_v0  ;;  %v8481_v24 = vpack.c.bf16 %v2309_v31, %v2309_v31 }
 0x1d0   :  { %3293 = vst.msk [vmem:[#allocation2 + $0xf0] sm:$0xf] %vm3232_vm2, %v8338_v19  ;;  %v8339_v63 = vpack.c.bf16 %v2167_v59, %v2167_v59  ;;  %v8482_v8 = vpack.c.bf16 %v2310_v46, %v2310_v46  ;;  %v2311_v19 = vmax.f32 %v2024_v43, 0.0  ;;  %v2028_v59 = vpop.f32.mrb[72].mxu1  ;;  %v10658_v43 = vld [vmem:[#allocation2 + $0x314] sm:$0xf] }
 0x1d1   :  { %v1452_v1 = vpop.f32.mrb[124].mxu0  ;;  %3436 = vst.msk [vmem:[#allocation2 + $0x32c] sm:$0xf] %vm3232_vm2, %v8481_v24  ;;  %v2029_v31 = vadd.f32 %v10426_v56, %v2028_v59  ;;  %v9173_v41 = vpop.f32.mrb[73].mxu1  ;;  %v9452_v24 = vld [vmem:[%s12891_s0 + $0x1d8] sm:$0xff]   ;;  %12997 = vst [vmem:[#allocation28_spill] sm:$0xff] %v10658_v43 }
 0x1d2   :  { %3294 = vst.msk [vmem:[#allocation2 + $0xf4] sm:$0xf] %vm3232_vm2, %v8339_v63  ;;  %v1453_v29 = vadd.f32 %v10426_v56, %v1452_v1  ;;  %v8885_v34 = vpop.f32.mrb[125].mxu0  ;;  %3437 = vst.msk [vmem:[#allocation2 + $0x330] sm:$0xf] %vm3232_vm2, %v8482_v8  ;;  %v8483_v5 = vpack.c.bf16 %v2311_v19, %v2311_v19 }
 0x1d3   :  { %v1455_v62 = vpop.f32.mrb[126].mxu0  ;;  %v2312_v46 = vmax.f32 %v2029_v31, 0.0 }
 0x1d4   :  { %v2168_v48 = vmax.f32 %v1453_v29, 0.0  ;;  %v1456_v2 = vadd.f32 %v10426_v56, %v1455_v62  ;;  %v8886_v15 = vpop.f32.mrb[127].mxu0  ;;  %3438 = vst.msk [vmem:[#allocation2 + $0x334] sm:$0xf] %vm3232_vm2, %v8483_v5 }
 0x1d5   :  { %v8484_v58 = vpack.c.bf16 %v2312_v46, %v2312_v46  ;;  %v3574_v15 = vld [vmem:[#allocation2 + $0x310] sm:$0xf] }
 0x1d6   :  { %v8340_v38 = vpack.c.bf16 %v2168_v48, %v2168_v48  ;;  %v2169_v51 = vmax.f32 %v1456_v2, 0.0  ;;  %8992 = vmatmul.mubr.msk.bf16.gmra.mrb[232].mxu0 %vm830_vm1, %v9451_v55  ;;  %v8035_v19 = vcombine.low %v3574_v15, %v10658_v43 }
 0x1d7   :  { %8995 = vmatprep.mubr.msk.bf16.mxu0 %vm9760_vm0, %v12898_v0  ;;  %3439 = vst.msk [vmem:[#allocation2 + $0x338] sm:$0xf] %vm3232_vm2, %v8484_v58 }
 0x1d8   :  { %3295 = vst.msk [vmem:[#allocation2 + $0xf8] sm:$0xf] %vm3232_vm2, %v8340_v38  ;;  %v8341_v39 = vpack.c.bf16 %v2169_v51, %v2169_v51  ;;  %v3609_v29 = vld [vmem:[#allocation2 + $0x32c] sm:$0xf]  ;;  %v2031_v51 = vpop.f32.mrb[74].mxu1 }
 0x1d9   :  { %v1460_v23 = vpop.f32.mrb[128].mxu0  ;;  %v3610_v48 = vld [vmem:[#allocation2 + $0x330] sm:$0xf]  ;;  %v9174_v5 = vpop.f32.mrb[75].mxu1 }
 0x1da   :  { %3296 = vst.msk [vmem:[#allocation2 + $0xfc] sm:$0xf] %vm3232_vm2, %v8341_v39  ;;  %v1461_v63 = vadd.f32 %v10426_v56, %v1460_v23  ;;  %v8889_v1 = vpop.f32.mrb[129].mxu0  ;;  %v8017_v2 = vcombine.low %v3609_v29, %v3610_v48  ;;  %v2032_v39 = vadd.f32 %v10426_v56, %v2031_v51  ;;  %v9453_v23 = vld [vmem:[%s12891_s0 + $0x1e0] sm:$0xff]   ;;  %v2036_v51 = vpop.f32.mrb[76].mxu1 }
 0x1db   :  { %v1463_v34 = vpop.f32.mrb[130].mxu0  ;;  %v2037_v5 = vadd.f32 %v10426_v56, %v2036_v51 }
 0x1dc   :  { %v2170_v55 = vmax.f32 %v1461_v63, 0.0  ;;  %v1464_v62 = vadd.f32 %v10426_v56, %v1463_v34  ;;  %v8890_v8 = vpop.f32.mrb[131].mxu0  ;;  %4355 = vrot.lane.b32.xlu0 %v8017_v2, %s9762_s30  ;;  %v3611_v63 = vld [vmem:[#allocation2 + $0x334] sm:$0xf]  ;;  %v2313_v29 = vmax.f32 %v2032_v39, 0.0 }
 0x1dd   :  { %v8053_v58 = vcombine.low %v3610_v48, %v3611_v63 }
 0x1de   :  { %v8342_v36 = vpack.c.bf16 %v2170_v55, %v2170_v55  ;;  %v2171_v38 = vmax.f32 %v1464_v62, 0.0  ;;  %8996 = vmatmul.mubr.msk.bf16.gmra.mrb[236].mxu0 %vm830_vm1, %v9452_v24 }
 0x1df   :  { %8999 = vmatprep.mubr.msk.bf16.mxu0 %vm9760_vm0, %v12898_v0  ;;  %v10668_v31 = vld [vmem:[#allocation2 + $0xf8] sm:$0xf] }
 0x1e0   :  { %3297 = vst.msk [vmem:[#allocation2 + $0x100] sm:$0xf] %vm3232_vm2, %v8342_v36  ;;  %v8343_v59 = vpack.c.bf16 %v2171_v38, %v2171_v38  ;;  %12998 = vst [vmem:[#allocation29_spill] sm:$0xff] %v10668_v31  ;;  %v10679_v55 = vld [vmem:[#allocation2 + $0xf8] sm:$0xf]  ;;  %4421 = vrot.lane.b32.xlu0 %v8035_v19, %s9761_s26  ;;  %v8485_v38 = vpack.c.bf16 %v2313_v29, %v2313_v29  ;;  %v2314_v19 = vmax.f32 %v2037_v5, 0.0 }
 0x1e1   :  { %v1468_v41 = vpop.f32.mrb[132].mxu0  ;;  %v10673_v1 = vld [vmem:[#allocation2 + $0xfc] sm:$0xf]  ;;  %13000 = vst [vmem:[#allocation31_spill] sm:$0xff] %v10679_v55 }
 0x1e2   :  { %12999 = vst [vmem:[#allocation30_spill] sm:$0xff] %v10673_v1  ;;  %3298 = vst.msk [vmem:[#allocation2 + $0x104] sm:$0xf] %vm3232_vm2, %v8343_v59  ;;  %v1469_v24 = vadd.f32 %v10426_v56, %v1468_v41  ;;  %v8893_v46 = vpop.f32.mrb[133].mxu0  ;;  %v10681_v62 = vld [vmem:[#allocation2 + $0xfc] sm:$0xf] }
 0x1e3   :  { %13001 = vst [vmem:[#allocation32_spill] sm:$0xff] %v10681_v62  ;;  %v1471_v8 = vpop.f32.mrb[134].mxu0  ;;  %v3612_v59 = vld [vmem:[#allocation2 + $0x338] sm:$0xf]  ;;  %3440 = vst.msk [vmem:[#allocation2 + $0x33c] sm:$0xf] %vm3232_vm2, %v8485_v38 }
 0x1e4   :  { %v2172_v15 = vmax.f32 %v1469_v24, 0.0  ;;  %v8894_v36 = vpop.f32.mrb[135].mxu0  ;;  %v9177_v41 = vpop.f32.mrb[77].mxu1  ;;  %4487 = vrot.lane.b32.xlu0 %v8053_v58, %s9763_s10  ;;  %v8018_v48 = vcombine.low %v3611_v63, %v3612_v59  ;;  %v3577_v8 = vld [vmem:[#allocation2 + $0x31c] sm:$0xf]  ;;  %v9454_v38 = vld [vmem:[%s12891_s0 + $0x1e8] sm:$0xff]   ;;  %v8486_v58 = vpack.c.bf16 %v2314_v19, %v2314_v19 }
 0x1e5   :  { %v9466_v41 = vld [vmem:[%s12891_s0 + $0x228] sm:$0xff]  }
 0x1e6   :  { %v8344_v39 = vpack.c.bf16 %v2172_v15, %v2172_v15  ;;  %9000 = vmatmul.mubr.msk.bf16.gmra.mrb[240].mxu0 %vm830_vm1, %v9453_v23  ;;  %v10697_v23 = vld [vmem:[#allocation2 + $0x318] sm:$0xf]  ;;  %3441 = vst.msk [vmem:[#allocation2 + $0x340] sm:$0xf] %vm3232_vm2, %v8486_v58 }
 0x1e7   :  { %9003 = vmatprep.mubr.msk.bf16.mxu0 %vm9760_vm0, %v12898_v0  ;;  %v10693_v24 = vld [vmem:[#allocation2 + $0x100] sm:$0xf]  ;;  %13004 = vst [vmem:[#allocation35_spill] sm:$0xff] %v10697_v23  ;;  %v8036_v5 = vcombine.low %v10697_v23, %v3577_v8 }
 0x1e8   :  { %3299 = vst.msk [vmem:[#allocation2 + $0x108] sm:$0xf] %vm3232_vm2, %v8344_v39  ;;  %13002 = vst [vmem:[#allocation33_spill] sm:$0xff] %v10693_v24  ;;  %v10695_v46 = vld [vmem:[#allocation2 + $0x100] sm:$0xf]  ;;  %4357 = vrot.lane.b32.xlu0 %v8018_v48, %s9762_s30 }
 0x1e9   :  { %13003 = vst [vmem:[#allocation34_spill] sm:$0xff] %v10695_v46  ;;  %v1476_v29 = vpop.f32.mrb[136].mxu0  ;;  %v10703_v63 = vld [vmem:[#allocation2 + $0x104] sm:$0xf] }
 0x1ea   :  { %v1477_v15 = vadd.f32 %v10426_v56, %v1476_v29  ;;  %v8897_v36 = vpop.f32.mrb[137].mxu0  ;;  %13005 = vst [vmem:[#allocation36_spill] sm:$0xff] %v10703_v63  ;;  %v10705_v51 = vld [vmem:[#allocation2 + $0x104] sm:$0xf]  ;;  %v3613_v19 = vld [vmem:[#allocation2 + $0x33c] sm:$0xf] }
 0x1eb   :  { %13006 = vst [vmem:[#allocation37_spill] sm:$0xff] %v10705_v51  ;;  %v1479_v39 = vpop.f32.mrb[138].mxu0  ;;  %v8054_v48 = vcombine.low %v3612_v59, %v3613_v19 }
 0x1ec   :  { %v2174_v36 = vmax.f32 %v1477_v15, 0.0  ;;  %v1480_v2 = vadd.f32 %v10426_v56, %v1479_v39  ;;  %v8898_v34 = vpop.f32.mrb[139].mxu0  ;;  %4423 = vrot.lane.b32.xlu0 %v8036_v5, %s9761_s26 }
 0x1ed   :  { %v3614_v59 = vld [vmem:[#allocation2 + $0x340] sm:$0xf] }
 0x1ee   :  { %v8346_v57 = vpack.c.bf16 %v2174_v36, %v2174_v36  ;;  %v2175_v37 = vmax.f32 %v1480_v2, 0.0  ;;  %9004 = vmatmul.mubr.msk.bf16.gmra.mrb[244].mxu0 %vm830_vm1, %v9454_v38  ;;  %v9455_v38 = vld [vmem:[%s12891_s0 + $0x1f0] sm:$0xff]   ;;  %v8019_v36 = vcombine.low %v3613_v19, %v3614_v59 }
 0x1ef   :  { %9007 = vmatprep.mubr.msk.bf16.mxu0 %vm9760_vm0, %v12898_v0 }
 0x1f0   :  { %3301 = vst.msk [vmem:[#allocation2 + $0x110] sm:$0xf] %vm3232_vm2, %v8346_v57  ;;  %v8347_v8 = vpack.c.bf16 %v2175_v37, %v2175_v37  ;;  %4489 = vrot.lane.b32.xlu0 %v8054_v48, %s9763_s10 }
 0x1f1   :  { %v1484_v34 = vpop.f32.mrb[140].mxu0 }
 0x1f2   :  { %3302 = vst.msk [vmem:[#allocation2 + $0x114] sm:$0xf] %vm3232_vm2, %v8347_v8  ;;  %v1485_v58 = vadd.f32 %v10426_v56, %v1484_v34  ;;  %v8901_v2 = vpop.f32.mrb[141].mxu0 }
 0x1f3   :  { %v1487_v39 = vpop.f32.mrb[142].mxu0 }
 0x1f4   :  { %v2176_v5 = vmax.f32 %v1485_v58, 0.0  ;;  %v1488_v37 = vadd.f32 %v10426_v56, %v1487_v39  ;;  %v8902_v57 = vpop.f32.mrb[143].mxu0  ;;  %4359 = vrot.lane.b32.xlu0 %v8019_v36, %s9762_s30  ;;  %v10738_v56 = vld [vmem:[%s12892_s2] ss:$0 sm:$0xff]  ;;  %v9456_v58 = vld [vmem:[%s12891_s0 + $0x1f8] sm:$0xff]  }
 0x1f6   :  { %v8348_v29 = vpack.c.bf16 %v2176_v5, %v2176_v5  ;;  %v2177_v15 = vmax.f32 %v1488_v37, 0.0  ;;  %9008 = vmatmul.mubr.msk.bf16.gmra.mrb[248].mxu0 %vm830_vm1, %v9455_v38 }
 0x1f7   :  { %9011 = vmatprep.mubr.msk.bf16.mxu0 %vm9760_vm0, %v12898_v0 }
 0x1f8   :  { %3303 = vst.msk [vmem:[#allocation2 + $0x118] sm:$0xf] %vm3232_vm2, %v8348_v29  ;;  %v8349_v8 = vpack.c.bf16 %v2177_v15, %v2177_v15 }
 0x1f9   :  { %v1492_v34 = vpop.f32.mrb[144].mxu0 }
 0x1fa   :  { %3304 = vst.msk [vmem:[#allocation2 + $0x11c] sm:$0xf] %vm3232_vm2, %v8349_v8  ;;  %v1493_v19 = vadd.f32 %v10738_v56, %v1492_v34  ;;  %v8905_v48 = vpop.f32.mrb[145].mxu0  ;;  %v9457_v8 = vld [vmem:[%s12891_s0 + $0x200] sm:$0xff]  }
 0x1fb   :  { %v1495_v2 = vpop.f32.mrb[146].mxu0 }
 0x1fc   :  { %v2178_v38 = vmax.f32 %v1493_v19, 0.0  ;;  %v1496_v29 = vadd.f32 %v10738_v56, %v1495_v2  ;;  %v8906_v15 = vpop.f32.mrb[147].mxu0 }
 0x1fe   :  { %v8350_v39 = vpack.c.bf16 %v2178_v38, %v2178_v38  ;;  %v2179_v59 = vmax.f32 %v1496_v29, 0.0  ;;  %9012 = vmatmul.mubr.msk.bf16.gmra.mrb[252].mxu0 %vm830_vm1, %v9456_v58 }
 0x1ff   :  { %9015 = vmatprep.mubr.msk.bf16.mxu0 %vm9760_vm0, %v12898_v0 }
 0x200   :  { %3305 = vst.msk [vmem:[#allocation2 + $0x120] sm:$0xf] %vm3232_vm2, %v8350_v39  ;;  %v8351_v5 = vpack.c.bf16 %v2179_v59, %v2179_v59 }
 0x201   :  { %v1500_v37 = vpop.f32.mrb[148].mxu0 }
 0x202   :  { %3306 = vst.msk [vmem:[#allocation2 + $0x124] sm:$0xf] %vm3232_vm2, %v8351_v5  ;;  %v1501_v57 = vadd.f32 %v10738_v56, %v1500_v37  ;;  %v8909_v36 = vpop.f32.mrb[149].mxu0  ;;  %v9458_v5 = vld [vmem:[%s12891_s0 + $0x208] sm:$0xff]  }
 0x203   :  { %v1503_v34 = vpop.f32.mrb[150].mxu0 }
 0x204   :  { %v2180_v19 = vmax.f32 %v1501_v57, 0.0  ;;  %v1504_v48 = vadd.f32 %v10738_v56, %v1503_v34  ;;  %v8910_v58 = vpop.f32.mrb[151].mxu0 }
 0x206   :  { %v8352_v2 = vpack.c.bf16 %v2180_v19, %v2180_v19  ;;  %v2181_v38 = vmax.f32 %v1504_v48, 0.0  ;;  %9016 = vmatmul.mubr.msk.bf16.gmra.mrb[0].mxu0 %vm830_vm1, %v9457_v8 }
 0x207   :  { %9019 = vmatprep.mubr.msk.bf16.mxu0 %vm9760_vm0, %v12898_v0 }
 0x208   :  { %3307 = vst.msk [vmem:[#allocation2 + $0x128] sm:$0xf] %vm3232_vm2, %v8352_v2  ;;  %v8353_v29 = vpack.c.bf16 %v2181_v38, %v2181_v38 }
 0x209   :  { %v1508_v15 = vpop.f32.mrb[152].mxu0 }
 0x20a   :  { %3308 = vst.msk [vmem:[#allocation2 + $0x12c] sm:$0xf] %vm3232_vm2, %v8353_v29  ;;  %v1509_v39 = vadd.f32 %v10738_v56, %v1508_v15  ;;  %v8913_v59 = vpop.f32.mrb[153].mxu0  ;;  %v9459_v29 = vld [vmem:[%s12891_s0 + $0x210] sm:$0xff]  }
 0x20b   :  { %v1511_v37 = vpop.f32.mrb[154].mxu0 }
 0x20c   :  { %v2182_v57 = vmax.f32 %v1509_v39, 0.0  ;;  %v1512_v36 = vadd.f32 %v10738_v56, %v1511_v37  ;;  %v8914_v8 = vpop.f32.mrb[155].mxu0 }
 0x20e   :  { %v8354_v34 = vpack.c.bf16 %v2182_v57, %v2182_v57  ;;  %v2183_v19 = vmax.f32 %v1512_v36, 0.0  ;;  %9020 = vmatmul.mubr.msk.bf16.gmra.mrb[4].mxu0 %vm830_vm1, %v9458_v5 }
 0x20f   :  { %9023 = vmatprep.mubr.msk.bf16.mxu0 %vm9760_vm0, %v12898_v0 }
 0x210   :  { %3309 = vst.msk [vmem:[#allocation2 + $0x130] sm:$0xf] %vm3232_vm2, %v8354_v34  ;;  %v8355_v48 = vpack.c.bf16 %v2183_v19, %v2183_v19 }
 0x211   :  { %v1516_v58 = vpop.f32.mrb[156].mxu0 }
 0x212   :  { %3310 = vst.msk [vmem:[#allocation2 + $0x134] sm:$0xf] %vm3232_vm2, %v8355_v48  ;;  %v1517_v2 = vadd.f32 %v10738_v56, %v1516_v58  ;;  %v8917_v38 = vpop.f32.mrb[157].mxu0  ;;  %v9461_v48 = vld [vmem:[%s12891_s0 + $0x218] sm:$0xff]  }
 0x213   :  { %v1519_v15 = vpop.f32.mrb[158].mxu0 }
 0x214   :  { %v2184_v39 = vmax.f32 %v1517_v2, 0.0  ;;  %v1520_v59 = vadd.f32 %v10738_v56, %v1519_v15  ;;  %v8918_v5 = vpop.f32.mrb[159].mxu0 }
 0x216   :  { %v8356_v37 = vpack.c.bf16 %v2184_v39, %v2184_v39  ;;  %v2185_v57 = vmax.f32 %v1520_v59, 0.0  ;;  %9024 = vmatmul.mubr.msk.bf16.gmra.mrb[8].mxu0 %vm830_vm1, %v9459_v29 }
 0x217   :  { %9027 = vmatprep.mubr.msk.bf16.mxu0 %vm9760_vm0, %v12898_v0 }
 0x218   :  { %3311 = vst.msk [vmem:[#allocation2 + $0x138] sm:$0xf] %vm3232_vm2, %v8356_v37  ;;  %v8357_v36 = vpack.c.bf16 %v2185_v57, %v2185_v57 }
 0x219   :  { %v1524_v8 = vpop.f32.mrb[160].mxu0  ;;  %v10786_v59 = vld [vmem:[#allocation2 + $0x134] sm:$0xf] }
 0x21a   :  { %3312 = vst.msk [vmem:[#allocation2 + $0x13c] sm:$0xf] %vm3232_vm2, %v8357_v36  ;;  %v1525_v34 = vadd.f32 %v10738_v56, %v1524_v8  ;;  %v8921_v19 = vpop.f32.mrb[161].mxu0  ;;  %13007 = vst [vmem:[#allocation38_spill] sm:$0xff] %v10786_v59  ;;  %v10792_v37 = vld [vmem:[#allocation2 + $0x134] sm:$0xf] }
 0x21b   :  { %v1527_v58 = vpop.f32.mrb[162].mxu0  ;;  %13009 = vst [vmem:[#allocation40_spill] sm:$0xff] %v10792_v37 }
 0x21c   :  { %v2186_v2 = vmax.f32 %v1525_v34, 0.0  ;;  %v1528_v38 = vadd.f32 %v10738_v56, %v1527_v58  ;;  %v8922_v29 = vpop.f32.mrb[163].mxu0  ;;  %v9465_v58 = vld [vmem:[%s12891_s0 + $0x220] sm:$0xff]  }
 0x21e   :  { %v8358_v15 = vpack.c.bf16 %v2186_v2, %v2186_v2  ;;  %v2187_v39 = vmax.f32 %v1528_v38, 0.0  ;;  %9028 = vmatmul.mubr.msk.bf16.gmra.mrb[12].mxu0 %vm830_vm1, %v9461_v48 }
 0x21f   :  { %9031 = vmatprep.mubr.msk.bf16.mxu0 %vm9760_vm0, %v12898_v0  ;;  %v10790_v5 = vld [vmem:[#allocation2 + $0x138] sm:$0xf] }
 0x220   :  { %13008 = vst [vmem:[#allocation39_spill] sm:$0xff] %v10790_v5  ;;  %v10794_v57 = vld [vmem:[#allocation2 + $0x138] sm:$0xf]  ;;  %3313 = vst.msk [vmem:[#allocation2 + $0x140] sm:$0xf] %vm3232_vm2, %v8358_v15  ;;  %v8359_v36 = vpack.c.bf16 %v2187_v39, %v2187_v39 }
 0x221   :  { %13010 = vst [vmem:[#allocation41_spill] sm:$0xff] %v10794_v57  ;;  %v1532_v19 = vpop.f32.mrb[164].mxu0  ;;  %v10807_v39 = vld [vmem:[#allocation2 + $0x13c] sm:$0xf]  ;;  %v10853_v57 = vld [vmem:[#allocation2 + $0x2e4] sm:$0xf] }
 0x222   :  { %3314 = vst.msk [vmem:[#allocation2 + $0x144] sm:$0xf] %vm3232_vm2, %v8359_v36  ;;  %v8925_v48 = vpop.f32.mrb[165].mxu0  ;;  %13011 = vst [vmem:[#allocation42_spill] sm:$0xff] %v10807_v39  ;;  %v10813_v36 = vld [vmem:[#allocation2 + $0x13c] sm:$0xf] }
 0x223   :  { %v1535_v2 = vpop.f32.mrb[166].mxu0  ;;  %13013 = vst [vmem:[#allocation44_spill] sm:$0xff] %v10813_v36  ;;  %13018 = vst [vmem:[#allocation48_spill] sm:$0xff] %v10853_v57  ;;  %v3518_v5 = vld [vmem:[#allocation2 + $0x110] sm:$0xf] }
 0x224   :  { %v1536_v38 = vadd.f32 %v10738_v56, %v1535_v2  ;;  %v8926_v29 = vpop.f32.mrb[167].mxu0 }
 0x226   :  { %v2189_v15 = vmax.f32 %v1536_v38, 0.0  ;;  %9032 = vmatmul.mubr.msk.bf16.gmra.mrb[16].mxu0 %vm830_vm1, %v9465_v58 }
 0x227   :  { %9035 = vmatprep.mubr.msk.bf16.mxu0 %vm9760_vm0, %v12898_v0  ;;  %v10811_v19 = vld [vmem:[#allocation2 + $0x140] sm:$0xf] }
 0x228   :  { %13012 = vst [vmem:[#allocation43_spill] sm:$0xff] %v10811_v19  ;;  %v10815_v48 = vld [vmem:[#allocation2 + $0x140] sm:$0xf]  ;;  %v8361_v34 = vpack.c.bf16 %v2189_v15, %v2189_v15 }
 0x229   :  { %13014 = vst [vmem:[#allocation45_spill] sm:$0xff] %v10815_v48  ;;  %v1540_v38 = vpop.f32.mrb[168].mxu0 }
 0x22a   :  { %3316 = vst.msk [vmem:[#allocation2 + $0x14c] sm:$0xf] %vm3232_vm2, %v8361_v34  ;;  %v1541_v58 = vadd.f32 %v10738_v56, %v1540_v38  ;;  %v8929_v29 = vpop.f32.mrb[169].mxu0 }
 0x22b   :  { %v1543_v30 = vpop.f32.mrb[170].mxu0 }
 0x22c   :  { %v2190_v13 = vmax.f32 %v1541_v58, 0.0  ;;  %v1544_v15 = vadd.f32 %v10738_v56, %v1543_v30  ;;  %v8930_v22 = vpop.f32.mrb[171].mxu0 }
 0x22d   :  { %v9468_v22 = vld [vmem:[%s12891_s0 + $0x230] sm:$0xff]  }
 0x22e   :  { %v8362_v53 = vpack.c.bf16 %v2190_v13, %v2190_v13  ;;  %v2191_v8 = vmax.f32 %v1544_v15, 0.0  ;;  %9036 = vmatmul.mubr.msk.bf16.gmra.mrb[20].mxu0 %vm830_vm1, %v9466_v41  ;;  %v10837_v15 = vld [vmem:[#allocation2 + $0x2dc] sm:$0xf] }
 0x22f   :  { %9039 = vmatprep.mubr.msk.bf16.mxu0 %vm9760_vm0, %v12898_v0  ;;  %13015 = vst [vmem:[#allocation46_spill] sm:$0xff] %v10837_v15 }
 0x230   :  { %3317 = vst.msk [vmem:[#allocation2 + $0x150] sm:$0xf] %vm3232_vm2, %v8362_v53  ;;  %v8363_v34 = vpack.c.bf16 %v2191_v8, %v2191_v8  ;;  %v10840_v8 = vld [vmem:[#allocation2 + $0x2d8] sm:$0xf] }
 0x231   :  { %v1548_v38 = vpop.f32.mrb[172].mxu0  ;;  %13016 = vst [vmem:[#allocation47_spill] sm:$0xff] %v10840_v8  ;;  %v9528_v8 = vld [vmem:[%s12891_s0 + $0x368] sm:$0xff]  }
 0x232   :  { %3318 = vst.msk [vmem:[#allocation2 + $0x154] sm:$0xf] %vm3232_vm2, %v8363_v34  ;;  %v1549_v29 = vadd.f32 %v10738_v56, %v1548_v38  ;;  %v8933_v2 = vpop.f32.mrb[173].mxu0  ;;  %v13017_v34 = vmov 0.0  }
 0x233   :  { %v1551_v13 = vpop.f32.mrb[174].mxu0 }
 0x234   :  { %v2192_v30 = vmax.f32 %v1549_v29, 0.0  ;;  %v1552_v41 = vadd.f32 %v10738_v56, %v1551_v13  ;;  %v8934_v58 = vpop.f32.mrb[175].mxu0 }
 0x236   :  { %v8364_v0 = vpack.c.bf16 %v2192_v30, %v2192_v30  ;;  %v2193_v53 = vmax.f32 %v1552_v41, 0.0  ;;  %9040 = vmatmul.mubr.msk.bf16.gmra.mrb[24].mxu0 %vm830_vm1, %v9468_v22  ;;  %v9470_v22 = vld [vmem:[%s12891_s0 + $0x238] sm:$0xff]  }
 0x237   :  { %9043 = vmatprep.mubr.msk.bf16.mxu0 %vm9760_vm0, %v13017_v34 }
 0x238   :  { %3319 = vst.msk [vmem:[#allocation2 + $0x158] sm:$0xf] %vm3232_vm2, %v8364_v0  ;;  %v8365_v38 = vpack.c.bf16 %v2193_v53, %v2193_v53  ;;  %v10856_v53 = vld [vmem:[#allocation2 + $0x2e0] sm:$0xf] }
 0x239   :  { %v1556_v29 = vpop.f32.mrb[176].mxu0  ;;  %13019 = vst [vmem:[#allocation49_spill] sm:$0xff] %v10856_v53 }
 0x23a   :  { %3320 = vst.msk [vmem:[#allocation2 + $0x15c] sm:$0xf] %vm3232_vm2, %v8365_v38  ;;  %v1557_v13 = vadd.f32 %v10738_v56, %v1556_v29  ;;  %v8937_v30 = vpop.f32.mrb[177].mxu0 }
 0x23b   :  { %v1559_v41 = vpop.f32.mrb[178].mxu0 }
 0x23c   :  { %v2194_v58 = vmax.f32 %v1557_v13, 0.0  ;;  %v1560_v48 = vadd.f32 %v10738_v56, %v1559_v41  ;;  %v8938_v36 = vpop.f32.mrb[179].mxu0 }
 0x23e   :  { %v8366_v2 = vpack.c.bf16 %v2194_v58, %v2194_v58  ;;  %v2195_v0 = vmax.f32 %v1560_v48, 0.0  ;;  %9044 = vmatmul.mubr.msk.bf16.gmra.mrb[28].mxu0 %vm830_vm1, %v9470_v22  ;;  %v9471_v48 = vld [vmem:[%s12891_s0 + $0x240] sm:$0xff]  }
 0x23f   :  { %9047 = vmatprep.mubr.msk.bf16.mxu0 %vm9760_vm0, %v13017_v34 }
 0x240   :  { %3321 = vst.msk [vmem:[#allocation2 + $0x160] sm:$0xf] %vm3232_vm2, %v8366_v2  ;;  %v8367_v29 = vpack.c.bf16 %v2195_v0, %v2195_v0 }
 0x241   :  { %v1564_v13 = vpop.f32.mrb[180].mxu0 }
 0x242   :  { %3322 = vst.msk [vmem:[#allocation2 + $0x164] sm:$0xf] %vm3232_vm2, %v8367_v29  ;;  %v1565_v36 = vadd.f32 %v10738_v56, %v1564_v13  ;;  %v8941_v30 = vpop.f32.mrb[181].mxu0 }
 0x243   :  { %v1567_v22 = vpop.f32.mrb[182].mxu0 }
 0x244   :  { %v2196_v41 = vmax.f32 %v1565_v36, 0.0  ;;  %v1568_v58 = vadd.f32 %v10738_v56, %v1567_v22  ;;  %v8942_v37 = vpop.f32.mrb[183].mxu0 }
 0x245   :  { %v9472_v37 = vld [vmem:[%s12891_s0 + $0x248] sm:$0xff]  }
 0x246   :  { %v8368_v51 = vpack.c.bf16 %v2196_v41, %v2196_v41  ;;  %v2197_v38 = vmax.f32 %v1568_v58, 0.0  ;;  %9048 = vmatmul.mubr.msk.bf16.gmra.mrb[32].mxu0 %vm830_vm1, %v9471_v48 }
 0x247   :  { %9051 = vmatprep.mubr.msk.bf16.mxu0 %vm9760_vm0, %v13017_v34 }
 0x248   :  { %3323 = vst.msk [vmem:[#allocation2 + $0x168] sm:$0xf] %vm3232_vm2, %v8368_v51  ;;  %v8369_v2 = vpack.c.bf16 %v2197_v38, %v2197_v38 }
 0x249   :  { %v1572_v0 = vpop.f32.mrb[184].mxu0 }
 0x24a   :  { %3324 = vst.msk [vmem:[#allocation2 + $0x16c] sm:$0xf] %vm3232_vm2, %v8369_v2  ;;  %v1573_v29 = vadd.f32 %v10738_v56, %v1572_v0  ;;  %v8945_v13 = vpop.f32.mrb[185].mxu0 }
 0x24b   :  { %v1575_v36 = vpop.f32.mrb[186].mxu0 }
 0x24c   :  { %v2198_v30 = vmax.f32 %v1573_v29, 0.0  ;;  %v1576_v48 = vadd.f32 %v10738_v56, %v1575_v36  ;;  %v8946_v22 = vpop.f32.mrb[187].mxu0  ;;  %v9473_v29 = vld [vmem:[%s12891_s0 + $0x250] sm:$0xff]  }
 0x24e   :  { %v8370_v41 = vpack.c.bf16 %v2198_v30, %v2198_v30  ;;  %v2199_v58 = vmax.f32 %v1576_v48, 0.0  ;;  %9052 = vmatmul.mubr.msk.bf16.gmra.mrb[36].mxu0 %vm830_vm1, %v9472_v37 }
 0x24f   :  { %9055 = vmatprep.mubr.msk.bf16.mxu0 %vm9760_vm0, %v13017_v34 }
 0x250   :  { %3325 = vst.msk [vmem:[#allocation2 + $0x170] sm:$0xf] %vm3232_vm2, %v8370_v41  ;;  %v8371_v51 = vpack.c.bf16 %v2199_v58, %v2199_v58 }
 0x251   :  { %v1580_v38 = vpop.f32.mrb[188].mxu0 }
 0x252   :  { %3326 = vst.msk [vmem:[#allocation2 + $0x174] sm:$0xf] %vm3232_vm2, %v8371_v51  ;;  %v1581_v2 = vadd.f32 %v10738_v56, %v1580_v38  ;;  %v8949_v0 = vpop.f32.mrb[189].mxu0 }
 0x253   :  { %v1583_v13 = vpop.f32.mrb[190].mxu0 }
 0x254   :  { %v2200_v36 = vmax.f32 %v1581_v2, 0.0  ;;  %v1584_v37 = vadd.f32 %v10738_v56, %v1583_v13  ;;  %v8950_v30 = vpop.f32.mrb[191].mxu0 }
 0x255   :  { %v9491_v30 = vld [vmem:[%s12893_s3] sm:$0xff]  }
 0x256   :  { %v8372_v48 = vpack.c.bf16 %v2200_v36, %v2200_v36  ;;  %v2201_v22 = vmax.f32 %v1584_v37, 0.0  ;;  %9056 = vmatmul.mubr.msk.bf16.gmra.mrb[40].mxu0 %vm830_vm1, %v9473_v29  ;;  %v9475_v29 = vld [vmem:[%s12891_s0 + $0x258] sm:$0xff]   ;;  %v12905_v37 = vmov 0  }
 0x257   :  { %9059 = vmatprep.mubr.msk.bf16.mxu0 %vm9760_vm0, %v13017_v34  ;;  %v10893_v51 = vld [vmem:[#allocation2 + $0x170] sm:$0xf]  ;;  %6031 = vmatprep.subr.bf16.mxu1 %v12905_v37 }
 0x258   :  { %3327 = vst.msk [vmem:[#allocation2 + $0x178] sm:$0xf] %vm3232_vm2, %v8372_v48  ;;  %v8373_v41 = vpack.c.bf16 %v2201_v22, %v2201_v22  ;;  %13020 = vst [vmem:[#allocation50_spill] sm:$0xff] %v10893_v51  ;;  %6032 = vmatpush1.bf16.msra.mxu1 %v9491_v30 }
 0x259   :  { %v1588_v58 = vpop.f32.mrb[192].mxu0  ;;  %v10895_v38 = vld [vmem:[#allocation2 + $0x174] sm:$0xf]  ;;  %6033 = vmatprep.subr.bf16.mxu1 %v12905_v37 }
 0x25a   :  { %13021 = vst [vmem:[#allocation51_spill] sm:$0xff] %v10895_v38  ;;  %3328 = vst.msk [vmem:[#allocation2 + $0x17c] sm:$0xf] %vm3232_vm2, %v8373_v41  ;;  %v1589_v2 = vadd.f32 %v10738_v56, %v1588_v58  ;;  %v8953_v0 = vpop.f32.mrb[193].mxu0 }
 0x25b   :  { %v1591_v36 = vpop.f32.mrb[194].mxu0 }
 0x25c   :  { %v2202_v48 = vmax.f32 %v1589_v2, 0.0  ;;  %v8954_v22 = vpop.f32.mrb[195].mxu0  ;;  %v9478_v2 = vld [vmem:[%s12891_s0 + $0x260] sm:$0xff]  }
 0x25e   :  { %v8374_v41 = vpack.c.bf16 %v2202_v48, %v2202_v48  ;;  %9060 = vmatmul.mubr.msk.bf16.gmra.mrb[44].mxu0 %vm830_vm1, %v9475_v29 }
 0x25f   :  { %9063 = vmatprep.mubr.msk.bf16.mxu0 %vm9760_vm0, %v13017_v34 }
 0x260   :  { %3329 = vst.msk [vmem:[#allocation2 + $0x180] sm:$0xf] %vm3232_vm2, %v8374_v41 }
 0x261   :  { %v1596_v58 = vpop.f32.mrb[196].mxu0 }
 0x262   :  { %v1597_v0 = vadd.f32 %v10738_v56, %v1596_v58  ;;  %v8957_v36 = vpop.f32.mrb[197].mxu0 }
 0x263   :  { %v1599_v22 = vpop.f32.mrb[198].mxu0  ;;  %v9481_v36 = vld [vmem:[%s12891_s0 + $0x268] sm:$0xff]  }
 0x264   :  { %v2204_v30 = vmax.f32 %v1597_v0, 0.0  ;;  %v1600_v48 = vadd.f32 %v10738_v56, %v1599_v22  ;;  %v8958_v29 = vpop.f32.mrb[199].mxu0 }
 0x266   :  { %v8376_v13 = vpack.c.bf16 %v2204_v30, %v2204_v30  ;;  %v2205_v37 = vmax.f32 %v1600_v48, 0.0  ;;  %9064 = vmatmul.mubr.msk.bf16.gmra.mrb[48].mxu0 %vm830_vm1, %v9478_v2  ;;  %v9496_v2 = vld [vmem:[%s12893_s3 + $0x8] sm:$0xff]  }
 0x267   :  { %9067 = vmatprep.mubr.msk.bf16.mxu0 %vm9760_vm0, %v13017_v34  ;;  %6034 = vmatpush1.bf16.msra.mxu1 %v9496_v2 }
 0x268   :  { %3331 = vst.msk [vmem:[#allocation2 + $0x188] sm:$0xf] %vm3232_vm2, %v8376_v13  ;;  %v8377_v41 = vpack.c.bf16 %v2205_v37, %v2205_v37  ;;  %v13022_v37 = vmov 0  }
 0x269   :  { %v1604_v58 = vpop.f32.mrb[200].mxu0  ;;  %6035 = vmatprep.subr.bf16.mxu1 %v13022_v37 }
 0x26a   :  { %3332 = vst.msk [vmem:[#allocation2 + $0x18c] sm:$0xf] %vm3232_vm2, %v8377_v41  ;;  %v1605_v0 = vadd.f32 %v10738_v56, %v1604_v58  ;;  %v8961_v22 = vpop.f32.mrb[201].mxu0  ;;  %v10936_v58 = vld [vmem:[#allocation2 + $0x178] sm:$0xf] }
 0x26b   :  { %v1607_v30 = vpop.f32.mrb[202].mxu0  ;;  %13023 = vst [vmem:[#allocation52_spill] sm:$0xff] %v10936_v58  ;;  %v10938_v22 = vld [vmem:[#allocation2 + $0x17c] sm:$0xf]  ;;  %v9485_v58 = vld [vmem:[%s12891_s0 + $0x288] sm:$0xff]  }
 0x26c   :  { %v2206_v48 = vmax.f32 %v1605_v0, 0.0  ;;  %v1608_v29 = vadd.f32 %v10738_v56, %v1607_v30  ;;  %v8962_v13 = vpop.f32.mrb[203].mxu0  ;;  %13024 = vst [vmem:[#allocation53_spill] sm:$0xff] %v10938_v22  ;;  %v10969_v22 = vld [vmem:[#allocation2 + $0x320] sm:$0xf] }
 0x26d   :  { %13028 = vst [vmem:[#allocation57_spill] sm:$0xff] %v10969_v22 }
 0x26e   :  { %v8378_v38 = vpack.c.bf16 %v2206_v48, %v2206_v48  ;;  %v2207_v51 = vmax.f32 %v1608_v29, 0.0  ;;  %9068 = vmatmul.mubr.msk.bf16.gmra.mrb[52].mxu0 %vm830_vm1, %v9481_v36  ;;  %v9482_v36 = vld [vmem:[%s12891_s0 + $0x270] sm:$0xff]  }
 0x26f   :  { %9071 = vmatprep.mubr.msk.bf16.mxu0 %vm9760_vm0, %v13017_v34 }
 0x270   :  { %3333 = vst.msk [vmem:[#allocation2 + $0x190] sm:$0xf] %vm3232_vm2, %v8378_v38  ;;  %v8379_v41 = vpack.c.bf16 %v2207_v51, %v2207_v51 }
 0x271   :  { %v1612_v0 = vpop.f32.mrb[204].mxu0 }
 0x272   :  { %3334 = vst.msk [vmem:[#allocation2 + $0x194] sm:$0xf] %vm3232_vm2, %v8379_v41  ;;  %v1613_v30 = vadd.f32 %v10738_v56, %v1612_v0  ;;  %v8965_v48 = vpop.f32.mrb[205].mxu0  ;;  %v10951_v41 = vld [vmem:[#allocation2 + $0x314] sm:$0xf] }
 0x273   :  { %v1615_v29 = vpop.f32.mrb[206].mxu0  ;;  %13025 = vst [vmem:[#allocation54_spill] sm:$0xff] %v10951_v41  ;;  %v9500_v48 = vld [vmem:[%s12893_s3 + $0x10] sm:$0xff]  }
 0x274   :  { %v2208_v38 = vmax.f32 %v1613_v30, 0.0  ;;  %v1616_v51 = vadd.f32 %v10738_v56, %v1615_v29  ;;  %v8966_v13 = vpop.f32.mrb[207].mxu0  ;;  %6036 = vmatpush1.bf16.msra.mxu1 %v9500_v48 }
 0x275   :  { %6037 = vmatprep.subr.bf16.mxu1 %v13022_v37 }
 0x276   :  { %v8380_v46 = vpack.c.bf16 %v2208_v38, %v2208_v38  ;;  %v2209_v57 = vmax.f32 %v1616_v51, 0.0  ;;  %9072 = vmatmul.mubr.msk.bf16.gmra.mrb[56].mxu0 %vm830_vm1, %v9482_v36  ;;  %v9483_v36 = vld [vmem:[%s12891_s0 + $0x278] sm:$0xff]  }
 0x277   :  { %9075 = vmatprep.mubr.msk.bf16.mxu0 %vm9760_vm0, %v13017_v34  ;;  %v10962_v51 = vld [vmem:[#allocation2 + $0x318] sm:$0xf] }
 0x278   :  { %3335 = vst.msk [vmem:[#allocation2 + $0x198] sm:$0xf] %vm3232_vm2, %v8380_v46  ;;  %v8381_v0 = vpack.c.bf16 %v2209_v57, %v2209_v57  ;;  %13026 = vst [vmem:[#allocation55_spill] sm:$0xff] %v10962_v51  ;;  %v10965_v46 = vld [vmem:[#allocation2 + $0x31c] sm:$0xf] }
 0x279   :  { %v1620_v30 = vpop.f32.mrb[208].mxu0  ;;  %13027 = vst [vmem:[#allocation56_spill] sm:$0xff] %v10965_v46  ;;  %v9522_v46 = vld [vmem:[%s12891_s0 + $0x358] sm:$0xff]  }
 0x27a   :  { %3336 = vst.msk [vmem:[#allocation2 + $0x19c] sm:$0xf] %vm3232_vm2, %v8381_v0  ;;  %v1621_v29 = vadd.f32 %v10738_v56, %v1620_v30  ;;  %v8969_v38 = vpop.f32.mrb[209].mxu0 }
 0x27b   :  { %v1623_v13 = vpop.f32.mrb[210].mxu0 }
 0x27c   :  { %v2210_v2 = vmax.f32 %v1621_v29, 0.0  ;;  %v8970_v0 = vpop.f32.mrb[211].mxu0  ;;  %v9484_v29 = vld [vmem:[%s12891_s0 + $0x280] sm:$0xff]  }
 0x27d   :  { %v9503_v0 = vld [vmem:[%s12893_s3 + $0x18] sm:$0xff]  }
 0x27e   :  { %v8382_v38 = vpack.c.bf16 %v2210_v2, %v2210_v2  ;;  %9076 = vmatmul.mubr.msk.bf16.gmra.mrb[60].mxu0 %vm830_vm1, %v9483_v36  ;;  %6038 = vmatpush1.bf16.msra.mxu1 %v9503_v0  ;;  %v2039_v2 = vpop.f32.mrb[78].mxu1 }
 0x27f   :  { %9079 = vmatprep.mubr.msk.bf16.mxu0 %vm9760_vm0, %v13017_v34  ;;  %6039 = vmatprep.subr.bf16.mxu1 %v13022_v37  ;;  %v9178_v36 = vpop.f32.mrb[79].mxu1 }
 0x280   :  { %3337 = vst.msk [vmem:[#allocation2 + $0x1a0] sm:$0xf] %vm3232_vm2, %v8382_v38 }
 0x281   :  { %v1628_v48 = vpop.f32.mrb[212].mxu0 }
 0x282   :  { %v8973_v13 = vpop.f32.mrb[213].mxu0  ;;  %v2040_v48 = vadd.f32 %v10738_v56, %v2039_v2  ;;  %v9486_v2 = vld [vmem:[%s12891_s0 + $0x290] sm:$0xff]  }
 0x283   :  { %v1631_v57 = vpop.f32.mrb[214].mxu0 }
 0x284   :  { %v8974_v30 = vpop.f32.mrb[215].mxu0 }
 0x285   :  { %v2315_v30 = vmax.f32 %v2040_v48, 0.0 }
 0x286   :  { %9080 = vmatmul.mubr.msk.bf16.gmra.mrb[64].mxu0 %vm830_vm1, %v9484_v29 }
 0x287   :  { %9083 = vmatprep.mubr.msk.bf16.mxu0 %vm9760_vm0, %v13017_v34  ;;  %v8487_v22 = vpack.c.bf16 %v2315_v30, %v2315_v30 }
 0x289   :  { %v1636_v38 = vpop.f32.mrb[216].mxu0  ;;  %3442 = vst.msk [vmem:[#allocation2 + $0x344] sm:$0xf] %vm3232_vm2, %v8487_v22 }
 0x28a   :  { %v8977_v13 = vpop.f32.mrb[217].mxu0  ;;  %v9510_v38 = vld [vmem:[%s12893_s3 + $0x20] sm:$0xff]  }
 0x28b   :  { %v1639_v57 = vpop.f32.mrb[218].mxu0  ;;  %6040 = vmatpush1.bf16.msra.mxu1 %v9510_v38  ;;  %v9513_v38 = vld [vmem:[%s12893_s3 + $0x28] sm:$0xff]  }
 0x28c   :  { %v8978_v0 = vpop.f32.mrb[219].mxu0  ;;  %6041 = vmatprep.subr.bf16.mxu1 %v13022_v37  ;;  %v9487_v57 = vld [vmem:[%s12891_s0 + $0x298] sm:$0xff]  }
 0x28e   :  { %9084 = vmatmul.mubr.msk.bf16.gmra.mrb[68].mxu0 %vm830_vm1, %v9485_v58 }
 0x28f   :  { %9087 = vmatprep.mubr.msk.bf16.mxu0 %vm9760_vm0, %v13017_v34  ;;  %6042 = vmatpush1.bf16.msra.mxu1 %v9513_v38 }
 0x290   :  { %6043 = vmatprep.subr.bf16.mxu1 %v13022_v37 }
 0x291   :  { %v1644_v29 = vpop.f32.mrb[220].mxu0 }
 0x292   :  { %v8981_v36 = vpop.f32.mrb[221].mxu0 }
 0x293   :  { %v1647_v48 = vpop.f32.mrb[222].mxu0 }
 0x294   :  { %v8982_v13 = vpop.f32.mrb[223].mxu0  ;;  %v11017_v48 = vpop.permute.xlu1 %4043 }
 0x296   :  { %9088 = vmatmul.mubr.msk.bf16.gmra.mrb[72].mxu0 %vm830_vm1, %v9486_v2  ;;  %v9488_v2 = vld [vmem:[%s12891_s0 + $0x2a0] sm:$0xff]  }
 0x297   :  { %9091 = vmatprep.mubr.msk.bf16.mxu0 %vm9760_vm0, %v13017_v34 }
 0x299   :  { %v1652_v58 = vpop.f32.mrb[224].mxu0 }
 0x29a   :  { %v8985_v22 = vpop.f32.mrb[225].mxu0 }
 0x29b   :  { %v1655_v30 = vpop.f32.mrb[226].mxu0  ;;  %v9516_v22 = vld [vmem:[%s12891_s0 + $0x348] sm:$0xff]  }
 0x29c   :  { %v8986_v0 = vpop.f32.mrb[227].mxu0  ;;  %9180 = vmatmul.mubr.msk.bf16.gmra.mrb[80].mxu1 %vm830_vm1, %v9516_v22 }
 0x29d   :  { %9183 = vmatprep.mubr.msk.bf16.mxu1 %vm9760_vm0, %v13017_v34 }
 0x29e   :  { %9092 = vmatmul.mubr.msk.bf16.gmra.mrb[76].mxu0 %vm830_vm1, %v9487_v57  ;;  %v11024_v57 = vpop.permute.xlu1 %4045 }
 0x29f   :  { %9095 = vmatprep.mubr.msk.bf16.mxu0 %vm9760_vm0, %v13017_v34 }
 0x2a1   :  { %v1660_v29 = vpop.f32.mrb[228].mxu0 }
 0x2a2   :  { %v8989_v36 = vpop.f32.mrb[229].mxu0  ;;  %v11029_v29 = vpop.permute.xlu1 %4047 }
 0x2a3   :  { %v1663_v13 = vpop.f32.mrb[230].mxu0 }
 0x2a4   :  { %v8990_v58 = vpop.f32.mrb[231].mxu0 }
 0x2a5   :  { %v9517_v58 = vld [vmem:[%s12893_s3 + $0x30] sm:$0xff]  }
 0x2a6   :  { %9096 = vmatmul.mubr.msk.bf16.gmra.mrb[80].mxu0 %vm830_vm1, %v9488_v2  ;;  %v9521_v2 = vld [vmem:[%s12891_s0 + $0x350] sm:$0xff]   ;;  %v11034_v13 = vpop.permute.xlu1 %4109  ;;  %6044 = vmatpush1.bf16.msra.mxu1 %v9517_v58  ;;  %v9523_v58 = vld [vmem:[%s12893_s3 + $0x38] sm:$0xff]  }
 0x2a7   :  { %9184 = vmatmul.mubr.msk.bf16.gmra.mrb[84].mxu1 %vm830_vm1, %v9521_v2  ;;  %6045 = vmatprep.subr.bf16.mxu1 %v13022_v37 }
 0x2a8   :  { %9187 = vmatprep.mubr.msk.bf16.mxu1 %vm9760_vm0, %v13017_v34 }
 0x2a9   :  { %v1668_v30 = vpop.f32.mrb[232].mxu0 }
 0x2aa   :  { %v8993_v0 = vpop.f32.mrb[233].mxu0  ;;  %6046 = vmatpush1.bf16.msra.mxu1 %v9523_v58 }
 0x2ab   :  { %v1671_v36 = vpop.f32.mrb[234].mxu0  ;;  %6047 = vmatprep.subr.bf16.mxu1 %v13022_v37 }
 0x2ac   :  { %v8994_v38 = vpop.f32.mrb[235].mxu0 }
 0x2ad   :  { %v11043_v38 = vpop.permute.xlu1 %3979 }
 0x2af   :  { %9188 = vmatmul.mubr.msk.bf16.gmra.mrb[88].mxu1 %vm830_vm1, %v9522_v46 }
 0x2b0   :  { %9191 = vmatprep.mubr.msk.bf16.mxu1 %vm9760_vm0, %v13017_v34 }
 0x2b1   :  { %v1676_v22 = vpop.f32.mrb[236].mxu0 }
 0x2b2   :  { %v8997_v30 = vpop.f32.mrb[237].mxu0 }
 0x2b3   :  { %v1679_v0 = vpop.f32.mrb[238].mxu0  ;;  %v11055_v30 = vpop.permute.xlu1 %4111 }
 0x2b4   :  { %v8998_v36 = vpop.f32.mrb[239].mxu0 }
 0x2b7   :  { %v11064_v55 = vpop.permute.xlu1 %3981 }
 0x2b9   :  { %v1684_v51 = vpop.f32.mrb[240].mxu0 }
 0x2ba   :  { %v1685_v2 = vadd.f32 %v10738_v56, %v1684_v51  ;;  %v9001_v22 = vpop.f32.mrb[241].mxu0  ;;  %v9525_v51 = vld [vmem:[%s12891_s0 + $0x360] sm:$0xff]  }
 0x2bb   :  { %v1687_v0 = vpop.f32.mrb[242].mxu0  ;;  %9192 = vmatmul.mubr.msk.bf16.gmra.mrb[92].mxu1 %vm830_vm1, %v9525_v51 }
 0x2bc   :  { %v2226_v36 = vmax.f32 %v1685_v2, 0.0  ;;  %v1688_v41 = vadd.f32 %v10738_v56, %v1687_v0  ;;  %v9002_v53 = vpop.f32.mrb[243].mxu0  ;;  %9195 = vmatprep.mubr.msk.bf16.mxu1 %vm9760_vm0, %v13017_v34 }
 0x2be   :  { %v8398_v46 = vpack.c.bf16 %v2226_v36, %v2226_v36  ;;  %v2227_v62 = vmax.f32 %v1688_v41, 0.0  ;;  %v11073_v36 = vld [vmem:[%s12892_s2] ss:$0 sm:$0xff] }
 0x2c0   :  { %3353 = vst.msk [vmem:[#allocation2 + $0x1e0] sm:$0xf] %vm3232_vm2, %v8398_v46  ;;  %v8399_v22 = vpack.c.bf16 %v2227_v62, %v2227_v62 }
 0x2c1   :  { %v1692_v2 = vpop.f32.mrb[244].mxu0 }
 0x2c2   :  { %3354 = vst.msk [vmem:[#allocation2 + $0x1e4] sm:$0xf] %vm3232_vm2, %v8399_v22  ;;  %v1693_v53 = vadd.f32 %v10738_v56, %v1692_v2  ;;  %v9005_v41 = vpop.f32.mrb[245].mxu0  ;;  %v11079_v22 = vpop.permute.xlu1 %4113  ;;  %v9526_v56 = vld [vmem:[%s12893_s3 + $0x40] sm:$0xff]  }
 0x2c3   :  { %v1695_v58 = vpop.f32.mrb[246].mxu0  ;;  %9196 = vmatmul.mubr.msk.bf16.gmra.mrb[96].mxu1 %vm830_vm1, %v9528_v8 }
 0x2c4   :  { %v2228_v0 = vmax.f32 %v1693_v53, 0.0  ;;  %v1696_v62 = vadd.f32 %v11073_v36, %v1695_v58  ;;  %v9006_v46 = vpop.f32.mrb[247].mxu0  ;;  %6048 = vmatpush1.bf16.msra.mxu1 %v9526_v56  ;;  %9199 = vmatprep.mubr.msk.bf16.mxu1 %vm9760_vm0, %v13017_v34  ;;  %v11097_v56 = vpop.permute.xlu0 %4343 }
 0x2c5   :  { %6049 = vmatprep.subr.bf16.mxu1 %v13022_v37  ;;  %13029 = vst [vmem:[#allocation58_spill] sm:$0xff] %v11097_v56 }
 0x2c6   :  { %v8400_v51 = vpack.c.bf16 %v2228_v0, %v2228_v0  ;;  %v2229_v15 = vmax.f32 %v1696_v62, 0.0  ;;  %v11091_v0 = vpop.permute.xlu1 %4049 }
 0x2c8   :  { %3355 = vst.msk [vmem:[#allocation2 + $0x1e8] sm:$0xf] %vm3232_vm2, %v8400_v51  ;;  %v8401_v2 = vpack.c.bf16 %v2229_v15, %v2229_v15  ;;  %v9531_v15 = vld [vmem:[%s12893_s3 + $0x48] sm:$0xff]   ;;  %v11131_v47 = vpop.permute.xlu0 %4475 }
 0x2c9   :  { %v1700_v53 = vpop.f32.mrb[248].mxu0  ;;  %6050 = vmatpush1.bf16.msra.mxu1 %v9531_v15  ;;  %v11105_v6 = vld [vmem:[#allocation2 + $0x1e4] sm:$0xf]  ;;  %13030 = vst [vmem:[#allocation59_spill] sm:$0xff] %v11131_v47  ;;  %v3529_v47 = vld [vmem:[#allocation2 + $0x160] sm:$0xf] }
 0x2ca   :  { %3356 = vst.msk [vmem:[#allocation2 + $0x1ec] sm:$0xf] %vm3232_vm2, %v8401_v2  ;;  %v1701_v41 = vadd.f32 %v11073_v36, %v1700_v53  ;;  %v9009_v58 = vpop.f32.mrb[249].mxu0  ;;  %v9533_v53 = vld [vmem:[%s12891_s0 + $0x370] sm:$0xff]   ;;  %6051 = vmatprep.subr.bf16.mxu1 %v13022_v37 }
 0x2cb   :  { %v1703_v62 = vpop.f32.mrb[250].mxu0  ;;  %v11103_v58 = vpop.permute.xlu1 %4051  ;;  %9200 = vmatmul.mubr.msk.bf16.gmra.mrb[100].mxu1 %vm830_vm1, %v9533_v53 }
 0x2cc   :  { %v2230_v8 = vmax.f32 %v1701_v41, 0.0  ;;  %v1704_v46 = vadd.f32 %v11073_v36, %v1703_v62  ;;  %v9010_v51 = vpop.f32.mrb[251].mxu0  ;;  %v9534_v41 = vld [vmem:[%s12893_s3 + $0x50] sm:$0xff]   ;;  %9203 = vmatprep.mubr.msk.bf16.mxu1 %vm9760_vm0, %v13017_v34  ;;  %v11153_v11 = vpop.permute.xlu0 %4345 }
 0x2cd   :  { %6052 = vmatpush1.bf16.msra.mxu1 %v9534_v41  ;;  %v9537_v41 = vld [vmem:[%s12893_s3 + $0x58] sm:$0xff]   ;;  %13031 = vst [vmem:[#allocation60_spill] sm:$0xff] %v11153_v11 }
 0x2ce   :  { %v8402_v2 = vpack.c.bf16 %v2230_v8, %v2230_v8  ;;  %v2231_v18 = vmax.f32 %v1704_v46, 0.0  ;;  %v3517_v46 = vld [vmem:[#allocation2 + $0xe8] sm:$0xf]  ;;  %6053 = vmatprep.subr.bf16.mxu1 %v13022_v37 }
 0x2cf   :  { %v11107_v20 = vld [vmem:[#allocation2 + $0x1e8] sm:$0xf]  ;;  %v11126_v53 = vpop.permute.xlu1 %4053 }
 0x2d0   :  { %3357 = vst.msk [vmem:[#allocation2 + $0x1f0] sm:$0xf] %vm3232_vm2, %v8402_v2  ;;  %v8403_v62 = vpack.c.bf16 %v2231_v18, %v2231_v18  ;;  %v8020_v15 = vcombine.low %v11105_v6, %v11107_v20  ;;  %v9538_v2 = vld [vmem:[%s12891_s0 + $0x378] sm:$0xff]  }
 0x2d1   :  { %v1708_v8 = vpop.f32.mrb[252].mxu0  ;;  %v11116_v51 = vld [vmem:[#allocation2 + $0x1ec] sm:$0xf]  ;;  %6054 = vmatpush1.bf16.msra.mxu1 %v9537_v41 }
 0x2d2   :  { %3358 = vst.msk [vmem:[#allocation2 + $0x1f4] sm:$0xf] %vm3232_vm2, %v8403_v62  ;;  %v1709_v35 = vadd.f32 %v11073_v36, %v1708_v8  ;;  %4391 = vrot.lane.b32.xlu1 %v8020_v15, %s9761_s26  ;;  %v9013_v18 = vpop.f32.mrb[253].mxu0  ;;  %v9695_v8 = vld [vmem:[#allocation2 + $0xe4] sm:$0xf]  ;;  %6055 = vmatprep.subr.bf16.mxu1 %v13022_v37 }
 0x2d3   :  { %v1711_v52 = vpop.f32.mrb[254].mxu0  ;;  %v7941_v25 = vcombine.low %v9695_v8, %v3517_v46  ;;  %v3533_v15 = vld [vmem:[#allocation2 + $0xcc] sm:$0xf]  ;;  %9204 = vmatmul.mubr.msk.bf16.gmra.mrb[104].mxu1 %vm830_vm1, %v9538_v2  ;;  %v9543_v2 = vld [vmem:[%s12891_s0 + $0x380] ss:$0 sps:$4 sm:$0xff]  }
 0x2d4   :  { %v2232_v62 = vmax.f32 %v1709_v35, 0.0  ;;  %v9014_v33 = vpop.f32.mrb[255].mxu0  ;;  %v11138_v52 = vpop.permute.xlu1 %3983  ;;  %v9696_v35 = vld [vmem:[#allocation2 + $0xc8] sm:$0xf]  ;;  %v3539_v8 = vld [vmem:[#allocation2 + $0xec] sm:$0xf]  ;;  %9207 = vmatprep.mubr.msk.bf16.mxu1 %vm9760_vm0, %v13017_v34 }
 0x2d5   :  { %v9539_v33 = vld [vmem:[%s12893_s3 + $0x60] sm:$0xff]   ;;  %v7959_v41 = vcombine.low %v9696_v35, %v3533_v15 }
 0x2d6   :  { %v8404_v18 = vpack.c.bf16 %v2232_v62, %v2232_v62  ;;  %3999 = vrot.lane.b32.xlu1 %v7941_v25, %s9762_s30  ;;  %6056 = vmatpush1.bf16.msra.mxu1 %v9539_v33  ;;  %v9541_v33 = vld [vmem:[%s12893_s3 + $0x68] sm:$0xff]  }
 0x2d7   :  { %v11140_v28 = vld [vmem:[#allocation2 + $0x1f0] sm:$0xf]  ;;  %6057 = vmatprep.subr.bf16.mxu1 %v13022_v37 }
 0x2d8   :  { %3359 = vst.msk [vmem:[#allocation2 + $0x1f8] sm:$0xf] %vm3232_vm2, %v8404_v18  ;;  %v8021_v25 = vcombine.low %v11116_v51, %v11140_v28  ;;  %v11165_v39 = vpop.permute.xlu1 %4115 }
 0x2d9   :  { %v1716_v62 = vpop.f32.mrb[0].mxu0  ;;  %v11149_v27 = vld [vmem:[#allocation2 + $0x1f4] sm:$0xf] }
 0x2da   :  { %v1717_v10 = vadd.f32 %v11073_v36, %v1716_v62  ;;  %4065 = vrot.lane.b32.xlu1 %v7959_v41, %s9761_s26  ;;  %4393 = vrot.lane.b32.xlu0 %v8021_v25, %s9761_s26  ;;  %v9017_v15 = vpop.f32.mrb[1].mxu0  ;;  %v7977_v62 = vcombine.low %v3517_v46, %v3539_v8  ;;  %v3519_v41 = vld [vmem:[#allocation2 + $0x114] sm:$0xf]  ;;  %v11175_v46 = vpop.permute.xlu0 %4477 }
 0x2db   :  { %v1719_v18 = vpop.f32.mrb[2].mxu0  ;;  %6058 = vmatpush1.bf16.msra.mxu1 %v9541_v33  ;;  %13032 = vst [vmem:[#allocation61_spill] sm:$0xff] %v11175_v46 }
 0x2dc   :  { %v2234_v34 = vmax.f32 %v1717_v10, 0.0  ;;  %v1720_v35 = vadd.f32 %v11073_v36, %v1719_v18  ;;  %v9018_v19 = vpop.f32.mrb[3].mxu0  ;;  %6059 = vmatprep.subr.bf16.mxu1 %v13022_v37  ;;  %v7942_v18 = vcombine.low %v3518_v5, %v3519_v41  ;;  %9208 = vmatmul.mubr.msk.bf16.gmra.mrb[108].mxu1 %vm830_vm1, %v9543_v2  ;;  %v11184_v59 = vpop.permute.xlu1 %3985  ;;  %v9545_v5 = vld [vmem:[%s12893_s3 + $0x78] sm:$0xff]  }
 0x2dd   :  { %v9544_v19 = vld [vmem:[%s12893_s3 + $0x70] sm:$0xff]  }
 0x2de   :  { %v8406_v25 = vpack.c.bf16 %v2234_v34, %v2234_v34  ;;  %v2235_v15 = vmax.f32 %v1720_v35, 0.0  ;;  %4131 = vrot.lane.b32.xlu1 %v7977_v62, %s9763_s10 }
 0x2df   :  { %v3615_v10 = vld [vmem:[#allocation2 + $0x1f8] sm:$0xf]  ;;  %6060 = vmatpush1.bf16.msra.mxu1 %v9544_v19 }
 0x2e0   :  { %3361 = vst.msk [vmem:[#allocation2 + $0x200] sm:$0xf] %vm3232_vm2, %v8406_v25  ;;  %v8407_v8 = vpack.c.bf16 %v2235_v15, %v2235_v15  ;;  %v8022_v33 = vcombine.low %v11149_v27, %v3615_v10  ;;  %v3483_v15 = vld [vmem:[#allocation2 + $0xf4] sm:$0xf]  ;;  %6061 = vmatprep.subr.bf16.mxu1 %v13022_v37  ;;  %v11196_v24 = vpop.permute.xlu1 %4117 }
 0x2e1   :  { %v1724_v34 = vpop.f32.mrb[4].mxu0 }
 0x2e2   :  { %3362 = vst.msk [vmem:[#allocation2 + $0x204] sm:$0xf] %vm3232_vm2, %v8407_v8  ;;  %v1725_v35 = vadd.f32 %v11073_v36, %v1724_v34  ;;  %4001 = vrot.lane.b32.xlu1 %v7942_v18, %s9762_s30  ;;  %4395 = vrot.lane.b32.xlu0 %v8022_v33, %s9761_s26  ;;  %v9021_v62 = vpop.f32.mrb[5].mxu0  ;;  %v9697_v8 = vld [vmem:[#allocation2 + $0xf8] sm:$0xf]  ;;  %v11191_v33 = vpop.permute.xlu0 %4347 }
 0x2e3   :  { %v1727_v25 = vpop.f32.mrb[6].mxu0  ;;  %v7960_v34 = vcombine.low %v3483_v15, %v9697_v8  ;;  %v3520_v18 = vld [vmem:[#allocation2 + $0x118] sm:$0xf]  ;;  %6062 = vmatpush1.bf16.msra.mxu1 %v9545_v5  ;;  %13033 = vst [vmem:[#allocation62_spill] sm:$0xff] %v11191_v33 }
 0x2e4   :  { %v2236_v2 = vmax.f32 %v1725_v35, 0.0  ;;  %v1728_v10 = vadd.f32 %v11073_v36, %v1727_v25  ;;  %v9022_v19 = vpop.f32.mrb[7].mxu0  ;;  %6208 = vmatprep.subr.bf16.mxu1 %v13022_v37  ;;  %v7978_v63 = vcombine.low %v3519_v41, %v3520_v18  ;;  %v3521_v35 = vld [vmem:[#allocation2 + $0x11c] sm:$0xf] }
 0x2e5   :  { %v7943_v1 = vcombine.low %v3520_v18, %v3521_v35 }
 0x2e6   :  { %v8408_v62 = vpack.c.bf16 %v2236_v2, %v2236_v2  ;;  %v2237_v23 = vmax.f32 %v1728_v10, 0.0  ;;  %4067 = vrot.lane.b32.xlu1 %v7960_v34, %s9761_s26  ;;  %v11201_v34 = vpop.permute.xlu0 %3977 }
 0x2e7   :  { %v3579_v19 = vld [vmem:[#allocation2 + $0x200] sm:$0xf] }
 0x2e8   :  { %3363 = vst.msk [vmem:[#allocation2 + $0x208] sm:$0xf] %vm3232_vm2, %v8408_v62  ;;  %v8409_v43 = vpack.c.bf16 %v2237_v23, %v2237_v23 }
 0x2e9   :  { %v1732_v25 = vpop.f32.mrb[8].mxu0  ;;  %v3580_v15 = vld [vmem:[#allocation2 + $0x204] sm:$0xf] }
 0x2ea   :  { %3364 = vst.msk [vmem:[#allocation2 + $0x20c] sm:$0xf] %vm3232_vm2, %v8409_v43  ;;  %v1733_v5 = vadd.f32 %v11073_v36, %v1732_v25  ;;  %4133 = vrot.lane.b32.xlu1 %v7978_v63, %s9763_s10  ;;  %v9025_v2 = vpop.f32.mrb[9].mxu0  ;;  %v8002_v10 = vcombine.low %v3579_v19, %v3580_v15  ;;  %v11206_v43 = vpop.permute.xlu1 %3987 }
 0x2eb   :  { %v1735_v8 = vpop.f32.mrb[10].mxu0  ;;  %v11208_v63 = vpop.permute.xlu0 %4413  ;;  %v9698_v2 = vld [vmem:[#allocation2 + $0xfc] sm:$0xf] }
 0x2ec   :  { %v2238_v62 = vmax.f32 %v1733_v5, 0.0  ;;  %v1736_v23 = vadd.f32 %v11073_v36, %v1735_v8  ;;  %4325 = vrot.lane.b32.xlu0 %v8002_v10, %s9762_s30  ;;  %v9026_v41 = vpop.f32.mrb[11].mxu0  ;;  %13034 = vst [vmem:[#allocation63_spill] sm:$0xff] %v11208_v63  ;;  %v9699_v5 = vld [vmem:[#allocation2 + $0x100] sm:$0xf] }
 0x2ed   :  { %v7961_v4 = vcombine.low %v9698_v2, %v9699_v5  ;;  %v3522_v10 = vld [vmem:[#allocation2 + $0x120] sm:$0xf]  ;;  %v3523_v5 = vld [vmem:[#allocation2 + $0x124] sm:$0xf] }
 0x2ee   :  { %v8410_v31 = vpack.c.bf16 %v2238_v62, %v2238_v62  ;;  %v2239_v54 = vmax.f32 %v1736_v23, 0.0  ;;  %4003 = vrot.lane.b32.xlu1 %v7943_v1, %s9762_s30  ;;  %v7979_v61 = vcombine.low %v3521_v35, %v3522_v10 }
 0x2ef   :  { %v3581_v25 = vld [vmem:[#allocation2 + $0x208] sm:$0xf]  ;;  %v11218_v12 = vpop.permute.xlu0 %4479 }
 0x2f0   :  { %3365 = vst.msk [vmem:[#allocation2 + $0x210] sm:$0xf] %vm3232_vm2, %v8410_v31  ;;  %v8411_v19 = vpack.c.bf16 %v2239_v54, %v2239_v54  ;;  %v8038_v8 = vcombine.low %v3580_v15, %v3581_v25  ;;  %v11216_v15 = vpop.permute.xlu1 %4119  ;;  %13035 = vst [vmem:[#allocation64_spill] sm:$0xff] %v11218_v12 }
 0x2f1   :  { %v1740_v3 = vpop.f32.mrb[12].mxu0  ;;  %v3582_v41 = vld [vmem:[#allocation2 + $0x20c] sm:$0xf] }
 0x2f2   :  { %3366 = vst.msk [vmem:[#allocation2 + $0x214] sm:$0xf] %vm3232_vm2, %v8411_v19  ;;  %v1741_v18 = vadd.f32 %v11073_v36, %v1740_v3  ;;  %4069 = vrot.lane.b32.xlu1 %v7961_v4, %s9761_s26  ;;  %4457 = vrot.lane.b32.xlu0 %v8038_v8, %s9763_s10  ;;  %v9029_v1 = vpop.f32.mrb[13].mxu0  ;;  %v8003_v2 = vcombine.low %v3581_v25, %v3582_v41  ;;  %v3534_v25 = vld [vmem:[#allocation2 + $0x108] sm:$0xf] }
 0x2f3   :  { %v1743_v62 = vpop.f32.mrb[14].mxu0  ;;  %v7944_v8 = vcombine.low %v3522_v10, %v3523_v5 }
 0x2f4   :  { %v2240_v23 = vmax.f32 %v1741_v18, 0.0  ;;  %v1744_v54 = vadd.f32 %v11073_v36, %v1743_v62  ;;  %v9030_v31 = vpop.f32.mrb[15].mxu0  ;;  %v11223_v1 = vpop.permute.xlu1 %4055 }
 0x2f5   :  { %13036 = vst [vmem:[#allocation65_spill] sm:$0xff] %v11223_v1  ;;  %v11229_v31 = vpop.permute.xlu0 %4349  ;;  %v9713_v1 = vld [vmem:[#allocation2 + $0x4] sm:$0xf] }
 0x2f6   :  { %v8412_v19 = vpack.c.bf16 %v2240_v23, %v2240_v23  ;;  %v2241_v42 = vmax.f32 %v1744_v54, 0.0  ;;  %4135 = vrot.lane.b32.xlu1 %v7979_v61, %s9763_s10  ;;  %4327 = vrot.lane.b32.xlu0 %v8003_v2, %s9762_s30  ;;  %13037 = vst [vmem:[#allocation66_spill] sm:$0xff] %v11229_v31  ;;  %v9700_v2 = vld [vmem:[#allocation2 + $0x104] sm:$0xf] }
 0x2f7   :  { %v3583_v3 = vld [vmem:[#allocation2 + $0x210] sm:$0xf] }
 0x2f8   :  { %3367 = vst.msk [vmem:[#allocation2 + $0x218] sm:$0xf] %vm3232_vm2, %v8412_v19  ;;  %v8413_v4 = vpack.c.bf16 %v2241_v42, %v2241_v42  ;;  %v8039_v18 = vcombine.low %v3582_v41, %v3583_v3  ;;  %v7962_v19 = vcombine.low %v9700_v2, %v3534_v25  ;;  %v11232_v46 = vpop.permute.xlu1 %4057  ;;  %v3525_v25 = vld [vmem:[#allocation2 + $0x150] sm:$0xf] }
 0x2f9   :  { %v1748_v35 = vpop.f32.mrb[16].mxu0  ;;  %v3584_v62 = vld [vmem:[#allocation2 + $0x214] sm:$0xf]  ;;  %13038 = vst [vmem:[#allocation67_spill] sm:$0xff] %v11232_v46  ;;  %v3666_v46 = vld [vmem:[#allocation2 + $0x64] sm:$0xf] }
 0x2fa   :  { %3368 = vst.msk [vmem:[#allocation2 + $0x21c] sm:$0xf] %vm3232_vm2, %v8413_v4  ;;  %v1749_v23 = vadd.f32 %v11073_v36, %v1748_v35  ;;  %4005 = vrot.lane.b32.xlu1 %v7944_v8, %s9762_s30  ;;  %4459 = vrot.lane.b32.xlu0 %v8039_v18, %s9763_s10  ;;  %v9033_v61 = vpop.f32.mrb[17].mxu0  ;;  %v8004_v12 = vcombine.low %v3583_v3, %v3584_v62  ;;  %v3540_v4 = vld [vmem:[#allocation2 + $0x128] sm:$0xf]  ;;  %v11239_v3 = vpop.permute.xlu0 %4415 }
 0x2fb   :  { %v1751_v54 = vpop.f32.mrb[18].mxu0  ;;  %13040 = vst [vmem:[#allocation69_spill] sm:$0xff] %v11239_v3  ;;  %v3526_v3 = vld [vmem:[#allocation2 + $0x154] sm:$0xf] }
 0x2fc   :  { %v2242_v42 = vmax.f32 %v1749_v23, 0.0  ;;  %v1752_v10 = vadd.f32 %v11073_v36, %v1751_v54  ;;  %v9034_v41 = vpop.f32.mrb[19].mxu0  ;;  %v7980_v23 = vcombine.low %v3523_v5, %v3540_v4  ;;  %v11237_v54 = vpop.permute.xlu1 %4059 }
 0x2fd   :  { %13039 = vst [vmem:[#allocation68_spill] sm:$0xff] %v11237_v54 }
 0x2fe   :  { %v8414_v63 = vpack.c.bf16 %v2242_v42, %v2242_v42  ;;  %v2243_v35 = vmax.f32 %v1752_v10, 0.0  ;;  %4071 = vrot.lane.b32.xlu1 %v7962_v19, %s9761_s26  ;;  %4329 = vrot.lane.b32.xlu0 %v8004_v12, %s9762_s30 }
 0x2ff   :  { %v3621_v8 = vld [vmem:[#allocation2 + $0x218] sm:$0xf] }
 0x300   :  { %3369 = vst.msk [vmem:[#allocation2 + $0x220] sm:$0xf] %vm3232_vm2, %v8414_v63  ;;  %v8415_v18 = vpack.c.bf16 %v2243_v35, %v2243_v35  ;;  %v8040_v61 = vcombine.low %v3584_v62, %v3621_v8  ;;  %v3524_v63 = vld [vmem:[#allocation2 + $0x14c] sm:$0xf]  ;;  %v11246_v4 = vpop.permute.xlu1 %3989 }
 0x301   :  { %v1756_v41 = vpop.f32.mrb[20].mxu0  ;;  %v7945_v19 = vcombine.low %v3524_v63, %v3525_v25  ;;  %13041 = vst [vmem:[#allocation70_spill] sm:$0xff] %v11246_v4 }
 0x302   :  { %3370 = vst.msk [vmem:[#allocation2 + $0x224] sm:$0xf] %vm3232_vm2, %v8415_v18  ;;  %v1757_v42 = vadd.f32 %v11073_v36, %v1756_v41  ;;  %4137 = vrot.lane.b32.xlu1 %v7980_v23, %s9763_s10  ;;  %4461 = vrot.lane.b32.xlu0 %v8040_v61, %s9763_s10  ;;  %v9037_v12 = vpop.f32.mrb[21].mxu0  ;;  %v3489_v18 = vld [vmem:[#allocation2 + $0x130] sm:$0xf]  ;;  %v11249_v41 = vpop.permute.xlu0 %4481 }
 0x303   :  { %v1759_v10 = vpop.f32.mrb[22].mxu0  ;;  %13042 = vst [vmem:[#allocation71_spill] sm:$0xff] %v11249_v41  ;;  %v9701_v61 = vld [vmem:[#allocation2 + $0x134] sm:$0xf]  ;;  %v3527_v41 = vld [vmem:[#allocation2 + $0x158] sm:$0xf] }
 0x304   :  { %v2244_v2 = vmax.f32 %v1757_v42, 0.0  ;;  %v1760_v5 = vadd.f32 %v11073_v36, %v1759_v10  ;;  %v9038_v62 = vpop.f32.mrb[23].mxu0  ;;  %v7963_v12 = vcombine.low %v3489_v18, %v9701_v61  ;;  %v11254_v63 = vpop.permute.xlu1 %4121  ;;  %v7981_v61 = vcombine.low %v3525_v25, %v3526_v3 }
 0x305   :  { %13043 = vst [vmem:[#allocation72_spill] sm:$0xff] %v11254_v63 }
 0x306   :  { %v8416_v35 = vpack.c.bf16 %v2244_v2, %v2244_v2  ;;  %v2245_v8 = vmax.f32 %v1760_v5, 0.0  ;;  %4007 = vrot.lane.b32.xlu1 %v7945_v19, %s9762_s30  ;;  %v11262_v11 = vpop.permute.xlu0 %4351 }
 0x307   :  { %v3550_v31 = vld [vmem:[#allocation2 + $0x220] sm:$0xf]  ;;  %13044 = vst [vmem:[#allocation73_spill] sm:$0xff] %v11262_v11  ;;  %v3528_v11 = vld [vmem:[#allocation2 + $0x15c] sm:$0xf] }
 0x308   :  { %3371 = vst.msk [vmem:[#allocation2 + $0x228] sm:$0xf] %vm3232_vm2, %v8416_v35  ;;  %v8417_v23 = vpack.c.bf16 %v2245_v8, %v2245_v8  ;;  %v7947_v49 = vcombine.low %v3528_v11, %v3529_v47 }
 0x309   :  { %v1764_v42 = vpop.f32.mrb[24].mxu0  ;;  %v11252_v10 = vld [vmem:[#allocation2 + $0x224] sm:$0xf] }
 0x30a   :  { %3372 = vst.msk [vmem:[#allocation2 + $0x22c] sm:$0xf] %vm3232_vm2, %v8417_v23  ;;  %v1765_v2 = vadd.f32 %v11073_v36, %v1764_v42  ;;  %4073 = vrot.lane.b32.xlu1 %v7963_v12, %s9761_s26  ;;  %v9041_v5 = vpop.f32.mrb[25].mxu0  ;;  %v8023_v62 = vcombine.low %v3550_v31, %v11252_v10  ;;  %v11267_v12 = vld [vmem:[#allocation2 + $0x224] sm:$0xf] }
 0x30b   :  { %v1767_v19 = vpop.f32.mrb[26].mxu0  ;;  %13045 = vst [vmem:[#allocation74_spill] sm:$0xff] %v11267_v12 }
 0x30c   :  { %v2246_v35 = vmax.f32 %v1765_v2, 0.0  ;;  %v1768_v8 = vadd.f32 %v11073_v36, %v1767_v19  ;;  %4397 = vrot.lane.b32.xlu0 %v8023_v62, %s9761_s26  ;;  %v9042_v18 = vpop.f32.mrb[27].mxu0  ;;  %v11271_v2 = vpop.permute.xlu1 %3991  ;;  %v7946_v62 = vcombine.low %v3526_v3, %v3527_v41  ;;  %v9702_v19 = vld [vmem:[#allocation2 + $0x138] sm:$0xf] }
 0x30d   :  { %13047 = vst [vmem:[#allocation76_spill] sm:$0xff] %v11271_v2 }
 0x30e   :  { %v8418_v16 = vpack.c.bf16 %v2246_v35, %v2246_v35  ;;  %v2247_v23 = vmax.f32 %v1768_v8, 0.0  ;;  %4139 = vrot.lane.b32.xlu1 %v7981_v61, %s9763_s10 }
 0x30f   :  { %v11265_v42 = vld [vmem:[#allocation2 + $0x228] sm:$0xf] }
 0x310   :  { %v11269_v31 = vld [vmem:[#allocation2 + $0x228] sm:$0xf]  ;;  %3373 = vst.msk [vmem:[#allocation2 + $0x230] sm:$0xf] %vm3232_vm2, %v8418_v16  ;;  %v8419_v5 = vpack.c.bf16 %v2247_v23, %v2247_v23  ;;  %v11284_v23 = vpop.permute.xlu0 %4417  ;;  %v11288_v40 = vpop.permute.xlu1 %4123 }
 0x311   :  { %13046 = vst [vmem:[#allocation75_spill] sm:$0xff] %v11269_v31  ;;  %v1772_v35 = vpop.f32.mrb[28].mxu0  ;;  %v11278_v8 = vld [vmem:[#allocation2 + $0x22c] sm:$0xf]  ;;  %13048 = vst [vmem:[#allocation77_spill] sm:$0xff] %v11284_v23  ;;  %v7982_v23 = vcombine.low %v3527_v41, %v3528_v11 }
 0x312   :  { %3374 = vst.msk [vmem:[#allocation2 + $0x234] sm:$0xf] %vm3232_vm2, %v8419_v5  ;;  %4009 = vrot.lane.b32.xlu1 %v7946_v62, %s9762_s30  ;;  %v9045_v18 = vpop.f32.mrb[29].mxu0  ;;  %v8024_v61 = vcombine.low %v11265_v42, %v11278_v8  ;;  %v9703_v35 = vld [vmem:[#allocation2 + $0x13c] sm:$0xf]  ;;  %13049 = vst [vmem:[#allocation78_spill] sm:$0xff] %v11288_v40 }
 0x313   :  { %v1775_v16 = vpop.f32.mrb[30].mxu0  ;;  %v7964_v31 = vcombine.low %v9702_v19, %v9703_v35  ;;  %v11293_v18 = vld [vmem:[#allocation2 + $0x22c] sm:$0xf] }
 0x314   :  { %v1776_v3 = vadd.f32 %v11073_v36, %v1775_v16  ;;  %4399 = vrot.lane.b32.xlu0 %v8024_v61, %s9761_s26  ;;  %v9046_v25 = vpop.f32.mrb[31].mxu0  ;;  %v11307_v54 = vpop.permute.xlu1 %3993 }
 0x315   :  { %13052 = vst [vmem:[#allocation81_spill] sm:$0xff] %v11307_v54 }
 0x316   :  { %v2249_v5 = vmax.f32 %v1776_v3, 0.0  ;;  %4075 = vrot.lane.b32.xlu1 %v7964_v31, %s9761_s26  ;;  %v11301_v3 = vpop.permute.xlu0 %4483 }
 0x317   :  { %v11291_v62 = vld [vmem:[#allocation2 + $0x230] sm:$0xf]  ;;  %13051 = vst [vmem:[#allocation80_spill] sm:$0xff] %v11301_v3  ;;  %v3535_v3 = vld [vmem:[#allocation2 + $0x144] sm:$0xf] }
 0x318   :  { %v11295_v33 = vld [vmem:[#allocation2 + $0x230] sm:$0xf]  ;;  %v8421_v16 = vpack.c.bf16 %v2249_v5, %v2249_v5  ;;  %v11315_v40 = vpop.permute.xlu1 %4125 }
 0x319   :  { %13050 = vst [vmem:[#allocation79_spill] sm:$0xff] %v11295_v33  ;;  %v1780_v61 = vpop.f32.mrb[32].mxu0  ;;  %v3616_v35 = vld [vmem:[#allocation2 + $0x234] sm:$0xf]  ;;  %13054 = vst [vmem:[#allocation83_spill] sm:$0xff] %v11315_v40 }
 0x31a   :  { %3376 = vst.msk [vmem:[#allocation2 + $0x23c] sm:$0xf] %vm3232_vm2, %v8421_v16  ;;  %v1781_v31 = vadd.f32 %v11073_v36, %v1780_v61  ;;  %4141 = vrot.lane.b32.xlu1 %v7982_v23, %s9763_s10  ;;  %v9049_v56 = vpop.f32.mrb[33].mxu0  ;;  %v8025_v41 = vcombine.low %v11291_v62, %v3616_v35  ;;  %v11312_v61 = vpop.permute.xlu0 %4353  ;;  %v9704_v23 = vld [vmem:[#allocation2 + $0x140] sm:$0xf] }
 0x31b   :  { %v1783_v5 = vpop.f32.mrb[34].mxu0  ;;  %13053 = vst [vmem:[#allocation82_spill] sm:$0xff] %v11312_v61  ;;  %v7965_v35 = vcombine.low %v9704_v23, %v3535_v3 }
 0x31c   :  { %v2250_v25 = vmax.f32 %v1781_v31, 0.0  ;;  %v1784_v19 = vadd.f32 %v11073_v36, %v1783_v5  ;;  %4401 = vrot.lane.b32.xlu0 %v8025_v41, %s9761_s26  ;;  %v9050_v33 = vpop.f32.mrb[35].mxu0  ;;  %v3541_v31 = vld [vmem:[#allocation2 + $0x164] sm:$0xf]  ;;  %v3665_v5 = vld [vmem:[#allocation2 + $0x60] sm:$0xf] }
 0x31e   :  { %v8422_v45 = vpack.c.bf16 %v2250_v25, %v2250_v25  ;;  %v2251_v16 = vmax.f32 %v1784_v19, 0.0  ;;  %4011 = vrot.lane.b32.xlu1 %v7947_v49, %s9762_s30  ;;  %v11323_v3 = vpop.permute.xlu0 %4419 }
 0x31f   :  { %13056 = vst [vmem:[#allocation85_spill] sm:$0xff] %v11323_v3 }
 0x320   :  { %3377 = vst.msk [vmem:[#allocation2 + $0x240] sm:$0xf] %vm3232_vm2, %v8422_v45  ;;  %v8423_v56 = vpack.c.bf16 %v2251_v16, %v2251_v16  ;;  %v7983_v45 = vcombine.low %v3529_v47, %v3541_v31  ;;  %v11321_v16 = vpop.permute.xlu1 %4061 }
 0x321   :  { %v1788_v54 = vpop.f32.mrb[36].mxu0  ;;  %13055 = vst [vmem:[#allocation84_spill] sm:$0xff] %v11321_v16 }
 0x322   :  { %3378 = vst.msk [vmem:[#allocation2 + $0x244] sm:$0xf] %vm3232_vm2, %v8423_v56  ;;  %v1789_v11 = vadd.f32 %v11073_v36, %v1788_v54  ;;  %4077 = vrot.lane.b32.xlu1 %v7965_v35, %s9761_s26  ;;  %v9053_v33 = vpop.f32.mrb[37].mxu0  ;;  %v3664_v56 = vld [vmem:[#allocation2 + $0x5c] sm:$0xf]  ;;  %v11333_v3 = vpop.permute.xlu0 %4485 }
 0x323   :  { %v1791_v25 = vpop.f32.mrb[38].mxu0  ;;  %v3585_v54 = vld [vmem:[#allocation2 + $0x23c] sm:$0xf]  ;;  %13058 = vst [vmem:[#allocation87_spill] sm:$0xff] %v11333_v3 }
 0x324   :  { %v2252_v49 = vmax.f32 %v1789_v11, 0.0  ;;  %v1792_v19 = vadd.f32 %v11073_v36, %v1791_v25  ;;  %v9054_v41 = vpop.f32.mrb[39].mxu0  ;;  %v8074_v11 = vcombine.low %v3664_v56, %v3665_v5  ;;  %v11327_v47 = vpop.permute.xlu1 %4063 }
 0x325   :  { %13057 = vst [vmem:[#allocation86_spill] sm:$0xff] %v11327_v47 }
 0x326   :  { %v8424_v23 = vpack.c.bf16 %v2252_v49, %v2252_v49  ;;  %v2253_v61 = vmax.f32 %v1792_v19, 0.0  ;;  %4143 = vrot.lane.b32.xlu1 %v7983_v45, %s9763_s10  ;;  %v3629_v45 = vld [vmem:[#allocation2 + $0x40] sm:$0xf] }
 0x327   :  { %v3586_v40 = vld [vmem:[#allocation2 + $0x240] sm:$0xf] }
 0x328   :  { %3379 = vst.msk [vmem:[#allocation2 + $0x248] sm:$0xf] %vm3232_vm2, %v8424_v23  ;;  %v8425_v35 = vpack.c.bf16 %v2253_v61, %v2253_v61  ;;  %v8005_v33 = vcombine.low %v3585_v54, %v3586_v40  ;;  %v9705_v54 = vld [vmem:[#allocation2 + $0x44] sm:$0xf] }
 0x329   :  { %v1796_v25 = vpop.f32.mrb[40].mxu0  ;;  %v3587_v41 = vld [vmem:[#allocation2 + $0x244] sm:$0xf]  ;;  %v8092_v16 = vcombine.low %v3629_v45, %v9705_v54  ;;  %v3667_v45 = vld [vmem:[#allocation2 + $0x68] sm:$0xf] }
 0x32a   :  { %3380 = vst.msk [vmem:[#allocation2 + $0x24c] sm:$0xf] %vm3232_vm2, %v8425_v35  ;;  %v1797_v31 = vadd.f32 %v11073_v36, %v1796_v25  ;;  %4673 = vrot.lane.b32.xlu1 %v8074_v11, %s9762_s30  ;;  %4331 = vrot.lane.b32.xlu0 %v8005_v33, %s9762_s30  ;;  %v9057_v49 = vpop.f32.mrb[41].mxu0  ;;  %v8041_v47 = vcombine.low %v3586_v40, %v3587_v41  ;;  %v11336_v35 = vpop.permute.xlu1 %3995 }
 0x32b   :  { %v1799_v19 = vpop.f32.mrb[42].mxu0  ;;  %13059 = vst [vmem:[#allocation88_spill] sm:$0xff] %v11336_v35  ;;  %v11340_v33 = vpop.permute.xlu0 %4355  ;;  %v8110_v49 = vcombine.low %v3665_v5, %v3666_v46 }
 0x32c   :  { %v2254_v61 = vmax.f32 %v1797_v31, 0.0  ;;  %v1800_v23 = vadd.f32 %v11073_v36, %v1799_v19  ;;  %v9058_v56 = vpop.f32.mrb[43].mxu0  ;;  %13060 = vst [vmem:[#allocation89_spill] sm:$0xff] %v11340_v33 }
 0x32e   :  { %v8426_v25 = vpack.c.bf16 %v2254_v61, %v2254_v61  ;;  %v2255_v32 = vmax.f32 %v1800_v23, 0.0  ;;  %4739 = vrot.lane.b32.xlu1 %v8092_v16, %s9761_s26  ;;  %4463 = vrot.lane.b32.xlu0 %v8041_v47, %s9763_s10  ;;  %v11347_v23 = vpop.permute.xlu1 %4127 }
 0x32f   :  { %v3588_v11 = vld [vmem:[#allocation2 + $0x248] sm:$0xf]  ;;  %13061 = vst [vmem:[#allocation90_spill] sm:$0xff] %v11347_v23  ;;  %v11350_v33 = vpop.permute.xlu0 %4421 }
 0x330   :  { %3381 = vst.msk [vmem:[#allocation2 + $0x250] sm:$0xf] %vm3232_vm2, %v8426_v25  ;;  %v8427_v31 = vpack.c.bf16 %v2255_v32, %v2255_v32  ;;  %v8006_v19 = vcombine.low %v3587_v41, %v3588_v11  ;;  %v8075_v41 = vcombine.low %v3666_v46, %v3667_v45  ;;  %13062 = vst [vmem:[#allocation91_spill] sm:$0xff] %v11350_v33  ;;  %v3669_v33 = vld [vmem:[#allocation2 + $0x70] sm:$0xf] }
 0x331   :  { %v1804_v56 = vpop.f32.mrb[44].mxu0  ;;  %v3589_v40 = vld [vmem:[#allocation2 + $0x24c] sm:$0xf] }
 0x332   :  { %3382 = vst.msk [vmem:[#allocation2 + $0x254] sm:$0xf] %vm3232_vm2, %v8427_v31  ;;  %v1805_v61 = vadd.f32 %v11073_v36, %v1804_v56  ;;  %4805 = vrot.lane.b32.xlu1 %v8110_v49, %s9763_s10  ;;  %4333 = vrot.lane.b32.xlu0 %v8006_v19, %s9762_s30  ;;  %v9061_v16 = vpop.f32.mrb[45].mxu0  ;;  %v8042_v25 = vcombine.low %v3588_v11, %v3589_v40  ;;  %v9706_v56 = vld [vmem:[#allocation2 + $0x48] sm:$0xf]  ;;  %v11355_v11 = vpop.permute.xlu1 %3997 }
 0x333   :  { %v1807_v47 = vpop.f32.mrb[46].mxu0  ;;  %v9707_v16 = vld [vmem:[#allocation2 + $0x4c] sm:$0xf]  ;;  %13063 = vst [vmem:[#allocation92_spill] sm:$0xff] %v11355_v11 }
 0x334   :  { %v2256_v54 = vmax.f32 %v1805_v61, 0.0  ;;  %v1808_v32 = vadd.f32 %v11073_v36, %v1807_v47  ;;  %v9062_v5 = vpop.f32.mrb[47].mxu0  ;;  %v8093_v61 = vcombine.low %v9706_v56, %v9707_v16 }
 0x335   :  { %v3668_v5 = vld [vmem:[#allocation2 + $0x6c] sm:$0xf] }
 0x336   :  { %v8428_v3 = vpack.c.bf16 %v2256_v54, %v2256_v54  ;;  %v2257_v31 = vmax.f32 %v1808_v32, 0.0  ;;  %4675 = vrot.lane.b32.xlu1 %v8075_v41, %s9762_s30  ;;  %4465 = vrot.lane.b32.xlu0 %v8042_v25, %s9763_s10  ;;  %v11361_v41 = vpop.permute.xlu0 %4487  ;;  %v8111_v56 = vcombine.low %v3667_v45, %v3668_v5 }
 0x337   :  { %v3590_v49 = vld [vmem:[#allocation2 + $0x250] sm:$0xf]  ;;  %13064 = vst [vmem:[#allocation93_spill] sm:$0xff] %v11361_v41 }
 0x338   :  { %3383 = vst.msk [vmem:[#allocation2 + $0x258] sm:$0xf] %vm3232_vm2, %v8428_v3  ;;  %v8429_v19 = vpack.c.bf16 %v2257_v31, %v2257_v31  ;;  %v8007_v23 = vcombine.low %v3589_v40, %v3590_v49 }
 0x339   :  { %v1812_v47 = vpop.f32.mrb[48].mxu0  ;;  %v3622_v46 = vld [vmem:[#allocation2 + $0x254] sm:$0xf] }
 0x33a   :  { %3384 = vst.msk [vmem:[#allocation2 + $0x25c] sm:$0xf] %vm3232_vm2, %v8429_v19  ;;  %v1813_v54 = vadd.f32 %v11073_v36, %v1812_v47  ;;  %4741 = vrot.lane.b32.xlu1 %v8093_v61, %s9761_s26  ;;  %4335 = vrot.lane.b32.xlu0 %v8007_v23, %s9762_s30  ;;  %v9065_v32 = vpop.f32.mrb[49].mxu0  ;;  %v8043_v16 = vcombine.low %v3590_v49, %v3622_v46  ;;  %v11366_v19 = vpop.permute.xlu1 %4129 }
 0x33b   :  { %v1815_v3 = vpop.f32.mrb[50].mxu0  ;;  %13065 = vst [vmem:[#allocation94_spill] sm:$0xff] %v11366_v19  ;;  %v8076_v61 = vcombine.low %v3668_v5, %v3669_v33  ;;  %v11369_v32 = vpop.permute.xlu0 %4357 }
 0x33c   :  { %v2258_v25 = vmax.f32 %v1813_v54, 0.0  ;;  %v1816_v40 = vadd.f32 %v11073_v36, %v1815_v3  ;;  %v9066_v31 = vpop.f32.mrb[51].mxu0  ;;  %v3700_v54 = vld [vmem:[#allocation2 + $0x54] sm:$0xf]  ;;  %13066 = vst [vmem:[#allocation95_spill] sm:$0xff] %v11369_v32 }
 0x33d   :  { %v3706_v31 = vld [vmem:[#allocation2 + $0x74] sm:$0xf] }
 0x33e   :  { %v8430_v11 = vpack.c.bf16 %v2258_v25, %v2258_v25  ;;  %v2259_v35 = vmax.f32 %v1816_v40, 0.0  ;;  %4807 = vrot.lane.b32.xlu1 %v8111_v56, %s9763_s10  ;;  %4467 = vrot.lane.b32.xlu0 %v8043_v16, %s9763_s10 }
 0x340   :  { %3385 = vst.msk [vmem:[#allocation2 + $0x260] sm:$0xf] %vm3232_vm2, %v8430_v11  ;;  %v8431_v23 = vpack.c.bf16 %v2259_v35, %v2259_v35  ;;  %v9708_v35 = vld [vmem:[#allocation2 + $0x50] sm:$0xf] }
 0x341   :  { %v1820_v47 = vpop.f32.mrb[52].mxu0  ;;  %v8094_v5 = vcombine.low %v9708_v35, %v3700_v54 }
 0x342   :  { %3386 = vst.msk [vmem:[#allocation2 + $0x264] sm:$0xf] %vm3232_vm2, %v8431_v23  ;;  %v1821_v45 = vadd.f32 %v11073_v36, %v1820_v47  ;;  %4677 = vrot.lane.b32.xlu1 %v8076_v61, %s9762_s30  ;;  %v9069_v49 = vpop.f32.mrb[53].mxu0  ;;  %v3556_v23 = vld [vmem:[#allocation2 + $0x25c] sm:$0xf]  ;;  %v11380_v47 = vpop.permute.xlu0 %4423 }
 0x343   :  { %v1823_v46 = vpop.f32.mrb[54].mxu0  ;;  %13068 = vst [vmem:[#allocation97_spill] sm:$0xff] %v11380_v47  ;;  %v8112_v49 = vcombine.low %v3669_v33, %v3706_v31  ;;  %v9709_v31 = vld [vmem:[#allocation2 + $0x80] sm:$0xf] }
 0x344   :  { %v2260_v3 = vmax.f32 %v1821_v45, 0.0  ;;  %v1824_v25 = vadd.f32 %v11073_v36, %v1823_v46  ;;  %v11375_v40 = vpop.permute.xlu1 %4391  ;;  %v9070_v11 = vpop.f32.mrb[55].mxu0  ;;  %v3672_v33 = vld [vmem:[#allocation2 + $0xa0] sm:$0xf] }
 0x345   :  { %v3671_v11 = vld [vmem:[#allocation2 + $0x9c] sm:$0xf] }
 0x346   :  { %v8432_v56 = vpack.c.bf16 %v2260_v3, %v2260_v3  ;;  %v2261_v16 = vmax.f32 %v1824_v25, 0.0  ;;  %4743 = vrot.lane.b32.xlu1 %v8094_v5, %s9761_s26  ;;  %v11402_v19 = vpop.permute.xlu0 %4489 }
 0x347   :  { %v11378_v32 = vld [vmem:[#allocation2 + $0x260] sm:$0xf]  ;;  %13072 = vst [vmem:[#allocation101_spill] sm:$0xff] %v11402_v19 }
 0x348   :  { %13067 = vst [vmem:[#allocation96_spill] sm:$0xff] %v11378_v32  ;;  %3387 = vst.msk [vmem:[#allocation2 + $0x268] sm:$0xf] %vm3232_vm2, %v8432_v56  ;;  %v8433_v61 = vpack.c.bf16 %v2261_v16, %v2261_v16  ;;  %v11383_v45 = vpop.permute.xlu1 %3999  ;;  %v8026_v46 = vcombine.low %v3556_v23, %v11378_v32  ;;  %v11386_v54 = vld [vmem:[#allocation2 + $0x260] sm:$0xf] }
 0x349   :  { %13069 = vst [vmem:[#allocation98_spill] sm:$0xff] %v11383_v45  ;;  %v1828_v3 = vpop.f32.mrb[56].mxu0  ;;  %v11388_v25 = vld [vmem:[#allocation2 + $0x264] sm:$0xf]  ;;  %v3670_v23 = vld [vmem:[#allocation2 + $0x98] sm:$0xf] }
 0x34a   :  { %13070 = vst [vmem:[#allocation99_spill] sm:$0xff] %v11388_v25  ;;  %v11390_v35 = vld [vmem:[#allocation2 + $0x264] sm:$0xf]  ;;  %3388 = vst.msk [vmem:[#allocation2 + $0x26c] sm:$0xf] %vm3232_vm2, %v8433_v61  ;;  %v1829_v5 = vadd.f32 %v11073_v36, %v1828_v3  ;;  %4809 = vrot.lane.b32.xlu1 %v8112_v49, %s9763_s10  ;;  %4403 = vrot.lane.b32.xlu0 %v8026_v46, %s9761_s26  ;;  %v9073_v56 = vpop.f32.mrb[57].mxu0  ;;  %v8077_v45 = vcombine.low %v3670_v23, %v3671_v11 }
 0x34b   :  { %v1831_v16 = vpop.f32.mrb[58].mxu0  ;;  %v3635_v49 = vld [vmem:[#allocation2 + $0x7c] sm:$0xf] }
 0x34c   :  { %v2262_v47 = vmax.f32 %v1829_v5, 0.0  ;;  %v11400_v41 = vpop.permute.xlu1 %4065  ;;  %v9074_v61 = vpop.f32.mrb[59].mxu0  ;;  %v8095_v16 = vcombine.low %v3635_v49, %v9709_v31 }
 0x34d   :  { %13071 = vst [vmem:[#allocation100_spill] sm:$0xff] %v11400_v41 }
 0x34e   :  { %v8434_v3 = vpack.c.bf16 %v2262_v47, %v2262_v47  ;;  %4679 = vrot.lane.b32.xlu1 %v8077_v45, %s9762_s30  ;;  %v11418_v45 = vpop.permute.xlu0 %4359 }
 0x34f   :  { %v11405_v46 = vld [vmem:[#allocation2 + $0x268] sm:$0xf]  ;;  %13077 = vst [vmem:[#allocation106_spill] sm:$0xff] %v11418_v45  ;;  %v8113_v45 = vcombine.low %v3671_v11, %v3672_v33 }
 0x350   :  { %13073 = vst [vmem:[#allocation102_spill] sm:$0xff] %v11405_v46  ;;  %3389 = vst.msk [vmem:[#allocation2 + $0x270] sm:$0xf] %vm3232_vm2, %v8434_v3  ;;  %v11408_v56 = vpop.permute.xlu1 %4131  ;;  %v8027_v5 = vcombine.low %v11388_v25, %v11405_v46  ;;  %v11412_v23 = vld [vmem:[#allocation2 + $0x268] sm:$0xf] }
 0x351   :  { %13074 = vst [vmem:[#allocation103_spill] sm:$0xff] %v11408_v56  ;;  %v1836_v61 = vpop.f32.mrb[60].mxu0  ;;  %v11414_v19 = vld [vmem:[#allocation2 + $0x26c] sm:$0xf] }
 0x352   :  { %13075 = vst [vmem:[#allocation104_spill] sm:$0xff] %v11414_v19  ;;  %v11416_v47 = vld [vmem:[#allocation2 + $0x26c] sm:$0xf]  ;;  %v1837_v41 = vadd.f32 %v11073_v36, %v1836_v61  ;;  %4745 = vrot.lane.b32.xlu1 %v8095_v16, %s9761_s26  ;;  %4405 = vrot.lane.b32.xlu0 %v8027_v5, %s9761_s26  ;;  %v9077_v31 = vpop.f32.mrb[61].mxu0  ;;  %v3673_v61 = vld [vmem:[#allocation2 + $0xa4] sm:$0xf]  ;;  %v11430_v63 = vpop.permute.xlu0 %4393 }
 0x353   :  { %13076 = vst [vmem:[#allocation105_spill] sm:$0xff] %v11416_v47  ;;  %v1839_v56 = vpop.f32.mrb[62].mxu0 }
 0x354   :  { %v2264_v21 = vmax.f32 %v1837_v41, 0.0  ;;  %v1840_v2 = vadd.f32 %v11073_v36, %v1839_v56  ;;  %v11428_v25 = vpop.permute.xlu1 %4001  ;;  %v9078_v32 = vpop.f32.mrb[63].mxu0  ;;  %v8078_v41 = vcombine.low %v3672_v33, %v3673_v61  ;;  %v11446_v33 = vld [vmem:[%s12892_s2] ss:$0 sm:$0xff] }
 0x355   :  { %13078 = vst [vmem:[#allocation107_spill] sm:$0xff] %v11428_v25 }
 0x356   :  { %v8436_v16 = vpack.c.bf16 %v2264_v21, %v2264_v21  ;;  %v2265_v5 = vmax.f32 %v1840_v2, 0.0  ;;  %4811 = vrot.lane.b32.xlu1 %v8113_v45, %s9763_s10  ;;  %v11438_v32 = vpop.permute.xlu0 %4395 }
 0x357   :  { %v3617_v31 = vld [vmem:[#allocation2 + $0x270] sm:$0xf] }
 0x358   :  { %3391 = vst.msk [vmem:[#allocation2 + $0x278] sm:$0xf] %vm3232_vm2, %v8436_v16  ;;  %v8437_v3 = vpack.c.bf16 %v2265_v5, %v2265_v5  ;;  %v11434_v49 = vpop.permute.xlu1 %4067  ;;  %v8028_v56 = vcombine.low %v11414_v19, %v3617_v31  ;;  %v9711_v31 = vld [vmem:[#allocation2 + $0x84] sm:$0xf] }
 0x359   :  { %13079 = vst [vmem:[#allocation108_spill] sm:$0xff] %v11434_v49  ;;  %v1844_v46 = vpop.f32.mrb[64].mxu0  ;;  %v9712_v49 = vld [vmem:[#allocation2 + $0x88] sm:$0xf] }
 0x35a   :  { %3392 = vst.msk [vmem:[#allocation2 + $0x27c] sm:$0xf] %vm3232_vm2, %v8437_v3  ;;  %v1845_v11 = vadd.f32 %v11073_v36, %v1844_v46  ;;  %4681 = vrot.lane.b32.xlu1 %v8078_v41, %s9762_s30  ;;  %4407 = vrot.lane.b32.xlu0 %v8028_v56, %s9761_s26  ;;  %v9081_v21 = vpop.f32.mrb[65].mxu0  ;;  %v8096_v36 = vcombine.low %v9711_v31, %v9712_v49  ;;  %v3674_v46 = vld [vmem:[#allocation2 + $0xa8] sm:$0xf] }
 0x35b   :  { %v1847_v2 = vpop.f32.mrb[66].mxu0  ;;  %v3543_v41 = vld [vmem:[#allocation2 + $0x1e0] sm:$0xf]  ;;  %v11456_v49 = vld [vmem:[#allocation2 + $0xac] sm:$0xf] }
 0x35c   :  { %v2266_v45 = vmax.f32 %v1845_v11, 0.0  ;;  %v1848_v16 = vadd.f32 %v11446_v33, %v1847_v2  ;;  %v11449_v5 = vpop.permute.xlu1 %4133  ;;  %v9082_v3 = vpop.f32.mrb[67].mxu0  ;;  %v3458_v21 = vld [vmem:[#allocation2] sm:$0xf]  ;;  %v7984_v19 = vcombine.low %v3543_v41, %v11105_v6 }
 0x35d   :  { %13080 = vst [vmem:[#allocation109_spill] sm:$0xff] %v11449_v5  ;;  %v7912_v4 = vcombine.low %v3458_v21, %v9713_v1  ;;  %v8114_v5 = vcombine.low %v3673_v61, %v3674_v46 }
 0x35e   :  { %v8438_v25 = vpack.c.bf16 %v2266_v45, %v2266_v45  ;;  %v2267_v56 = vmax.f32 %v1848_v16, 0.0  ;;  %4747 = vrot.lane.b32.xlu1 %v8096_v36, %s9761_s26  ;;  %v4326_v11 = vpop.permute.xlu0 %4325 }
 0x35f   :  { %v5338_v45 = vsel %vm5189_vm3, %v7984_v19, %v4326_v11  ;;  %v3591_v31 = vld [vmem:[#allocation2 + $0x278] sm:$0xf]  ;;  %v5192_v47 = vsel %vm5189_vm3, %v7912_v4, %v11201_v34  ;;  %v8079_v34 = vcombine.low %v3674_v46, %v11456_v49 }
 0x360   :  { %3393 = vst.msk [vmem:[#allocation2 + $0x280] sm:$0xf] %vm3232_vm2, %v8438_v25  ;;  %v8439_v2 = vpack.c.bf16 %v2267_v56, %v2267_v56  ;;  %v11454_v3 = vpop.permute.xlu1 %4003  ;;  %v5391_v4 = vsel %vm5244_vm4, %v5338_v45, %v11375_v40  ;;  %v5246_v21 = vsel %vm5244_vm4, %v5192_v47, %v11017_v48  ;;  %v9714_v47 = vld [vmem:[#allocation2 + $0x8c] sm:$0xf] }
 0x361   :  { %v1852_v16 = vpop.f32.mrb[68].mxu0  ;;  %v3592_v36 = vld [vmem:[#allocation2 + $0x27c] sm:$0xf] }
 0x362   :  { %3394 = vst.msk [vmem:[#allocation2 + $0x284] sm:$0xf] %vm3232_vm2, %v8439_v2  ;;  %v1853_v6 = vadd.f32 %v11446_v33, %v1852_v16  ;;  %4813 = vrot.lane.b32.xlu1 %v8114_v5, %s9763_s10  ;;  %v9085_v1 = vpop.f32.mrb[69].mxu0  ;;  %v8008_v25 = vcombine.low %v3591_v31, %v3592_v36  ;;  %v9575_v5 = vld [vmem:[%s12893_s3 + $0x80] sm:$0xff]   ;;  %v3701_v31 = vld [vmem:[#allocation2 + $0x90] sm:$0xf] }
 0x363   :  { %v1855_v61 = vpop.f32.mrb[70].mxu0 }
 0x364   :  { %v2268_v41 = vmax.f32 %v1853_v6, 0.0  ;;  %v1856_v19 = vadd.f32 %v11446_v33, %v1855_v61  ;;  %v11465_v56 = vpop.permute.xlu1 %4069  ;;  %v4458_v11 = vpop.permute.xlu0 %4457  ;;  %4337 = vrot.lane.b32.xlu0 %v8008_v25, %s9762_s30  ;;  %v5283_v6 = vsel %vm5281_vm5, %v5246_v21, %v11034_v13  ;;  %v8097_v61 = vcombine.low %v9714_v47, %v3701_v31  ;;  %v9581_v13 = vld [vmem:[%s12893_s3 + $0x88] sm:$0xff]  }
 0x365   :  { %v9086_v2 = vpop.f32.mrb[71].mxu0  ;;  %v5427_v16 = vsel %vm5281_vm5, %v5391_v4, %v4458_v11  ;;  %v3707_v4 = vld [vmem:[#allocation2 + $0xb0] sm:$0xf]  ;;  %v13082_v21 = vcombine.low %v10114_v44, %v10122_v50 }
 0x366   :  { %v8440_v1 = vpack.c.bf16 %v2268_v41, %v2268_v41  ;;  %v2269_v25 = vmax.f32 %v1856_v19, 0.0  ;;  %4683 = vrot.lane.b32.xlu1 %v8079_v34, %s9762_s30  ;;  %6063 = vmatprep.mubr.bf16.mxu1 %v5427_v16  ;;  %v13081_v41 = vcombine.low %v11107_v20, %v11116_v51  ;;  %v8115_v44 = vcombine.low %v11456_v49, %v3707_v4 }
 0x367   :  { %6064 = vmatmul.mubr.bf16.vlgmr.msra.gmra.mrb[112].mxu1 %v5283_v6  ;;  %v3593_v40 = vld [vmem:[#allocation2 + $0x280] sm:$0xf] }
 0x368   :  { %3395 = vst.msk [vmem:[#allocation2 + $0x288] sm:$0xf] %vm3232_vm2, %v8440_v1  ;;  %v8441_v46 = vpack.c.bf16 %v2269_v25, %v2269_v25  ;;  %v11481_v45 = vpop.permute.xlu1 %4135  ;;  %v4328_v48 = vpop.permute.xlu0 %4327  ;;  %v8044_v11 = vcombine.low %v3592_v36, %v3593_v40  ;;  %6209 = vmatpush1.bf16.msra.mxu1 %v9575_v5  ;;  %v5195_v36 = vsel %vm5189_vm3, %v13082_v21, %v11043_v38  ;;  %v9586_v38 = vld [vmem:[%s12893_s3 + $0x90] sm:$0xff]   ;;  %v9591_v21 = vld [vmem:[%s12893_s3 + $0x98] sm:$0xff]  }
 0x369   :  { %v5341_v19 = vsel %vm5189_vm3, %v13081_v41, %v4328_v48  ;;  %v1860_v34 = vpop.f32.mrb[72].mxu0  ;;  %6210 = vmatprep.subr.bf16.mxu1 %v13022_v37  ;;  %v3594_v51 = vld [vmem:[#allocation2 + $0x284] sm:$0xf]  ;;  %v5248_v47 = vsel %vm5244_vm4, %v5195_v36, %v11024_v57 }
 0x36a   :  { %3396 = vst.msk [vmem:[#allocation2 + $0x28c] sm:$0xf] %vm3232_vm2, %v8441_v46  ;;  %v1861_v5 = vadd.f32 %v11446_v33, %v1860_v34  ;;  %4749 = vrot.lane.b32.xlu1 %v8097_v61, %s9761_s26  ;;  %4469 = vrot.lane.b32.xlu0 %v8044_v11, %s9763_s10  ;;  %v9089_v20 = vpop.f32.mrb[73].mxu0  ;;  %v5393_v50 = vsel %vm5244_vm4, %v5341_v19, %v11430_v63  ;;  %v11512_v61 = vld [vmem:[#allocation2 + $0xd8] sm:$0xf] }
 0x36b   :  { %v1863_v2 = vpop.f32.mrb[74].mxu0  ;;  %v8009_v48 = vcombine.low %v3593_v40, %v3594_v51  ;;  %v5286_v63 = vsel %vm5281_vm5, %v5248_v47, %v11055_v30  ;;  %v13083_v30 = vcombine.low %v11140_v28, %v11149_v27  ;;  %v13084_v20 = vcombine.low %v10141_v7, %v10150_v14  ;;  %v3641_v28 = vld [vmem:[#allocation2 + $0xb8] sm:$0xf]  ;;  %v9715_v14 = vld [vmem:[#allocation2 + $0xbc] sm:$0xf] }
 0x36c   :  { %v2270_v16 = vmax.f32 %v1861_v5, 0.0  ;;  %v1864_v31 = vadd.f32 %v11446_v33, %v1863_v2  ;;  %v11501_v6 = vpop.permute.xlu1 %4005  ;;  %v4460_v1 = vpop.permute.xlu0 %4459  ;;  %6211 = vmatpush1.bf16.msra.mxu1 %v9581_v13  ;;  %v3676_v13 = vld [vmem:[#allocation2 + $0xd4] sm:$0xf] }
 0x36d   :  { %v9090_v25 = vpop.f32.mrb[75].mxu0  ;;  %v5430_v46 = vsel %vm5281_vm5, %v5393_v50, %v4460_v1  ;;  %6212 = vmatprep.subr.bf16.mxu1 %v13022_v37  ;;  %v8080_v34 = vcombine.low %v3676_v13, %v11512_v61  ;;  %v5198_v2 = vsel %vm5189_vm3, %v13084_v20, %v11064_v55  ;;  %v8098_v55 = vcombine.low %v3641_v28, %v9715_v14  ;;  %v9717_v14 = vld [vmem:[#allocation2 + $0xc4] sm:$0xf] }
 0x36e   :  { %v8442_v49 = vpack.c.bf16 %v2270_v16, %v2270_v16  ;;  %v2271_v11 = vmax.f32 %v1864_v31, 0.0  ;;  %4815 = vrot.lane.b32.xlu1 %v8115_v44, %s9763_s10  ;;  %6071 = vmatprep.mubr.bf16.mxu1 %v5430_v46  ;;  %v9597_v25 = vld [vmem:[%s12893_s3 + $0xa0] sm:$0xff]  }
 0x36f   :  { %4339 = vrot.lane.b32.xlu0 %v8009_v48, %s9762_s30  ;;  %6072 = vmatmul.mubr.bf16.gmra.mrb[116].mxu1 %v5286_v63  ;;  %v3595_v40 = vld [vmem:[#allocation2 + $0x288] sm:$0xf] }
 0x370   :  { %3397 = vst.msk [vmem:[#allocation2 + $0x290] sm:$0xf] %vm3232_vm2, %v8442_v49  ;;  %v8443_v57 = vpack.c.bf16 %v2271_v11, %v2271_v11  ;;  %v11520_v41 = vpop.permute.xlu1 %4071  ;;  %v4330_v19 = vpop.permute.xlu0 %4329  ;;  %v8045_v4 = vcombine.low %v3594_v51, %v3595_v40  ;;  %6213 = vmatpush1.bf16.msra.mxu1 %v9586_v38  ;;  %v5250_v49 = vsel %vm5244_vm4, %v5198_v2, %v11029_v29  ;;  %v3678_v11 = vld [vmem:[#allocation2 + $0xdc] sm:$0xf] }
 0x371   :  { %v5344_v36 = vsel %vm5189_vm3, %v13083_v30, %v4330_v19  ;;  %v1868_v5 = vpop.f32.mrb[76].mxu0  ;;  %6214 = vmatprep.subr.bf16.mxu1 %v13022_v37  ;;  %v3596_v31 = vld [vmem:[#allocation2 + $0x28c] sm:$0xf]  ;;  %v3679_v30 = vld [vmem:[#allocation2 + $0xe0] sm:$0xf] }
 0x372   :  { %3398 = vst.msk [vmem:[#allocation2 + $0x294] sm:$0xf] %vm3232_vm2, %v8443_v57  ;;  %v1869_v51 = vadd.f32 %v11446_v33, %v1868_v5  ;;  %4685 = vrot.lane.b32.xlu1 %v8080_v34, %s9762_s30  ;;  %v9093_v16 = vpop.f32.mrb[77].mxu0  ;;  %v5395_v38 = vsel %vm5244_vm4, %v5344_v36, %v11438_v32  ;;  %v8010_v47 = vcombine.low %v3595_v40, %v3596_v31 }
 0x373   :  { %4471 = vrot.lane.b32.xlu0 %v8045_v4, %s9763_s10  ;;  %v1871_v27 = vpop.f32.mrb[78].mxu0  ;;  %v5289_v32 = vsel %vm5281_vm5, %v5250_v49, %v11079_v22  ;;  %v8116_v34 = vcombine.low %v11512_v61, %v3678_v11  ;;  %v9603_v4 = vld [vmem:[%s12893_s3 + $0xa8] sm:$0xff]   ;;  %v8081_v16 = vcombine.low %v3678_v11, %v3679_v30  ;;  %v3620_v49 = vld [vmem:[#allocation2 + $0x324] sm:$0xf] }
 0x374   :  { %v2272_v1 = vmax.f32 %v1869_v51, 0.0  ;;  %v1872_v44 = vadd.f32 %v11446_v33, %v1871_v27  ;;  %v11541_v50 = vpop.permute.xlu1 %4137  ;;  %v4462_v7 = vpop.permute.xlu0 %4461  ;;  %6215 = vmatpush1.bf16.msra.mxu1 %v9591_v21 }
 0x375   :  { %v9094_v46 = vpop.f32.mrb[79].mxu0  ;;  %v5433_v48 = vsel %vm5281_vm5, %v5395_v38, %v4462_v7  ;;  %6216 = vmatprep.subr.bf16.mxu1 %v13022_v37  ;;  %v9716_v7 = vld [vmem:[#allocation2 + $0xc0] sm:$0xf]  ;;  %v9613_v38 = vld [vmem:[%s12893_s3 + $0xb8] sm:$0xff]  }
 0x376   :  { %v8444_v63 = vpack.c.bf16 %v2272_v1, %v2272_v1  ;;  %v2273_v13 = vmax.f32 %v1872_v44, 0.0  ;;  %4751 = vrot.lane.b32.xlu1 %v8098_v55, %s9761_s26  ;;  %6079 = vmatprep.mubr.bf16.mxu1 %v5433_v48  ;;  %v8099_v55 = vcombine.low %v9716_v7, %v9717_v14  ;;  %v3680_v48 = vld [vmem:[#allocation2 + $0xe4] sm:$0xf]  ;;  %v9719_v7 = vld [vmem:[#allocation2 + $0x340] sm:$0xf] }
 0x377   :  { %4341 = vrot.lane.b32.xlu0 %v8010_v47, %s9762_s30  ;;  %v3623_v57 = vld [vmem:[#allocation2 + $0x290] sm:$0xf]  ;;  %6080 = vmatmul.mubr.bf16.gmra.mrb[120].mxu1 %v5289_v32  ;;  %v3578_v32 = vld [vmem:[#allocation2 + $0x320] sm:$0xf] }
 0x378   :  { %3399 = vst.msk [vmem:[#allocation2 + $0x298] sm:$0xf] %vm3232_vm2, %v8444_v63  ;;  %v8445_v40 = vpack.c.bf16 %v2273_v13, %v2273_v13  ;;  %v8046_v19 = vcombine.low %v3596_v31, %v3623_v57  ;;  %v11557_v29 = vpop.permute.xlu1 %4007  ;;  %6217 = vmatpush1.bf16.msra.mxu1 %v9597_v25  ;;  %v9608_v31 = vld [vmem:[%s12893_s3 + $0xb0] sm:$0xff]   ;;  %v8117_v63 = vcombine.low %v3679_v30, %v3680_v48  ;;  %v9621_v13 = vld [vmem:[%s12893_s3 + $0xc0] sm:$0xff]   ;;  %v3681_v57 = vld [vmem:[#allocation2 + $0xe8] sm:$0xf] }
 0x379   :  { %v1876_v21 = vpop.f32.mrb[80].mxu0  ;;  %6218 = vmatprep.subr.bf16.mxu1 %v13022_v37  ;;  %v8082_v30 = vcombine.low %v3680_v48, %v3681_v57 }
 0x37a   :  { %3400 = vst.msk [vmem:[#allocation2 + $0x29c] sm:$0xf] %vm3232_vm2, %v8445_v40  ;;  %v1877_v22 = vadd.f32 %v11446_v33, %v1876_v21  ;;  %4817 = vrot.lane.b32.xlu1 %v8116_v34, %s9763_s10  ;;  %v9097_v36 = vpop.f32.mrb[81].mxu0  ;;  %v8037_v40 = vcombine.low %v3578_v32, %v3620_v49 }
 0x37b   :  { %4473 = vrot.lane.b32.xlu0 %v8046_v19, %s9763_s10  ;;  %v1879_v5 = vpop.f32.mrb[82].mxu0  ;;  %v9626_v36 = vld [vmem:[%s12893_s3 + $0xc8] sm:$0xff]  }
 0x37c   :  { %v2274_v61 = vmax.f32 %v1877_v22, 0.0  ;;  %v1880_v20 = vadd.f32 %v11446_v33, %v1879_v5  ;;  %v11569_v2 = vpop.permute.xlu1 %4073  ;;  %v9098_v51 = vpop.f32.mrb[83].mxu0  ;;  %6219 = vmatpush1.bf16.msra.mxu1 %v9603_v4  ;;  %v11653_v22 = vld [vmem:[#allocation2 + $0x248] sm:$0xf] }
 0x37d   :  { %6220 = vmatprep.subr.bf16.mxu1 %v13022_v37 }
 0x37e   :  { %v8446_v27 = vpack.c.bf16 %v2274_v61, %v2274_v61  ;;  %v2275_v28 = vmax.f32 %v1880_v20, 0.0  ;;  %4687 = vrot.lane.b32.xlu1 %v8081_v16, %s9762_s30  ;;  %v3702_v20 = vld [vmem:[#allocation2 + $0xcc] sm:$0xf]  ;;  %v3626_v16 = vld [vmem:[#allocation2 + $0x344] sm:$0xf]  ;;  %v4398_v48 = vpop.permute.xlu0 %4397 }
 0x37f   :  { %v11582_v25 = vld [vmem:[#allocation2 + $0x298] sm:$0xf]  ;;  %v8055_v14 = vcombine.low %v9719_v7, %v3626_v16  ;;  %v3647_v16 = vld [vmem:[#allocation2 + $0xf4] sm:$0xf] }
 0x380   :  { %3401 = vst.msk [vmem:[#allocation2 + $0x2a0] sm:$0xf] %vm3232_vm2, %v8446_v27  ;;  %v8447_v1 = vpack.c.bf16 %v2275_v28, %v2275_v28  ;;  %v11577_v44 = vpop.permute.xlu1 %4139  ;;  %6221 = vmatpush1.bf16.msra.mxu1 %v9608_v31  ;;  %v9718_v27 = vld [vmem:[#allocation2 + $0xc8] sm:$0xf]  ;;  %v9720_v7 = vld [vmem:[#allocation2 + $0xf8] sm:$0xf] }
 0x381   :  { %v11584_v46 = vld [vmem:[#allocation2 + $0x29c] sm:$0xf]  ;;  %6222 = vmatprep.subr.bf16.mxu1 %v13022_v37  ;;  %v8100_v28 = vcombine.low %v9718_v27, %v3702_v20  ;;  %v3751_v27 = vld [vmem:[#allocation2 + $0x244] sm:$0xf] }
 0x382   :  { %3402 = vst.msk [vmem:[#allocation2 + $0x2a4] sm:$0xf] %vm3232_vm2, %v8447_v1  ;;  %4753 = vrot.lane.b32.xlu1 %v8099_v55, %s9761_s26  ;;  %v8029_v47 = vcombine.low %v11582_v25, %v11584_v46  ;;  %v11601_v34 = vld [vmem:[#allocation2 + $0x29c] sm:$0xf]  ;;  %v3708_v1 = vld [vmem:[#allocation2 + $0xec] sm:$0xf] }
 0x383   :  { %13085 = vst [vmem:[#allocation110_spill] sm:$0xff] %v11601_v34  ;;  %v9631_v55 = vld [vmem:[%s12893_s3 + $0xd0] sm:$0xff]   ;;  %v8118_v49 = vcombine.low %v3681_v57, %v3708_v1 }
 0x384   :  { %v11591_v11 = vpop.permute.xlu1 %4009  ;;  %4409 = vrot.lane.b32.xlu0 %v8029_v47, %s9761_s26  ;;  %6223 = vmatpush1.bf16.msra.mxu1 %v9613_v38  ;;  %v3750_v38 = vld [vmem:[#allocation2 + $0x240] sm:$0xf] }
 0x385   :  { %6224 = vmatprep.subr.bf16.mxu1 %v13022_v37 }
 0x386   :  { %4819 = vrot.lane.b32.xlu1 %v8117_v63, %s9763_s10  ;;  %v3749_v63 = vld [vmem:[#allocation2 + $0x23c] sm:$0xf] }
 0x387   :  { %v11599_v19 = vld [vmem:[#allocation2 + $0x2a0] sm:$0xf]  ;;  %v8146_v32 = vcombine.low %v3749_v63, %v3750_v38  ;;  %v3549_v63 = vld [vmem:[#allocation2 + $0x21c] sm:$0xf] }
 0x388   :  { %v11603_v4 = vld [vmem:[#allocation2 + $0x2a0] sm:$0xf]  ;;  %v11605_v21 = vpop.permute.xlu1 %4075  ;;  %4425 = vrot.lane.b32.xlu0 %v8037_v40, %s9761_s26  ;;  %6225 = vmatpush1.bf16.msra.mxu1 %v9621_v13  ;;  %v3683_v13 = vld [vmem:[#allocation2 + $0x114] sm:$0xf]  ;;  %v3682_v40 = vld [vmem:[#allocation2 + $0x110] sm:$0xf] }
 0x389   :  { %13086 = vst [vmem:[#allocation111_spill] sm:$0xff] %v11603_v4  ;;  %v11615_v61 = vld [vmem:[#allocation2 + $0x2a4] sm:$0xf]  ;;  %6226 = vmatprep.subr.bf16.mxu1 %v13022_v37  ;;  %v8083_v20 = vcombine.low %v3682_v40, %v3683_v13  ;;  %v3464_v40 = vld [vmem:[#allocation2 + $0x3c] sm:$0xf] }
 0x38a   :  { %4689 = vrot.lane.b32.xlu1 %v8082_v30, %s9762_s30  ;;  %v8030_v51 = vcombine.low %v11599_v19, %v11615_v61  ;;  %v11634_v30 = vpop.permute.xlu0 %4399 }
 0x38c   :  { %v11621_v31 = vpop.permute.xlu1 %4141  ;;  %4411 = vrot.lane.b32.xlu0 %v8030_v51, %s9761_s26  ;;  %6227 = vmatpush1.bf16.msra.mxu1 %v9626_v36  ;;  %v11639_v51 = vld [vmem:[#allocation2 + $0x220] sm:$0xf] }
 0x38d   :  { %6228 = vmatprep.subr.bf16.mxu1 %v13022_v37  ;;  %v8164_v57 = vcombine.low %v11639_v51, %v11267_v12  ;;  %v9722_v12 = vld [vmem:[#allocation2 + $0x40] sm:$0xf] }
 0x38e   :  { %4755 = vrot.lane.b32.xlu1 %v8100_v28, %s9761_s26  ;;  %v11644_v28 = vpop.permute.xlu0 %4401 }
 0x390   :  { %v11629_v47 = vpop.permute.xlu1 %4011  ;;  %4491 = vrot.lane.b32.xlu0 %v8055_v14, %s9763_s10  ;;  %6229 = vmatpush1.bf16.msra.mxu1 %v9631_v55  ;;  %v8101_v14 = vcombine.low %v3647_v16, %v9720_v7  ;;  %v3684_v55 = vld [vmem:[#allocation2 + $0x118] sm:$0xf] }
 0x391   :  { %13087 = vst [vmem:[#allocation112_spill] sm:$0xff] %v11629_v47  ;;  %6230 = vmatprep.subr.bf16.mxu1 %v13022_v37  ;;  %v8119_v7 = vcombine.low %v3683_v13, %v3684_v55 }
 0x392   :  { %4821 = vrot.lane.b32.xlu1 %v8118_v49, %s9763_s10  ;;  %v9636_v49 = vld [vmem:[%s12893_s3 + $0xd8] sm:$0xff]  }
 0x394   :  { %v11636_v36 = vpop.permute.xlu1 %4077  ;;  %5021 = vrot.lane.b32.xlu0 %v8146_v32, %s9762_s30  ;;  %v8182_v32 = vcombine.low %v3750_v38, %v3751_v27  ;;  %6231 = vmatpush1.bf16.msra.mxu1 %v9636_v49  ;;  %v2044_v38 = vpop.f32.mrb[80].mxu1 }
 0x395   :  { %13088 = vst [vmem:[#allocation113_spill] sm:$0xff] %v11636_v36  ;;  %6232 = vmatprep.subr.bf16.mxu1 %v13022_v37  ;;  %v2045_v49 = vadd.f32 %v11446_v33, %v2044_v38 }
 0x396   :  { %4691 = vrot.lane.b32.xlu1 %v8083_v20, %s9762_s30  ;;  %v9721_v20 = vld [vmem:[#allocation2 + $0x220] sm:$0xf] }
 0x397   :  { %v7987_v5 = vcombine.low %v3549_v63, %v9721_v20 }
 0x398   :  { %v11646_v1 = vpop.permute.xlu1 %4143  ;;  %5087 = vrot.lane.b32.xlu0 %v8164_v57, %s9761_s26 }
 0x399   :  { %13089 = vst [vmem:[#allocation114_spill] sm:$0xff] %v11646_v1  ;;  %v7915_v1 = vcombine.low %v3464_v40, %v9722_v12  ;;  %v8147_v12 = vcombine.low %v3751_v27, %v11653_v22  ;;  %v9181_v40 = vpop.f32.mrb[81].mxu1 }
 0x39a   :  { %4757 = vrot.lane.b32.xlu1 %v8101_v14, %s9761_s26  ;;  %v11660_v14 = vld [vmem:[#allocation2 + $0x11c] sm:$0xf]  ;;  %v2047_v20 = vpop.f32.mrb[82].mxu1  ;;  %v3753_v40 = vld [vmem:[#allocation2 + $0x24c] sm:$0xf] }
 0x39b   :  { %v5201_v63 = vsel %vm5189_vm3, %v7915_v1, %v11138_v52  ;;  %v8084_v13 = vcombine.low %v3684_v55, %v11660_v14  ;;  %v9182_v1 = vpop.f32.mrb[83].mxu1 }
 0x39c   :  { %v11655_v57 = vpop.permute.xlu1 %4673  ;;  %v4332_v16 = vpop.permute.xlu0 %4331  ;;  %5153 = vrot.lane.b32.xlu0 %v8182_v32, %s9763_s10  ;;  %v5252_v27 = vsel %vm5244_vm4, %v5201_v63, %v11091_v0  ;;  %v13092_v1 = vcombine.low %v10247_v60, %v10258_v9 }
 0x39d   :  { %13090 = vst [vmem:[#allocation115_spill] sm:$0xff] %v11655_v57  ;;  %v5347_v36 = vsel %vm5189_vm3, %v7987_v5, %v4332_v16  ;;  %v2316_v16 = vmax.f32 %v2045_v49, 0.0  ;;  %v2048_v57 = vadd.f32 %v11446_v33, %v2047_v20  ;;  %v2052_v49 = vpop.f32.mrb[84].mxu1 }
 0x39e   :  { %4823 = vrot.lane.b32.xlu1 %v8119_v7, %s9763_s10  ;;  %v5397_v5 = vsel %vm5244_vm4, %v5347_v36, %v4398_v48  ;;  %v9639_v7 = vld [vmem:[%s12893_s3 + $0xe0] sm:$0xff]   ;;  %v5292_v48 = vsel %vm5281_vm5, %v5252_v27, %v11165_v39  ;;  %v9723_v36 = vld [vmem:[#allocation2 + $0x228] sm:$0xf]  ;;  %v2053_v0 = vadd.f32 %v11446_v33, %v2052_v49  ;;  %v9185_v63 = vpop.f32.mrb[85].mxu1 }
 0x39f   :  { %v8165_v55 = vcombine.low %v9723_v36, %v11293_v18  ;;  %v8488_v38 = vpack.c.bf16 %v2316_v16, %v2316_v16  ;;  %6233 = vmatpush1.bf16.msra.mxu1 %v9639_v7  ;;  %v13091_v16 = vcombine.low %v11252_v10, %v11265_v42  ;;  %v8183_v36 = vcombine.low %v11653_v22, %v3753_v40  ;;  %v2055_v7 = vpop.f32.mrb[86].mxu1  ;;  %v11701_v42 = vld [vmem:[#allocation2 + $0x250] sm:$0xf]  ;;  %v3687_v63 = vld [vmem:[#allocation2 + $0x124] sm:$0xf] }
 0x3a0   :  { %v4464_v32 = vpop.permute.xlu0 %4463  ;;  %5023 = vrot.lane.b32.xlu0 %v8147_v12, %s9762_s30  ;;  %v11671_v47 = vpop.permute.xlu1 %4739  ;;  %v2317_v12 = vmax.f32 %v2048_v57, 0.0  ;;  %v2318_v27 = vmax.f32 %v2053_v0, 0.0  ;;  %6234 = vmatprep.subr.bf16.mxu1 %v13022_v37 }
 0x3a1   :  { %v5436_v52 = vsel %vm5281_vm5, %v5397_v5, %v4464_v32  ;;  %v9724_v32 = vld [vmem:[#allocation2 + $0xfc] sm:$0xf]  ;;  %3443 = vst.msk [vmem:[#allocation2 + $0x348] sm:$0xf] %vm3232_vm2, %v8488_v38  ;;  %v2056_v38 = vadd.f32 %v11446_v33, %v2055_v7  ;;  %v9726_v7 = vld [vmem:[#allocation2 + $0x230] sm:$0xf] }
 0x3a2   :  { %4693 = vrot.lane.b32.xlu1 %v8084_v13, %s9762_s30  ;;  %6087 = vmatprep.mubr.bf16.mxu1 %v5436_v52  ;;  %v9725_v13 = vld [vmem:[#allocation2 + $0x100] sm:$0xf]  ;;  %v8489_v39 = vpack.c.bf16 %v2317_v12, %v2317_v12  ;;  %v9186_v12 = vpop.f32.mrb[87].mxu1 }
 0x3a3   :  { %6088 = vmatmul.mubr.bf16.gmra.mrb[124].mxu1 %v5292_v48  ;;  %v8102_v5 = vcombine.low %v9724_v32, %v9725_v13  ;;  %v3686_v52 = vld [vmem:[#allocation2 + $0x120] sm:$0xf]  ;;  %v5204_v48 = vsel %vm5189_vm3, %v13092_v1, %v11184_v59  ;;  %v9642_v59 = vld [vmem:[%s12893_s3 + $0xe8] sm:$0xff]   ;;  %v2060_v32 = vpop.f32.mrb[88].mxu1  ;;  %v3791_v12 = vld [vmem:[#allocation2 + $0x254] sm:$0xf] }
 0x3a4   :  { %v4334_v20 = vpop.permute.xlu0 %4333  ;;  %5089 = vrot.lane.b32.xlu0 %v8165_v55, %s9761_s26  ;;  %3444 = vst.msk [vmem:[#allocation2 + $0x34c] sm:$0xf] %vm3232_vm2, %v8489_v39  ;;  %v11699_v10 = vpop.permute.xlu1 %4805  ;;  %v8490_v55 = vpack.c.bf16 %v2318_v27, %v2318_v27  ;;  %v8120_v60 = vcombine.low %v11660_v14, %v3686_v52  ;;  %v5254_v0 = vsel %vm5244_vm4, %v5204_v48, %v11103_v58  ;;  %v3785_v39 = vld [vmem:[#allocation2 + $0x234] sm:$0xf] }
 0x3a5   :  { %v5350_v57 = vsel %vm5189_vm3, %v13091_v16, %v4334_v20  ;;  %v2319_v20 = vmax.f32 %v2056_v38, 0.0  ;;  %v8148_v14 = vcombine.low %v3753_v40, %v11701_v42  ;;  %v2061_v13 = vadd.f32 %v11446_v33, %v2060_v32  ;;  %6235 = vmatpush1.bf16.msra.mxu1 %v9642_v59  ;;  %v3703_v40 = vld [vmem:[#allocation2 + $0x108] sm:$0xf] }
 0x3a6   :  { %4759 = vrot.lane.b32.xlu1 %v8102_v5, %s9761_s26  ;;  %v5399_v9 = vsel %vm5244_vm4, %v5350_v57, %v11634_v30  ;;  %3445 = vst.msk [vmem:[#allocation2 + $0x350] sm:$0xf] %vm3232_vm2, %v8490_v55  ;;  %v5295_v30 = vsel %vm5281_vm5, %v5254_v0, %v11196_v24  ;;  %v9189_v5 = vpop.f32.mrb[89].mxu1  ;;  %v8085_v57 = vcombine.low %v3686_v52, %v3687_v63  ;;  %v3709_v59 = vld [vmem:[#allocation2 + $0x128] sm:$0xf] }
 0x3a7   :  { %v8491_v16 = vpack.c.bf16 %v2319_v20, %v2319_v20  ;;  %v2320_v27 = vmax.f32 %v2061_v13, 0.0  ;;  %v13093_v48 = vcombine.low %v11278_v8, %v11291_v62  ;;  %6236 = vmatprep.subr.bf16.mxu1 %v13022_v37  ;;  %v8166_v55 = vcombine.low %v9726_v7, %v3785_v39  ;;  %v2063_v8 = vpop.f32.mrb[90].mxu1 }
 0x3a8   :  { %v4466_v49 = vpop.permute.xlu0 %4465  ;;  %5155 = vrot.lane.b32.xlu0 %v8183_v36, %s9763_s10  ;;  %v11721_v1 = vpop.permute.xlu1 %4675  ;;  %v13094_v36 = vcombine.low %v10271_v17, %v10282_v26  ;;  %v2064_v17 = vadd.f32 %v11446_v33, %v2063_v8  ;;  %v8184_v20 = vcombine.low %v11701_v42, %v3791_v12  ;;  %v8121_v39 = vcombine.low %v3687_v63, %v3709_v59  ;;  %v3689_v42 = vld [vmem:[#allocation2 + $0x150] sm:$0xf]  ;;  %v11761_v12 = vld [vmem:[#allocation2 + $0x25c] sm:$0xf] }
 0x3a9   :  { %v5439_v22 = vsel %vm5281_vm5, %v5399_v9, %v4466_v49  ;;  %3446 = vst.msk [vmem:[#allocation2 + $0x354] sm:$0xf] %vm3232_vm2, %v8491_v16  ;;  %v8492_v38 = vpack.c.bf16 %v2320_v27, %v2320_v27  ;;  %v9727_v49 = vld [vmem:[#allocation2 + $0x104] sm:$0xf] }
 0x3aa   :  { %4825 = vrot.lane.b32.xlu1 %v8120_v60, %s9763_s10  ;;  %6095 = vmatprep.mubr.bf16.mxu1 %v5439_v22  ;;  %v5207_v52 = vsel %vm5189_vm3, %v13094_v36, %v11206_v43  ;;  %v8103_v60 = vcombine.low %v9727_v49, %v3703_v40  ;;  %v9190_v22 = vpop.f32.mrb[91].mxu1  ;;  %v3688_v40 = vld [vmem:[#allocation2 + $0x14c] sm:$0xf] }
 0x3ab   :  { %6096 = vmatmul.mubr.bf16.gmra.mrb[128].mxu1 %v5295_v30  ;;  %3447 = vst.msk [vmem:[#allocation2 + $0x358] sm:$0xf] %vm3232_vm2, %v8492_v38  ;;  %v5256_v43 = vsel %vm5244_vm4, %v5207_v52, %v11126_v53  ;;  %v2068_v32 = vpop.f32.mrb[92].mxu1  ;;  %v9643_v53 = vld [vmem:[%s12893_s3 + $0xf0] sm:$0xff]   ;;  %v8086_v7 = vcombine.low %v3688_v40, %v3689_v42 }
 0x3ac   :  { %v4336_v58 = vpop.permute.xlu0 %4335  ;;  %5025 = vrot.lane.b32.xlu0 %v8148_v14, %s9762_s30  ;;  %v5298_v0 = vsel %vm5281_vm5, %v5256_v43, %v11216_v15  ;;  %v11747_v30 = vpop.permute.xlu1 %4741  ;;  %v3756_v14 = vld [vmem:[#allocation2 + $0x27c] sm:$0xf]  ;;  %v2069_v13 = vadd.f32 %v11446_v33, %v2068_v32  ;;  %6237 = vmatpush1.bf16.msra.mxu1 %v9643_v53  ;;  %v9728_v43 = vld [vmem:[#allocation2 + $0x134] sm:$0xf] }
 0x3ad   :  { %v5353_v24 = vsel %vm5189_vm3, %v13093_v48, %v4336_v58  ;;  %v9193_v5 = vpop.f32.mrb[93].mxu1  ;;  %v3755_v58 = vld [vmem:[#allocation2 + $0x278] sm:$0xf]  ;;  %6238 = vmatprep.subr.bf16.mxu1 %v13022_v37  ;;  %v8167_v37 = vcombine.low %v11761_v12, %v11386_v54  ;;  %v3690_v22 = vld [vmem:[#allocation2 + $0x154] sm:$0xf] }
 0x3ae   :  { %4695 = vrot.lane.b32.xlu1 %v8085_v57, %s9762_s30  ;;  %v5401_v9 = vsel %vm5244_vm4, %v5353_v24, %v11644_v28  ;;  %v2321_v28 = vmax.f32 %v2064_v17, 0.0  ;;  %v2071_v15 = vpop.f32.mrb[94].mxu1  ;;  %v2322_v57 = vmax.f32 %v2069_v13, 0.0  ;;  %v8149_v48 = vcombine.low %v3755_v58, %v3756_v14  ;;  %v3758_v5 = vld [vmem:[#allocation2 + $0x284] sm:$0xf] }
 0x3af   :  { %v9194_v27 = vpop.f32.mrb[95].mxu1  ;;  %v3691_v15 = vld [vmem:[#allocation2 + $0x158] sm:$0xf] }
 0x3b0   :  { %v4468_v62 = vpop.permute.xlu0 %4467  ;;  %5091 = vrot.lane.b32.xlu0 %v8166_v55, %s9761_s26  ;;  %v8493_v16 = vpack.c.bf16 %v2321_v28, %v2321_v28  ;;  %v2076_v24 = vpop.f32.mrb[96].mxu1  ;;  %v8494_v36 = vpack.c.bf16 %v2322_v57, %v2322_v57 }
 0x3b1   :  { %v5442_v26 = vsel %vm5281_vm5, %v5401_v9, %v4468_v62  ;;  %v2077_v52 = vadd.f32 %v11446_v33, %v2076_v24  ;;  %v9197_v63 = vpop.f32.mrb[97].mxu1  ;;  %v11759_v38 = vpop.permute.xlu1 %4807  ;;  %v3757_v9 = vld [vmem:[#allocation2 + $0x280] sm:$0xf] }
 0x3b2   :  { %4761 = vrot.lane.b32.xlu1 %v8103_v60, %s9761_s26  ;;  %6103 = vmatprep.mubr.bf16.mxu1 %v5442_v26  ;;  %3448 = vst.msk [vmem:[#allocation2 + $0x35c] sm:$0xf] %vm3232_vm2, %v8493_v16  ;;  %v2079_v55 = vpop.f32.mrb[98].mxu1  ;;  %3449 = vst.msk [vmem:[#allocation2 + $0x360] sm:$0xf] %vm3232_vm2, %v8494_v36  ;;  %v8185_v28 = vcombine.low %v3756_v14, %v3757_v9  ;;  %v8122_v16 = vcombine.low %v3689_v42, %v3690_v22 }
 0x3b3   :  { %6104 = vmatmul.mubr.bf16.gmra.mrb[132].mxu1 %v5298_v0  ;;  %v2324_v8 = vmax.f32 %v2077_v52, 0.0  ;;  %v2080_v62 = vadd.f32 %v11446_v33, %v2079_v55  ;;  %v9198_v49 = vpop.f32.mrb[99].mxu1  ;;  %v3653_v60 = vld [vmem:[#allocation2 + $0x130] sm:$0xf]  ;;  %v8150_v57 = vcombine.low %v3757_v9, %v3758_v5  ;;  %v8168_v42 = vcombine.low %v11390_v35, %v11412_v23  ;;  %v3759_v63 = vld [vmem:[#allocation2 + $0x288] sm:$0xf] }
 0x3b4   :  { %5157 = vrot.lane.b32.xlu0 %v8184_v20, %s9763_s10  ;;  %v8104_v59 = vcombine.low %v3653_v60, %v9728_v43  ;;  %v9645_v20 = vld [vmem:[%s12893_s3 + $0xf8] sm:$0xff]   ;;  %v2084_v32 = vpop.f32.mrb[100].mxu1  ;;  %v11789_v49 = vld [vmem:[#allocation2 + $0x350] sm:$0xf] }
 0x3b5   :  { %v8496_v17 = vpack.c.bf16 %v2324_v8, %v2324_v8  ;;  %v2325_v26 = vmax.f32 %v2080_v62, 0.0  ;;  %v11774_v13 = vpop.permute.xlu1 %4677  ;;  %6239 = vmatpush1.bf16.msra.mxu1 %v9645_v20  ;;  %v2085_v53 = vadd.f32 %v11446_v33, %v2084_v32  ;;  %v9730_v55 = vld [vmem:[#allocation2 + $0x13c] sm:$0xf]  ;;  %v3693_v32 = vld [vmem:[#allocation2 + $0x160] sm:$0xf] }
 0x3b6   :  { %4827 = vrot.lane.b32.xlu1 %v8121_v39, %s9763_s10  ;;  %v9201_v39 = vpop.f32.mrb[101].mxu1  ;;  %v3692_v60 = vld [vmem:[#allocation2 + $0x15c] sm:$0xf] }
 0x3b7   :  { %3451 = vst.msk [vmem:[#allocation2 + $0x368] sm:$0xf] %vm3232_vm2, %v8496_v17  ;;  %v8497_v0 = vpack.c.bf16 %v2325_v26, %v2325_v26  ;;  %v2326_v58 = vmax.f32 %v2085_v53, 0.0  ;;  %v2087_v14 = vpop.f32.mrb[102].mxu1  ;;  %v8186_v26 = vcombine.low %v3758_v5, %v3759_v63  ;;  %v3786_v5 = vld [vmem:[#allocation2 + $0x270] sm:$0xf] }
 0x3b8   :  { %5027 = vrot.lane.b32.xlu0 %v8149_v48, %s9762_s30  ;;  %v8087_v48 = vcombine.low %v3690_v22, %v3691_v15  ;;  %v2088_v24 = vadd.f32 %v11446_v33, %v2087_v14  ;;  %v9202_v36 = vpop.f32.mrb[103].mxu1  ;;  %v3760_v22 = vld [vmem:[#allocation2 + $0x28c] sm:$0xf] }
 0x3b9   :  { %3452 = vst.msk [vmem:[#allocation2 + $0x36c] sm:$0xf] %vm3232_vm2, %v8497_v0  ;;  %v8498_v27 = vpack.c.bf16 %v2326_v58, %v2326_v58  ;;  %v11782_v40 = vpop.permute.xlu1 %4743  ;;  %v2092_v43 = vpop.f32.mrb[104].mxu1  ;;  %v11810_v36 = vld [vmem:[#allocation2 + $0x35c] sm:$0xf] }
 0x3ba   :  { %4697 = vrot.lane.b32.xlu1 %v8086_v7, %s9762_s30  ;;  %v2327_v52 = vmax.f32 %v2088_v24, 0.0  ;;  %v9729_v7 = vld [vmem:[#allocation2 + $0x138] sm:$0xf]  ;;  %v2093_v0 = vadd.f32 %v11446_v33, %v2092_v43  ;;  %v9205_v20 = vpop.f32.mrb[105].mxu1  ;;  %13095 = vst [vmem:[#allocation116_spill] sm:$0xff] %v11810_v36  ;;  %v13097_v36 = vld [vmem:[#allocation70_spill] sm:$0xff] }
 0x3bb   :  { %3453 = vst.msk [vmem:[#allocation2 + $0x370] sm:$0xf] %vm3232_vm2, %v8498_v27  ;;  %v8105_v8 = vcombine.low %v9729_v7, %v9730_v55  ;;  %v8088_v27 = vcombine.low %v3692_v60, %v3693_v32  ;;  %v11808_v24 = vld [vmem:[#allocation2 + $0x358] sm:$0xf]  ;;  %v13096_v7 = vld [vmem:[#allocation105_spill] sm:$0xff] }
 0x3bc   :  { %5093 = vrot.lane.b32.xlu0 %v8167_v37, %s9761_s26  ;;  %v8499_v62 = vpack.c.bf16 %v2327_v52, %v2327_v52  ;;  %v11791_v37 = vld [vmem:[#allocation2 + $0x354] sm:$0xf]  ;;  %v11795_v17 = vpop.permute.xlu0 %4403  ;;  %v2328_v53 = vmax.f32 %v2093_v0, 0.0  ;;  %v8169_v55 = vcombine.low %v13096_v7, %v3786_v5  ;;  %v3710_v0 = vld [vmem:[#allocation2 + $0x164] sm:$0xf] }
 0x3bd   :  { %v3470_v20 = vld [vmem:[#allocation2 + $0x78] sm:$0xf]  ;;  %v8124_v52 = vcombine.low %v3693_v32, %v3710_v0  ;;  %v3694_v7 = vld [vmem:[#allocation2 + $0x188] sm:$0xf] }
 0x3be   :  { %4763 = vrot.lane.b32.xlu1 %v8104_v59, %s9761_s26  ;;  %3454 = vst.msk [vmem:[#allocation2 + $0x374] sm:$0xf] %vm3232_vm2, %v8499_v62  ;;  %v11799_v59 = vpop.permute.xlu1 %4809  ;;  %v8500_v58 = vpack.c.bf16 %v2328_v53, %v2328_v53  ;;  %v3792_v62 = vld [vmem:[#allocation2 + $0x290] sm:$0xf] }
 0x3c0   :  { %5159 = vrot.lane.b32.xlu0 %v8185_v28, %s9763_s10  ;;  %v8123_v28 = vcombine.low %v3691_v15, %v3692_v60  ;;  %3455 = vst.msk [vmem:[#allocation2 + $0x378] sm:$0xf] %vm3232_vm2, %v8500_v58  ;;  %v9731_v60 = vld [vmem:[#allocation2 + $0x140] sm:$0xf] }
 0x3c2   :  { %4829 = vrot.lane.b32.xlu1 %v8122_v16, %s9763_s10  ;;  %v8151_v16 = vcombine.low %v3759_v63, %v3760_v22  ;;  %v11812_v15 = vpop.permute.xlu1 %4679 }
 0x3c4   :  { %5029 = vrot.lane.b32.xlu0 %v8150_v57, %s9762_s30  ;;  %v11803_v39 = vpop.permute.xlu0 %4405  ;;  %v2095_v57 = vpop.f32.mrb[106].mxu1 }
 0x3c5   :  { %v2096_v14 = vadd.f32 %v11446_v33, %v2095_v57  ;;  %v9732_v57 = vld [vmem:[#allocation2 + $0x25c] sm:$0xf] }
 0x3c6   :  { %4699 = vrot.lane.b32.xlu1 %v8087_v48, %s9762_s30  ;;  %v9206_v48 = vpop.f32.mrb[107].mxu1  ;;  %v11824_v5 = vpop.permute.xlu1 %4745 }
 0x3c7   :  { %v2100_v58 = vpop.f32.mrb[108].mxu1  ;;  %v3762_v48 = vld [vmem:[#allocation2 + $0x2b8] sm:$0xf] }
 0x3c8   :  { %5095 = vrot.lane.b32.xlu0 %v8168_v42, %s9761_s26  ;;  %v3704_v42 = vld [vmem:[#allocation2 + $0x144] sm:$0xf] }
 0x3ca   :  { %4765 = vrot.lane.b32.xlu1 %v8105_v8, %s9761_s26  ;;  %v2329_v8 = vmax.f32 %v2096_v14, 0.0  ;;  %v3761_v14 = vld [vmem:[#allocation2 + $0x2b4] sm:$0xf]  ;;  %v11835_v0 = vpop.permute.xlu1 %4811 }
 0x3cc   :  { %5161 = vrot.lane.b32.xlu0 %v8186_v26, %s9763_s10  ;;  %v11817_v63 = vpop.permute.xlu0 %4407  ;;  %v8106_v26 = vcombine.low %v9731_v60, %v3704_v42  ;;  %v8501_v43 = vpack.c.bf16 %v2329_v8, %v2329_v8  ;;  %v9209_v42 = vpop.f32.mrb[109].mxu1  ;;  %v9733_v8 = vld [vmem:[#allocation2 + $0x7c] sm:$0xf] }
 0x3cd   :  { %v7918_v60 = vcombine.low %v3470_v20, %v9733_v8 }
 0x3ce   :  { %4831 = vrot.lane.b32.xlu1 %v8123_v28, %s9763_s10  ;;  %v3555_v28 = vld [vmem:[#allocation2 + $0x258] sm:$0xf]  ;;  %3456 = vst.msk [vmem:[#allocation2 + $0x37c] sm:$0xf] %vm3232_vm2, %v8501_v43 }
 0x3d0   :  { %5031 = vrot.lane.b32.xlu0 %v8151_v16, %s9762_s30  ;;  %v8187_v16 = vcombine.low %v3760_v22, %v3792_v62  ;;  %v3695_v62 = vld [vmem:[#allocation2 + $0x18c] sm:$0xf] }
 0x3d1   :  { %v8089_v20 = vcombine.low %v3694_v7, %v3695_v62 }
 0x3d2   :  { %4701 = vrot.lane.b32.xlu1 %v8088_v27, %s9762_s30  ;;  %v7990_v27 = vcombine.low %v3555_v28, %v9732_v57  ;;  %v5210_v28 = vsel %vm5189_vm3, %v7918_v60, %v13097_v36  ;;  %v8152_v57 = vcombine.low %v3761_v14, %v3762_v48  ;;  %v11840_v36 = vld [vmem:[#allocation2 + $0x298] sm:$0xf]  ;;  %v3763_v14 = vld [vmem:[#allocation2 + $0x2bc] sm:$0xf]  ;;  %v3696_v60 = vld [vmem:[#allocation2 + $0x190] sm:$0xf] }
 0x3d4   :  { %5097 = vrot.lane.b32.xlu0 %v8169_v55, %s9761_s26  ;;  %v2101_v55 = vadd.f32 %v11446_v33, %v2100_v58 }
 0x3d6   :  { %4767 = vrot.lane.b32.xlu1 %v8106_v26, %s9761_s26  ;;  %v4338_v53 = vpop.permute.xlu0 %4337  ;;  %v2103_v26 = vpop.f32.mrb[110].mxu1  ;;  %v2330_v43 = vmax.f32 %v2101_v55, 0.0  ;;  %v9734_v55 = vld [vmem:[#allocation2 + $0x170] sm:$0xf] }
 0x3d7   :  { %v5356_v22 = vsel %vm5189_vm3, %v7990_v27, %v4338_v53  ;;  %v9210_v9 = vpop.f32.mrb[111].mxu1  ;;  %v11848_v27 = vld [vmem:[#allocation2 + $0x16c] sm:$0xf]  ;;  %v13101_v26 = vld [vmem:[#allocation96_spill] sm:$0xff] }
 0x3d8   :  { %5163 = vrot.lane.b32.xlu0 %v8187_v16, %s9763_s10  ;;  %v8502_v33 = vpack.c.bf16 %v2330_v43, %v2330_v43  ;;  %v5403_v32 = vsel %vm5244_vm4, %v5356_v22, %v11795_v17  ;;  %v13098_v9 = vld [vmem:[#allocation65_spill] sm:$0xff]  ;;  %v8170_v17 = vcombine.low %v11840_v36, %v11601_v34  ;;  %13100 = vst [vmem:[#allocation70_spill] sm:$0xff] %v11848_v27  ;;  %v13102_v22 = vld [vmem:[#allocation99_spill] sm:$0xff] }
 0x3d9   :  { %v5258_v16 = vsel %vm5244_vm4, %v5210_v28, %v13098_v9  ;;  %v8107_v42 = vcombine.low %v11848_v27, %v9734_v55  ;;  %v13103_v43 = vcombine.low %v13101_v26, %v13102_v22  ;;  %v11862_v9 = vpop.permute.xlu1 %4681  ;;  %v3697_v55 = vld [vmem:[#allocation2 + $0x194] sm:$0xf]  ;;  %v13109_v22 = vld [vmem:[#allocation78_spill] sm:$0xff]  ;;  %v13162_v34 = vld [vmem:[#allocation27_spill] sm:$0xff] }
 0x3da   :  { %4833 = vrot.lane.b32.xlu1 %v8124_v52, %s9763_s10  ;;  %3457 = vst.msk [vmem:[#allocation2 + $0x380] sm:$0xf] %vm3232_vm2, %v8502_v33  ;;  %v13099_v52 = vld [vmem:[#allocation72_spill] sm:$0xff] }
 0x3db   :  { %v5301_v7 = vsel %vm5281_vm5, %v5258_v16, %v13099_v52  ;;  %v13104_v33 = vld [vmem:[#allocation76_spill] sm:$0xff]  ;;  %v3764_v16 = vld [vmem:[#allocation2 + $0x2c0] sm:$0xf]  ;;  %v8125_v52 = vcombine.low %v3695_v62, %v3696_v60  ;;  %v8090_v62 = vcombine.low %v3696_v60, %v3697_v55 }
 0x3dc   :  { %v4470_v58 = vpop.permute.xlu0 %4469  ;;  %5033 = vrot.lane.b32.xlu0 %v8152_v57, %s9762_s30  ;;  %v8188_v57 = vcombine.low %v3762_v48, %v3763_v14  ;;  %v8153_v26 = vcombine.low %v3763_v14, %v3764_v16  ;;  %v9735_v60 = vld [vmem:[#allocation2 + $0x174] sm:$0xf] }
 0x3dd   :  { %v5445_v53 = vsel %vm5281_vm5, %v5403_v32, %v4470_v58  ;;  %v13105_v58 = vld [vmem:[#allocation8_spill] sm:$0xff] }
 0x3de   :  { %4703 = vrot.lane.b32.xlu1 %v8089_v20, %s9762_s30  ;;  %6111 = vmatprep.mubr.bf16.mxu1 %v5445_v53  ;;  %v13106_v20 = vld [vmem:[#allocation10_spill] sm:$0xff] }
 0x3df   :  { %6112 = vmatmul.mubr.bf16.gmra.mrb[136].mxu1 %v5301_v7  ;;  %v13107_v32 = vcombine.low %v13105_v58, %v13106_v20  ;;  %v13111_v58 = vld [vmem:[#allocation104_spill] sm:$0xff] }
 0x3e0   :  { %5099 = vrot.lane.b32.xlu0 %v8170_v17, %s9761_s26 }
 0x3e1   :  { %v4340_v8 = vpop.permute.xlu0 %4339  ;;  %v5213_v53 = vsel %vm5189_vm3, %v13107_v32, %v13104_v33  ;;  %v3765_v33 = vld [vmem:[#allocation2 + $0x2c4] sm:$0xf] }
 0x3e2   :  { %v5359_v28 = vsel %vm5189_vm3, %v13103_v43, %v4340_v8  ;;  %4769 = vrot.lane.b32.xlu1 %v8107_v42, %s9761_s26  ;;  %v13108_v42 = vld [vmem:[#allocation67_spill] sm:$0xff]  ;;  %v8189_v14 = vcombine.low %v3764_v16, %v3765_v33 }
 0x3e3   :  { %v5405_v17 = vsel %vm5244_vm4, %v5359_v28, %v11803_v39  ;;  %v5260_v8 = vsel %vm5244_vm4, %v5213_v53, %v13108_v42  ;;  %v13110_v28 = vld [vmem:[#allocation102_spill] sm:$0xff]  ;;  %v13113_v53 = vld [vmem:[#allocation81_spill] sm:$0xff] }
 0x3e4   :  { %5165 = vrot.lane.b32.xlu0 %v8188_v57, %s9763_s10  ;;  %v5304_v43 = vsel %vm5281_vm5, %v5260_v8, %v13109_v22  ;;  %v11874_v57 = vpop.permute.xlu1 %4747  ;;  %v13112_v20 = vcombine.low %v13110_v28, %v13111_v58  ;;  %v3766_v42 = vld [vmem:[#allocation2 + $0x2c8] sm:$0xf]  ;;  %v9736_v8 = vld [vmem:[#allocation2 + $0x178] sm:$0xf] }
 0x3e5   :  { %v4472_v7 = vpop.permute.xlu0 %4471  ;;  %v8154_v58 = vcombine.low %v3765_v33, %v3766_v42 }
 0x3e6   :  { %4835 = vrot.lane.b32.xlu1 %v8125_v52, %s9763_s10  ;;  %v5448_v48 = vsel %vm5281_vm5, %v5405_v17, %v4472_v7  ;;  %v13114_v52 = vld [vmem:[#allocation12_spill] sm:$0xff]  ;;  %v13115_v7 = vld [vmem:[#allocation14_spill] sm:$0xff] }
 0x3e7   :  { %6119 = vmatprep.mubr.bf16.mxu1 %v5448_v48  ;;  %v13116_v17 = vcombine.low %v13114_v52, %v13115_v7  ;;  %v11897_v52 = vld [vmem:[#allocation2 + $0x2a8] sm:$0xf]  ;;  %v3787_v7 = vld [vmem:[#allocation2 + $0x2ac] sm:$0xf] }
 0x3e8   :  { %6120 = vmatmul.mubr.bf16.gmra.mrb[140].mxu1 %v5304_v43  ;;  %5035 = vrot.lane.b32.xlu0 %v8153_v26, %s9762_s30  ;;  %v8108_v26 = vcombine.low %v9735_v60, %v9736_v8  ;;  %13119 = vst [vmem:[#allocation65_spill] sm:$0xff] %v11897_v52  ;;  %v3476_v60 = vld [vmem:[#allocation2 + $0xb4] sm:$0xf]  ;;  %v8172_v33 = vcombine.low %v11897_v52, %v3787_v7  ;;  %v9737_v8 = vld [vmem:[#allocation2 + $0xb8] sm:$0xf] }
 0x3e9   :  { %v4342_v39 = vpop.permute.xlu0 %4341  ;;  %v5216_v48 = vsel %vm5189_vm3, %v13116_v17, %v13113_v53  ;;  %v3561_v17 = vld [vmem:[#allocation2 + $0x294] sm:$0xf]  ;;  %v9744_v52 = vld [vmem:[#allocation2 + $0x2e0] sm:$0xf] }
 0x3ea   :  { %v5362_v32 = vsel %vm5189_vm3, %v13112_v20, %v4342_v39  ;;  %4705 = vrot.lane.b32.xlu1 %v8090_v62, %s9762_s30  ;;  %v3698_v39 = vld [vmem:[#allocation2 + $0x198] sm:$0xf]  ;;  %v11893_v20 = vpop.permute.xlu1 %4813 }
 0x3eb   :  { %v5407_v43 = vsel %vm5244_vm4, %v5362_v32, %v11817_v63  ;;  %v13117_v62 = vld [vmem:[#allocation68_spill] sm:$0xff]  ;;  %v8126_v63 = vcombine.low %v3697_v55, %v3698_v39  ;;  %v3699_v32 = vld [vmem:[#allocation2 + $0x19c] sm:$0xf]  ;;  %v3705_v55 = vld [vmem:[#allocation2 + $0x180] sm:$0xf] }
 0x3ec   :  { %5167 = vrot.lane.b32.xlu0 %v8189_v14, %s9763_s10  ;;  %v5262_v28 = vsel %vm5244_vm4, %v5216_v48, %v13117_v62  ;;  %v13118_v14 = vld [vmem:[#allocation83_spill] sm:$0xff]  ;;  %v7993_v48 = vcombine.low %v3561_v17, %v11582_v25  ;;  %v3768_v17 = vld [vmem:[#allocation2 + $0x2f4] sm:$0xf] }
 0x3ed   :  { %v4474_v22 = vpop.permute.xlu0 %4473  ;;  %v5307_v53 = vsel %vm5281_vm5, %v5262_v28, %v13118_v14 }
 0x3ee   :  { %4771 = vrot.lane.b32.xlu1 %v8108_v26, %s9761_s26  ;;  %v5451_v16 = vsel %vm5281_vm5, %v5407_v43, %v4474_v22  ;;  %v7921_v26 = vcombine.low %v3476_v60, %v9737_v8  ;;  %v3793_v22 = vld [vmem:[#allocation2 + $0x2cc] sm:$0xf]  ;;  %v8091_v43 = vcombine.low %v3698_v39, %v3699_v32  ;;  %v11906_v28 = vpop.permute.xlu1 %4683  ;;  %v9738_v60 = vld [vmem:[#allocation2 + $0x2a8] sm:$0xf] }
 0x3ef   :  { %6127 = vmatprep.mubr.bf16.mxu1 %v5451_v16  ;;  %v13120_v16 = vld [vmem:[#allocation88_spill] sm:$0xff]  ;;  %v8190_v7 = vcombine.low %v3766_v42, %v3793_v22  ;;  %v7995_v39 = vcombine.low %v11615_v61, %v9738_v60  ;;  %v3711_v22 = vld [vmem:[#allocation2 + $0x1a0] sm:$0xf] }
 0x3f0   :  { %6128 = vmatmul.mubr.bf16.gmra.mrb[144].mxu1 %v5307_v53  ;;  %5037 = vrot.lane.b32.xlu0 %v8154_v58, %s9762_s30  ;;  %v5219_v62 = vsel %vm5189_vm3, %v7921_v26, %v13120_v16  ;;  %v13121_v58 = vld [vmem:[#allocation58_spill] sm:$0xff]  ;;  %v9739_v26 = vld [vmem:[#allocation2 + $0x17c] sm:$0xf]  ;;  %v13127_v60 = vld [vmem:[#allocation92_spill] sm:$0xff] }
 0x3f1   :  { %v5365_v14 = vsel %vm5189_vm3, %v7993_v48, %v13121_v58  ;;  %v8109_v16 = vcombine.low %v9739_v26, %v3705_v55  ;;  %v13124_v48 = vld [vmem:[#allocation90_spill] sm:$0xff]  ;;  %v8127_v55 = vcombine.low %v3699_v32, %v3711_v22  ;;  %v9740_v32 = vld [vmem:[#allocation2 + $0x2d8] sm:$0xf]  ;;  %v13133_v22 = vld [vmem:[#allocation63_spill] sm:$0xff] }
 0x3f2   :  { %4837 = vrot.lane.b32.xlu1 %v8126_v63, %s9763_s10  ;;  %v3767_v63 = vld [vmem:[#allocation2 + $0x2f0] sm:$0xf] }
 0x3f3   :  { %v8155_v61 = vcombine.low %v3767_v63, %v3768_v17  ;;  %v13131_v63 = vld [vmem:[#allocation60_spill] sm:$0xff] }
 0x3f4   :  { %5103 = vrot.lane.b32.xlu0 %v8172_v33, %s9761_s26  ;;  %v13122_v33 = vld [vmem:[#allocation59_spill] sm:$0xff] }
 0x3f6   :  { %4707 = vrot.lane.b32.xlu1 %v8091_v43, %s9762_s30  ;;  %v4410_v53 = vpop.permute.xlu0 %4409  ;;  %v13123_v43 = vld [vmem:[#allocation84_spill] sm:$0xff] }
 0x3f7   :  { %v5409_v25 = vsel %vm5244_vm4, %v5365_v14, %v4410_v53  ;;  %v5264_v27 = vsel %vm5244_vm4, %v5219_v62, %v13123_v43  ;;  %v11923_v14 = vpop.permute.xlu1 %4749  ;;  %v11925_v53 = vld [vmem:[#allocation2 + $0x2d4] sm:$0xf] }
 0x3f8   :  { %5169 = vrot.lane.b32.xlu0 %v8190_v7, %s9763_s10  ;;  %v5454_v8 = vsel %vm5281_vm5, %v5409_v25, %v13122_v33  ;;  %v5310_v42 = vsel %vm5281_vm5, %v5264_v27, %v13124_v48  ;;  %13125 = vst [vmem:[#allocation72_spill] sm:$0xff] %v11925_v53  ;;  %v13126_v7 = vld [vmem:[#allocation62_spill] sm:$0xff]  ;;  %v3567_v25 = vld [vmem:[#allocation2 + $0x2d0] sm:$0xf]  ;;  %v13128_v27 = vld [vmem:[#allocation16_spill] sm:$0xff] }
 0x3f9   :  { %6135 = vmatprep.mubr.bf16.mxu1 %v5454_v8  ;;  %v5371_v62 = vsel %vm5189_vm3, %v7995_v39, %v13126_v7  ;;  %v13129_v33 = vld [vmem:[#allocation18_spill] sm:$0xff] }
 0x3fa   :  { %4773 = vrot.lane.b32.xlu1 %v8109_v16, %s9761_s26  ;;  %6136 = vmatmul.mubr.bf16.gmra.mrb[148].mxu1 %v5310_v42  ;;  %v11921_v58 = vpop.permute.xlu0 %4425  ;;  %v13130_v8 = vcombine.low %v13128_v27, %v13129_v33  ;;  %v13132_v16 = vcombine.low %v11584_v46, %v11599_v19  ;;  %v8173_v42 = vcombine.low %v11925_v53, %v9740_v32  ;;  %v11945_v7 = vld [vmem:[#allocation2 + $0x2a4] sm:$0xf]  ;;  %v3769_v32 = vld [vmem:[#allocation2 + $0x2f8] sm:$0xf] }
 0x3fb   :  { %13134 = vst [vmem:[#allocation96_spill] sm:$0xff] %v11945_v7  ;;  %v13136_v19 = vld [vmem:[#allocation86_spill] sm:$0xff] }
 0x3fc   :  { %5039 = vrot.lane.b32.xlu0 %v8155_v61, %s9762_s30  ;;  %v5222_v26 = vsel %vm5189_vm3, %v13130_v8, %v13127_v60  ;;  %v5368_v43 = vsel %vm5189_vm3, %v13132_v16, %v13131_v63  ;;  %v5413_v61 = vsel %vm5244_vm4, %v5371_v62, %v13133_v22  ;;  %v9741_v60 = vld [vmem:[#allocation2 + $0x2d4] sm:$0xf]  ;;  %v11952_v8 = vpop.permute.xlu1 %4815  ;;  %v13137_v63 = vld [vmem:[#allocation94_spill] sm:$0xff]  ;;  %v8191_v22 = vcombine.low %v3768_v17, %v3769_v32 }
 0x3fd   :  { %v7996_v27 = vcombine.low %v3567_v25, %v9741_v60  ;;  %v5266_v33 = vsel %vm5244_vm4, %v5222_v26, %v13136_v19  ;;  %v13140_v60 = vld [vmem:[#allocation69_spill] sm:$0xff] }
 0x3fe   :  { %4839 = vrot.lane.b32.xlu1 %v8127_v55, %s9763_s10  ;;  %v4412_v48 = vpop.permute.xlu0 %4411  ;;  %v13135_v55 = vld [vmem:[#allocation61_spill] sm:$0xff]  ;;  %v5313_v16 = vsel %vm5281_vm5, %v5266_v33, %v13137_v63 }
 0x3ff   :  { %v5411_v39 = vsel %vm5244_vm4, %v5368_v43, %v4412_v48  ;;  %v13138_v43 = vld [vmem:[#allocation64_spill] sm:$0xff]  ;;  %v8171_v48 = vcombine.low %v11603_v4, %v11945_v7  ;;  %v13142_v19 = vld [vmem:[#allocation21_spill] sm:$0xff] }
 0x400   :  { %5105 = vrot.lane.b32.xlu0 %v8173_v42, %s9761_s26  ;;  %v5457_v46 = vsel %vm5281_vm5, %v5411_v39, %v13135_v55  ;;  %v5460_v25 = vsel %vm5281_vm5, %v5413_v61, %v13138_v43  ;;  %v13139_v42 = vld [vmem:[#allocation66_spill] sm:$0xff]  ;;  %v13143_v33 = vld [vmem:[#allocation25_spill] sm:$0xff]  ;;  %v13158_v4 = vld [vmem:[#allocation80_spill] sm:$0xff] }
 0x401   :  { %6143 = vmatprep.mubr.bf16.mxu1 %v5457_v46  ;;  %v5374_v26 = vsel %vm5189_vm3, %v7996_v27, %v13139_v42  ;;  %v13141_v46 = vld [vmem:[#allocation98_spill] sm:$0xff]  ;;  %v13144_v61 = vcombine.low %v13142_v19, %v13143_v33  ;;  %v3770_v43 = vld [vmem:[#allocation2 + $0x2fc] sm:$0xf] }
 0x402   :  { %6144 = vmatmul.mubr.bf16.gmra.mrb[152].mxu1 %v5313_v16  ;;  %v11956_v62 = vpop.permute.xlu0 %4491  ;;  %v5415_v55 = vsel %vm5244_vm4, %v5374_v26, %v13140_v60  ;;  %v11974_v16 = vpop.permute.xlu1 %4685  ;;  %v13148_v26 = vld [vmem:[#allocation71_spill] sm:$0xff]  ;;  %v8156_v19 = vcombine.low %v3769_v32, %v3770_v43  ;;  %v13150_v33 = vld [vmem:[#allocation17_spill] sm:$0xff] }
 0x403   :  { %6151 = vmatprep.mubr.bf16.mxu1 %v5460_v25  ;;  %v5225_v63 = vsel %vm5189_vm3, %v13144_v61, %v13141_v46  ;;  %13145 = vst [vmem:[#allocation99_spill] sm:$0xff] %v11974_v16  ;;  %v13146_v25 = vld [vmem:[#allocation100_spill] sm:$0xff]  ;;  %v5463_v60 = vsel %vm5281_vm5, %v5415_v55, %v13148_v26  ;;  %v13149_v46 = vld [vmem:[#allocation73_spill] sm:$0xff]  ;;  %v13151_v61 = vld [vmem:[#allocation22_spill] sm:$0xff] }
 0x404   :  { %5101 = vrot.lane.b32.xlu0 %v8171_v48, %s9761_s26  ;;  %v5268_v27 = vsel %vm5244_vm4, %v5225_v63, %v13146_v25  ;;  %v13147_v48 = vld [vmem:[#allocation103_spill] sm:$0xff]  ;;  %v13152_v53 = vcombine.low %v13150_v33, %v13151_v61  ;;  %v13154_v32 = vld [vmem:[#allocation77_spill] sm:$0xff] }
 0x405   :  { %v5316_v17 = vsel %vm5281_vm5, %v5268_v27, %v13147_v48  ;;  %v3482_v63 = vld [vmem:[#allocation2 + $0xf0] sm:$0xf]  ;;  %v3771_v61 = vld [vmem:[#allocation2 + $0x300] sm:$0xf] }
 0x406   :  { %v11965_v39 = vpop.permute.xlu0 %5021  ;;  %v5377_v7 = vsel %vm5189_vm3, %v13152_v53, %v13149_v46  ;;  %v11991_v27 = vpop.permute.xlu1 %4751  ;;  %v13156_v53 = vld [vmem:[#allocation108_spill] sm:$0xff]  ;;  %v9745_v16 = vld [vmem:[#allocation2 + $0x310] sm:$0xf] }
 0x407   :  { %13153 = vst [vmem:[#allocation76_spill] sm:$0xff] %v11991_v27  ;;  %v5417_v26 = vsel %vm5244_vm4, %v5377_v7, %v13154_v32  ;;  %v13160_v32 = vld [vmem:[#allocation82_spill] sm:$0xff] }
 0x408   :  { %5171 = vrot.lane.b32.xlu0 %v8191_v22, %s9763_s10  ;;  %v9742_v22 = vld [vmem:[#allocation2 + $0xf4] sm:$0xf]  ;;  %v3788_v27 = vld [vmem:[#allocation2 + $0x2e8] sm:$0xf] }
 0x409   :  { %v7924_v25 = vcombine.low %v3482_v63, %v9742_v22 }
 0x40a   :  { %v11981_v42 = vpop.permute.xlu0 %5087  ;;  %6152 = vmatmul.mubr.bf16.gmra.mrb[156].mxu1 %v5316_v17  ;;  %v9743_v17 = vld [vmem:[#allocation2 + $0x2dc] sm:$0xf]  ;;  %v12008_v7 = vpop.permute.xlu1 %4817 }
 0x40b   :  { %6159 = vmatprep.mubr.bf16.mxu1 %v5463_v60  ;;  %v8174_v55 = vcombine.low %v9743_v17, %v9744_v52  ;;  %v13155_v60 = vld [vmem:[#allocation107_spill] sm:$0xff]  ;;  %v5466_v52 = vsel %vm5281_vm5, %v5417_v26, %v13158_v4  ;;  %v8192_v17 = vcombine.low %v3770_v43, %v3771_v61  ;;  %13159 = vst [vmem:[#allocation8_spill] sm:$0xff] %v12008_v7  ;;  %v13165_v43 = vld [vmem:[#allocation29_spill] sm:$0xff]  ;;  %v13166_v26 = vld [vmem:[#allocation30_spill] sm:$0xff] }
 0x40c   :  { %5041 = vrot.lane.b32.xlu0 %v8156_v19, %s9762_s30  ;;  %v5228_v33 = vsel %vm5189_vm3, %v7924_v25, %v13155_v60  ;;  %v13157_v19 = vld [vmem:[#allocation109_spill] sm:$0xff]  ;;  %v3772_v25 = vld [vmem:[#allocation2 + $0x304] sm:$0xf]  ;;  %v13161_v60 = vld [vmem:[#allocation23_spill] sm:$0xff] }
 0x40d   :  { %v5270_v46 = vsel %vm5244_vm4, %v5228_v33, %v13156_v53  ;;  %v13163_v33 = vcombine.low %v13161_v60, %v13162_v34  ;;  %v3573_v53 = vld [vmem:[#allocation2 + $0x30c] sm:$0xf] }
 0x40e   :  { %v11993_v48 = vpop.permute.xlu0 %5153  ;;  %v5319_v63 = vsel %vm5281_vm5, %v5270_v46, %v13157_v19  ;;  %v8157_v19 = vcombine.low %v3771_v61, %v3772_v25  ;;  %v7999_v34 = vcombine.low %v3573_v53, %v9745_v16  ;;  %v3794_v16 = vld [vmem:[#allocation2 + $0x308] sm:$0xf]  ;;  %v13169_v53 = vld [vmem:[#allocation89_spill] sm:$0xff] }
 0x410   :  { %5107 = vrot.lane.b32.xlu0 %v8174_v55, %s9761_s26  ;;  %v5380_v55 = vsel %vm5189_vm3, %v13163_v33, %v13160_v32  ;;  %v13168_v33 = vld [vmem:[#allocation87_spill] sm:$0xff] }
 0x412   :  { %v12004_v22 = vpop.permute.xlu0 %5023  ;;  %6160 = vmatmul.mubr.bf16.gmra.mrb[160].mxu1 %v5319_v63  ;;  %v13164_v63 = vld [vmem:[#allocation85_spill] sm:$0xff] }
 0x413   :  { %6167 = vmatprep.mubr.bf16.mxu1 %v5466_v52  ;;  %v5419_v4 = vsel %vm5244_vm4, %v5380_v55, %v13164_v63  ;;  %v13167_v52 = vcombine.low %v13165_v43, %v13166_v26  ;;  %v13170_v43 = vld [vmem:[#allocation91_spill] sm:$0xff]  ;;  %v13171_v26 = vld [vmem:[#allocation33_spill] sm:$0xff] }
 0x414   :  { %5173 = vrot.lane.b32.xlu0 %v8192_v17, %s9763_s10  ;;  %v12028_v17 = vpop.permute.xlu1 %4687  ;;  %v5469_v55 = vsel %vm5281_vm5, %v5419_v4, %v13168_v33  ;;  %v3774_v33 = vld [vmem:[#allocation2 + $0x330] sm:$0xf] }
 0x415   :  { %v5231_v7 = vsel %vm5189_vm3, %v13167_v52, %v11454_v3  ;;  %v9746_v3 = vld [vmem:[#allocation2 + $0x2e4] sm:$0xf]  ;;  %v13172_v52 = vld [vmem:[#allocation36_spill] sm:$0xff] }
 0x416   :  { %v12016_v46 = vpop.permute.xlu0 %5089  ;;  %v5272_v32 = vsel %vm5244_vm4, %v5231_v7, %v11465_v56  ;;  %v8175_v63 = vcombine.low %v9746_v3, %v3788_v27  ;;  %v5383_v56 = vsel %vm5189_vm3, %v7999_v34, %v13169_v53  ;;  %v13174_v3 = vld [vmem:[#allocation93_spill] sm:$0xff]  ;;  %v13176_v53 = vld [vmem:[#allocation28_spill] sm:$0xff] }
 0x417   :  { %v5322_v61 = vsel %vm5281_vm5, %v5272_v32, %v11481_v45  ;;  %v5421_v45 = vsel %vm5244_vm4, %v5383_v56, %v13170_v43  ;;  %v13173_v32 = vcombine.low %v13171_v26, %v13172_v52  ;;  %v13177_v56 = vld [vmem:[#allocation35_spill] sm:$0xff] }
 0x418   :  { %5043 = vrot.lane.b32.xlu0 %v8157_v19, %s9762_s30  ;;  %v8193_v19 = vcombine.low %v3772_v25, %v3794_v16  ;;  %v12048_v27 = vpop.permute.xlu1 %4753  ;;  %v13178_v43 = vcombine.low %v13176_v53, %v13177_v56  ;;  %v13180_v56 = vld [vmem:[#allocation101_spill] sm:$0xff] }
 0x419   :  { %v5234_v4 = vsel %vm5189_vm3, %v13173_v32, %v11501_v6  ;;  %v13175_v6 = vld [vmem:[#allocation95_spill] sm:$0xff] }
 0x41a   :  { %v12032_v60 = vpop.permute.xlu0 %5155  ;;  %6168 = vmatmul.mubr.bf16.gmra.mrb[164].mxu1 %v5322_v61  ;;  %v3773_v61 = vld [vmem:[#allocation2 + $0x32c] sm:$0xf]  ;;  %v5274_v34 = vsel %vm5244_vm4, %v5234_v4, %v11520_v41  ;;  %v5386_v26 = vsel %vm5189_vm3, %v13178_v43, %v13175_v6  ;;  %v12067_v32 = vld [vmem:[#allocation2 + $0x310] sm:$0xf] }
 0x41b   :  { %6175 = vmatprep.mubr.bf16.mxu1 %v5469_v55  ;;  %v5325_v25 = vsel %vm5281_vm5, %v5274_v34, %v11541_v50  ;;  %v8158_v16 = vcombine.low %v3773_v61, %v3774_v33  ;;  %v3488_v41 = vld [vmem:[#allocation2 + $0x12c] sm:$0xf]  ;;  %v13179_v34 = vld [vmem:[#allocation97_spill] sm:$0xff] }
 0x41c   :  { %5109 = vrot.lane.b32.xlu0 %v8175_v63, %s9761_s26  ;;  %v5472_v63 = vsel %vm5281_vm5, %v5421_v45, %v13174_v3  ;;  %v12065_v50 = vpop.permute.xlu1 %4819  ;;  %v9748_v45 = vld [vmem:[#allocation2 + $0x314] sm:$0xf] }
 0x41d   :  { %v8176_v61 = vcombine.low %v12067_v32, %v9748_v45 }
 0x41e   :  { %v12039_v7 = vpop.permute.xlu0 %5025 }
 0x420   :  { %5175 = vrot.lane.b32.xlu0 %v8193_v19, %s9763_s10  ;;  %v9747_v19 = vld [vmem:[#allocation2 + $0x130] sm:$0xf] }
 0x421   :  { %v7927_v52 = vcombine.low %v3488_v41, %v9747_v19  ;;  %v9749_v19 = vld [vmem:[#allocation2 + $0x31c] sm:$0xf] }
 0x422   :  { %v12055_v55 = vpop.permute.xlu0 %5091  ;;  %6176 = vmatmul.mubr.bf16.gmra.mrb[168].mxu1 %v5325_v25  ;;  %v5423_v25 = vsel %vm5244_vm4, %v5386_v26, %v13179_v34  ;;  %v12085_v26 = vpop.permute.xlu1 %4689  ;;  %v13182_v34 = vld [vmem:[#allocation39_spill] sm:$0xff] }
 0x423   :  { %6183 = vmatprep.mubr.bf16.mxu1 %v5472_v63  ;;  %v5237_v3 = vsel %vm5189_vm3, %v7927_v52, %v11557_v29  ;;  %v3775_v63 = vld [vmem:[#allocation2 + $0x334] sm:$0xf]  ;;  %v5475_v43 = vsel %vm5281_vm5, %v5423_v25, %v13180_v56  ;;  %v3776_v29 = vld [vmem:[#allocation2 + $0x338] sm:$0xf]  ;;  %v9750_v52 = vld [vmem:[#allocation2 + $0x320] sm:$0xf] }
 0x424   :  { %5045 = vrot.lane.b32.xlu0 %v8158_v16, %s9762_s30  ;;  %v5276_v16 = vsel %vm5244_vm4, %v5237_v3, %v11569_v2  ;;  %v8194_v41 = vcombine.low %v3774_v33, %v3775_v63  ;;  %v8001_v45 = vcombine.low %v9749_v19, %v9750_v52  ;;  %v13184_v25 = vld [vmem:[#allocation106_spill] sm:$0xff]  ;;  %v9751_v19 = vld [vmem:[#allocation2 + $0x318] sm:$0xf]  ;;  %v9752_v52 = vld [vmem:[#allocation2 + $0x31c] sm:$0xf] }
 0x425   :  { %v5328_v6 = vsel %vm5281_vm5, %v5276_v16, %v11577_v44  ;;  %v13181_v44 = vld [vmem:[#allocation38_spill] sm:$0xff] }
 0x426   :  { %v12069_v4 = vpop.permute.xlu0 %5157  ;;  %v13183_v3 = vcombine.low %v13181_v44, %v13182_v34  ;;  %v5389_v33 = vsel %vm5189_vm3, %v8001_v45, %v13184_v25  ;;  %v8177_v45 = vcombine.low %v9751_v19, %v9752_v52 }
 0x427   :  { %v5425_v56 = vsel %vm5244_vm4, %v5389_v33, %v11921_v58 }
 0x428   :  { %5111 = vrot.lane.b32.xlu0 %v8176_v61, %s9761_s26  ;;  %v8159_v61 = vcombine.low %v3775_v63, %v3776_v29  ;;  %v5240_v16 = vsel %vm5189_vm3, %v13183_v3, %v11591_v11  ;;  %v5478_v11 = vsel %vm5281_vm5, %v5425_v56, %v11956_v62  ;;  %v13186_v3 = vld [vmem:[#allocation42_spill] sm:$0xff]  ;;  %v13189_v56 = vld [vmem:[#allocation113_spill] sm:$0xff] }
 0x42a   :  { %v12081_v53 = vpop.permute.xlu0 %5027  ;;  %6184 = vmatmul.mubr.bf16.gmra.mrb[172].mxu1 %v5328_v6  ;;  %v5278_v6 = vsel %vm5244_vm4, %v5240_v16, %v11605_v21  ;;  %v3777_v21 = vld [vmem:[#allocation2 + $0x33c] sm:$0xf]  ;;  %v13187_v16 = vld [vmem:[#allocation43_spill] sm:$0xff] }
 0x42b   :  { %6191 = vmatprep.mubr.bf16.mxu1 %v5475_v43  ;;  %v12102_v43 = vpop.permute.xlu1 %4755  ;;  %v5331_v63 = vsel %vm5281_vm5, %v5278_v6, %v11621_v31  ;;  %v8195_v34 = vcombine.low %v3776_v29, %v3777_v21  ;;  %v13185_v31 = vld [vmem:[#allocation112_spill] sm:$0xff]  ;;  %v13188_v25 = vcombine.low %v13186_v3, %v13187_v16  ;;  %v3778_v6 = vld [vmem:[#allocation2 + $0x340] sm:$0xf]  ;;  %v13190_v29 = vld [vmem:[#allocation114_spill] sm:$0xff] }
 0x42c   :  { %5177 = vrot.lane.b32.xlu0 %v8194_v41, %s9763_s10  ;;  %v3628_v3 = vld [vmem:[#allocation2 + $0x3c] sm:$0xf]  ;;  %v9754_v16 = vld [vmem:[#allocation2 + $0x320] sm:$0xf] }
 0x42d   :  { %v5243_v33 = vsel %vm5189_vm3, %v13188_v25, %v13185_v31  ;;  %v3789_v31 = vld [vmem:[#allocation2 + $0x324] sm:$0xf] }
 0x42e   :  { %v12088_v2 = vpop.permute.xlu0 %5093  ;;  %v8178_v25 = vcombine.low %v9754_v16, %v3789_v31  ;;  %v3780_v31 = vld [vmem:[#allocation2 + $0x36c] sm:$0xf] }
 0x42f   :  { %v12119_v62 = vpop.permute.xlu1 %4821 }
 0x430   :  { %5047 = vrot.lane.b32.xlu0 %v8159_v61, %s9762_s30  ;;  %v3713_v61 = vld [vmem:[#allocation2 + $0x21c] sm:$0xf] }
 0x431   :  { %v8128_v58 = vcombine.low %v3713_v61, %v11639_v51  ;;  %v8160_v61 = vcombine.low %v3777_v21, %v3778_v6  ;;  %v13192_v21 = vld [vmem:[#allocation74_spill] sm:$0xff] }
 0x432   :  { %v12106_v41 = vpop.permute.xlu0 %5159  ;;  %6192 = vmatmul.mubr.bf16.gmra.mrb[176].mxu1 %v5331_v63  ;;  %v5280_v63 = vsel %vm5244_vm4, %v5243_v33, %v13189_v56  ;;  %v13191_v33 = vld [vmem:[#allocation115_spill] sm:$0xff] }
 0x433   :  { %6199 = vmatprep.mubr.bf16.mxu1 %v5478_v11  ;;  %v5626_v11 = vsel %vm5189_vm3, %v8128_v58, %v11965_v39  ;;  %v5334_v19 = vsel %vm5281_vm5, %v5280_v63, %v13190_v29  ;;  %v9753_v39 = vld [vmem:[#allocation2 + $0x40] sm:$0xf]  ;;  %v3795_v63 = vld [vmem:[#allocation2 + $0x344] sm:$0xf] }
 0x434   :  { %5113 = vrot.lane.b32.xlu0 %v8177_v45, %s9761_s26  ;;  %v5679_v51 = vsel %vm5244_vm4, %v5626_v11, %v11981_v42  ;;  %v8056_v58 = vcombine.low %v3628_v3, %v9753_v39  ;;  %v13193_v11 = vld [vmem:[#allocation75_spill] sm:$0xff]  ;;  %v8196_v39 = vcombine.low %v3778_v6, %v3795_v63 }
 0x435   :  { %v5715_v45 = vsel %vm5281_vm5, %v5679_v51, %v11993_v48  ;;  %v13194_v51 = vcombine.low %v13192_v21, %v13193_v11  ;;  %v13198_v6 = vld [vmem:[#allocation79_spill] sm:$0xff] }
 0x436   :  { %v12112_v44 = vpop.permute.xlu0 %5029  ;;  %v5482_v56 = vsel %vm5189_vm3, %v8056_v58, %v13191_v33  ;;  %v13199_v63 = vcombine.low %v11293_v18, %v13198_v6 }
 0x437   :  { %v5535_v48 = vsel %vm5244_vm4, %v5482_v56, %v11671_v47  ;;  %v5629_v29 = vsel %vm5189_vm3, %v13194_v51, %v12004_v22  ;;  %v12167_v56 = vld [vmem:[#allocation2 + $0x34c] sm:$0xf]  ;;  %v3781_v51 = vld [vmem:[#allocation2 + $0x370] sm:$0xf] }
 0x438   :  { %5179 = vrot.lane.b32.xlu0 %v8195_v34, %s9763_s10  ;;  %v12135_v34 = vpop.permute.xlu1 %4691  ;;  %v8179_v18 = vcombine.low %v12167_v56, %v11789_v49 }
 0x43a   :  { %v12130_v52 = vpop.permute.xlu0 %5095  ;;  %6200 = vmatmul.mubr.bf16.gmra.mrb[180].mxu1 %v5334_v19  ;;  %v5571_v19 = vsel %vm5281_vm5, %v5535_v48, %v11699_v10  ;;  %v13195_v10 = vld [vmem:[#allocation4_spill] sm:$0xff]  ;;  %v5632_v48 = vsel %vm5189_vm3, %v13199_v63, %v12039_v7  ;;  %v8197_v7 = vcombine.low %v3780_v31, %v3781_v51 }
 0x43b   :  { %6240 = vmatprep.mubr.bf16.mxu1 %v5715_v45  ;;  %v5681_v45 = vsel %vm5244_vm4, %v5629_v29, %v12016_v46  ;;  %v13196_v46 = vld [vmem:[#allocation5_spill] sm:$0xff]  ;;  %v5683_v11 = vsel %vm5244_vm4, %v5632_v48, %v12055_v55  ;;  %v3783_v63 = vld [vmem:[#allocation2 + $0x378] sm:$0xf] }
 0x43c   :  { %5049 = vrot.lane.b32.xlu0 %v8160_v61, %s9762_s30  ;;  %v3779_v61 = vld [vmem:[#allocation2 + $0x368] sm:$0xf]  ;;  %v5718_v47 = vsel %vm5281_vm5, %v5681_v45, %v12032_v60  ;;  %v12157_v58 = vpop.permute.xlu1 %4757  ;;  %v3782_v45 = vld [vmem:[#allocation2 + $0x374] sm:$0xf] }
 0x43d   :  { %v8161_v22 = vcombine.low %v3779_v61, %v3780_v31  ;;  %v8162_v31 = vcombine.low %v3781_v51, %v3782_v45  ;;  %v8198_v51 = vcombine.low %v3782_v45, %v3783_v63  ;;  %v13205_v45 = vld [vmem:[#allocation11_spill] sm:$0xff] }
 0x43e   :  { %v12137_v42 = vpop.permute.xlu0 %5161 }
 0x440   :  { %5115 = vrot.lane.b32.xlu0 %v8178_v25, %s9761_s26  ;;  %v13197_v25 = vcombine.low %v13195_v10, %v13196_v46  ;;  %v12177_v21 = vpop.permute.xlu1 %4823 }
 0x442   :  { %v12153_v3 = vpop.permute.xlu0 %5031  ;;  %6241 = vmatmul.mubr.bf16.vlgmr.msra.gmra.mrb[112].mxu1 %v5571_v19  ;;  %v5485_v33 = vsel %vm5189_vm3, %v13197_v25, %v11721_v1  ;;  %v3719_v19 = vld [vmem:[#allocation2 + $0x258] sm:$0xf] }
 0x443   :  { %6248 = vmatprep.mubr.bf16.mxu1 %v5718_v47  ;;  %v5537_v60 = vsel %vm5244_vm4, %v5485_v33, %v11747_v30  ;;  %v5721_v30 = vsel %vm5281_vm5, %v5683_v11, %v12069_v4  ;;  %v8131_v55 = vcombine.low %v3719_v19, %v11761_v12  ;;  %v13201_v47 = vld [vmem:[#allocation7_spill] sm:$0xff] }
 0x444   :  { %5181 = vrot.lane.b32.xlu0 %v8196_v39, %s9763_s10  ;;  %v5574_v1 = vsel %vm5281_vm5, %v5537_v60, %v11759_v38  ;;  %v13200_v38 = vld [vmem:[#allocation6_spill] sm:$0xff]  ;;  %v12194_v10 = vpop.permute.xlu1 %4693  ;;  %v3634_v60 = vld [vmem:[#allocation2 + $0x78] sm:$0xf] }
 0x445   :  { %v13202_v39 = vcombine.low %v13200_v38, %v13201_v47  ;;  %v5635_v46 = vsel %vm5189_vm3, %v8131_v55, %v12081_v53 }
 0x446   :  { %v12160_v16 = vpop.permute.xlu0 %5097  ;;  %v5685_v12 = vsel %vm5244_vm4, %v5635_v46, %v12088_v2  ;;  %v8180_v2 = vcombine.low %v11791_v37, %v11808_v24  ;;  %v3796_v46 = vld [vmem:[#allocation2 + $0x380] sm:$0xf] }
 0x448   :  { %5051 = vrot.lane.b32.xlu0 %v8161_v22, %s9762_s30  ;;  %v5488_v22 = vsel %vm5189_vm3, %v13202_v39, %v11774_v13  ;;  %v5724_v13 = vsel %vm5281_vm5, %v5685_v12, %v12106_v41  ;;  %v12208_v6 = vpop.permute.xlu1 %4759  ;;  %v13203_v41 = vcombine.low %v11386_v54, %v11390_v35  ;;  %v13209_v12 = vld [vmem:[#allocation116_spill] sm:$0xff] }
 0x449   :  { %v5539_v4 = vsel %vm5244_vm4, %v5488_v22, %v11782_v40  ;;  %v9755_v40 = vld [vmem:[#allocation2 + $0x7c] sm:$0xf] }
 0x44a   :  { %v5164_v29 = vpop.permute.xlu0 %5163  ;;  %6249 = vmatmul.mubr.bf16.gmra.mrb[116].mxu1 %v5574_v1  ;;  %v5577_v25 = vsel %vm5281_vm5, %v5539_v4, %v11799_v59  ;;  %v8059_v53 = vcombine.low %v3634_v60, %v9755_v40  ;;  %v5638_v1 = vsel %vm5189_vm3, %v13203_v41, %v12112_v44  ;;  %v13204_v44 = vld [vmem:[#allocation9_spill] sm:$0xff]  ;;  %v13211_v40 = vld [vmem:[#allocation15_spill] sm:$0xff] }
 0x44b   :  { %6256 = vmatprep.mubr.bf16.mxu1 %v5721_v30  ;;  %v5687_v30 = vsel %vm5244_vm4, %v5638_v1, %v12130_v52  ;;  %v13206_v52 = vcombine.low %v13204_v44, %v13205_v45  ;;  %v9756_v1 = vld [vmem:[#allocation2 + $0xb8] sm:$0xf]  ;;  %v13217_v45 = vld [vmem:[#allocation111_spill] sm:$0xff] }
 0x44c   :  { %5117 = vrot.lane.b32.xlu0 %v8179_v18, %s9761_s26  ;;  %v5491_v59 = vsel %vm5189_vm3, %v8059_v53, %v11812_v15  ;;  %v12228_v19 = vpop.permute.xlu1 %4825 }
 0x44d   :  { %v5541_v11 = vsel %vm5244_vm4, %v5491_v59, %v11824_v5  ;;  %v5727_v5 = vsel %vm5281_vm5, %v5687_v30, %v12137_v42  ;;  %v5494_v55 = vsel %vm5189_vm3, %v13206_v52, %v11862_v9  ;;  %v13207_v42 = vld [vmem:[#allocation105_spill] sm:$0xff] }
 0x44e   :  { %v5034_v61 = vpop.permute.xlu0 %5033  ;;  %v5580_v18 = vsel %vm5281_vm5, %v5541_v11, %v11835_v0  ;;  %v3790_v0 = vld [vmem:[#allocation2 + $0x360] sm:$0xf]  ;;  %v5543_v38 = vsel %vm5244_vm4, %v5494_v55, %v11874_v57  ;;  %v13208_v47 = vcombine.low %v11412_v23, %v13207_v42 }
 0x44f   :  { %v5583_v9 = vsel %vm5281_vm5, %v5543_v38, %v11893_v20  ;;  %v13220_v38 = vld [vmem:[#allocation96_spill] sm:$0xff] }
 0x450   :  { %5183 = vrot.lane.b32.xlu0 %v8197_v7, %s9763_s10  ;;  %v3784_v7 = vld [vmem:[#allocation2 + $0x37c] sm:$0xf]  ;;  %v5641_v39 = vsel %vm5189_vm3, %v13208_v47, %v12153_v3  ;;  %v12244_v22 = vpop.permute.xlu1 %4695  ;;  %v3725_v3 = vld [vmem:[#allocation2 + $0x294] sm:$0xf] }
 0x451   :  { %v8163_v54 = vcombine.low %v3783_v63, %v3784_v7  ;;  %v5689_v4 = vsel %vm5244_vm4, %v5641_v39, %v12160_v16  ;;  %v8199_v23 = vcombine.low %v3784_v7, %v3796_v46  ;;  %v13210_v16 = vld [vmem:[#allocation13_spill] sm:$0xff]  ;;  %v13214_v7 = vld [vmem:[#allocation76_spill] sm:$0xff] }
 0x452   :  { %v5100_v33 = vpop.permute.xlu0 %5099  ;;  %6257 = vmatmul.mubr.bf16.gmra.mrb[120].mxu1 %v5577_v25  ;;  %v5730_v57 = vsel %vm5281_vm5, %v5689_v4, %v5164_v29  ;;  %v8181_v25 = vcombine.low %v13209_v12, %v3790_v0  ;;  %v13212_v53 = vcombine.low %v13210_v16, %v13211_v40  ;;  %v13219_v0 = vld [vmem:[#allocation65_spill] sm:$0xff]  ;;  %v13221_v39 = vld [vmem:[#allocation20_spill] sm:$0xff]  ;;  %v13222_v4 = vld [vmem:[#allocation19_spill] sm:$0xff] }
 0x453   :  { %6264 = vmatprep.mubr.bf16.mxu1 %v5724_v13  ;;  %v8134_v13 = vcombine.low %v3725_v3, %v11840_v36  ;;  %v8136_v42 = vcombine.low %v13220_v38, %v13219_v0  ;;  %v13231_v0 = vld [vmem:[#allocation31_spill] sm:$0xff] }
 0x454   :  { %5053 = vrot.lane.b32.xlu0 %v8162_v31, %s9762_s30  ;;  %v5497_v20 = vsel %vm5189_vm3, %v13212_v53, %v11906_v28  ;;  %v12259_v63 = vpop.permute.xlu1 %4761  ;;  %v3640_v28 = vld [vmem:[#allocation2 + $0xb4] sm:$0xf]  ;;  %v3731_v53 = vld [vmem:[#allocation2 + $0x2d0] sm:$0xf] }
 0x455   :  { %v5545_v29 = vsel %vm5244_vm4, %v5497_v20, %v11923_v14  ;;  %v13224_v20 = vld [vmem:[#allocation72_spill] sm:$0xff] }
 0x456   :  { %v5166_v48 = vpop.permute.xlu0 %5165  ;;  %v5586_v36 = vsel %vm5281_vm5, %v5545_v29, %v11952_v8 }
 0x458   :  { %5119 = vrot.lane.b32.xlu0 %v8180_v2, %s9761_s26  ;;  %v5644_v2 = vsel %vm5189_vm3, %v8134_v13, %v5034_v61  ;;  %v12269_v30 = vpop.permute.xlu1 %4827 }
 0x459   :  { %v5691_v59 = vsel %vm5244_vm4, %v5644_v2, %v5100_v33 }
 0x45a   :  { %v5036_v15 = vpop.permute.xlu0 %5035  ;;  %6265 = vmatmul.mubr.bf16.gmra.mrb[124].mxu1 %v5580_v18  ;;  %v5733_v41 = vsel %vm5281_vm5, %v5691_v59, %v5166_v48  ;;  %v13213_v18 = vld [vmem:[#allocation99_spill] sm:$0xff]  ;;  %v13216_v48 = vld [vmem:[#allocation110_spill] sm:$0xff] }
 0x45b   :  { %6272 = vmatprep.mubr.bf16.mxu1 %v5727_v5  ;;  %v13215_v5 = vld [vmem:[#allocation8_spill] sm:$0xff]  ;;  %v13218_v52 = vcombine.low %v13216_v48, %v13217_v45 }
 0x45c   :  { %5185 = vrot.lane.b32.xlu0 %v8198_v51, %s9763_s10  ;;  %v8062_v51 = vcombine.low %v3640_v28, %v9756_v1  ;;  %v12277_v44 = vpop.permute.xlu1 %4697 }
 0x45d   :  { %v5647_v55 = vsel %vm5189_vm3, %v13218_v52, %v5036_v15 }
 0x45e   :  { %v5168_v35 = vpop.permute.xlu0 %5167  ;;  %v5500_v61 = vsel %vm5189_vm3, %v8062_v51, %v13213_v18  ;;  %v3646_v51 = vld [vmem:[#allocation2 + $0xf0] sm:$0xf]  ;;  %v9757_v18 = vld [vmem:[#allocation2 + $0xf4] sm:$0xf] }
 0x45f   :  { %v5547_v33 = vsel %vm5244_vm4, %v5500_v61, %v13214_v7  ;;  %v8065_v61 = vcombine.low %v3646_v51, %v9757_v18  ;;  %v13240_v18 = vld [vmem:[#allocation54_spill] sm:$0xff] }
 0x460   :  { %5055 = vrot.lane.b32.xlu0 %v8163_v54, %s9762_s30  ;;  %v5589_v8 = vsel %vm5281_vm5, %v5547_v33, %v13215_v5  ;;  %v12295_v15 = vpop.permute.xlu1 %4763  ;;  %v13228_v33 = vld [vmem:[#allocation47_spill] sm:$0xff]  ;;  %v13229_v5 = vld [vmem:[#allocation46_spill] sm:$0xff] }
 0x462   :  { %v5038_v31 = vpop.permute.xlu0 %5037  ;;  %6273 = vmatmul.mubr.bf16.gmra.mrb[128].mxu1 %v5583_v9  ;;  %v13223_v9 = vcombine.low %v13221_v39, %v13222_v4  ;;  %v13234_v4 = vld [vmem:[#allocation49_spill] sm:$0xff] }
 0x463   :  { %6280 = vmatprep.mubr.bf16.mxu1 %v5730_v57 }
 0x464   :  { %5121 = vrot.lane.b32.xlu0 %v8181_v25, %s9761_s26  ;;  %v5503_v46 = vsel %vm5189_vm3, %v13223_v9, %v12028_v17  ;;  %v13235_v9 = vld [vmem:[#allocation48_spill] sm:$0xff] }
 0x465   :  { %v5549_v25 = vsel %vm5244_vm4, %v5503_v46, %v12048_v27  ;;  %v8137_v27 = vcombine.low %v3731_v53, %v13224_v20  ;;  %v3737_v20 = vld [vmem:[#allocation2 + $0x30c] sm:$0xf] }
 0x466   :  { %v5104_v60 = vpop.permute.xlu0 %5103  ;;  %v5592_v16 = vsel %vm5281_vm5, %v5549_v25, %v12065_v50 }
 0x468   :  { %5187 = vrot.lane.b32.xlu0 %v8199_v23, %s9763_s10  ;;  %v5650_v23 = vsel %vm5189_vm3, %v8136_v42, %v5038_v31  ;;  %v13225_v31 = vld [vmem:[#allocation24_spill] sm:$0xff] }
 0x469   :  { %v5695_v13 = vsel %vm5244_vm4, %v5650_v23, %v5104_v60  ;;  %v4830_v60 = vpop.permute.xlu1 %4829 }
 0x46a   :  { %v5170_v11 = vpop.permute.xlu0 %5169  ;;  %6281 = vmatmul.mubr.bf16.gmra.mrb[132].mxu1 %v5586_v36 }
 0x46b   :  { %6288 = vmatprep.mubr.bf16.mxu1 %v5733_v41  ;;  %v5739_v17 = vsel %vm5281_vm5, %v5695_v13, %v5170_v11  ;;  %v13237_v13 = vld [vmem:[#allocation34_spill] sm:$0xff] }
 0x46e   :  { %v5040_v14 = vpop.permute.xlu0 %5039 }
 0x46f   :  { %v5653_v50 = vsel %vm5189_vm3, %v8137_v27, %v5040_v14 }
 0x472   :  { %v5106_v54 = vpop.permute.xlu0 %5105  ;;  %6289 = vmatmul.mubr.bf16.gmra.mrb[136].mxu1 %v5589_v8  ;;  %v13230_v8 = vcombine.low %v13228_v33, %v13229_v5 }
 0x473   :  { %v5697_v41 = vsel %vm5244_vm4, %v5653_v50, %v5106_v54 }
 0x476   :  { %v5102_v47 = vpop.permute.xlu0 %5101 }
 0x477   :  { %v5693_v57 = vsel %vm5244_vm4, %v5647_v55, %v5102_v47 }
 0x478   :  { %v5736_v3 = vsel %vm5281_vm5, %v5693_v57, %v5168_v35  ;;  %v13226_v35 = vld [vmem:[#allocation26_spill] sm:$0xff] }
 0x479   :  { %6296 = vmatprep.mubr.bf16.mxu1 %v5736_v3  ;;  %v13227_v2 = vcombine.low %v13225_v31, %v13226_v35  ;;  %v3652_v31 = vld [vmem:[#allocation2 + $0x12c] sm:$0xf]  ;;  %v9758_v35 = vld [vmem:[#allocation2 + $0x130] sm:$0xf] }
 0x47a   :  { %v5172_v40 = vpop.permute.xlu0 %5171  ;;  %6297 = vmatmul.mubr.bf16.gmra.mrb[140].mxu1 %v5592_v16 }
 0x47b   :  { %6304 = vmatprep.mubr.bf16.mxu1 %v5739_v17  ;;  %v5506_v59 = vsel %vm5189_vm3, %v13227_v2, %v12085_v26  ;;  %v5742_v1 = vsel %vm5281_vm5, %v5697_v41, %v5172_v40  ;;  %v4700_v26 = vpop.permute.xlu1 %4699  ;;  %v8068_v2 = vcombine.low %v3652_v31, %v9758_v35  ;;  %v9657_v31 = vld [vmem:[%s12894_s5] sm:$0xff]  }
 0x47c   :  { %v5551_v36 = vsel %vm5244_vm4, %v5506_v59, %v12102_v43  ;;  %v5509_v43 = vsel %vm5189_vm3, %v8065_v61, %v12135_v34  ;;  %v13241_v61 = vld [vmem:[#allocation55_spill] sm:$0xff] }
 0x47d   :  { %v5595_v11 = vsel %vm5281_vm5, %v5551_v36, %v12119_v62  ;;  %v5553_v14 = vsel %vm5244_vm4, %v5509_v43, %v12157_v58  ;;  %v13232_v58 = vld [vmem:[#allocation32_spill] sm:$0xff] }
 0x47e   :  { %v5042_v29 = vpop.permute.xlu0 %5041  ;;  %v5598_v48 = vsel %vm5281_vm5, %v5553_v14, %v12177_v21  ;;  %v13233_v38 = vcombine.low %v13231_v0, %v13232_v58  ;;  %v13236_v21 = vcombine.low %v13234_v4, %v13235_v9  ;;  %v13243_v14 = vld [vmem:[#allocation40_spill] sm:$0xff]  ;;  %v13247_v58 = vld [vmem:[#allocation57_spill] sm:$0xff] }
 0x47f   :  { %v5656_v62 = vsel %vm5189_vm3, %v13230_v8, %v5042_v29  ;;  %v4766_v55 = vpop.permute.xlu1 %4765  ;;  %v8140_v29 = vcombine.low %v3737_v20, %v12067_v32  ;;  %v13246_v0 = vld [vmem:[#allocation56_spill] sm:$0xff]  ;;  %v9656_v20 = vld [vmem:[%s12894_s5 + $0x40] sm:$0xff]  }
 0x480   :  { %v5512_v42 = vsel %vm5189_vm3, %v13233_v38, %v12194_v10  ;;  %v13248_v38 = vcombine.low %v13246_v0, %v13247_v58  ;;  %8617 = vmatprep.subr.bf16.mxu1 %v9656_v20  ;;  %v9662_v58 = vld [vmem:[%s12894_s5 + $0x58] sm:$0xff]  }
 0x481   :  { %v5555_v47 = vsel %vm5244_vm4, %v5512_v42, %v12208_v6  ;;  %v13238_v6 = vld [vmem:[#allocation37_spill] sm:$0xff]  ;;  %v13249_v42 = vld [vmem:[#allocation44_spill] sm:$0xff]  ;;  %8618 = vmatpush3.bf16.msra.mxu1 %v9657_v31 }
 0x482   :  { %v5108_v28 = vpop.permute.xlu0 %5107  ;;  %6305 = vmatmul.mubr.bf16.gmra.mrb[144].mxu1 %v5595_v11  ;;  %v5601_v57 = vsel %vm5281_vm5, %v5555_v47, %v12228_v19  ;;  %v13239_v16 = vcombine.low %v13237_v13, %v13238_v6  ;;  %v13250_v47 = vld [vmem:[#allocation45_spill] sm:$0xff]  ;;  %v3658_v13 = vld [vmem:[#allocation2 + $0x168] sm:$0xf] }
 0x483   :  { %6312 = vmatprep.mubr.bf16.mxu1 %v5742_v1  ;;  %v5699_v54 = vsel %vm5244_vm4, %v5656_v62, %v5108_v28  ;;  %v4832_v39 = vpop.permute.xlu1 %4831  ;;  %v13251_v4 = vcombine.low %v13249_v42, %v13250_v47  ;;  %v9665_v42 = vld [vmem:[%s12894_s5 + $0x20] sm:$0xff]  }
 0x484   :  { %v5515_v40 = vsel %vm5189_vm3, %v13239_v16, %v12244_v22  ;;  %v13252_v16 = vld [vmem:[#allocation70_spill] sm:$0xff]  ;;  %v12448_v47 = vld [vmem:[%s12895_s4] ss:$0 sm:$0xff] }
 0x485   :  { %v5557_v53 = vsel %vm5244_vm4, %v5515_v40, %v12259_v63  ;;  %v5518_v63 = vsel %vm5189_vm3, %v8068_v2, %v12277_v44  ;;  %v13244_v44 = vld [vmem:[#allocation41_spill] sm:$0xff]  ;;  %v8071_v40 = vcombine.low %v3658_v13, %v13252_v16 }
 0x486   :  { %v5174_v7 = vpop.permute.xlu0 %5173  ;;  %v5604_v19 = vsel %vm5281_vm5, %v5557_v53, %v12269_v30  ;;  %v5559_v30 = vsel %vm5244_vm4, %v5518_v63, %v12295_v15  ;;  %v13245_v33 = vcombine.low %v13243_v14, %v13244_v44  ;;  %v13253_v63 = vcombine.low %v11789_v49, %v11791_v37  ;;  %v9658_v14 = vld [vmem:[%s12894_s5 + $0x48] sm:$0xff]  }
 0x487   :  { %v5745_v52 = vsel %vm5281_vm5, %v5699_v54, %v5174_v7  ;;  %v4702_v17 = vpop.permute.xlu1 %4701  ;;  %v5607_v32 = vsel %vm5281_vm5, %v5559_v30, %v4830_v60  ;;  %v13242_v7 = vcombine.low %v13240_v18, %v13241_v61  ;;  %v13254_v30 = vld [vmem:[#allocation50_spill] sm:$0xff]  ;;  %8619 = vmatprep.subr.bf16.mxu1 %v9658_v14 }
 0x488   :  { %v5521_v5 = vsel %vm5189_vm3, %v13245_v33, %v4700_v26  ;;  %v9659_v44 = vld [vmem:[%s12894_s5 + $0x8] sm:$0xff]  }
 0x489   :  { %v5561_v60 = vsel %vm5244_vm4, %v5521_v5, %v4766_v55  ;;  %v5524_v55 = vsel %vm5189_vm3, %v13251_v4, %v4702_v17  ;;  %v13257_v5 = vcombine.low %v11808_v24, %v13209_v12  ;;  %8620 = vmatpush3.bf16.msra.mxu1 %v9659_v44  ;;  %v9660_v24 = vld [vmem:[%s12894_s5 + $0x50] sm:$0xff]  }
 0x48a   :  { %v5044_v45 = vpop.permute.xlu0 %5043  ;;  %6313 = vmatmul.mubr.bf16.gmra.mrb[148].mxu1 %v5598_v48  ;;  %v5610_v54 = vsel %vm5281_vm5, %v5561_v60, %v4832_v39  ;;  %v13259_v60 = vld [vmem:[#allocation53_spill] sm:$0xff]  ;;  %v9661_v12 = vld [vmem:[%s12894_s5 + $0x10] sm:$0xff]   ;;  %8621 = vmatprep.subr.bf16.mxu1 %v9660_v24 }
 0x48b   :  { %6320 = vmatprep.mubr.bf16.mxu1 %v5745_v52  ;;  %v5659_v46 = vsel %vm5189_vm3, %v13236_v21, %v5044_v45  ;;  %v4768_v59 = vpop.permute.xlu1 %4767 }
 0x48c   :  { %v5563_v39 = vsel %vm5244_vm4, %v5524_v55, %v4768_v59  ;;  %v9666_v55 = vld [vmem:[%s12894_s5 + $0x68] sm:$0xff]  }
 0x48d   :  { %8622 = vmatpush3.bf16.msra.mxu1 %v9661_v12 }
 0x48e   :  { %v5110_v34 = vpop.permute.xlu0 %5109  ;;  %8623 = vmatprep.subr.bf16.mxu1 %v9662_v58 }
 0x48f   :  { %v5701_v25 = vsel %vm5244_vm4, %v5659_v46, %v5110_v34  ;;  %v4834_v28 = vpop.permute.xlu1 %4833 }
 0x492   :  { %v5176_v23 = vpop.permute.xlu0 %5175  ;;  %6321 = vmatmul.mubr.bf16.gmra.mrb[152].mxu1 %v5601_v57  ;;  %v5613_v57 = vsel %vm5281_vm5, %v5563_v39, %v4834_v28 }
 0x493   :  { %v5748_v3 = vsel %vm5281_vm5, %v5701_v25, %v5176_v23  ;;  %v4704_v51 = vpop.permute.xlu1 %4703 }
 0x494   :  { %6328 = vmatprep.mubr.bf16.mxu1 %v5748_v3  ;;  %v3743_v3 = vld [vmem:[#allocation2 + $0x348] sm:$0xf] }
 0x495   :  { %v8143_v6 = vcombine.low %v3743_v3, %v12167_v56  ;;  %v9667_v3 = vld [vmem:[%s12894_s5 + $0x28] sm:$0xff]  }
 0x496   :  { %v5046_v10 = vpop.permute.xlu0 %5045 }
 0x497   :  { %v5662_v36 = vsel %vm5189_vm3, %v8140_v29, %v5046_v10  ;;  %v4770_v45 = vpop.permute.xlu1 %4769 }
 0x49a   :  { %v5112_v27 = vpop.permute.xlu0 %5111  ;;  %6329 = vmatmul.mubr.bf16.gmra.mrb[156].mxu1 %v5604_v19  ;;  %v5527_v19 = vsel %vm5189_vm3, %v8071_v40, %v4704_v51 }
 0x49b   :  { %v5703_v22 = vsel %vm5244_vm4, %v5662_v36, %v5112_v27  ;;  %v4836_v34 = vpop.permute.xlu1 %4835  ;;  %v5565_v56 = vsel %vm5244_vm4, %v5527_v19, %v4770_v45 }
 0x49c   :  { %v5616_v2 = vsel %vm5281_vm5, %v5565_v56, %v4836_v34 }
 0x49e   :  { %v5178_v50 = vpop.permute.xlu0 %5177 }
 0x49f   :  { %v5751_v41 = vsel %vm5281_vm5, %v5703_v22, %v5178_v50  ;;  %v4706_v23 = vpop.permute.xlu1 %4705 }
 0x4a0   :  { %6336 = vmatprep.mubr.bf16.mxu1 %v5751_v41 }
 0x4a2   :  { %v5048_v11 = vpop.permute.xlu0 %5047  ;;  %6337 = vmatmul.mubr.bf16.gmra.mrb[160].mxu1 %v5607_v32  ;;  %v13255_v32 = vld [vmem:[#allocation51_spill] sm:$0xff] }
 0x4a3   :  { %v5665_v43 = vsel %vm5189_vm3, %v13242_v7, %v5048_v11  ;;  %v4772_v17 = vpop.permute.xlu1 %4771  ;;  %v13256_v11 = vcombine.low %v13254_v30, %v13255_v32  ;;  %v9668_v32 = vld [vmem:[%s12894_s5 + $0x70] sm:$0xff]  }
 0x4a5   :  { %v5530_v28 = vsel %vm5189_vm3, %v13256_v11, %v4706_v23  ;;  %v9669_v11 = vld [vmem:[%s12894_s5 + $0x30] sm:$0xff]  }
 0x4a6   :  { %v5114_v1 = vpop.permute.xlu0 %5113  ;;  %v5567_v18 = vsel %vm5244_vm4, %v5530_v28, %v4772_v17 }
 0x4a7   :  { %v5705_v15 = vsel %vm5244_vm4, %v5665_v43, %v5114_v1  ;;  %v4838_v36 = vpop.permute.xlu1 %4837 }
 0x4a8   :  { %v5619_v7 = vsel %vm5281_vm5, %v5567_v18, %v4838_v36 }
 0x4aa   :  { %v5180_v8 = vpop.permute.xlu0 %5179 }
 0x4ab   :  { %v5754_v62 = vsel %vm5281_vm5, %v5705_v15, %v5180_v8  ;;  %v4708_v50 = vpop.permute.xlu1 %4707  ;;  %v13258_v8 = vld [vmem:[#allocation52_spill] sm:$0xff] }
 0x4ac   :  { %6344 = vmatprep.mubr.bf16.mxu1 %v5754_v62  ;;  %v13260_v62 = vcombine.low %v13258_v8, %v13259_v60 }
 0x4ad   :  { %6345 = vmatmul.mubr.bf16.gmra.mrb[164].mxu1 %v5610_v54 }
 0x4ae   :  { %v5050_v48 = vpop.permute.xlu0 %5049  ;;  %v5533_v54 = vsel %vm5189_vm3, %v13260_v62, %v4708_v50 }
 0x4af   :  { %v5668_v26 = vsel %vm5189_vm3, %v13248_v38, %v5050_v48  ;;  %v4774_v49 = vpop.permute.xlu1 %4773  ;;  %v9663_v38 = vld [vmem:[%s12894_s5 + $0x18] sm:$0xff]  }
 0x4b0   :  { %8624 = vmatpush3.bf16.msra.mxu1 %v9663_v38 }
 0x4b2   :  { %v5116_v52 = vpop.permute.xlu0 %5115 }
 0x4b3   :  { %v5707_v9 = vsel %vm5244_vm4, %v5668_v26, %v5116_v52  ;;  %v4840_v33 = vpop.permute.xlu1 %4839  ;;  %v5569_v52 = vsel %vm5244_vm4, %v5533_v54, %v4774_v49  ;;  %v9664_v26 = vld [vmem:[%s12894_s5 + $0x60] sm:$0xff]  }
 0x4b4   :  { %v5622_v0 = vsel %vm5281_vm5, %v5569_v52, %v4840_v33  ;;  %8625 = vmatprep.subr.bf16.mxu1 %v9664_v26  ;;  %v9671_v33 = vld [vmem:[%s12894_s5 + $0x38] sm:$0xff]  }
 0x4b5   :  { %8626 = vmatpush3.bf16.msra.mxu1 %v9665_v42 }
 0x4b6   :  { %v5182_v21 = vpop.permute.xlu0 %5181  ;;  %8627 = vmatprep.subr.bf16.mxu1 %v9666_v55 }
 0x4b7   :  { %v5757_v46 = vsel %vm5281_vm5, %v5707_v9, %v5182_v21 }
 0x4b8   :  { %6352 = vmatprep.mubr.bf16.mxu1 %v5757_v46 }
 0x4b9   :  { %6353 = vmatmul.mubr.bf16.gmra.mrb[168].mxu1 %v5613_v57 }
 0x4ba   :  { %v5052_v25 = vpop.permute.xlu0 %5051  ;;  %8628 = vmatpush3.bf16.msra.mxu1 %v9667_v3 }
 0x4bb   :  { %v5671_v53 = vsel %vm5189_vm3, %v8143_v6, %v5052_v25  ;;  %8629 = vmatprep.subr.bf16.mxu1 %v9668_v32 }
 0x4be   :  { %v5118_v10 = vpop.permute.xlu0 %5117  ;;  %8630 = vmatpush3.bf16.msra.mxu1 %v9669_v11 }
 0x4bf   :  { %v5709_v27 = vsel %vm5244_vm4, %v5671_v53, %v5118_v10 }
 0x4c2   :  { %v5184_v29 = vpop.permute.xlu0 %5183 }
 0x4c3   :  { %v5760_v35 = vsel %vm5281_vm5, %v5709_v27, %v5184_v29 }
 0x4c4   :  { %6360 = vmatprep.mubr.bf16.mxu1 %v5760_v35 }
 0x4c5   :  { %6361 = vmatmul.mubr.bf16.gmra.mrb[172].mxu1 %v5616_v2 }
 0x4c6   :  { %v5054_v59 = vpop.permute.xlu0 %5053 }
 0x4c7   :  { %v5674_v41 = vsel %vm5189_vm3, %v13253_v63, %v5054_v59 }
 0x4ca   :  { %v5120_v22 = vpop.permute.xlu0 %5119 }
 0x4cb   :  { %v5711_v1 = vsel %vm5244_vm4, %v5674_v41, %v5120_v22 }
 0x4ce   :  { %v5186_v51 = vpop.permute.xlu0 %5185 }
 0x4cf   :  { %v5763_v61 = vsel %vm5281_vm5, %v5711_v1, %v5186_v51 }
 0x4d0   :  { %6368 = vmatprep.mubr.bf16.mxu1 %v5763_v61  ;;  %v9670_v61 = vld [vmem:[%s12894_s5 + $0x78] sm:$0xff]  }
 0x4d1   :  { %6369 = vmatmul.mubr.bf16.gmra.mrb[176].mxu1 %v5619_v7  ;;  %8631 = vmatprep.subr.bf16.mxu1 %v9670_v61 }
 0x4d2   :  { %v5056_v43 = vpop.permute.xlu0 %5055  ;;  %8632 = vmatpush3.bf16.msra.mxu1 %v9671_v33 }
 0x4d3   :  { %v5677_v15 = vsel %vm5189_vm3, %v13257_v5, %v5056_v43 }
 0x4d6   :  { %v5122_v37 = vpop.permute.xlu0 %5121 }
 0x4d7   :  { %v5713_v48 = vsel %vm5244_vm4, %v5677_v15, %v5122_v37 }
 0x4da   :  { %v5188_v45 = vpop.permute.xlu0 %5187 }
 0x4db   :  { %v5766_v34 = vsel %vm5281_vm5, %v5713_v48, %v5188_v45 }
 0x4dc   :  { %6376 = vmatprep.mubr.bf16.mxu1 %v5766_v34 }
 0x4dd   :  { %6377 = vmatmul.mubr.bf16.gmra.mrb[180].mxu1 %v5622_v0 }
 0x515   :  { %v6242_v4 = vpop.f32.mrb[112].mxu1 }
 0x516   :  { %v9237_v9 = vadd.f32 %v12448_v47, %v6242_v4  ;;  %v6244_v21 = vpop.f32.mrb[113].mxu1 }
 0x517   :  { %v6245_v39 = vpop.f32.mrb[114].mxu1 }
 0x518   :  { %v9238_v46 = vadd.f32 %v12448_v47, %v6245_v39  ;;  %v6247_v57 = vpop.f32.mrb[115].mxu1  ;;  %v6385_v25 = vmax.f32 %v9237_v9, 0.0 }
 0x51a   :  { %v6386_v23 = vmax.f32 %v9238_v46, 0.0 }
 0x51c   :  { %v6421_v10 = vpack.c.bf16 %v6386_v23, %v6385_v25 }
 0x51d   :  { %v6250_v13 = vpop.f32.mrb[116].mxu1 }
 0x51e   :  { %6439 = vst.msk [vmem:[#allocation3] sm:$0xff] %vm5244_vm4, %v6421_v10  ;;  %v9239_v6 = vadd.f32 %v12448_v47, %v6250_v13  ;;  %v6252_v16 = vpop.f32.mrb[117].mxu1 }
 0x51f   :  { %v6253_v40 = vpop.f32.mrb[118].mxu1 }
 0x520   :  { %v9240_v17 = vadd.f32 %v12448_v47, %v6253_v40  ;;  %v6255_v53 = vpop.f32.mrb[119].mxu1  ;;  %v6387_v20 = vmax.f32 %v9239_v6, 0.0 }
 0x522   :  { %v6388_v19 = vmax.f32 %v9240_v17, 0.0 }
 0x524   :  { %v6422_v27 = vpack.c.bf16 %v6388_v19, %v6387_v20 }
 0x525   :  { %v6258_v29 = vpop.f32.mrb[120].mxu1  ;;  %v6465_v50 = vld [vmem:[#allocation3] sm:$0xf0] }
 0x526   :  { %6440 = vst.msk [vmem:[#allocation3 + $0x8] sm:$0xff] %vm5244_vm4, %v6422_v27  ;;  %v9241_v31 = vadd.f32 %v12448_v47, %v6258_v29  ;;  %v6260_v56 = vpop.f32.mrb[121].mxu1  ;;  %v6532_v51 = vrot.slane %v6465_v50, 4  ;;  %v9672_v27 = vld [vmem:[%s12894_s5 + $0xc0] sm:$0xff]  }
 0x527   :  { %v6261_v35 = vpop.f32.mrb[122].mxu1  ;;  %8681 = vmatprep.subr.bf16.mxu1 %v9672_v27 }
 0x528   :  { %v9242_v2 = vadd.f32 %v12448_v47, %v6261_v35  ;;  %v6263_v59 = vpop.f32.mrb[123].mxu1  ;;  %v6389_v36 = vmax.f32 %v9241_v31, 0.0 }
 0x52a   :  { %v6390_v22 = vmax.f32 %v9242_v2, 0.0 }
 0x52c   :  { %v6423_v63 = vpack.c.bf16 %v6390_v22, %v6389_v36 }
 0x52d   :  { %v6266_v41 = vpop.f32.mrb[124].mxu1  ;;  %v12464_v30 = vld [vmem:[#allocation3 + $0x8] sm:$0xff] }
 0x52e   :  { %6441 = vst.msk [vmem:[#allocation3 + $0x10] sm:$0xff] %vm5244_vm4, %v6423_v63  ;;  %v9243_v28 = vadd.f32 %v12448_v47, %v6266_v41  ;;  %v6268_v1 = vpop.f32.mrb[125].mxu1  ;;  %v6533_v18 = vrot.slane %v12464_v30, 4 }
 0x52f   :  { %v6269_v7 = vpop.f32.mrb[126].mxu1 }
 0x530   :  { %v9244_v43 = vadd.f32 %v12448_v47, %v6269_v7  ;;  %v6271_v49 = vpop.f32.mrb[127].mxu1  ;;  %v6534_v37 = vsel %vm6531_vm6, %v6532_v51, %v6533_v18  ;;  %v6391_v14 = vmax.f32 %v9243_v28, 0.0 }
 0x531   :  { %6552 = vrot.lane.b32.xlu1 %v6534_v37, %s9761_s26 }
 0x532   :  { %v6392_v44 = vmax.f32 %v9244_v43, 0.0 }
 0x534   :  { %v6424_v5 = vpack.c.bf16 %v6392_v44, %v6391_v14 }
 0x535   :  { %v6274_v15 = vpop.f32.mrb[128].mxu1  ;;  %v6466_v8 = vld [vmem:[#allocation3 + $0x10] sm:$0xf] }
 0x536   :  { %6442 = vst.msk [vmem:[#allocation3 + $0x18] sm:$0xff] %vm5244_vm4, %v6424_v5  ;;  %v9245_v60 = vadd.f32 %v12448_v47, %v6274_v15  ;;  %v6276_v62 = vpop.f32.mrb[129].mxu1  ;;  %v6535_v54 = vrot.slane %v6466_v8, 4 }
 0x537   :  { %v6277_v48 = vpop.f32.mrb[130].mxu1 }
 0x538   :  { %v9246_v45 = vadd.f32 %v12448_v47, %v6277_v48  ;;  %v6279_v52 = vpop.f32.mrb[131].mxu1  ;;  %v6536_v34 = vsel %vm6531_vm6, %v6533_v18, %v6535_v54  ;;  %v6393_v0 = vmax.f32 %v9245_v60, 0.0 }
 0x539   :  { %6554 = vrot.lane.b32.xlu1 %v6536_v34, %s9761_s26 }
 0x53a   :  { %v6394_v24 = vmax.f32 %v9246_v45, 0.0 }
 0x53c   :  { %v6425_v12 = vpack.c.bf16 %v6394_v24, %v6393_v0 }
 0x53d   :  { %v6282_v58 = vpop.f32.mrb[132].mxu1  ;;  %v12489_v38 = vld [vmem:[#allocation3 + $0x18] sm:$0xff] }
 0x53e   :  { %6443 = vst.msk [vmem:[#allocation3 + $0x20] sm:$0xff] %vm5244_vm4, %v6425_v12  ;;  %v9247_v26 = vadd.f32 %v12448_v47, %v6282_v58  ;;  %v6284_v42 = vpop.f32.mrb[133].mxu1  ;;  %6576 = vrot.lane.b32.xlu0 %v12489_v38, %s9761_s26  ;;  %v6467_v46 = vld [vmem:[#allocation3 + $0x18] sm:$0xf0] }
 0x53f   :  { %v6285_v4 = vpop.f32.mrb[134].mxu1  ;;  %v6537_v6 = vrot.slane %v6467_v46, 4 }
 0x540   :  { %v9248_v55 = vadd.f32 %v12448_v47, %v6285_v4  ;;  %v6287_v9 = vpop.f32.mrb[135].mxu1  ;;  %v6395_v21 = vmax.f32 %v9247_v26, 0.0 }
 0x542   :  { %v6396_v39 = vmax.f32 %v9248_v55, 0.0 }
 0x544   :  { %v6426_v57 = vpack.c.bf16 %v6396_v39, %v6395_v21 }
 0x545   :  { %v6290_v25 = vpop.f32.mrb[136].mxu1  ;;  %v12496_v23 = vld [vmem:[#allocation3 + $0x20] sm:$0xff] }
 0x546   :  { %6444 = vst.msk [vmem:[#allocation3 + $0x28] sm:$0xff] %vm5244_vm4, %v6426_v57  ;;  %v9249_v3 = vadd.f32 %v12448_v47, %v6290_v25  ;;  %v6292_v10 = vpop.f32.mrb[137].mxu1  ;;  %v12501_v13 = vrot.slane %v12496_v23, 4  ;;  %6578 = vrot.lane.b32.xlu0 %v12496_v23, %s9761_s26 }
 0x547   :  { %v6293_v16 = vpop.f32.mrb[138].mxu1 }
 0x548   :  { %v9250_v40 = vadd.f32 %v12448_v47, %v6293_v16  ;;  %v6295_v17 = vpop.f32.mrb[139].mxu1  ;;  %v6539_v53 = vsel %vm6531_vm6, %v6537_v6, %v12501_v13  ;;  %v6397_v20 = vmax.f32 %v9249_v3, 0.0 }
 0x549   :  { %6556 = vrot.lane.b32.xlu1 %v6539_v53, %s9761_s26 }
 0x54a   :  { %v6398_v19 = vmax.f32 %v9250_v40, 0.0 }
 0x54c   :  { %v6427_v29 = vpack.c.bf16 %v6398_v19, %v6397_v20 }
 0x54d   :  { %v6298_v31 = vpop.f32.mrb[140].mxu1  ;;  %v6468_v56 = vld [vmem:[#allocation3 + $0x28] sm:$0xf] }
 0x54e   :  { %6445 = vst.msk [vmem:[#allocation3 + $0x30] sm:$0xff] %vm5244_vm4, %v6427_v29  ;;  %v9251_v35 = vadd.f32 %v12448_v47, %v6298_v31  ;;  %v6300_v2 = vpop.f32.mrb[141].mxu1  ;;  %v6540_v59 = vrot.slane %v6468_v56, 4 }
 0x54f   :  { %v6301_v36 = vpop.f32.mrb[142].mxu1 }
 0x550   :  { %v9252_v22 = vadd.f32 %v12448_v47, %v6301_v36  ;;  %v6303_v50 = vpop.f32.mrb[143].mxu1  ;;  %v6541_v63 = vsel %vm6531_vm6, %v12501_v13, %v6540_v59  ;;  %v6399_v41 = vmax.f32 %v9251_v35, 0.0 }
 0x551   :  { %6558 = vrot.lane.b32.xlu1 %v6541_v63, %s9761_s26 }
 0x552   :  { %v6400_v32 = vmax.f32 %v9252_v22, 0.0 }
 0x554   :  { %v6428_v11 = vpack.c.bf16 %v6400_v32, %v6399_v41 }
 0x555   :  { %v6306_v28 = vpop.f32.mrb[144].mxu1  ;;  %v12518_v1 = vld [vmem:[#allocation3 + $0x30] sm:$0xff] }
 0x556   :  { %6446 = vst.msk [vmem:[#allocation3 + $0x38] sm:$0xff] %vm5244_vm4, %v6428_v11  ;;  %v9253_v51 = vadd.f32 %v12448_v47, %v6306_v28  ;;  %v6308_v18 = vpop.f32.mrb[145].mxu1  ;;  %6580 = vrot.lane.b32.xlu0 %v12518_v1, %s9761_s26  ;;  %v6469_v14 = vld [vmem:[#allocation3 + $0x30] sm:$0xf0] }
 0x557   :  { %v6309_v61 = vpop.f32.mrb[146].mxu1  ;;  %v6542_v62 = vrot.slane %v6469_v14, 4 }
 0x558   :  { %v9254_v7 = vadd.f32 %v12448_v47, %v6309_v61  ;;  %v6311_v43 = vpop.f32.mrb[147].mxu1  ;;  %v6401_v49 = vmax.f32 %v9253_v51, 0.0 }
 0x55a   :  { %v6402_v37 = vmax.f32 %v9254_v7, 0.0 }
 0x55c   :  { %v6429_v44 = vpack.c.bf16 %v6402_v37, %v6401_v49 }
 0x55d   :  { %v6314_v33 = vpop.f32.mrb[148].mxu1  ;;  %v12525_v5 = vld [vmem:[#allocation3 + $0x38] sm:$0xff] }
 0x55e   :  { %6447 = vst.msk [vmem:[#allocation3 + $0x40] sm:$0xff] %vm5244_vm4, %v6429_v44  ;;  %v9255_v15 = vadd.f32 %v12448_v47, %v6314_v33  ;;  %v6316_v8 = vpop.f32.mrb[149].mxu1  ;;  %v12530_v60 = vrot.slane %v12525_v5, 4  ;;  %6582 = vrot.lane.b32.xlu0 %v12525_v5, %s9761_s26 }
 0x55f   :  { %v6317_v54 = vpop.f32.mrb[150].mxu1 }
 0x560   :  { %v9256_v48 = vadd.f32 %v12448_v47, %v6317_v54  ;;  %v6319_v45 = vpop.f32.mrb[151].mxu1  ;;  %v6544_v52 = vsel %vm6531_vm6, %v6542_v62, %v12530_v60  ;;  %v6403_v34 = vmax.f32 %v9255_v15, 0.0 }
 0x561   :  { %6560 = vrot.lane.b32.xlu1 %v6544_v52, %s9761_s26 }
 0x562   :  { %v6404_v0 = vmax.f32 %v9256_v48, 0.0 }
 0x564   :  { %v6430_v24 = vpack.c.bf16 %v6404_v0, %v6403_v34 }
 0x565   :  { %v6322_v12 = vpop.f32.mrb[152].mxu1  ;;  %v6470_v58 = vld [vmem:[#allocation3 + $0x40] sm:$0xf] }
 0x566   :  { %6448 = vst.msk [vmem:[#allocation3 + $0x48] sm:$0xff] %vm5244_vm4, %v6430_v24  ;;  %v9257_v26 = vadd.f32 %v12448_v47, %v6322_v12  ;;  %v6324_v42 = vpop.f32.mrb[153].mxu1  ;;  %v6545_v4 = vrot.slane %v6470_v58, 4  ;;  %v6508_v18 = vld [vmem:[#allocation3 + $0x40] sm:$0xf] }
 0x567   :  { %v6325_v55 = vpop.f32.mrb[154].mxu1  ;;  %v6647_v49 = vrot.slane %v6508_v18, 4  ;;  %v12581_v12 = vld [vmem:[#allocation3 + $0x40] sm:$0xff] }
 0x568   :  { %v9258_v9 = vadd.f32 %v12448_v47, %v6325_v55  ;;  %v6327_v21 = vpop.f32.mrb[155].mxu1  ;;  %v6546_v39 = vsel %vm6531_vm6, %v12530_v60, %v6545_v4  ;;  %v6405_v46 = vmax.f32 %v9257_v26, 0.0 }
 0x569   :  { %6562 = vrot.lane.b32.xlu1 %v6546_v39, %s9761_s26  ;;  %v6648_v62 = vsel %vm6531_vm6, %v12530_v60, %v6647_v49 }
 0x56a   :  { %v6406_v57 = vmax.f32 %v9258_v9, 0.0  ;;  %v6507_v9 = vld [vmem:[#allocation3 + $0x30] sm:$0xf0] }
 0x56c   :  { %v6431_v25 = vpack.c.bf16 %v6406_v57, %v6405_v46  ;;  %v6644_v57 = vrot.slane %v6507_v9, 4  ;;  %v6486_v9 = vld [vmem:[#allocation3 + $0x18] sm:$0xf0] }
 0x56d   :  { %v6330_v3 = vpop.f32.mrb[156].mxu1  ;;  %v12544_v10 = vld [vmem:[#allocation3 + $0x48] sm:$0xff] }
 0x56e   :  { %6449 = vst.msk [vmem:[#allocation3 + $0x50] sm:$0xff] %vm5244_vm4, %v6431_v25  ;;  %v9259_v6 = vadd.f32 %v12448_v47, %v6330_v3  ;;  %v6332_v16 = vpop.f32.mrb[157].mxu1  ;;  %6584 = vrot.lane.b32.xlu0 %v12544_v10, %s9761_s26  ;;  %v6471_v27 = vld [vmem:[#allocation3 + $0x48] sm:$0xf0]  ;;  %v6646_v3 = vsel %vm6531_vm6, %v6644_v57, %v12530_v60 }
 0x56f   :  { %v6333_v40 = vpop.f32.mrb[158].mxu1  ;;  %v6547_v36 = vrot.slane %v6471_v27, 4  ;;  %v6509_v8 = vld [vmem:[#allocation3 + $0x48] sm:$0xf0] }
 0x570   :  { %v9260_v17 = vadd.f32 %v12448_v47, %v6333_v40  ;;  %v6335_v53 = vpop.f32.mrb[159].mxu1  ;;  %v6407_v20 = vmax.f32 %v9259_v6, 0.0  ;;  %v6649_v52 = vrot.slane %v6509_v8, 4  ;;  %v12595_v40 = vld [vmem:[#allocation3 + $0x28] sm:$0xff] }
 0x572   :  { %v6408_v19 = vmax.f32 %v9260_v17, 0.0 }
 0x574   :  { %v6432_v29 = vpack.c.bf16 %v6408_v19, %v6407_v20 }
 0x575   :  { %v6338_v31 = vpop.f32.mrb[160].mxu1  ;;  %v12551_v56 = vld [vmem:[#allocation3 + $0x50] sm:$0xff] }
 0x576   :  { %6450 = vst.msk [vmem:[#allocation3 + $0x58] sm:$0xff] %vm5244_vm4, %v6432_v29  ;;  %v9261_v35 = vadd.f32 %v12448_v47, %v6338_v31  ;;  %v6340_v2 = vpop.f32.mrb[161].mxu1  ;;  %v12556_v59 = vrot.slane %v12551_v56, 4  ;;  %6586 = vrot.lane.b32.xlu0 %v12551_v56, %s9761_s26 }
 0x577   :  { %v6341_v22 = vpop.f32.mrb[162].mxu1 }
 0x578   :  { %v9262_v50 = vadd.f32 %v12448_v47, %v6341_v22  ;;  %v6343_v63 = vpop.f32.mrb[163].mxu1  ;;  %v6549_v41 = vsel %vm6531_vm6, %v6547_v36, %v12556_v59  ;;  %v6409_v32 = vmax.f32 %v9261_v35, 0.0  ;;  %v6651_v0 = vsel %vm6531_vm6, %v6649_v52, %v12556_v59 }
 0x579   :  { %6564 = vrot.lane.b32.xlu1 %v6549_v41, %s9761_s26 }
 0x57a   :  { %v6410_v11 = vmax.f32 %v9262_v50, 0.0 }
 0x57c   :  { %v6433_v28 = vpack.c.bf16 %v6410_v11, %v6409_v32 }
 0x57d   :  { %v6472_v51 = vld [vmem:[#allocation3 + $0x58] sm:$0xf] }
 0x57e   :  { %6451 = vst.msk [vmem:[#allocation3 + $0x60] sm:$0xff] %vm5244_vm4, %v6433_v28  ;;  %v6550_v61 = vrot.slane %v6472_v51, 4  ;;  %v6510_v6 = vld [vmem:[#allocation3 + $0x58] sm:$0xf] }
 0x57f   :  { %v6652_v17 = vrot.slane %v6510_v6, 4  ;;  %v12614_v18 = vld [vmem:[#allocation3 + $0x58] sm:$0xff] }
 0x580   :  { %v6346_v7 = vpop.f32.mrb[164].mxu1  ;;  %v6551_v43 = vsel %vm6531_vm6, %v12556_v59, %v6550_v61 }
 0x581   :  { %v9263_v37 = vadd.f32 %v12448_v47, %v6346_v7  ;;  %v6348_v14 = vpop.f32.mrb[165].mxu1  ;;  %6566 = vrot.lane.b32.xlu1 %v6551_v43, %s9761_s26  ;;  %v6653_v2 = vsel %vm6531_vm6, %v12556_v59, %v6652_v17 }
 0x582   :  { %v6349_v44 = vpop.f32.mrb[166].mxu1 }
 0x583   :  { %v9264_v33 = vadd.f32 %v12448_v47, %v6349_v44  ;;  %v6351_v15 = vpop.f32.mrb[167].mxu1  ;;  %v6411_v54 = vmax.f32 %v9263_v37, 0.0 }
 0x585   :  { %v6412_v48 = vmax.f32 %v9264_v33, 0.0  ;;  %6666 = vrot.lane.b32.xlu1 %v6648_v62, %s9761_s26  ;;  %v12573_v45 = vld [vmem:[#allocation3 + $0x60] sm:$0xff] }
 0x586   :  { %6588 = vrot.lane.b32.xlu0 %v12573_v45, %s9761_s26  ;;  %v6511_v31 = vld [vmem:[#allocation3 + $0x60] sm:$0xf0] }
 0x587   :  { %v6434_v34 = vpack.c.bf16 %v6412_v48, %v6411_v54  ;;  %v6654_v41 = vrot.slane %v6511_v31, 4  ;;  %v9673_v54 = vld [vmem:[%s12894_s5 + $0x80] sm:$0xff]   ;;  %v9677_v31 = vld [vmem:[%s12894_s5 + $0x90] sm:$0xff]  }
 0x588   :  { %v6457_v48 = vld [vmem:[#allocation3] sm:$0xff] }
 0x589   :  { %6452 = vst.msk [vmem:[#allocation3 + $0x68] sm:$0xff] %vm5244_vm4, %v6434_v34  ;;  %6668 = vrot.lane.b32.xlu1 %v6651_v0, %s9761_s26 }
 0x58c   :  { %v6354_v24 = vpop.f32.mrb[168].mxu1 }
 0x58d   :  { %v9265_v58 = vadd.f32 %v12448_v47, %v6354_v24  ;;  %v6356_v26 = vpop.f32.mrb[169].mxu1  ;;  %6626 = vrot.lane.b32.xlu1 %v12581_v12, %s9761_s26  ;;  %v9674_v24 = vld [vmem:[%s12894_s5 + $0xc8] sm:$0xff]  }
 0x58e   :  { %v6357_v42 = vpop.f32.mrb[170].mxu1 }
 0x58f   :  { %v9266_v4 = vadd.f32 %v12448_v47, %v6357_v42  ;;  %v6359_v55 = vpop.f32.mrb[171].mxu1  ;;  %v6413_v39 = vmax.f32 %v9265_v58, 0.0 }
 0x590   :  { %v12587_v21 = vld [vmem:[#allocation3 + $0x68] sm:$0xff] }
 0x591   :  { %v6414_v46 = vmax.f32 %v9266_v4, 0.0  ;;  %6590 = vrot.lane.b32.xlu0 %v12587_v21, %s9761_s26  ;;  %v12602_v35 = vrot.slane %v12587_v21, 4 }
 0x593   :  { %v6435_v25 = vpack.c.bf16 %v6414_v46, %v6413_v39  ;;  %v6656_v28 = vsel %vm6531_vm6, %v6654_v41, %v12602_v35  ;;  %v9675_v46 = vld [vmem:[%s12894_s5 + $0x88] sm:$0xff]   ;;  %v9679_v41 = vld [vmem:[%s12894_s5 + $0x98] sm:$0xff]  }
 0x595   :  { %6453 = vst.msk [vmem:[#allocation3 + $0x70] sm:$0xff] %vm5244_vm4, %v6435_v25  ;;  %6664 = vrot.lane.b32.xlu0 %v6646_v3, %s9761_s26 }
 0x598   :  { %v6362_v16 = vpop.f32.mrb[172].mxu1 }
 0x599   :  { %v9267_v53 = vadd.f32 %v12448_v47, %v6362_v16  ;;  %v6364_v20 = vpop.f32.mrb[173].mxu1  ;;  %6624 = vrot.lane.b32.xlu0 %v12595_v40, %s9761_s26  ;;  %v6600_v16 = vrot.slane %v6486_v9, 4  ;;  %v6490_v9 = vld [vmem:[#allocation3 + $0x48] sm:$0xf0] }
 0x59a   :  { %v6365_v19 = vpop.f32.mrb[174].mxu1 }
 0x59b   :  { %v9268_v27 = vadd.f32 %v12448_v47, %v6365_v19  ;;  %v6367_v29 = vpop.f32.mrb[175].mxu1  ;;  %v6415_v22 = vmax.f32 %v9267_v53, 0.0  ;;  %v6602_v19 = vsel %vm6531_vm6, %v6600_v16, %v12501_v13 }
 0x59c   :  { %v6512_v36 = vld [vmem:[#allocation3 + $0x70] sm:$0xf] }
 0x59d   :  { %v6416_v50 = vmax.f32 %v9268_v27, 0.0  ;;  %6670 = vrot.lane.b32.xlu0 %v6653_v2, %s9761_s26  ;;  %v6657_v63 = vrot.slane %v6512_v36, 4  ;;  %v6473_v29 = vld [vmem:[#allocation3 + $0x10] sm:$0xff] }
 0x59f   :  { %v6436_v32 = vpack.c.bf16 %v6416_v50, %v6415_v22  ;;  %v6658_v11 = vsel %vm6531_vm6, %v12602_v35, %v6657_v63  ;;  %v9678_v22 = vld [vmem:[%s12894_s5 + $0xd8] sm:$0xff]  }
 0x5a0   :  { %6674 = vrot.lane.b32.xlu1 %v6658_v11, %s9761_s26  ;;  %v12658_v63 = vld [vmem:[#allocation3 + $0x70] sm:$0xff] }
 0x5a1   :  { %6454 = vst.msk [vmem:[#allocation3 + $0x78] sm:$0xff] %vm5244_vm4, %v6436_v32  ;;  %6672 = vrot.lane.b32.xlu0 %v6656_v28, %s9761_s26  ;;  %v9680_v32 = vld [vmem:[%s12894_s5 + $0xe0] sm:$0xff]  }
 0x5a3   :  { %v6553_v15 = vpop.permute.xlu1 %6552 }
 0x5a4   :  { %v6370_v51 = vpop.f32.mrb[176].mxu1  ;;  %v6682_v58 = vsel %vm5244_vm4, %v6457_v48, %v6553_v15 }
 0x5a5   :  { %v9269_v61 = vadd.f32 %v12448_v47, %v6370_v51  ;;  %v6372_v7 = vpop.f32.mrb[177].mxu1  ;;  %6628 = vrot.lane.b32.xlu0 %v12614_v18, %s9761_s26  ;;  %v9682_v51 = vld [vmem:[%s12894_s5 + $0xe8] sm:$0xff]  }
 0x5a6   :  { %v6373_v43 = vpop.f32.mrb[178].mxu1  ;;  %v9683_v7 = vld [vmem:[%s12894_s5 + $0xa8] sm:$0xff]  }
 0x5a7   :  { %v9270_v49 = vadd.f32 %v12448_v47, %v6373_v43  ;;  %v6375_v37 = vpop.f32.mrb[179].mxu1  ;;  %v6417_v14 = vmax.f32 %v9269_v61, 0.0  ;;  %v9684_v43 = vld [vmem:[%s12894_s5 + $0xf0] sm:$0xff]  }
 0x5a8   :  { %v6513_v42 = vld [vmem:[#allocation3 + $0x78] sm:$0xf0] }
 0x5a9   :  { %v6418_v44 = vmax.f32 %v9270_v49, 0.0  ;;  %v6659_v3 = vrot.slane %v6513_v42, 4 }
 0x5ab   :  { %v6437_v33 = vpack.c.bf16 %v6418_v44, %v6417_v14  ;;  %v6555_v17 = vpop.permute.xlu1 %6554  ;;  %v9685_v14 = vld [vmem:[%s12894_s5 + $0xb0] sm:$0xff]  }
 0x5ac   :  { %v6686_v50 = vsel %vm5244_vm4, %v12464_v30, %v6555_v17 }
 0x5ad   :  { %6455 = vst.msk [vmem:[#allocation3 + $0x80] sm:$0xff] %vm5244_vm4, %v6437_v33  ;;  %v9686_v33 = vld [vmem:[%s12894_s5 + $0xf8] sm:$0xff]  }
 0x5b0   :  { %v6378_v8 = vpop.f32.mrb[180].mxu1  ;;  %v6577_v62 = vpop.permute.xlu0 %6576 }
 0x5b1   :  { %v9271_v52 = vadd.f32 %v12448_v47, %v6378_v8  ;;  %v6380_v34 = vpop.f32.mrb[181].mxu1  ;;  %v6713_v0 = vsel %vm5244_vm4, %v12464_v30, %v6577_v62  ;;  %v9681_v30 = vld [vmem:[%s12894_s5 + $0xa0] sm:$0xff]   ;;  %v6488_v8 = vld [vmem:[#allocation3 + $0x30] sm:$0xf0] }
 0x5b2   :  { %v6381_v26 = vpop.f32.mrb[182].mxu1  ;;  %7147 = vmatprep.mubr.bf16.mxu1 %v6713_v0  ;;  %v9687_v62 = vld [vmem:[%s12894_s5 + $0xb8] sm:$0xff]   ;;  %v6605_v48 = vrot.slane %v6488_v8, 4 }
 0x5b3   :  { %v9272_v4 = vadd.f32 %v12448_v47, %v6381_v26  ;;  %v6383_v55 = vpop.f32.mrb[183].mxu1  ;;  %7148 = vmatmul.mubr.bf16.vlgmr.msra.gmra.mrb[184].mxu1 %v6682_v58  ;;  %v6419_v57 = vmax.f32 %v9271_v52, 0.0  ;;  %v9676_v47 = vld [vmem:[%s12894_s5 + $0xd0] sm:$0xff]  }
 0x5b4   :  { %v12632_v39 = vld [vmem:[#allocation3 + $0x80] sm:$0xff]  ;;  %8682 = vmatpush3.bf16.msra.mxu1 %v9673_v54  ;;  %v6607_v0 = vsel %vm6531_vm6, %v6605_v48, %v12530_v60 }
 0x5b5   :  { %v6420_v25 = vmax.f32 %v9272_v4, 0.0  ;;  %v6660_v6 = vrot.slane %v12632_v39, 4  ;;  %8683 = vmatprep.subr.bf16.mxu1 %v9674_v24  ;;  %v9688_v54 = vld [vmem:[%s12894_s5 + $0x100] sm:$0xff]  }
 0x5b7   :  { %v6438_v53 = vpack.c.bf16 %v6420_v25, %v6419_v57  ;;  %v6661_v20 = vsel %vm6531_vm6, %v6659_v3, %v6660_v6 }
 0x5b8   :  { %v6579_v27 = vpop.permute.xlu0 %6578  ;;  %6676 = vrot.lane.b32.xlu1 %v6661_v20, %s9761_s26  ;;  %8684 = vmatpush3.bf16.msra.mxu1 %v9675_v46 }
 0x5b9   :  { %6456 = vst.msk [vmem:[#allocation3 + $0x88] sm:$0xff] %vm5244_vm4, %v6438_v53  ;;  %v12650_v2 = vsel %vm5244_vm4, %v6602_v19, %v6579_v27  ;;  %v6717_v36 = vsel %vm5244_vm4, %v6473_v29, %v6579_v27  ;;  %8685 = vmatprep.subr.bf16.mxu1 %v9676_v47 }
 0x5ba   :  { %7155 = vmatprep.mubr.bf16.mxu1 %v6717_v36 }
 0x5bb   :  { %7156 = vmatmul.mubr.bf16.gmra.mrb[188].mxu1 %v6686_v50  ;;  %v6557_v49 = vpop.permute.xlu1 %6556  ;;  %v9689_v50 = vld [vmem:[%s12894_s5 + $0x108] sm:$0xff]  }
 0x5bc   :  { %6630 = vrot.lane.b32.xlu1 %v12658_v63, %s9761_s26  ;;  %8686 = vmatpush3.bf16.msra.mxu1 %v9677_v31  ;;  %v6690_v15 = vsel %vm5244_vm4, %v12489_v38, %v6557_v49  ;;  %v6489_v49 = vld [vmem:[#allocation3 + $0x40] sm:$0xf] }
 0x5bd   :  { %8687 = vmatprep.subr.bf16.mxu1 %v9678_v22 }
 0x5c0   :  { %v6514_v11 = vld [vmem:[#allocation3 + $0x88] sm:$0xf]  ;;  %8688 = vmatpush3.bf16.msra.mxu1 %v9679_v41 }
 0x5c1   :  { %v6662_v28 = vrot.slane %v6514_v11, 4  ;;  %8689 = vmatprep.subr.bf16.mxu1 %v9680_v32  ;;  %v6487_v41 = vld [vmem:[#allocation3 + $0x28] sm:$0xf] }
 0x5c2   :  { %v6603_v11 = vrot.slane %v6487_v41, 4 }
 0x5c3   :  { %v6663_v61 = vsel %vm6531_vm6, %v6660_v6, %v6662_v28  ;;  %v6559_v52 = vpop.permute.xlu1 %6558 }
 0x5c4   :  { %6678 = vrot.lane.b32.xlu0 %v6663_v61, %s9761_s26  ;;  %8690 = vmatpush3.bf16.msra.mxu1 %v9681_v30  ;;  %v6694_v58 = vsel %vm5244_vm4, %v12496_v23, %v6559_v52 }
 0x5c5   :  { %8691 = vmatprep.subr.bf16.mxu1 %v9682_v51  ;;  %v6604_v51 = vsel %vm6531_vm6, %v12501_v13, %v6603_v11 }
 0x5c8   :  { %v6581_v37 = vpop.permute.xlu0 %6580  ;;  %8692 = vmatpush3.bf16.msra.mxu1 %v9683_v7 }
 0x5c9   :  { %v6720_v44 = vsel %vm5244_vm4, %v12496_v23, %v6581_v37  ;;  %8693 = vmatprep.subr.bf16.mxu1 %v9684_v43  ;;  %v6608_v37 = vrot.slane %v6489_v49, 4 }
 0x5ca   :  { %7163 = vmatprep.mubr.bf16.mxu1 %v6720_v44 }
 0x5cb   :  { %7164 = vmatmul.mubr.bf16.gmra.mrb[192].mxu1 %v6690_v15 }
 0x5cc   :  { %8694 = vmatpush3.bf16.msra.mxu1 %v9685_v14 }
 0x5cd   :  { %8695 = vmatprep.subr.bf16.mxu1 %v9686_v33  ;;  %v6609_v33 = vsel %vm6531_vm6, %v12530_v60, %v6608_v37 }
 0x5d0   :  { %v6583_v34 = vpop.permute.xlu0 %6582  ;;  %8696 = vmatpush3.bf16.msra.mxu1 %v9687_v62  ;;  %v6491_v62 = vld [vmem:[#allocation3 + $0x58] sm:$0xf] }
 0x5d1   :  { %v6724_v38 = vsel %vm5244_vm4, %v12595_v40, %v6583_v34  ;;  %9211 = vmatprep.subr.bf16.mxu1 %v9688_v54  ;;  %v6748_v24 = vsel %vm5244_vm4, %v6607_v0, %v6583_v34  ;;  %v6610_v40 = vrot.slane %v6490_v9, 4  ;;  %v6613_v48 = vrot.slane %v6491_v62, 4 }
 0x5d2   :  { %7171 = vmatprep.mubr.bf16.mxu1 %v6724_v38  ;;  %v6505_v38 = vld [vmem:[#allocation3 + $0x78] sm:$0xff] }
 0x5d3   :  { %7172 = vmatmul.mubr.bf16.gmra.mrb[196].mxu1 %v6694_v58  ;;  %v6561_v26 = vpop.permute.xlu1 %6560  ;;  %v6612_v25 = vsel %vm6531_vm6, %v6610_v40, %v12556_v59  ;;  %v6614_v60 = vsel %vm6531_vm6, %v12556_v59, %v6613_v48 }
 0x5d4   :  { %v6698_v55 = vsel %vm5244_vm4, %v12518_v1, %v6561_v26 }
 0x5db   :  { %v6563_v46 = vpop.permute.xlu1 %6562 }
 0x5dc   :  { %v6702_v6 = vsel %vm5244_vm4, %v12525_v5, %v6563_v46 }
 0x5e0   :  { %v6585_v42 = vpop.permute.xlu0 %6584 }
 0x5e1   :  { %v6727_v4 = vsel %vm5244_vm4, %v12525_v5, %v6585_v42 }
 0x5e2   :  { %7179 = vmatprep.mubr.bf16.mxu1 %v6727_v4 }
 0x5e3   :  { %7180 = vmatmul.mubr.bf16.gmra.mrb[200].mxu1 %v6698_v55  ;;  %v6493_v55 = vld [vmem:[#allocation3 + $0x70] sm:$0xf] }
 0x5e4   :  { %v6618_v9 = vrot.slane %v6493_v55, 4 }
 0x5e6   :  { %v6619_v46 = vsel %vm6531_vm6, %v12602_v35, %v6618_v9 }
 0x5e8   :  { %v6587_v57 = vpop.permute.xlu0 %6586 }
 0x5e9   :  { %v6731_v23 = vsel %vm5244_vm4, %v12581_v12, %v6587_v57  ;;  %v6755_v3 = vsel %vm5244_vm4, %v6612_v25, %v6587_v57 }
 0x5ea   :  { %7187 = vmatprep.mubr.bf16.mxu1 %v6731_v23 }
 0x5eb   :  { %7188 = vmatmul.mubr.bf16.gmra.mrb[204].mxu1 %v6702_v6  ;;  %v6565_v47 = vpop.permute.xlu1 %6564 }
 0x5ec   :  { %v6706_v53 = vsel %vm5244_vm4, %v12544_v10, %v6565_v47 }
 0x5f3   :  { %v6567_v20 = vpop.permute.xlu1 %6566 }
 0x5f4   :  { %v6710_v29 = vsel %vm5244_vm4, %v12551_v56, %v6567_v20 }
 0x5f7   :  { %v6667_v22 = vpop.permute.xlu1 %6666 }
 0x5f8   :  { %v6589_v16 = vpop.permute.xlu0 %6588  ;;  %v6774_v32 = vsel %vm5244_vm4, %v12525_v5, %v6667_v22 }
 0x5f9   :  { %v6734_v17 = vsel %vm5244_vm4, %v12551_v56, %v6589_v16 }
 0x5fa   :  { %7195 = vmatprep.mubr.bf16.mxu1 %v6734_v17 }
 0x5fb   :  { %7196 = vmatmul.mubr.bf16.gmra.mrb[208].mxu1 %v6706_v53  ;;  %v6669_v28 = vpop.permute.xlu1 %6668 }
 0x5fc   :  { %v6778_v7 = vsel %vm5244_vm4, %v12544_v10, %v6669_v28 }
 0x5ff   :  { %v6627_v14 = vpop.permute.xlu1 %6626 }
 0x600   :  { %v6752_v15 = vsel %vm5244_vm4, %v6609_v33, %v6627_v14 }
 0x603   :  { %v12720_v19 = vpop.permute.xlu0 %6590 }
 0x604   :  { %v6738_v27 = vsel %vm5244_vm4, %v12614_v18, %v12720_v19 }
 0x605   :  { %7203 = vmatprep.mubr.bf16.mxu1 %v6738_v27 }
 0x606   :  { %7204 = vmatmul.mubr.bf16.gmra.mrb[212].mxu1 %v6710_v29 }
 0x607   :  { %v6665_v31 = vpop.permute.xlu0 %6664 }
 0x608   :  { %v6770_v36 = vsel %vm5244_vm4, %v12518_v1, %v6665_v31  ;;  %v9690_v1 = vld [vmem:[%s12894_s5 + $0x110] sm:$0xff]  }
 0x609   :  { %7244 = vmatprep.mubr.bf16.mxu1 %v6770_v36 }
 0x60b   :  { %v6625_v30 = vpop.permute.xlu0 %6624 }
 0x60c   :  { %v6745_v61 = vsel %vm5244_vm4, %v6604_v51, %v6625_v30 }
 0x60e   :  { %7245 = vmatmul.mubr.bf16.vlgmr.msra.gmra.mrb[216].mxu1 %v12650_v2  ;;  %v9691_v2 = vld [vmem:[%s12894_s5 + $0x118] sm:$0xff]  }
 0x60f   :  { %9212 = vmatpush3.bf16.msra.mxu1 %v9688_v54  ;;  %7252 = vmatprep.mubr.bf16.mxu1 %v6774_v32  ;;  %v6671_v43 = vpop.permute.xlu0 %6670 }
 0x610   :  { %9213 = vmatprep.subr.bf16.mxu1 %v9689_v50  ;;  %v6782_v13 = vsel %vm5244_vm4, %v12551_v56, %v6671_v43 }
 0x612   :  { %v6675_v8 = vpop.permute.xlu1 %6674 }
 0x613   :  { %9214 = vmatpush3.bf16.msra.mxu1 %v9689_v50  ;;  %v6673_v44 = vpop.permute.xlu0 %6672  ;;  %v6790_v54 = vsel %vm5244_vm4, %v12587_v21, %v6675_v8 }
 0x614   :  { %9215 = vmatprep.subr.bf16.mxu1 %v9690_v1  ;;  %v6786_v10 = vsel %vm5244_vm4, %v12573_v45, %v6673_v44 }
 0x616   :  { %7253 = vmatmul.mubr.bf16.gmra.mrb[220].mxu1 %v6745_v61 }
 0x617   :  { %7260 = vmatprep.mubr.bf16.mxu1 %v6778_v7  ;;  %9216 = vmatpush3.bf16.msra.mxu1 %v9690_v1  ;;  %v6629_v52 = vpop.permute.xlu0 %6628 }
 0x618   :  { %9217 = vmatprep.subr.bf16.mxu1 %v9691_v2  ;;  %v6759_v0 = vsel %vm5244_vm4, %v6614_v60, %v6629_v52  ;;  %v12804_v60 = vld [vmem:[%s12896_s6] ss:$0 sm:$0xff] }
 0x61b   :  { %9218 = vmatpush3.bf16.msra.mxu1 %v9691_v2 }
 0x61e   :  { %7261 = vmatmul.mubr.bf16.gmra.mrb[224].mxu1 %v6748_v24  ;;  %v6492_v24 = vld [vmem:[#allocation3 + $0x60] sm:$0xf0] }
 0x61f   :  { %7268 = vmatprep.mubr.bf16.mxu1 %v6782_v13  ;;  %v6615_v58 = vrot.slane %v6492_v24, 4 }
 0x621   :  { %v6617_v42 = vsel %vm6531_vm6, %v6615_v58, %v12602_v35  ;;  %v6518_v35 = vld [vmem:[#allocation3 + $0x88] sm:$0xff] }
 0x622   :  { %v6762_v4 = vsel %vm5244_vm4, %v6617_v42, %v12720_v19 }
 0x626   :  { %7269 = vmatmul.mubr.bf16.gmra.mrb[228].mxu1 %v6752_v15 }
 0x627   :  { %7276 = vmatprep.mubr.bf16.mxu1 %v6786_v10 }
 0x62a   :  { %v6677_v34 = vpop.permute.xlu1 %6676 }
 0x62b   :  { %v6794_v45 = vsel %vm5244_vm4, %v6505_v38, %v6677_v34 }
 0x62e   :  { %7277 = vmatmul.mubr.bf16.gmra.mrb[232].mxu1 %v6755_v3  ;;  %v6631_v40 = vpop.permute.xlu1 %6630 }
 0x62f   :  { %7284 = vmatprep.mubr.bf16.mxu1 %v6790_v54  ;;  %v6766_v57 = vsel %vm5244_vm4, %v6619_v46, %v6631_v40 }
 0x636   :  { %7285 = vmatmul.mubr.bf16.gmra.mrb[236].mxu1 %v6759_v0  ;;  %v6679_v26 = vpop.permute.xlu0 %6678 }
 0x637   :  { %7292 = vmatprep.mubr.bf16.mxu1 %v6794_v45  ;;  %v6798_v59 = vsel %vm5244_vm4, %v12632_v39, %v6679_v26 }
 0x63e   :  { %7293 = vmatmul.mubr.bf16.gmra.mrb[240].mxu1 %v6762_v4 }
 0x63f   :  { %7300 = vmatprep.mubr.bf16.mxu1 %v6798_v59 }
 0x646   :  { %7301 = vmatmul.mubr.bf16.gmra.mrb[244].mxu1 %v6766_v57 }
 0x647   :  { %9219 = vmatprep.mubr.msk.bf16.mxu1 %vm5244_vm4, %v12525_v5 }
 0x64e   :  { %9220 = vmatmul.mubr.msk.bf16.vlgmr.msra.gmra.mrb[248].mxu1 %vm5244_vm4, %v12581_v12 }
 0x64f   :  { %9223 = vmatprep.mubr.msk.bf16.mxu1 %vm5244_vm4, %v12551_v56 }
 0x656   :  { %9224 = vmatmul.mubr.msk.bf16.gmra.mrb[252].mxu1 %vm5244_vm4, %v12614_v18 }
 0x657   :  { %9227 = vmatprep.mubr.msk.bf16.mxu1 %vm5244_vm4, %v12587_v21 }
 0x65e   :  { %9228 = vmatmul.mubr.msk.bf16.gmra.mrb[0].mxu1 %vm5244_vm4, %v12658_v63 }
 0x65f   :  { %9231 = vmatprep.mubr.msk.bf16.mxu1 %vm5244_vm4, %v12632_v39 }
 0x666   :  { %9232 = vmatmul.mubr.msk.bf16.gmra.mrb[4].mxu1 %vm5244_vm4, %v6518_v35 }
 0x686   :  { %v8633_v5 = vpop.f32.mrb[184].mxu1 }
 0x687   :  { %v8634_v12 = vpop.f32.mrb[185].mxu1 }
 0x688   :  { %v8635_v25 = vadd.f32 %v8634_v12, %v8633_v5  ;;  %v8636_v23 = vpop.f32.mrb[186].mxu1 }
 0x689   :  { %v8637_v56 = vpop.f32.mrb[187].mxu1 }
 0x68a   :  { %v8638_v3 = vadd.f32 %v8637_v56, %v8636_v23  ;;  %v7150_v45 = vadd.f32 %v8635_v25, %v12804_v60 }
 0x68c   :  { %v7153_v42 = vadd.f32 %v8638_v3, %v12804_v60 }
 0x68e   :  { %v8639_v6 = vpop.f32.mrb[188].mxu1 }
 0x68f   :  { %v8640_v18 = vpop.f32.mrb[189].mxu1 }
 0x690   :  { %v8641_v47 = vadd.f32 %v8640_v18, %v8639_v6  ;;  %v8642_v16 = vpop.f32.mrb[190].mxu1 }
 0x691   :  { %v8643_v21 = vpop.f32.mrb[191].mxu1 }
 0x692   :  { %v8644_v17 = vadd.f32 %v8643_v21, %v8642_v16  ;;  %v7158_v46 = vadd.f32 %v8641_v47, %v12804_v60 }
 0x694   :  { %v7161_v12 = vadd.f32 %v8644_v17, %v12804_v60 }
 0x69e   :  { %v8645_v53 = vpop.f32.mrb[192].mxu1 }
 0x69f   :  { %v8646_v63 = vpop.f32.mrb[193].mxu1 }
 0x6a0   :  { %v8647_v20 = vadd.f32 %v8646_v63, %v8645_v53  ;;  %v8648_v19 = vpop.f32.mrb[194].mxu1 }
 0x6a1   :  { %v8649_v39 = vpop.f32.mrb[195].mxu1 }
 0x6a2   :  { %v8650_v27 = vadd.f32 %v8649_v39, %v8648_v19  ;;  %v7166_v18 = vadd.f32 %v8647_v20, %v12804_v60 }
 0x6a4   :  { %v7169_v63 = vadd.f32 %v8650_v27, %v12804_v60 }
 0x6a6   :  { %v8651_v29 = vpop.f32.mrb[196].mxu1 }
 0x6a7   :  { %v8652_v31 = vpop.f32.mrb[197].mxu1 }
 0x6a8   :  { %v8653_v36 = vadd.f32 %v8652_v31, %v8651_v29  ;;  %v8654_v22 = vpop.f32.mrb[198].mxu1 }
 0x6a9   :  { %v8655_v50 = vpop.f32.mrb[199].mxu1 }
 0x6aa   :  { %v12783_v41 = vadd.f32 %v8655_v50, %v8654_v22  ;;  %v7174_v31 = vadd.f32 %v8653_v36, %v12804_v60 }
 0x6ac   :  { %v7177_v20 = vadd.f32 %v12783_v41, %v12804_v60 }
 0x6b6   :  { %v8657_v32 = vpop.f32.mrb[200].mxu1 }
 0x6b7   :  { %v8658_v11 = vpop.f32.mrb[201].mxu1 }
 0x6b8   :  { %v12785_v1 = vadd.f32 %v8658_v11, %v8657_v32  ;;  %v8660_v30 = vpop.f32.mrb[202].mxu1 }
 0x6b9   :  { %v8661_v28 = vpop.f32.mrb[203].mxu1 }
 0x6ba   :  { %v12787_v51 = vadd.f32 %v8661_v28, %v8660_v30 }
 0x6bc   :  { %v7185_v36 = vadd.f32 %v12787_v51, %v12804_v60 }
 0x6be   :  { %v8663_v2 = vpop.f32.mrb[204].mxu1 }
 0x6bf   :  { %v8664_v61 = vpop.f32.mrb[205].mxu1 }
 0x6c0   :  { %v12789_v7 = vadd.f32 %v8664_v61, %v8663_v2  ;;  %v8666_v43 = vpop.f32.mrb[206].mxu1  ;;  %v7182_v61 = vadd.f32 %v12785_v1, %v12804_v60 }
 0x6c1   :  { %v8667_v49 = vpop.f32.mrb[207].mxu1 }
 0x6c2   :  { %v12791_v13 = vadd.f32 %v8667_v49, %v8666_v43 }
 0x6c4   :  { %v7193_v1 = vadd.f32 %v12791_v13, %v12804_v60 }
 0x6ce   :  { %v8669_v37 = vpop.f32.mrb[208].mxu1 }
 0x6cf   :  { %v8670_v14 = vpop.f32.mrb[209].mxu1 }
 0x6d0   :  { %v12793_v44 = vadd.f32 %v8670_v14, %v8669_v37  ;;  %v8672_v33 = vpop.f32.mrb[210].mxu1 }
 0x6d1   :  { %v8673_v15 = vpop.f32.mrb[211].mxu1 }
 0x6d2   :  { %v12795_v10 = vadd.f32 %v8673_v15, %v8672_v33 }
 0x6d9   :  { %v8675_v8 = vpop.f32.mrb[212].mxu1 }
 0x6da   :  { %v8676_v62 = vpop.f32.mrb[213].mxu1 }
 0x6db   :  { %v12797_v54 = vadd.f32 %v8676_v62, %v8675_v8  ;;  %v8678_v48 = vpop.f32.mrb[214].mxu1  ;;  %v7190_v62 = vadd.f32 %v12789_v7, %v12804_v60  ;;  %v7201_v7 = vadd.f32 %v12795_v10, %v12804_v60 }
 0x6dc   :  { %v8679_v52 = vpop.f32.mrb[215].mxu1 }
 0x6dd   :  { %v12799_v34 = vadd.f32 %v8679_v52, %v8678_v48 }
 0x6e1   :  { %v8697_v0 = vpop.f32.mrb[216].mxu1 }
 0x6e2   :  { %v8698_v38 = vpop.f32.mrb[217].mxu1 }
 0x6e3   :  { %v8699_v24 = vadd.f32 %v8698_v38, %v8697_v0  ;;  %v8700_v58 = vpop.f32.mrb[218].mxu1 }
 0x6e4   :  { %v8701_v26 = vpop.f32.mrb[219].mxu1 }
 0x6e5   :  { %v8702_v4 = vadd.f32 %v8701_v26, %v8700_v58  ;;  %v12808_v55 = vadd.f32 %v8699_v24, %v7150_v45  ;;  %v7198_v26 = vadd.f32 %v12793_v44, %v12804_v60  ;;  %v7209_v44 = vadd.f32 %v12799_v34, %v12804_v60 }
 0x6e7   :  { %v12810_v59 = vadd.f32 %v8702_v4, %v7153_v42 }
 0x6e9   :  { %v8703_v9 = vpop.f32.mrb[220].mxu1 }
 0x6ea   :  { %v8704_v40 = vpop.f32.mrb[221].mxu1 }
 0x6eb   :  { %v8705_v57 = vadd.f32 %v8704_v40, %v8703_v9  ;;  %v8706_v35 = vpop.f32.mrb[222].mxu1 }
 0x6ec   :  { %v8707_v5 = vpop.f32.mrb[223].mxu1 }
 0x6ed   :  { %v8708_v25 = vadd.f32 %v8707_v5, %v8706_v35  ;;  %v12814_v23 = vadd.f32 %v8705_v57, %v7158_v46  ;;  %v7206_v5 = vadd.f32 %v12797_v54, %v12804_v60 }
 0x6ef   :  { %v12816_v56 = vadd.f32 %v8708_v25, %v7161_v12 }
 0x6f1   :  { %v8709_v3 = vpop.f32.mrb[224].mxu1 }
 0x6f2   :  { %v8710_v6 = vpop.f32.mrb[225].mxu1 }
 0x6f3   :  { %v8711_v16 = vadd.f32 %v8710_v6, %v8709_v3  ;;  %v8712_v21 = vpop.f32.mrb[226].mxu1 }
 0x6f4   :  { %v8713_v53 = vpop.f32.mrb[227].mxu1 }
 0x6f5   :  { %v8714_v47 = vadd.f32 %v8713_v53, %v8712_v21  ;;  %v12820_v19 = vadd.f32 %v8711_v16, %v7166_v18 }
 0x6f7   :  { %v12822_v39 = vadd.f32 %v8714_v47, %v7169_v63 }
 0x6f9   :  { %v8715_v17 = vpop.f32.mrb[228].mxu1 }
 0x6fa   :  { %v8716_v29 = vpop.f32.mrb[229].mxu1 }
 0x6fb   :  { %v8717_v22 = vadd.f32 %v8716_v29, %v8715_v17  ;;  %v8718_v50 = vpop.f32.mrb[230].mxu1 }
 0x6fc   :  { %v8719_v32 = vpop.f32.mrb[231].mxu1 }
 0x6fd   :  { %v8720_v11 = vadd.f32 %v8719_v32, %v8718_v50  ;;  %v7271_v30 = vadd.f32 %v8717_v22, %v7174_v31 }
 0x6ff   :  { %v12827_v28 = vadd.f32 %v8720_v11, %v7177_v20 }
 0x701   :  { %v8721_v27 = vpop.f32.mrb[232].mxu1 }
 0x702   :  { %v8722_v2 = vpop.f32.mrb[233].mxu1 }
 0x703   :  { %v8723_v43 = vadd.f32 %v8722_v2, %v8721_v27  ;;  %v8724_v49 = vpop.f32.mrb[234].mxu1 }
 0x704   :  { %v8725_v37 = vpop.f32.mrb[235].mxu1 }
 0x705   :  { %v8726_v14 = vadd.f32 %v8725_v37, %v8724_v49  ;;  %v12833_v33 = vadd.f32 %v8723_v43, %v7182_v61 }
 0x707   :  { %v12835_v15 = vadd.f32 %v8726_v14, %v7185_v36 }
 0x709   :  { %v8727_v41 = vpop.f32.mrb[236].mxu1 }
 0x70a   :  { %v8728_v8 = vpop.f32.mrb[237].mxu1 }
 0x70b   :  { %v8729_v48 = vadd.f32 %v8728_v8, %v8727_v41  ;;  %v8730_v52 = vpop.f32.mrb[238].mxu1 }
 0x70c   :  { %v8731_v0 = vpop.f32.mrb[239].mxu1 }
 0x70d   :  { %v8732_v38 = vadd.f32 %v8731_v0, %v8730_v52  ;;  %v7287_v45 = vadd.f32 %v8729_v48, %v7190_v62 }
 0x70f   :  { %v12841_v24 = vadd.f32 %v8732_v38, %v7193_v1 }
 0x711   :  { %v8733_v51 = vpop.f32.mrb[240].mxu1 }
 0x712   :  { %v8734_v58 = vpop.f32.mrb[241].mxu1 }
 0x713   :  { %v8735_v42 = vadd.f32 %v8734_v58, %v8733_v51  ;;  %v8736_v4 = vpop.f32.mrb[242].mxu1 }
 0x714   :  { %v8737_v9 = vpop.f32.mrb[243].mxu1 }
 0x715   :  { %v8738_v40 = vadd.f32 %v8737_v9, %v8736_v4  ;;  %v12847_v46 = vadd.f32 %v8735_v42, %v7198_v26 }
 0x717   :  { %v12849_v57 = vadd.f32 %v8738_v40, %v7201_v7 }
 0x719   :  { %v8739_v13 = vpop.f32.mrb[244].mxu1 }
 0x71a   :  { %v8740_v35 = vpop.f32.mrb[245].mxu1 }
 0x71b   :  { %v8741_v12 = vadd.f32 %v8740_v35, %v8739_v13  ;;  %v8742_v25 = vpop.f32.mrb[246].mxu1 }
 0x71c   :  { %v8743_v3 = vpop.f32.mrb[247].mxu1 }
 0x71d   :  { %v8744_v6 = vadd.f32 %v8743_v3, %v8742_v25  ;;  %v7303_v18 = vadd.f32 %v8741_v12, %v7206_v5 }
 0x71f   :  { %v12855_v16 = vadd.f32 %v8744_v6, %v7209_v44 }
 0x721   :  { %v9221_v10 = vpop.f32.mrb[248].mxu1 }
 0x722   :  { %v7352_v21 = vadd.f32 %v9221_v10, %v12814_v23  ;;  %v7343_v53 = vpop.f32.mrb[249].mxu1 }
 0x723   :  { %v7344_v63 = vadd.f32 %v7343_v53, %v12808_v55  ;;  %v9222_v47 = vpop.f32.mrb[250].mxu1 }
 0x724   :  { %v7355_v17 = vadd.f32 %v9222_v47, %v12816_v56  ;;  %v7346_v54 = vpop.f32.mrb[251].mxu1  ;;  %v7408_v22 = vmax.f32 %v7352_v21, 0.0 }
 0x725   :  { %v7406_v29 = vmax.f32 %v7344_v63, 0.0  ;;  %v7347_v31 = vadd.f32 %v7346_v54, %v12810_v59 }
 0x726   :  { %v7409_v60 = vmax.f32 %v7355_v17, 0.0  ;;  %v7425_v55 = vsel %vm5244_vm4, %v7408_v22, 0.0 }
 0x727   :  { %v7407_v50 = vmax.f32 %v7347_v31, 0.0  ;;  %v7422_v34 = vsel %vm5244_vm4, %v7406_v29, 0.0 }
 0x728   :  { %v7427_v49 = vsel %vm5244_vm4, %v7409_v60, 0.0 }
 0x729   :  { %v7423_v32 = vsel %vm5244_vm4, %v7407_v50, 0.0  ;;  %v9225_v20 = vpop.f32.mrb[252].mxu1 }
 0x72a   :  { %v7424_v11 = vadd.f32 %v7423_v32, %v7422_v34  ;;  %v7368_v23 = vadd.f32 %v9225_v20, %v7271_v30  ;;  %v7359_v27 = vpop.f32.mrb[253].mxu1 }
 0x72b   :  { %v7360_v2 = vadd.f32 %v7359_v27, %v12820_v19  ;;  %v9226_v56 = vpop.f32.mrb[254].mxu1 }
 0x72c   :  { %v7426_v61 = vadd.f32 %v7425_v55, %v7424_v11  ;;  %v7371_v43 = vadd.f32 %v9226_v56, %v12827_v28  ;;  %v7362_v59 = vpop.f32.mrb[255].mxu1  ;;  %v7412_v41 = vmax.f32 %v7368_v23, 0.0 }
 0x72d   :  { %v7410_v37 = vmax.f32 %v7360_v2, 0.0  ;;  %v7363_v36 = vadd.f32 %v7362_v59, %v12822_v39 }
 0x72e   :  { %v7428_v14 = vadd.f32 %v7427_v49, %v7426_v61  ;;  %v7413_v48 = vmax.f32 %v7371_v43, 0.0  ;;  %v7433_v28 = vsel %vm5244_vm4, %v7412_v41, 0.0 }
 0x72f   :  { %v7429_v8 = vsel %vm5244_vm4, %v7410_v37, 0.0  ;;  %v7411_v30 = vmax.f32 %v7363_v36, 0.0 }
 0x730   :  { %v7430_v62 = vadd.f32 %v7429_v8, %v7428_v14  ;;  %v7435_v4 = vsel %vm5244_vm4, %v7413_v48, 0.0 }
 0x731   :  { %v7431_v52 = vsel %vm5244_vm4, %v7411_v30, 0.0  ;;  %v9229_v19 = vpop.f32.mrb[0].mxu1 }
 0x732   :  { %v7432_v0 = vadd.f32 %v7431_v52, %v7430_v62  ;;  %v7384_v1 = vadd.f32 %v9229_v19, %v7287_v45  ;;  %v7375_v38 = vpop.f32.mrb[1].mxu1 }
 0x733   :  { %v7376_v51 = vadd.f32 %v7375_v38, %v12833_v33  ;;  %v9230_v58 = vpop.f32.mrb[2].mxu1 }
 0x734   :  { %v7434_v26 = vadd.f32 %v7433_v28, %v7432_v0  ;;  %v7387_v39 = vadd.f32 %v9230_v58, %v12841_v24  ;;  %v7378_v42 = vpop.f32.mrb[3].mxu1  ;;  %v7416_v13 = vmax.f32 %v7384_v1, 0.0 }
 0x735   :  { %v7414_v9 = vmax.f32 %v7376_v51, 0.0  ;;  %v7379_v7 = vadd.f32 %v7378_v42, %v12835_v15 }
 0x736   :  { %v7436_v40 = vadd.f32 %v7435_v4, %v7434_v26  ;;  %v7417_v12 = vmax.f32 %v7387_v39, 0.0  ;;  %v7441_v24 = vsel %vm5244_vm4, %v7416_v13, 0.0 }
 0x737   :  { %v7437_v35 = vsel %vm5244_vm4, %v7414_v9, 0.0  ;;  %v7415_v45 = vmax.f32 %v7379_v7, 0.0 }
 0x738   :  { %v7438_v5 = vadd.f32 %v7437_v35, %v7436_v40  ;;  %v7443_v47 = vsel %vm5244_vm4, %v7417_v12, 0.0 }
 0x739   :  { %v7439_v25 = vsel %vm5244_vm4, %v7415_v45, 0.0  ;;  %v9233_v33 = vpop.f32.mrb[4].mxu1 }
 0x73a   :  { %v7440_v3 = vadd.f32 %v7439_v25, %v7438_v5  ;;  %v7400_v44 = vadd.f32 %v9233_v33, %v7303_v18  ;;  %v7391_v6 = vpop.f32.mrb[5].mxu1 }
 0x73b   :  { %v7392_v10 = vadd.f32 %v7391_v6, %v12847_v46  ;;  %v9234_v21 = vpop.f32.mrb[6].mxu1 }
 0x73c   :  { %v7442_v53 = vadd.f32 %v7441_v24, %v7440_v3  ;;  %v7403_v15 = vadd.f32 %v9234_v21, %v12855_v16  ;;  %v7394_v63 = vpop.f32.mrb[7].mxu1  ;;  %v7420_v31 = vmax.f32 %v7400_v44, 0.0 }
 0x73d   :  { %v7418_v17 = vmax.f32 %v7392_v10, 0.0  ;;  %v7395_v54 = vadd.f32 %v7394_v63, %v12849_v57 }
 0x73e   :  { %v7444_v29 = vadd.f32 %v7443_v47, %v7442_v53  ;;  %v7421_v34 = vmax.f32 %v7403_v15, 0.0  ;;  %v7449_v32 = vsel %vm5244_vm4, %v7420_v31, 0.0 }
 0x73f   :  { %v7445_v22 = vsel %vm5244_vm4, %v7418_v17, 0.0  ;;  %v7419_v18 = vmax.f32 %v7395_v54, 0.0 }
 0x740   :  { %v7446_v50 = vadd.f32 %v7445_v22, %v7444_v29  ;;  %v7451_v16 = vsel %vm5244_vm4, %v7421_v34, 0.0 }
 0x741   :  { %v7447_v60 = vsel %vm5244_vm4, %v7419_v18, 0.0 }
 0x742   :  { %v7448_v46 = vadd.f32 %v7447_v60, %v7446_v50 }
 0x744   :  { %v7450_v20 = vadd.f32 %v7449_v32, %v7448_v46 }
 0x746   :  { %v7452_v11 = vadd.f32 %v7451_v16, %v7450_v20 }
 0x748   :  { %v7453_v23 = vmul.f32 0.0625, %v7452_v11 }
 0x74a   :  { %7454 = vst.msk [vmem:[%s12897_s7] sm:$0xff] %vm5244_vm4, %v7453_v23 }

</bundles_post_ra>
